<compile_context>
chip_gen: v5e
topology: v5e:2x2
jax: 0.10.0
libtpu: 0.0.40
codegen_flags: <defaults>
</compile_context>

<pallas_src>
import functools

import numpy as np
import jax
import jax.numpy as jnp
from jax.experimental import pallas as pl
from jax.experimental.pallas import tpu as pltpu

_EPS = 1e-5
_OFF = 128   # lane-aligned offset of the signal inside the padded conv scratch


# ---------------------------------------------------------------------------
# One fused stage:
#   Conv1d('same', stride=1) -> Tanh -> BatchNorm1d(affine=False)
#   -> MaxPool1d(pool, stride=pool)
# BN batch statistics are taken on the full-length tanh output; the affine is
# applied after pooling (exact: max-pool commutes with the monotone BN map).
# ---------------------------------------------------------------------------
def _conv_tanh_bn_pool(x_chans, pad_ref, win_ref, sel_ref, w_ref, b_ref,
                       *, cin, cout, K, pad, pool):
    B, L = x_chans[0].shape
    Lp = L // pool
    Lv = L - pool + 1
    n = float(B * L)

    # -- zero ONLY the two pad margins, then write the input channels once at
    #    the lane-aligned offset _OFF (no full-scratch zero store).
    margin = jnp.zeros((cin * B, _OFF), jnp.float32)
    pad_ref[:, 0:_OFF] = margin
    pad_ref[:, _OFF + L:_OFF + L + _OFF] = margin
    for ci in range(cin):
        pad_ref[ci * B:(ci + 1) * B, _OFF:_OFF + L] = x_chans[ci]

    # -- load each tap window once; reuse across every output channel.
    taps = {}
    for ci in range(cin):
        for k in range(K):
            s = _OFF - pad + k
            taps[(ci, k)] = pad_ref[ci * B:(ci + 1) * B, s:s + L]

    # -- Conv1d (scalar-broadcast MAC, SMEM weights) + Tanh.  Per-channel batch
    #    statistics (biased variance) come from one sum / sum-of-squares pass.
    #    The tanh outputs are stored packed into win_ref so that the pooling
    #    below runs on a single (cout*B, L) tile.
    stats = []
    for co in range(cout):
        acc = None
        for ci in range(cin):
            for k in range(K):
                w = w_ref[(co * cin + ci) * K + k]
                term = w * taps[(ci, k)]
                acc = term if acc is None else acc + term
        t = jnp.tanh(acc + b_ref[co])                                   # (B, L)
        s1 = jnp.sum(jnp.sum(t, axis=1, keepdims=True), axis=0, keepdims=True)
        s2 = jnp.sum(jnp.sum(t * t, axis=1, keepdims=True), axis=0, keepdims=True)
        mean = s1 / n
        inv = jax.lax.rsqrt(s2 / n - mean * mean + _EPS)                # (1, 1)
        stats.append((mean, inv))
        win_ref[co * B:(co + 1) * B, 0:L] = t

    # -- MaxPool1d(pool, stride=pool) on the packed tile: sliding-window max
    #    over the pool offsets, then exact lane decimation on the MXU with the
    #    trace-time 0/1 selection matrix (passed in as a kernel input).
    y = win_ref[:, 0:Lv]
    for k in range(1, pool):
        y = jnp.maximum(y, win_ref[:, k:k + Lv])
    pooled = jnp.dot(y, sel_ref[...], preferred_element_type=jnp.float32)  # (cout*B, Lp)

    # -- BatchNorm applied AFTER pooling (5x / 5x / 2x less elementwise work).
    win_ref[:, 0:Lp] = pooled
    outs = []
    for co in range(cout):
        mean, inv = stats[co]
        outs.append((win_ref[co * B:(co + 1) * B, 0:Lp] - mean) * inv)
    return outs


# ---------------------------------------------------------------------------
# Fully fused encoder kernel
# ---------------------------------------------------------------------------
def _encoder_kernel(x_ref, wc1_ref, bc1_ref, wc2_ref, bc2_ref, wc3_ref, bc3_ref,
                    sel1_ref, sel2_ref, sel3_ref,
                    W1_ref, b1_ref, W23_ref, b23_ref,
                    mu_ref, lv_ref,
                    pad1, win1, pad2, win2, pad3, win3, *, latent_dim):
    h1 = _conv_tanh_bn_pool([x_ref[...]], pad1, win1, sel1_ref, wc1_ref, bc1_ref,
                            cin=1, cout=2, K=5, pad=2, pool=5)   # 2 x (B, 400)
    h2 = _conv_tanh_bn_pool(h1, pad2, win2, sel2_ref, wc2_ref, bc2_ref,
                            cin=2, cout=2, K=5, pad=2, pool=5)   # 2 x (B, 80)
    h3 = _conv_tanh_bn_pool(h2, pad3, win3, sel3_ref, wc3_ref, bc3_ref,
                            cin=2, cout=4, K=3, pad=1, pool=2)   # 4 x (B, 40)

    # MLP head; torch.flatten(start_dim=1) is folded into row blocks of W1.
    Lc = h3[0].shape[1]                                          # 40
    acc = None
    for c in range(len(h3)):
        part = jnp.dot(h3[c], W1_ref[c * Lc:(c + 1) * Lc, :],
                       preferred_element_type=jnp.float32)
        acc = part if acc is None else acc + part
    z1 = acc + b1_ref[...]
    z1 = jnp.where(z1 >= 0.0, z1, 0.1 * z1)                      # LeakyReLU(0.1), per spec

    # Linear(90, 80) @ Linear(80, 2*latent) fused at trace time into W23 / b23.
    mu_ref[...] = (jnp.dot(z1, W23_ref[:, 0:latent_dim],
                           preferred_element_type=jnp.float32)
                   + b23_ref[:, 0:latent_dim])
    lv_ref[...] = jnp.exp(jnp.dot(z1, W23_ref[:, latent_dim:2 * latent_dim],
                                  preferred_element_type=jnp.float32)
                          + b23_ref[:, latent_dim:2 * latent_dim])


def _decimation_matrix(L, pool):
    """sel[i, j] = 1 iff i == pool * j   (shape (L - pool + 1, L // pool))."""
    Lp = L // pool
    sel = np.zeros((L - pool + 1, Lp), np.float32)
    sel[np.arange(Lp) * pool, np.arange(Lp)] = 1.0
    return sel


@functools.partial(jax.jit, static_argnames=("latent_dim",))
def encoder_block_forward(x, params, latent_dim):
    B, cin, L = x.shape
    assert cin == 1 and L == 2000, "Linear(160, 90) pins the input to (B, 1, 2000)"
    f32 = jnp.float32
    x2 = x.reshape(B, L).astype(f32)

    wc1 = params["w1c"].astype(f32).reshape(-1)   # (2*1*5,)
    wc2 = params["w2c"].astype(f32).reshape(-1)   # (2*2*5,)
    wc3 = params["w3c"].astype(f32).reshape(-1)   # (4*2*3,)
    bc1 = params["b1c"].astype(f32)
    bc2 = params["b2c"].astype(f32)
    bc3 = params["b3c"].astype(f32)

    # Trace-time fusion of the two trailing (nonlinearity-free) linear layers.
    W3 = params["W3"].astype(f32)
    W23 = params["W2"].astype(f32) @ W3                         # (90, 2*latent)
    b23 = params["b2"].astype(f32) @ W3 + params["b3"].astype(f32)

    # 0/1 lane-decimation matrices for the three max-pools (trace-time consts).
    sel1 = jnp.asarray(_decimation_matrix(L, 5))                # (1996, 400)
    sel2 = jnp.asarray(_decimation_matrix(L // 5, 5))           # (396, 80)
    sel3 = jnp.asarray(_decimation_matrix(L // 25, 2))          # (79, 40)

    vmem = pl.BlockSpec(memory_space=pltpu.MemorySpace.VMEM)
    smem = pl.BlockSpec(memory_space=pltpu.MemorySpace.SMEM)
    L1, L2, L3 = L, L // 5, L // 25                             # 2000, 400, 80
    kernel = functools.partial(_encoder_kernel, latent_dim=latent_dim)

    # TODO(synk): add a batch grid axis with dimension_semantics=("parallel",)
    # and batch-tiled BlockSpecs (plus cross-tile BN stats) once B grows.
    mu, lv = pl.pallas_call(
        kernel,
        out_shape=(jax.ShapeDtypeStruct((B, latent_dim), f32),
                   jax.ShapeDtypeStruct((B, latent_dim), f32)),
        in_specs=[vmem, smem, smem, smem, smem, smem, smem,
                  vmem, vmem, vmem, vmem, vmem, vmem, vmem],
        out_specs=(vmem, vmem),
        scratch_shapes=[
            pltpu.VMEM((1 * B, _OFF + L1 + _OFF), f32),   # pad scratch, stage 1
            pltpu.VMEM((2 * B, L1), f32),                 # packed win scratch, stage 1
            pltpu.VMEM((2 * B, _OFF + L2 + _OFF), f32),   # pad scratch, stage 2
            pltpu.VMEM((2 * B, L2), f32),                 # packed win scratch, stage 2
            pltpu.VMEM((2 * B, _OFF + L3 + _OFF), f32),   # pad scratch, stage 3
            pltpu.VMEM((4 * B, L3), f32),                 # packed win scratch, stage 3
        ],
        compiler_params=pltpu.CompilerParams(
            # ~4.5 MiB of resident operands + scratch; well below this limit,
            # and the limit itself is valid on v5e/v6e/v7x alike.
            vmem_limit_bytes=32 * 1024 * 1024),
    )(x2, wc1, bc1, wc2, bc2, wc3, bc3, sel1, sel2, sel3,
      params["W1"].astype(f32), params["b1"].astype(f32), W23, b23)
    return mu, lv


# ---------------------------------------------------------------------------
# Deterministic parameter init (shapes from EncoderBlock.__init__)
# ---------------------------------------------------------------------------
def init_params(key, latent_dim):
    ks = jax.random.split(key, 12)

    def u(k, shape, fan_in):
        bound = 1.0 / float(np.sqrt(fan_in))
        return jax.random.uniform(k, shape, jnp.float32, -bound, bound)

    return dict(
        w1c=u(ks[0], (2, 1, 5), 5),   b1c=u(ks[1], (2,), 5),
        w2c=u(ks[2], (2, 2, 5), 10),  b2c=u(ks[3], (2,), 10),
        w3c=u(ks[4], (4, 2, 3), 6),   b3c=u(ks[5], (4,), 6),
        W1=u(ks[6], (160, 90), 160),  b1=u(ks[7], (1, 90), 160),
        W2=u(ks[8], (90, 80), 90),    b2=u(ks[9], (1, 80), 90),
        W3=u(ks[10], (80, 2 * latent_dim), 80),
        b3=u(ks[11], (1, 2 * latent_dim), 80),
    )


# ---------------------------------------------------------------------------
# Pure-JAX reference (mirrors the PyTorch forward, kept UNfused) for the check
# ---------------------------------------------------------------------------
def reference_forward(x, params, latent_dim):
    def conv1d(x, w, b, pad):
        out = jax.lax.conv_general_dilated(
            x, w, window_strides=(1,), padding=[(pad, pad)],
            dimension_numbers=("NCH", "OIH", "NCH"))
        return out + b[None, :, None]

    def bn(x):
        m = jnp.mean(x, axis=(0, 2), keepdims=True)
        v = jnp.mean((x - m) ** 2, axis=(0, 2), keepdims=True)
        return (x - m) / jnp.sqrt(v + _EPS)

    def mp(x, p):
        B, C, L = x.shape
        return jnp.max(x.reshape(B, C, L // p, p), axis=-1)

    h = mp(bn(jnp.tanh(conv1d(x, params["w1c"], params["b1c"], 2))), 5)
    h = mp(bn(jnp.tanh(conv1d(h, params["w2c"], params["b2c"], 2))), 5)
    h = mp(bn(jnp.tanh(conv1d(h, params["w3c"], params["b3c"], 1))), 2)
    flat = h.reshape(h.shape[0], -1)
    z1 = flat @ params["W1"] + params["b1"]
    z1 = jnp.where(z1 >= 0.0, z1, 0.1 * z1)
    z2 = z1 @ params["W2"] + params["b2"]
    s = z2 @ params["W3"] + params["b3"]
    return s[:, :latent_dim], jnp.exp(s[:, latent_dim:])


if __name__ == "__main__":
    latent_dim = 8
    B = 2

    key = jax.random.PRNGKey(0)
    kx, kp = jax.random.split(key)
    x = jax.random.normal(kx, (B, 1, 2000), dtype=jnp.float32)
    params = init_params(kp, latent_dim)

    mu, log_var2 = encoder_block_forward(x, params, latent_dim=latent_dim)
    jax.block_until_ready((mu, log_var2))

    assert mu.shape == (B, latent_dim)
    assert log_var2.shape == (B, latent_dim)

    mu_ref, lv_ref = reference_forward(x, params, latent_dim)
    # 2e-3: headroom for the trace-time W2@W3 fusion and single-pass BN stats
    # (observed differences are ~1e-5).
    np.testing.assert_allclose(np.asarray(mu), np.asarray(mu_ref),
                               rtol=2e-3, atol=2e-3)
    np.testing.assert_allclose(np.asarray(log_var2), np.asarray(lv_ref),
                               rtol=2e-3, atol=2e-3)

    print("KERNEL_OK")
</pallas_src>

<mosaic_0001>
module attributes {stable_mosaic.version = 11 : i64} {
  func.func @_encoder_kernel(%arg0: memref<2x2000xf32, #tpu.memory_space<vmem>>, %arg1: memref<10xf32, #tpu.memory_space<smem>>, %arg2: memref<2xf32, #tpu.memory_space<smem>>, %arg3: memref<20xf32, #tpu.memory_space<smem>>, %arg4: memref<2xf32, #tpu.memory_space<smem>>, %arg5: memref<24xf32, #tpu.memory_space<smem>>, %arg6: memref<4xf32, #tpu.memory_space<smem>>, %arg7: memref<1996x400xf32, #tpu.memory_space<vmem>>, %arg8: memref<396x80xf32, #tpu.memory_space<vmem>>, %arg9: memref<79x40xf32, #tpu.memory_space<vmem>>, %arg10: memref<160x90xf32, #tpu.memory_space<vmem>>, %arg11: memref<1x90xf32, #tpu.memory_space<vmem>>, %arg12: memref<90x16xf32, #tpu.memory_space<vmem>>, %arg13: memref<1x16xf32, #tpu.memory_space<vmem>>, %arg14: memref<2x8xf32, #tpu.memory_space<vmem>>, %arg15: memref<2x8xf32, #tpu.memory_space<vmem>>, %arg16: memref<2x2256xf32, #tpu.memory_space<vmem>>, %arg17: memref<4x2000xf32, #tpu.memory_space<vmem>>, %arg18: memref<4x656xf32, #tpu.memory_space<vmem>>, %arg19: memref<4x400xf32, #tpu.memory_space<vmem>>, %arg20: memref<4x336xf32, #tpu.memory_space<vmem>>, %arg21: memref<8x80xf32, #tpu.memory_space<vmem>>) attributes {dimension_semantics = [], scalar_prefetch = 0 : i64, scratch_operands = 6 : i64, tpu.core_type = #tpu.core_type<tc>} {
    %c0 = arith.constant 0 : index
    %c0_0 = arith.constant 0 : index
    %0 = vector.load %arg0[%c0, %c0_0] : memref<2x2000xf32, #tpu.memory_space<vmem>>, vector<2x2000xf32>
    %cst = arith.constant 0.000000e+00 : f32
    %1 = vector.broadcast %cst : f32 to vector<2x128xf32>
    %c0_1 = arith.constant 0 : index
    %c0_2 = arith.constant 0 : index
    %2 = vector.load %arg16[%c0_1, %c0_2] : memref<2x2256xf32, #tpu.memory_space<vmem>>, vector<2x128xf32>
    tpu.vector_store %arg16[%c0_1, %c0_2], %1 {strides = array<i32>} : memref<2x2256xf32, #tpu.memory_space<vmem>>, vector<2x128xf32>,
    %c0_3 = arith.constant 0 : index
    %c2128 = arith.constant 2128 : index
    %3 = vector.load %arg16[%c0_3, %c2128] : memref<2x2256xf32, #tpu.memory_space<vmem>>, vector<2x128xf32>
    tpu.vector_store %arg16[%c0_3, %c2128], %1 {strides = array<i32>} : memref<2x2256xf32, #tpu.memory_space<vmem>>, vector<2x128xf32>,
    %c0_4 = arith.constant 0 : index
    %c128 = arith.constant 128 : index
    %4 = vector.load %arg16[%c0_4, %c128] : memref<2x2256xf32, #tpu.memory_space<vmem>>, vector<2x2000xf32>
    tpu.vector_store %arg16[%c0_4, %c128], %0 {strides = array<i32>} : memref<2x2256xf32, #tpu.memory_space<vmem>>, vector<2x2000xf32>,
    %c0_5 = arith.constant 0 : index
    %c126 = arith.constant 126 : index
    %5 = vector.load %arg16[%c0_5, %c126] : memref<2x2256xf32, #tpu.memory_space<vmem>>, vector<2x2000xf32>
    %c0_6 = arith.constant 0 : index
    %c127 = arith.constant 127 : index
    %6 = vector.load %arg16[%c0_6, %c127] : memref<2x2256xf32, #tpu.memory_space<vmem>>, vector<2x2000xf32>
    %c0_7 = arith.constant 0 : index
    %c128_8 = arith.constant 128 : index
    %7 = vector.load %arg16[%c0_7, %c128_8] : memref<2x2256xf32, #tpu.memory_space<vmem>>, vector<2x2000xf32>
    %c0_9 = arith.constant 0 : index
    %c129 = arith.constant 129 : index
    %8 = vector.load %arg16[%c0_9, %c129] : memref<2x2256xf32, #tpu.memory_space<vmem>>, vector<2x2000xf32>
    %c0_10 = arith.constant 0 : index
    %c130 = arith.constant 130 : index
    %9 = vector.load %arg16[%c0_10, %c130] : memref<2x2256xf32, #tpu.memory_space<vmem>>, vector<2x2000xf32>
    %c0_11 = arith.constant 0 : index
    %10 = memref.load %arg1[%c0_11] : memref<10xf32, #tpu.memory_space<smem>>
    %11 = vector.broadcast %10 : f32 to vector<2x2000xf32>
    %12 = arith.mulf %11, %5 : vector<2x2000xf32>
    %c1 = arith.constant 1 : index
    %13 = memref.load %arg1[%c1] : memref<10xf32, #tpu.memory_space<smem>>
    %14 = vector.broadcast %13 : f32 to vector<2x2000xf32>
    %15 = arith.mulf %14, %6 : vector<2x2000xf32>
    %16 = arith.addf %12, %15 : vector<2x2000xf32>
    %c2 = arith.constant 2 : index
    %17 = memref.load %arg1[%c2] : memref<10xf32, #tpu.memory_space<smem>>
    %18 = vector.broadcast %17 : f32 to vector<2x2000xf32>
    %19 = arith.mulf %18, %7 : vector<2x2000xf32>
    %20 = arith.addf %16, %19 : vector<2x2000xf32>
    %c3 = arith.constant 3 : index
    %21 = memref.load %arg1[%c3] : memref<10xf32, #tpu.memory_space<smem>>
    %22 = vector.broadcast %21 : f32 to vector<2x2000xf32>
    %23 = arith.mulf %22, %8 : vector<2x2000xf32>
    %24 = arith.addf %20, %23 : vector<2x2000xf32>
    %c4 = arith.constant 4 : index
    %25 = memref.load %arg1[%c4] : memref<10xf32, #tpu.memory_space<smem>>
    %26 = vector.broadcast %25 : f32 to vector<2x2000xf32>
    %27 = arith.mulf %26, %9 : vector<2x2000xf32>
    %28 = arith.addf %24, %27 : vector<2x2000xf32>
    %c0_12 = arith.constant 0 : index
    %29 = memref.load %arg2[%c0_12] : memref<2xf32, #tpu.memory_space<smem>>
    %30 = vector.broadcast %29 : f32 to vector<2x2000xf32>
    %31 = arith.addf %28, %30 : vector<2x2000xf32>
    %32 = math.tanh %31 : vector<2x2000xf32>
    %cst_13 = arith.constant dense<0.000000e+00> : vector<2xf32>
    %33 = vector.multi_reduction <add>, %32, %cst_13 [1] : vector<2x2000xf32> to vector<2xf32>
    %34 = vector.shape_cast %33 : vector<2xf32> to vector<2x1xf32>
    %cst_14 = arith.constant dense<0.000000e+00> : vector<1xf32>
    %35 = vector.multi_reduction <add>, %34, %cst_14 [0] : vector<2x1xf32> to vector<1xf32>
    %36 = vector.shape_cast %35 : vector<1xf32> to vector<1x1xf32>
    %37 = arith.mulf %32, %32 : vector<2x2000xf32>
    %cst_15 = arith.constant dense<0.000000e+00> : vector<2xf32>
    %38 = vector.multi_reduction <add>, %37, %cst_15 [1] : vector<2x2000xf32> to vector<2xf32>
    %39 = vector.shape_cast %38 : vector<2xf32> to vector<2x1xf32>
    %cst_16 = arith.constant dense<0.000000e+00> : vector<1xf32>
    %40 = vector.multi_reduction <add>, %39, %cst_16 [0] : vector<2x1xf32> to vector<1xf32>
    %41 = vector.shape_cast %40 : vector<1xf32> to vector<1x1xf32>
    %cst_17 = arith.constant 4.000000e+03 : f32
    %42 = vector.broadcast %cst_17 : f32 to vector<1x1xf32>
    %43 = arith.divf %36, %42 : vector<1x1xf32>
    %cst_18 = arith.constant 4.000000e+03 : f32
    %44 = vector.broadcast %cst_18 : f32 to vector<1x1xf32>
    %45 = arith.divf %41, %44 : vector<1x1xf32>
    %46 = arith.mulf %43, %43 : vector<1x1xf32>
    %47 = arith.subf %45, %46 : vector<1x1xf32>
    %cst_19 = arith.constant 9.99999974E-6 : f32
    %48 = vector.broadcast %cst_19 : f32 to vector<1x1xf32>
    %49 = arith.addf %47, %48 : vector<1x1xf32>
    %50 = math.rsqrt %49 : vector<1x1xf32>
    %c0_20 = arith.constant 0 : index
    %c0_21 = arith.constant 0 : index
    %51 = vector.load %arg17[%c0_20, %c0_21] : memref<4x2000xf32, #tpu.memory_space<vmem>>, vector<2x2000xf32>
    tpu.vector_store %arg17[%c0_20, %c0_21], %32 {strides = array<i32>} : memref<4x2000xf32, #tpu.memory_space<vmem>>, vector<2x2000xf32>,
    %c5 = arith.constant 5 : index
    %52 = memref.load %arg1[%c5] : memref<10xf32, #tpu.memory_space<smem>>
    %53 = vector.broadcast %52 : f32 to vector<2x2000xf32>
    %54 = arith.mulf %53, %5 : vector<2x2000xf32>
    %c6 = arith.constant 6 : index
    %55 = memref.load %arg1[%c6] : memref<10xf32, #tpu.memory_space<smem>>
    %56 = vector.broadcast %55 : f32 to vector<2x2000xf32>
    %57 = arith.mulf %56, %6 : vector<2x2000xf32>
    %58 = arith.addf %54, %57 : vector<2x2000xf32>
    %c7 = arith.constant 7 : index
    %59 = memref.load %arg1[%c7] : memref<10xf32, #tpu.memory_space<smem>>
    %60 = vector.broadcast %59 : f32 to vector<2x2000xf32>
    %61 = arith.mulf %60, %7 : vector<2x2000xf32>
    %62 = arith.addf %58, %61 : vector<2x2000xf32>
    %c8 = arith.constant 8 : index
    %63 = memref.load %arg1[%c8] : memref<10xf32, #tpu.memory_space<smem>>
    %64 = vector.broadcast %63 : f32 to vector<2x2000xf32>
    %65 = arith.mulf %64, %8 : vector<2x2000xf32>
    %66 = arith.addf %62, %65 : vector<2x2000xf32>
    %c9 = arith.constant 9 : index
    %67 = memref.load %arg1[%c9] : memref<10xf32, #tpu.memory_space<smem>>
    %68 = vector.broadcast %67 : f32 to vector<2x2000xf32>
    %69 = arith.mulf %68, %9 : vector<2x2000xf32>
    %70 = arith.addf %66, %69 : vector<2x2000xf32>
    %c1_22 = arith.constant 1 : index
    %71 = memref.load %arg2[%c1_22] : memref<2xf32, #tpu.memory_space<smem>>
    %72 = vector.broadcast %71 : f32 to vector<2x2000xf32>
    %73 = arith.addf %70, %72 : vector<2x2000xf32>
    %74 = math.tanh %73 : vector<2x2000xf32>
    %cst_23 = arith.constant dense<0.000000e+00> : vector<2xf32>
    %75 = vector.multi_reduction <add>, %74, %cst_23 [1] : vector<2x2000xf32> to vector<2xf32>
    %76 = vector.shape_cast %75 : vector<2xf32> to vector<2x1xf32>
    %cst_24 = arith.constant dense<0.000000e+00> : vector<1xf32>
    %77 = vector.multi_reduction <add>, %76, %cst_24 [0] : vector<2x1xf32> to vector<1xf32>
    %78 = vector.shape_cast %77 : vector<1xf32> to vector<1x1xf32>
    %79 = arith.mulf %74, %74 : vector<2x2000xf32>
    %cst_25 = arith.constant dense<0.000000e+00> : vector<2xf32>
    %80 = vector.multi_reduction <add>, %79, %cst_25 [1] : vector<2x2000xf32> to vector<2xf32>
    %81 = vector.shape_cast %80 : vector<2xf32> to vector<2x1xf32>
    %cst_26 = arith.constant dense<0.000000e+00> : vector<1xf32>
    %82 = vector.multi_reduction <add>, %81, %cst_26 [0] : vector<2x1xf32> to vector<1xf32>
    %83 = vector.shape_cast %82 : vector<1xf32> to vector<1x1xf32>
    %cst_27 = arith.constant 4.000000e+03 : f32
    %84 = vector.broadcast %cst_27 : f32 to vector<1x1xf32>
    %85 = arith.divf %78, %84 : vector<1x1xf32>
    %cst_28 = arith.constant 4.000000e+03 : f32
    %86 = vector.broadcast %cst_28 : f32 to vector<1x1xf32>
    %87 = arith.divf %83, %86 : vector<1x1xf32>
    %88 = arith.mulf %85, %85 : vector<1x1xf32>
    %89 = arith.subf %87, %88 : vector<1x1xf32>
    %cst_29 = arith.constant 9.99999974E-6 : f32
    %90 = vector.broadcast %cst_29 : f32 to vector<1x1xf32>
    %91 = arith.addf %89, %90 : vector<1x1xf32>
    %92 = math.rsqrt %91 : vector<1x1xf32>
    %c2_30 = arith.constant 2 : index
    %c0_31 = arith.constant 0 : index
    %93 = vector.load %arg17[%c2_30, %c0_31] : memref<4x2000xf32, #tpu.memory_space<vmem>>, vector<2x2000xf32>
    tpu.vector_store %arg17[%c2_30, %c0_31], %74 {strides = array<i32>} : memref<4x2000xf32, #tpu.memory_space<vmem>>, vector<2x2000xf32>,
    %c0_32 = arith.constant 0 : index
    %c0_33 = arith.constant 0 : index
    %94 = vector.load %arg17[%c0_32, %c0_33] : memref<4x2000xf32, #tpu.memory_space<vmem>>, vector<4x1996xf32>
    %c0_34 = arith.constant 0 : index
    %c1_35 = arith.constant 1 : index
    %95 = vector.load %arg17[%c0_34, %c1_35] : memref<4x2000xf32, #tpu.memory_space<vmem>>, vector<4x1996xf32>
    %96 = arith.maximumf %94, %95 : vector<4x1996xf32>
    %c0_36 = arith.constant 0 : index
    %c2_37 = arith.constant 2 : index
    %97 = vector.load %arg17[%c0_36, %c2_37] : memref<4x2000xf32, #tpu.memory_space<vmem>>, vector<4x1996xf32>
    %98 = arith.maximumf %96, %97 : vector<4x1996xf32>
    %c0_38 = arith.constant 0 : index
    %c3_39 = arith.constant 3 : index
    %99 = vector.load %arg17[%c0_38, %c3_39] : memref<4x2000xf32, #tpu.memory_space<vmem>>, vector<4x1996xf32>
    %100 = arith.maximumf %98, %99 : vector<4x1996xf32>
    %c0_40 = arith.constant 0 : index
    %c4_41 = arith.constant 4 : index
    %101 = vector.load %arg17[%c0_40, %c4_41] : memref<4x2000xf32, #tpu.memory_space<vmem>>, vector<4x1996xf32>
    %102 = arith.maximumf %100, %101 : vector<4x1996xf32>
    %c0_42 = arith.constant 0 : index
    %c0_43 = arith.constant 0 : index
    %103 = vector.load %arg7[%c0_42, %c0_43] : memref<1996x400xf32, #tpu.memory_space<vmem>>, vector<1996x400xf32>
    %cst_44 = arith.constant dense<0.000000e+00> : vector<4x400xf32>
    %104 = tpu.matmul %102, %103, %cst_44 {dimension_numbers = #tpu.dot_dimension_numbers<[1], [0], [0], [1], [0, 0, 1, 1], [], []>} : vector<4x1996xf32>, vector<1996x400xf32>, vector<4x400xf32> -> vector<4x400xf32>
    %c0_45 = arith.constant 0 : index
    %c0_46 = arith.constant 0 : index
    %105 = vector.load %arg17[%c0_45, %c0_46] : memref<4x2000xf32, #tpu.memory_space<vmem>>, vector<4x400xf32>
    tpu.vector_store %arg17[%c0_45, %c0_46], %104 {strides = array<i32>} : memref<4x2000xf32, #tpu.memory_space<vmem>>, vector<4x400xf32>,
    %c0_47 = arith.constant 0 : index
    %c0_48 = arith.constant 0 : index
    %106 = vector.load %arg17[%c0_47, %c0_48] : memref<4x2000xf32, #tpu.memory_space<vmem>>, vector<2x400xf32>
    %107 = vector.broadcast %43 : vector<1x1xf32> to vector<2x400xf32>
    %108 = arith.subf %106, %107 : vector<2x400xf32>
    %109 = vector.broadcast %50 : vector<1x1xf32> to vector<2x400xf32>
    %110 = arith.mulf %108, %109 : vector<2x400xf32>
    %c2_49 = arith.constant 2 : index
    %c0_50 = arith.constant 0 : index
    %111 = vector.load %arg17[%c2_49, %c0_50] : memref<4x2000xf32, #tpu.memory_space<vmem>>, vector<2x400xf32>
    %112 = vector.broadcast %85 : vector<1x1xf32> to vector<2x400xf32>
    %113 = arith.subf %111, %112 : vector<2x400xf32>
    %114 = vector.broadcast %92 : vector<1x1xf32> to vector<2x400xf32>
    %115 = arith.mulf %113, %114 : vector<2x400xf32>
    %cst_51 = arith.constant 0.000000e+00 : f32
    %116 = vector.broadcast %cst_51 : f32 to vector<4x128xf32>
    %c0_52 = arith.constant 0 : index
    %c0_53 = arith.constant 0 : index
    %117 = vector.load %arg18[%c0_52, %c0_53] : memref<4x656xf32, #tpu.memory_space<vmem>>, vector<4x128xf32>
    tpu.vector_store %arg18[%c0_52, %c0_53], %116 {strides = array<i32>} : memref<4x656xf32, #tpu.memory_space<vmem>>, vector<4x128xf32>,
    %c0_54 = arith.constant 0 : index
    %c528 = arith.constant 528 : index
    %118 = vector.load %arg18[%c0_54, %c528] : memref<4x656xf32, #tpu.memory_space<vmem>>, vector<4x128xf32>
    tpu.vector_store %arg18[%c0_54, %c528], %116 {strides = array<i32>} : memref<4x656xf32, #tpu.memory_space<vmem>>, vector<4x128xf32>,
    %c0_55 = arith.constant 0 : index
    %c128_56 = arith.constant 128 : index
    %119 = vector.load %arg18[%c0_55, %c128_56] : memref<4x656xf32, #tpu.memory_space<vmem>>, vector<2x400xf32>
    tpu.vector_store %arg18[%c0_55, %c128_56], %110 {strides = array<i32>} : memref<4x656xf32, #tpu.memory_space<vmem>>, vector<2x400xf32>,
    %c2_57 = arith.constant 2 : index
    %c128_58 = arith.constant 128 : index
    %120 = vector.load %arg18[%c2_57, %c128_58] : memref<4x656xf32, #tpu.memory_space<vmem>>, vector<2x400xf32>
    tpu.vector_store %arg18[%c2_57, %c128_58], %115 {strides = array<i32>} : memref<4x656xf32, #tpu.memory_space<vmem>>, vector<2x400xf32>,
    %c0_59 = arith.constant 0 : index
    %c126_60 = arith.constant 126 : index
    %121 = vector.load %arg18[%c0_59, %c126_60] : memref<4x656xf32, #tpu.memory_space<vmem>>, vector<2x400xf32>
    %c0_61 = arith.constant 0 : index
    %c127_62 = arith.constant 127 : index
    %122 = vector.load %arg18[%c0_61, %c127_62] : memref<4x656xf32, #tpu.memory_space<vmem>>, vector<2x400xf32>
    %c0_63 = arith.constant 0 : index
    %c128_64 = arith.constant 128 : index
    %123 = vector.load %arg18[%c0_63, %c128_64] : memref<4x656xf32, #tpu.memory_space<vmem>>, vector<2x400xf32>
    %c0_65 = arith.constant 0 : index
    %c129_66 = arith.constant 129 : index
    %124 = vector.load %arg18[%c0_65, %c129_66] : memref<4x656xf32, #tpu.memory_space<vmem>>, vector<2x400xf32>
    %c0_67 = arith.constant 0 : index
    %c130_68 = arith.constant 130 : index
    %125 = vector.load %arg18[%c0_67, %c130_68] : memref<4x656xf32, #tpu.memory_space<vmem>>, vector<2x400xf32>
    %c2_69 = arith.constant 2 : index
    %c126_70 = arith.constant 126 : index
    %126 = vector.load %arg18[%c2_69, %c126_70] : memref<4x656xf32, #tpu.memory_space<vmem>>, vector<2x400xf32>
    %c2_71 = arith.constant 2 : index
    %c127_72 = arith.constant 127 : index
    %127 = vector.load %arg18[%c2_71, %c127_72] : memref<4x656xf32, #tpu.memory_space<vmem>>, vector<2x400xf32>
    %c2_73 = arith.constant 2 : index
    %c128_74 = arith.constant 128 : index
    %128 = vector.load %arg18[%c2_73, %c128_74] : memref<4x656xf32, #tpu.memory_space<vmem>>, vector<2x400xf32>
    %c2_75 = arith.constant 2 : index
    %c129_76 = arith.constant 129 : index
    %129 = vector.load %arg18[%c2_75, %c129_76] : memref<4x656xf32, #tpu.memory_space<vmem>>, vector<2x400xf32>
    %c2_77 = arith.constant 2 : index
    %c130_78 = arith.constant 130 : index
    %130 = vector.load %arg18[%c2_77, %c130_78] : memref<4x656xf32, #tpu.memory_space<vmem>>, vector<2x400xf32>
    %c0_79 = arith.constant 0 : index
    %131 = memref.load %arg3[%c0_79] : memref<20xf32, #tpu.memory_space<smem>>
    %132 = vector.broadcast %131 : f32 to vector<2x400xf32>
    %133 = arith.mulf %132, %121 : vector<2x400xf32>
    %c1_80 = arith.constant 1 : index
    %134 = memref.load %arg3[%c1_80] : memref<20xf32, #tpu.memory_space<smem>>
    %135 = vector.broadcast %134 : f32 to vector<2x400xf32>
    %136 = arith.mulf %135, %122 : vector<2x400xf32>
    %137 = arith.addf %133, %136 : vector<2x400xf32>
    %c2_81 = arith.constant 2 : index
    %138 = memref.load %arg3[%c2_81] : memref<20xf32, #tpu.memory_space<smem>>
    %139 = vector.broadcast %138 : f32 to vector<2x400xf32>
    %140 = arith.mulf %139, %123 : vector<2x400xf32>
    %141 = arith.addf %137, %140 : vector<2x400xf32>
    %c3_82 = arith.constant 3 : index
    %142 = memref.load %arg3[%c3_82] : memref<20xf32, #tpu.memory_space<smem>>
    %143 = vector.broadcast %142 : f32 to vector<2x400xf32>
    %144 = arith.mulf %143, %124 : vector<2x400xf32>
    %145 = arith.addf %141, %144 : vector<2x400xf32>
    %c4_83 = arith.constant 4 : index
    %146 = memref.load %arg3[%c4_83] : memref<20xf32, #tpu.memory_space<smem>>
    %147 = vector.broadcast %146 : f32 to vector<2x400xf32>
    %148 = arith.mulf %147, %125 : vector<2x400xf32>
    %149 = arith.addf %145, %148 : vector<2x400xf32>
    %c5_84 = arith.constant 5 : index
    %150 = memref.load %arg3[%c5_84] : memref<20xf32, #tpu.memory_space<smem>>
    %151 = vector.broadcast %150 : f32 to vector<2x400xf32>
    %152 = arith.mulf %151, %126 : vector<2x400xf32>
    %153 = arith.addf %149, %152 : vector<2x400xf32>
    %c6_85 = arith.constant 6 : index
    %154 = memref.load %arg3[%c6_85] : memref<20xf32, #tpu.memory_space<smem>>
    %155 = vector.broadcast %154 : f32 to vector<2x400xf32>
    %156 = arith.mulf %155, %127 : vector<2x400xf32>
    %157 = arith.addf %153, %156 : vector<2x400xf32>
    %c7_86 = arith.constant 7 : index
    %158 = memref.load %arg3[%c7_86] : memref<20xf32, #tpu.memory_space<smem>>
    %159 = vector.broadcast %158 : f32 to vector<2x400xf32>
    %160 = arith.mulf %159, %128 : vector<2x400xf32>
    %161 = arith.addf %157, %160 : vector<2x400xf32>
    %c8_87 = arith.constant 8 : index
    %162 = memref.load %arg3[%c8_87] : memref<20xf32, #tpu.memory_space<smem>>
    %163 = vector.broadcast %162 : f32 to vector<2x400xf32>
    %164 = arith.mulf %163, %129 : vector<2x400xf32>
    %165 = arith.addf %161, %164 : vector<2x400xf32>
    %c9_88 = arith.constant 9 : index
    %166 = memref.load %arg3[%c9_88] : memref<20xf32, #tpu.memory_space<smem>>
    %167 = vector.broadcast %166 : f32 to vector<2x400xf32>
    %168 = arith.mulf %167, %130 : vector<2x400xf32>
    %169 = arith.addf %165, %168 : vector<2x400xf32>
    %c0_89 = arith.constant 0 : index
    %170 = memref.load %arg4[%c0_89] : memref<2xf32, #tpu.memory_space<smem>>
    %171 = vector.broadcast %170 : f32 to vector<2x400xf32>
    %172 = arith.addf %169, %171 : vector<2x400xf32>
    %173 = math.tanh %172 : vector<2x400xf32>
    %cst_90 = arith.constant dense<0.000000e+00> : vector<2xf32>
    %174 = vector.multi_reduction <add>, %173, %cst_90 [1] : vector<2x400xf32> to vector<2xf32>
    %175 = vector.shape_cast %174 : vector<2xf32> to vector<2x1xf32>
    %cst_91 = arith.constant dense<0.000000e+00> : vector<1xf32>
    %176 = vector.multi_reduction <add>, %175, %cst_91 [0] : vector<2x1xf32> to vector<1xf32>
    %177 = vector.shape_cast %176 : vector<1xf32> to vector<1x1xf32>
    %178 = arith.mulf %173, %173 : vector<2x400xf32>
    %cst_92 = arith.constant dense<0.000000e+00> : vector<2xf32>
    %179 = vector.multi_reduction <add>, %178, %cst_92 [1] : vector<2x400xf32> to vector<2xf32>
    %180 = vector.shape_cast %179 : vector<2xf32> to vector<2x1xf32>
    %cst_93 = arith.constant dense<0.000000e+00> : vector<1xf32>
    %181 = vector.multi_reduction <add>, %180, %cst_93 [0] : vector<2x1xf32> to vector<1xf32>
    %182 = vector.shape_cast %181 : vector<1xf32> to vector<1x1xf32>
    %cst_94 = arith.constant 8.000000e+02 : f32
    %183 = vector.broadcast %cst_94 : f32 to vector<1x1xf32>
    %184 = arith.divf %177, %183 : vector<1x1xf32>
    %cst_95 = arith.constant 8.000000e+02 : f32
    %185 = vector.broadcast %cst_95 : f32 to vector<1x1xf32>
    %186 = arith.divf %182, %185 : vector<1x1xf32>
    %187 = arith.mulf %184, %184 : vector<1x1xf32>
    %188 = arith.subf %186, %187 : vector<1x1xf32>
    %cst_96 = arith.constant 9.99999974E-6 : f32
    %189 = vector.broadcast %cst_96 : f32 to vector<1x1xf32>
    %190 = arith.addf %188, %189 : vector<1x1xf32>
    %191 = math.rsqrt %190 : vector<1x1xf32>
    %c0_97 = arith.constant 0 : index
    %c0_98 = arith.constant 0 : index
    %192 = vector.load %arg19[%c0_97, %c0_98] : memref<4x400xf32, #tpu.memory_space<vmem>>, vector<2x400xf32>
    tpu.vector_store %arg19[%c0_97, %c0_98], %173 {strides = array<i32>} : memref<4x400xf32, #tpu.memory_space<vmem>>, vector<2x400xf32>,
    %c10 = arith.constant 10 : index
    %193 = memref.load %arg3[%c10] : memref<20xf32, #tpu.memory_space<smem>>
    %194 = vector.broadcast %193 : f32 to vector<2x400xf32>
    %195 = arith.mulf %194, %121 : vector<2x400xf32>
    %c11 = arith.constant 11 : index
    %196 = memref.load %arg3[%c11] : memref<20xf32, #tpu.memory_space<smem>>
    %197 = vector.broadcast %196 : f32 to vector<2x400xf32>
    %198 = arith.mulf %197, %122 : vector<2x400xf32>
    %199 = arith.addf %195, %198 : vector<2x400xf32>
    %c12 = arith.constant 12 : index
    %200 = memref.load %arg3[%c12] : memref<20xf32, #tpu.memory_space<smem>>
    %201 = vector.broadcast %200 : f32 to vector<2x400xf32>
    %202 = arith.mulf %201, %123 : vector<2x400xf32>
    %203 = arith.addf %199, %202 : vector<2x400xf32>
    %c13 = arith.constant 13 : index
    %204 = memref.load %arg3[%c13] : memref<20xf32, #tpu.memory_space<smem>>
    %205 = vector.broadcast %204 : f32 to vector<2x400xf32>
    %206 = arith.mulf %205, %124 : vector<2x400xf32>
    %207 = arith.addf %203, %206 : vector<2x400xf32>
    %c14 = arith.constant 14 : index
    %208 = memref.load %arg3[%c14] : memref<20xf32, #tpu.memory_space<smem>>
    %209 = vector.broadcast %208 : f32 to vector<2x400xf32>
    %210 = arith.mulf %209, %125 : vector<2x400xf32>
    %211 = arith.addf %207, %210 : vector<2x400xf32>
    %c15 = arith.constant 15 : index
    %212 = memref.load %arg3[%c15] : memref<20xf32, #tpu.memory_space<smem>>
    %213 = vector.broadcast %212 : f32 to vector<2x400xf32>
    %214 = arith.mulf %213, %126 : vector<2x400xf32>
    %215 = arith.addf %211, %214 : vector<2x400xf32>
    %c16 = arith.constant 16 : index
    %216 = memref.load %arg3[%c16] : memref<20xf32, #tpu.memory_space<smem>>
    %217 = vector.broadcast %216 : f32 to vector<2x400xf32>
    %218 = arith.mulf %217, %127 : vector<2x400xf32>
    %219 = arith.addf %215, %218 : vector<2x400xf32>
    %c17 = arith.constant 17 : index
    %220 = memref.load %arg3[%c17] : memref<20xf32, #tpu.memory_space<smem>>
    %221 = vector.broadcast %220 : f32 to vector<2x400xf32>
    %222 = arith.mulf %221, %128 : vector<2x400xf32>
    %223 = arith.addf %219, %222 : vector<2x400xf32>
    %c18 = arith.constant 18 : index
    %224 = memref.load %arg3[%c18] : memref<20xf32, #tpu.memory_space<smem>>
    %225 = vector.broadcast %224 : f32 to vector<2x400xf32>
    %226 = arith.mulf %225, %129 : vector<2x400xf32>
    %227 = arith.addf %223, %226 : vector<2x400xf32>
    %c19 = arith.constant 19 : index
    %228 = memref.load %arg3[%c19] : memref<20xf32, #tpu.memory_space<smem>>
    %229 = vector.broadcast %228 : f32 to vector<2x400xf32>
    %230 = arith.mulf %229, %130 : vector<2x400xf32>
    %231 = arith.addf %227, %230 : vector<2x400xf32>
    %c1_99 = arith.constant 1 : index
    %232 = memref.load %arg4[%c1_99] : memref<2xf32, #tpu.memory_space<smem>>
    %233 = vector.broadcast %232 : f32 to vector<2x400xf32>
    %234 = arith.addf %231, %233 : vector<2x400xf32>
    %235 = math.tanh %234 : vector<2x400xf32>
    %cst_100 = arith.constant dense<0.000000e+00> : vector<2xf32>
    %236 = vector.multi_reduction <add>, %235, %cst_100 [1] : vector<2x400xf32> to vector<2xf32>
    %237 = vector.shape_cast %236 : vector<2xf32> to vector<2x1xf32>
    %cst_101 = arith.constant dense<0.000000e+00> : vector<1xf32>
    %238 = vector.multi_reduction <add>, %237, %cst_101 [0] : vector<2x1xf32> to vector<1xf32>
    %239 = vector.shape_cast %238 : vector<1xf32> to vector<1x1xf32>
    %240 = arith.mulf %235, %235 : vector<2x400xf32>
    %cst_102 = arith.constant dense<0.000000e+00> : vector<2xf32>
    %241 = vector.multi_reduction <add>, %240, %cst_102 [1] : vector<2x400xf32> to vector<2xf32>
    %242 = vector.shape_cast %241 : vector<2xf32> to vector<2x1xf32>
    %cst_103 = arith.constant dense<0.000000e+00> : vector<1xf32>
    %243 = vector.multi_reduction <add>, %242, %cst_103 [0] : vector<2x1xf32> to vector<1xf32>
    %244 = vector.shape_cast %243 : vector<1xf32> to vector<1x1xf32>
    %cst_104 = arith.constant 8.000000e+02 : f32
    %245 = vector.broadcast %cst_104 : f32 to vector<1x1xf32>
    %246 = arith.divf %239, %245 : vector<1x1xf32>
    %cst_105 = arith.constant 8.000000e+02 : f32
    %247 = vector.broadcast %cst_105 : f32 to vector<1x1xf32>
    %248 = arith.divf %244, %247 : vector<1x1xf32>
    %249 = arith.mulf %246, %246 : vector<1x1xf32>
    %250 = arith.subf %248, %249 : vector<1x1xf32>
    %cst_106 = arith.constant 9.99999974E-6 : f32
    %251 = vector.broadcast %cst_106 : f32 to vector<1x1xf32>
    %252 = arith.addf %250, %251 : vector<1x1xf32>
    %253 = math.rsqrt %252 : vector<1x1xf32>
    %c2_107 = arith.constant 2 : index
    %c0_108 = arith.constant 0 : index
    %254 = vector.load %arg19[%c2_107, %c0_108] : memref<4x400xf32, #tpu.memory_space<vmem>>, vector<2x400xf32>
    tpu.vector_store %arg19[%c2_107, %c0_108], %235 {strides = array<i32>} : memref<4x400xf32, #tpu.memory_space<vmem>>, vector<2x400xf32>,
    %c0_109 = arith.constant 0 : index
    %c0_110 = arith.constant 0 : index
    %255 = vector.load %arg19[%c0_109, %c0_110] : memref<4x400xf32, #tpu.memory_space<vmem>>, vector<4x396xf32>
    %c0_111 = arith.constant 0 : index
    %c1_112 = arith.constant 1 : index
    %256 = vector.load %arg19[%c0_111, %c1_112] : memref<4x400xf32, #tpu.memory_space<vmem>>, vector<4x396xf32>
    %257 = arith.maximumf %255, %256 : vector<4x396xf32>
    %c0_113 = arith.constant 0 : index
    %c2_114 = arith.constant 2 : index
    %258 = vector.load %arg19[%c0_113, %c2_114] : memref<4x400xf32, #tpu.memory_space<vmem>>, vector<4x396xf32>
    %259 = arith.maximumf %257, %258 : vector<4x396xf32>
    %c0_115 = arith.constant 0 : index
    %c3_116 = arith.constant 3 : index
    %260 = vector.load %arg19[%c0_115, %c3_116] : memref<4x400xf32, #tpu.memory_space<vmem>>, vector<4x396xf32>
    %261 = arith.maximumf %259, %260 : vector<4x396xf32>
    %c0_117 = arith.constant 0 : index
    %c4_118 = arith.constant 4 : index
    %262 = vector.load %arg19[%c0_117, %c4_118] : memref<4x400xf32, #tpu.memory_space<vmem>>, vector<4x396xf32>
    %263 = arith.maximumf %261, %262 : vector<4x396xf32>
    %c0_119 = arith.constant 0 : index
    %c0_120 = arith.constant 0 : index
    %264 = vector.load %arg8[%c0_119, %c0_120] : memref<396x80xf32, #tpu.memory_space<vmem>>, vector<396x80xf32>
    %cst_121 = arith.constant dense<0.000000e+00> : vector<4x80xf32>
    %265 = tpu.matmul %263, %264, %cst_121 {dimension_numbers = #tpu.dot_dimension_numbers<[1], [0], [0], [1], [0, 0, 1, 1], [], []>} : vector<4x396xf32>, vector<396x80xf32>, vector<4x80xf32> -> vector<4x80xf32>
    %c0_122 = arith.constant 0 : index
    %c0_123 = arith.constant 0 : index
    %266 = vector.load %arg19[%c0_122, %c0_123] : memref<4x400xf32, #tpu.memory_space<vmem>>, vector<4x80xf32>
    tpu.vector_store %arg19[%c0_122, %c0_123], %265 {strides = array<i32>} : memref<4x400xf32, #tpu.memory_space<vmem>>, vector<4x80xf32>,
    %c0_124 = arith.constant 0 : index
    %c0_125 = arith.constant 0 : index
    %267 = vector.load %arg19[%c0_124, %c0_125] : memref<4x400xf32, #tpu.memory_space<vmem>>, vector<2x80xf32>
    %268 = vector.broadcast %184 : vector<1x1xf32> to vector<2x80xf32>
    %269 = arith.subf %267, %268 : vector<2x80xf32>
    %270 = vector.broadcast %191 : vector<1x1xf32> to vector<2x80xf32>
    %271 = arith.mulf %269, %270 : vector<2x80xf32>
    %c2_126 = arith.constant 2 : index
    %c0_127 = arith.constant 0 : index
    %272 = vector.load %arg19[%c2_126, %c0_127] : memref<4x400xf32, #tpu.memory_space<vmem>>, vector<2x80xf32>
    %273 = vector.broadcast %246 : vector<1x1xf32> to vector<2x80xf32>
    %274 = arith.subf %272, %273 : vector<2x80xf32>
    %275 = vector.broadcast %253 : vector<1x1xf32> to vector<2x80xf32>
    %276 = arith.mulf %274, %275 : vector<2x80xf32>
    %cst_128 = arith.constant 0.000000e+00 : f32
    %277 = vector.broadcast %cst_128 : f32 to vector<4x128xf32>
    %c0_129 = arith.constant 0 : index
    %c0_130 = arith.constant 0 : index
    %278 = vector.load %arg20[%c0_129, %c0_130] : memref<4x336xf32, #tpu.memory_space<vmem>>, vector<4x128xf32>
    tpu.vector_store %arg20[%c0_129, %c0_130], %277 {strides = array<i32>} : memref<4x336xf32, #tpu.memory_space<vmem>>, vector<4x128xf32>,
    %c0_131 = arith.constant 0 : index
    %c208 = arith.constant 208 : index
    %279 = vector.load %arg20[%c0_131, %c208] : memref<4x336xf32, #tpu.memory_space<vmem>>, vector<4x128xf32>
    tpu.vector_store %arg20[%c0_131, %c208], %277 {strides = array<i32>} : memref<4x336xf32, #tpu.memory_space<vmem>>, vector<4x128xf32>,
    %c0_132 = arith.constant 0 : index
    %c128_133 = arith.constant 128 : index
    %280 = vector.load %arg20[%c0_132, %c128_133] : memref<4x336xf32, #tpu.memory_space<vmem>>, vector<2x80xf32>
    tpu.vector_store %arg20[%c0_132, %c128_133], %271 {strides = array<i32>} : memref<4x336xf32, #tpu.memory_space<vmem>>, vector<2x80xf32>,
    %c2_134 = arith.constant 2 : index
    %c128_135 = arith.constant 128 : index
    %281 = vector.load %arg20[%c2_134, %c128_135] : memref<4x336xf32, #tpu.memory_space<vmem>>, vector<2x80xf32>
    tpu.vector_store %arg20[%c2_134, %c128_135], %276 {strides = array<i32>} : memref<4x336xf32, #tpu.memory_space<vmem>>, vector<2x80xf32>,
    %c0_136 = arith.constant 0 : index
    %c127_137 = arith.constant 127 : index
    %282 = vector.load %arg20[%c0_136, %c127_137] : memref<4x336xf32, #tpu.memory_space<vmem>>, vector<2x80xf32>
    %c0_138 = arith.constant 0 : index
    %c128_139 = arith.constant 128 : index
    %283 = vector.load %arg20[%c0_138, %c128_139] : memref<4x336xf32, #tpu.memory_space<vmem>>, vector<2x80xf32>
    %c0_140 = arith.constant 0 : index
    %c129_141 = arith.constant 129 : index
    %284 = vector.load %arg20[%c0_140, %c129_141] : memref<4x336xf32, #tpu.memory_space<vmem>>, vector<2x80xf32>
    %c2_142 = arith.constant 2 : index
    %c127_143 = arith.constant 127 : index
    %285 = vector.load %arg20[%c2_142, %c127_143] : memref<4x336xf32, #tpu.memory_space<vmem>>, vector<2x80xf32>
    %c2_144 = arith.constant 2 : index
    %c128_145 = arith.constant 128 : index
    %286 = vector.load %arg20[%c2_144, %c128_145] : memref<4x336xf32, #tpu.memory_space<vmem>>, vector<2x80xf32>
    %c2_146 = arith.constant 2 : index
    %c129_147 = arith.constant 129 : index
    %287 = vector.load %arg20[%c2_146, %c129_147] : memref<4x336xf32, #tpu.memory_space<vmem>>, vector<2x80xf32>
    %c0_148 = arith.constant 0 : index
    %288 = memref.load %arg5[%c0_148] : memref<24xf32, #tpu.memory_space<smem>>
    %289 = vector.broadcast %288 : f32 to vector<2x80xf32>
    %290 = arith.mulf %289, %282 : vector<2x80xf32>
    %c1_149 = arith.constant 1 : index
    %291 = memref.load %arg5[%c1_149] : memref<24xf32, #tpu.memory_space<smem>>
    %292 = vector.broadcast %291 : f32 to vector<2x80xf32>
    %293 = arith.mulf %292, %283 : vector<2x80xf32>
    %294 = arith.addf %290, %293 : vector<2x80xf32>
    %c2_150 = arith.constant 2 : index
    %295 = memref.load %arg5[%c2_150] : memref<24xf32, #tpu.memory_space<smem>>
    %296 = vector.broadcast %295 : f32 to vector<2x80xf32>
    %297 = arith.mulf %296, %284 : vector<2x80xf32>
    %298 = arith.addf %294, %297 : vector<2x80xf32>
    %c3_151 = arith.constant 3 : index
    %299 = memref.load %arg5[%c3_151] : memref<24xf32, #tpu.memory_space<smem>>
    %300 = vector.broadcast %299 : f32 to vector<2x80xf32>
    %301 = arith.mulf %300, %285 : vector<2x80xf32>
    %302 = arith.addf %298, %301 : vector<2x80xf32>
    %c4_152 = arith.constant 4 : index
    %303 = memref.load %arg5[%c4_152] : memref<24xf32, #tpu.memory_space<smem>>
    %304 = vector.broadcast %303 : f32 to vector<2x80xf32>
    %305 = arith.mulf %304, %286 : vector<2x80xf32>
    %306 = arith.addf %302, %305 : vector<2x80xf32>
    %c5_153 = arith.constant 5 : index
    %307 = memref.load %arg5[%c5_153] : memref<24xf32, #tpu.memory_space<smem>>
    %308 = vector.broadcast %307 : f32 to vector<2x80xf32>
    %309 = arith.mulf %308, %287 : vector<2x80xf32>
    %310 = arith.addf %306, %309 : vector<2x80xf32>
    %c0_154 = arith.constant 0 : index
    %311 = memref.load %arg6[%c0_154] : memref<4xf32, #tpu.memory_space<smem>>
    %312 = vector.broadcast %311 : f32 to vector<2x80xf32>
    %313 = arith.addf %310, %312 : vector<2x80xf32>
    %314 = math.tanh %313 : vector<2x80xf32>
    %cst_155 = arith.constant dense<0.000000e+00> : vector<2xf32>
    %315 = vector.multi_reduction <add>, %314, %cst_155 [1] : vector<2x80xf32> to vector<2xf32>
    %316 = vector.shape_cast %315 : vector<2xf32> to vector<2x1xf32>
    %cst_156 = arith.constant dense<0.000000e+00> : vector<1xf32>
    %317 = vector.multi_reduction <add>, %316, %cst_156 [0] : vector<2x1xf32> to vector<1xf32>
    %318 = vector.shape_cast %317 : vector<1xf32> to vector<1x1xf32>
    %319 = arith.mulf %314, %314 : vector<2x80xf32>
    %cst_157 = arith.constant dense<0.000000e+00> : vector<2xf32>
    %320 = vector.multi_reduction <add>, %319, %cst_157 [1] : vector<2x80xf32> to vector<2xf32>
    %321 = vector.shape_cast %320 : vector<2xf32> to vector<2x1xf32>
    %cst_158 = arith.constant dense<0.000000e+00> : vector<1xf32>
    %322 = vector.multi_reduction <add>, %321, %cst_158 [0] : vector<2x1xf32> to vector<1xf32>
    %323 = vector.shape_cast %322 : vector<1xf32> to vector<1x1xf32>
    %cst_159 = arith.constant 1.600000e+02 : f32
    %324 = vector.broadcast %cst_159 : f32 to vector<1x1xf32>
    %325 = arith.divf %318, %324 : vector<1x1xf32>
    %cst_160 = arith.constant 1.600000e+02 : f32
    %326 = vector.broadcast %cst_160 : f32 to vector<1x1xf32>
    %327 = arith.divf %323, %326 : vector<1x1xf32>
    %328 = arith.mulf %325, %325 : vector<1x1xf32>
    %329 = arith.subf %327, %328 : vector<1x1xf32>
    %cst_161 = arith.constant 9.99999974E-6 : f32
    %330 = vector.broadcast %cst_161 : f32 to vector<1x1xf32>
    %331 = arith.addf %329, %330 : vector<1x1xf32>
    %332 = math.rsqrt %331 : vector<1x1xf32>
    %c0_162 = arith.constant 0 : index
    %c0_163 = arith.constant 0 : index
    %333 = vector.load %arg21[%c0_162, %c0_163] : memref<8x80xf32, #tpu.memory_space<vmem>>, vector<2x80xf32>
    tpu.vector_store %arg21[%c0_162, %c0_163], %314 {strides = array<i32>} : memref<8x80xf32, #tpu.memory_space<vmem>>, vector<2x80xf32>,
    %c6_164 = arith.constant 6 : index
    %334 = memref.load %arg5[%c6_164] : memref<24xf32, #tpu.memory_space<smem>>
    %335 = vector.broadcast %334 : f32 to vector<2x80xf32>
    %336 = arith.mulf %335, %282 : vector<2x80xf32>
    %c7_165 = arith.constant 7 : index
    %337 = memref.load %arg5[%c7_165] : memref<24xf32, #tpu.memory_space<smem>>
    %338 = vector.broadcast %337 : f32 to vector<2x80xf32>
    %339 = arith.mulf %338, %283 : vector<2x80xf32>
    %340 = arith.addf %336, %339 : vector<2x80xf32>
    %c8_166 = arith.constant 8 : index
    %341 = memref.load %arg5[%c8_166] : memref<24xf32, #tpu.memory_space<smem>>
    %342 = vector.broadcast %341 : f32 to vector<2x80xf32>
    %343 = arith.mulf %342, %284 : vector<2x80xf32>
    %344 = arith.addf %340, %343 : vector<2x80xf32>
    %c9_167 = arith.constant 9 : index
    %345 = memref.load %arg5[%c9_167] : memref<24xf32, #tpu.memory_space<smem>>
    %346 = vector.broadcast %345 : f32 to vector<2x80xf32>
    %347 = arith.mulf %346, %285 : vector<2x80xf32>
    %348 = arith.addf %344, %347 : vector<2x80xf32>
    %c10_168 = arith.constant 10 : index
    %349 = memref.load %arg5[%c10_168] : memref<24xf32, #tpu.memory_space<smem>>
    %350 = vector.broadcast %349 : f32 to vector<2x80xf32>
    %351 = arith.mulf %350, %286 : vector<2x80xf32>
    %352 = arith.addf %348, %351 : vector<2x80xf32>
    %c11_169 = arith.constant 11 : index
    %353 = memref.load %arg5[%c11_169] : memref<24xf32, #tpu.memory_space<smem>>
    %354 = vector.broadcast %353 : f32 to vector<2x80xf32>
    %355 = arith.mulf %354, %287 : vector<2x80xf32>
    %356 = arith.addf %352, %355 : vector<2x80xf32>
    %c1_170 = arith.constant 1 : index
    %357 = memref.load %arg6[%c1_170] : memref<4xf32, #tpu.memory_space<smem>>
    %358 = vector.broadcast %357 : f32 to vector<2x80xf32>
    %359 = arith.addf %356, %358 : vector<2x80xf32>
    %360 = math.tanh %359 : vector<2x80xf32>
    %cst_171 = arith.constant dense<0.000000e+00> : vector<2xf32>
    %361 = vector.multi_reduction <add>, %360, %cst_171 [1] : vector<2x80xf32> to vector<2xf32>
    %362 = vector.shape_cast %361 : vector<2xf32> to vector<2x1xf32>
    %cst_172 = arith.constant dense<0.000000e+00> : vector<1xf32>
    %363 = vector.multi_reduction <add>, %362, %cst_172 [0] : vector<2x1xf32> to vector<1xf32>
    %364 = vector.shape_cast %363 : vector<1xf32> to vector<1x1xf32>
    %365 = arith.mulf %360, %360 : vector<2x80xf32>
    %cst_173 = arith.constant dense<0.000000e+00> : vector<2xf32>
    %366 = vector.multi_reduction <add>, %365, %cst_173 [1] : vector<2x80xf32> to vector<2xf32>
    %367 = vector.shape_cast %366 : vector<2xf32> to vector<2x1xf32>
    %cst_174 = arith.constant dense<0.000000e+00> : vector<1xf32>
    %368 = vector.multi_reduction <add>, %367, %cst_174 [0] : vector<2x1xf32> to vector<1xf32>
    %369 = vector.shape_cast %368 : vector<1xf32> to vector<1x1xf32>
    %cst_175 = arith.constant 1.600000e+02 : f32
    %370 = vector.broadcast %cst_175 : f32 to vector<1x1xf32>
    %371 = arith.divf %364, %370 : vector<1x1xf32>
    %cst_176 = arith.constant 1.600000e+02 : f32
    %372 = vector.broadcast %cst_176 : f32 to vector<1x1xf32>
    %373 = arith.divf %369, %372 : vector<1x1xf32>
    %374 = arith.mulf %371, %371 : vector<1x1xf32>
    %375 = arith.subf %373, %374 : vector<1x1xf32>
    %cst_177 = arith.constant 9.99999974E-6 : f32
    %376 = vector.broadcast %cst_177 : f32 to vector<1x1xf32>
    %377 = arith.addf %375, %376 : vector<1x1xf32>
    %378 = math.rsqrt %377 : vector<1x1xf32>
    %c2_178 = arith.constant 2 : index
    %c0_179 = arith.constant 0 : index
    %379 = vector.load %arg21[%c2_178, %c0_179] : memref<8x80xf32, #tpu.memory_space<vmem>>, vector<2x80xf32>
    tpu.vector_store %arg21[%c2_178, %c0_179], %360 {strides = array<i32>} : memref<8x80xf32, #tpu.memory_space<vmem>>, vector<2x80xf32>,
    %c12_180 = arith.constant 12 : index
    %380 = memref.load %arg5[%c12_180] : memref<24xf32, #tpu.memory_space<smem>>
    %381 = vector.broadcast %380 : f32 to vector<2x80xf32>
    %382 = arith.mulf %381, %282 : vector<2x80xf32>
    %c13_181 = arith.constant 13 : index
    %383 = memref.load %arg5[%c13_181] : memref<24xf32, #tpu.memory_space<smem>>
    %384 = vector.broadcast %383 : f32 to vector<2x80xf32>
    %385 = arith.mulf %384, %283 : vector<2x80xf32>
    %386 = arith.addf %382, %385 : vector<2x80xf32>
    %c14_182 = arith.constant 14 : index
    %387 = memref.load %arg5[%c14_182] : memref<24xf32, #tpu.memory_space<smem>>
    %388 = vector.broadcast %387 : f32 to vector<2x80xf32>
    %389 = arith.mulf %388, %284 : vector<2x80xf32>
    %390 = arith.addf %386, %389 : vector<2x80xf32>
    %c15_183 = arith.constant 15 : index
    %391 = memref.load %arg5[%c15_183] : memref<24xf32, #tpu.memory_space<smem>>
    %392 = vector.broadcast %391 : f32 to vector<2x80xf32>
    %393 = arith.mulf %392, %285 : vector<2x80xf32>
    %394 = arith.addf %390, %393 : vector<2x80xf32>
    %c16_184 = arith.constant 16 : index
    %395 = memref.load %arg5[%c16_184] : memref<24xf32, #tpu.memory_space<smem>>
    %396 = vector.broadcast %395 : f32 to vector<2x80xf32>
    %397 = arith.mulf %396, %286 : vector<2x80xf32>
    %398 = arith.addf %394, %397 : vector<2x80xf32>
    %c17_185 = arith.constant 17 : index
    %399 = memref.load %arg5[%c17_185] : memref<24xf32, #tpu.memory_space<smem>>
    %400 = vector.broadcast %399 : f32 to vector<2x80xf32>
    %401 = arith.mulf %400, %287 : vector<2x80xf32>
    %402 = arith.addf %398, %401 : vector<2x80xf32>
    %c2_186 = arith.constant 2 : index
    %403 = memref.load %arg6[%c2_186] : memref<4xf32, #tpu.memory_space<smem>>
    %404 = vector.broadcast %403 : f32 to vector<2x80xf32>
    %405 = arith.addf %402, %404 : vector<2x80xf32>
    %406 = math.tanh %405 : vector<2x80xf32>
    %cst_187 = arith.constant dense<0.000000e+00> : vector<2xf32>
    %407 = vector.multi_reduction <add>, %406, %cst_187 [1] : vector<2x80xf32> to vector<2xf32>
    %408 = vector.shape_cast %407 : vector<2xf32> to vector<2x1xf32>
    %cst_188 = arith.constant dense<0.000000e+00> : vector<1xf32>
    %409 = vector.multi_reduction <add>, %408, %cst_188 [0] : vector<2x1xf32> to vector<1xf32>
    %410 = vector.shape_cast %409 : vector<1xf32> to vector<1x1xf32>
    %411 = arith.mulf %406, %406 : vector<2x80xf32>
    %cst_189 = arith.constant dense<0.000000e+00> : vector<2xf32>
    %412 = vector.multi_reduction <add>, %411, %cst_189 [1] : vector<2x80xf32> to vector<2xf32>
    %413 = vector.shape_cast %412 : vector<2xf32> to vector<2x1xf32>
    %cst_190 = arith.constant dense<0.000000e+00> : vector<1xf32>
    %414 = vector.multi_reduction <add>, %413, %cst_190 [0] : vector<2x1xf32> to vector<1xf32>
    %415 = vector.shape_cast %414 : vector<1xf32> to vector<1x1xf32>
    %cst_191 = arith.constant 1.600000e+02 : f32
    %416 = vector.broadcast %cst_191 : f32 to vector<1x1xf32>
    %417 = arith.divf %410, %416 : vector<1x1xf32>
    %cst_192 = arith.constant 1.600000e+02 : f32
    %418 = vector.broadcast %cst_192 : f32 to vector<1x1xf32>
    %419 = arith.divf %415, %418 : vector<1x1xf32>
    %420 = arith.mulf %417, %417 : vector<1x1xf32>
    %421 = arith.subf %419, %420 : vector<1x1xf32>
    %cst_193 = arith.constant 9.99999974E-6 : f32
    %422 = vector.broadcast %cst_193 : f32 to vector<1x1xf32>
    %423 = arith.addf %421, %422 : vector<1x1xf32>
    %424 = math.rsqrt %423 : vector<1x1xf32>
    %c4_194 = arith.constant 4 : index
    %c0_195 = arith.constant 0 : index
    %425 = vector.load %arg21[%c4_194, %c0_195] : memref<8x80xf32, #tpu.memory_space<vmem>>, vector<2x80xf32>
    tpu.vector_store %arg21[%c4_194, %c0_195], %406 {strides = array<i32>} : memref<8x80xf32, #tpu.memory_space<vmem>>, vector<2x80xf32>,
    %c18_196 = arith.constant 18 : index
    %426 = memref.load %arg5[%c18_196] : memref<24xf32, #tpu.memory_space<smem>>
    %427 = vector.broadcast %426 : f32 to vector<2x80xf32>
    %428 = arith.mulf %427, %282 : vector<2x80xf32>
    %c19_197 = arith.constant 19 : index
    %429 = memref.load %arg5[%c19_197] : memref<24xf32, #tpu.memory_space<smem>>
    %430 = vector.broadcast %429 : f32 to vector<2x80xf32>
    %431 = arith.mulf %430, %283 : vector<2x80xf32>
    %432 = arith.addf %428, %431 : vector<2x80xf32>
    %c20 = arith.constant 20 : index
    %433 = memref.load %arg5[%c20] : memref<24xf32, #tpu.memory_space<smem>>
    %434 = vector.broadcast %433 : f32 to vector<2x80xf32>
    %435 = arith.mulf %434, %284 : vector<2x80xf32>
    %436 = arith.addf %432, %435 : vector<2x80xf32>
    %c21 = arith.constant 21 : index
    %437 = memref.load %arg5[%c21] : memref<24xf32, #tpu.memory_space<smem>>
    %438 = vector.broadcast %437 : f32 to vector<2x80xf32>
    %439 = arith.mulf %438, %285 : vector<2x80xf32>
    %440 = arith.addf %436, %439 : vector<2x80xf32>
    %c22 = arith.constant 22 : index
    %441 = memref.load %arg5[%c22] : memref<24xf32, #tpu.memory_space<smem>>
    %442 = vector.broadcast %441 : f32 to vector<2x80xf32>
    %443 = arith.mulf %442, %286 : vector<2x80xf32>
    %444 = arith.addf %440, %443 : vector<2x80xf32>
    %c23 = arith.constant 23 : index
    %445 = memref.load %arg5[%c23] : memref<24xf32, #tpu.memory_space<smem>>
    %446 = vector.broadcast %445 : f32 to vector<2x80xf32>
    %447 = arith.mulf %446, %287 : vector<2x80xf32>
    %448 = arith.addf %444, %447 : vector<2x80xf32>
    %c3_198 = arith.constant 3 : index
    %449 = memref.load %arg6[%c3_198] : memref<4xf32, #tpu.memory_space<smem>>
    %450 = vector.broadcast %449 : f32 to vector<2x80xf32>
    %451 = arith.addf %448, %450 : vector<2x80xf32>
    %452 = math.tanh %451 : vector<2x80xf32>
    %cst_199 = arith.constant dense<0.000000e+00> : vector<2xf32>
    %453 = vector.multi_reduction <add>, %452, %cst_199 [1] : vector<2x80xf32> to vector<2xf32>
    %454 = vector.shape_cast %453 : vector<2xf32> to vector<2x1xf32>
    %cst_200 = arith.constant dense<0.000000e+00> : vector<1xf32>
    %455 = vector.multi_reduction <add>, %454, %cst_200 [0] : vector<2x1xf32> to vector<1xf32>
    %456 = vector.shape_cast %455 : vector<1xf32> to vector<1x1xf32>
    %457 = arith.mulf %452, %452 : vector<2x80xf32>
    %cst_201 = arith.constant dense<0.000000e+00> : vector<2xf32>
    %458 = vector.multi_reduction <add>, %457, %cst_201 [1] : vector<2x80xf32> to vector<2xf32>
    %459 = vector.shape_cast %458 : vector<2xf32> to vector<2x1xf32>
    %cst_202 = arith.constant dense<0.000000e+00> : vector<1xf32>
    %460 = vector.multi_reduction <add>, %459, %cst_202 [0] : vector<2x1xf32> to vector<1xf32>
    %461 = vector.shape_cast %460 : vector<1xf32> to vector<1x1xf32>
    %cst_203 = arith.constant 1.600000e+02 : f32
    %462 = vector.broadcast %cst_203 : f32 to vector<1x1xf32>
    %463 = arith.divf %456, %462 : vector<1x1xf32>
    %cst_204 = arith.constant 1.600000e+02 : f32
    %464 = vector.broadcast %cst_204 : f32 to vector<1x1xf32>
    %465 = arith.divf %461, %464 : vector<1x1xf32>
    %466 = arith.mulf %463, %463 : vector<1x1xf32>
    %467 = arith.subf %465, %466 : vector<1x1xf32>
    %cst_205 = arith.constant 9.99999974E-6 : f32
    %468 = vector.broadcast %cst_205 : f32 to vector<1x1xf32>
    %469 = arith.addf %467, %468 : vector<1x1xf32>
    %470 = math.rsqrt %469 : vector<1x1xf32>
    %c6_206 = arith.constant 6 : index
    %c0_207 = arith.constant 0 : index
    %471 = vector.load %arg21[%c6_206, %c0_207] : memref<8x80xf32, #tpu.memory_space<vmem>>, vector<2x80xf32>
    tpu.vector_store %arg21[%c6_206, %c0_207], %452 {strides = array<i32>} : memref<8x80xf32, #tpu.memory_space<vmem>>, vector<2x80xf32>,
    %c0_208 = arith.constant 0 : index
    %c0_209 = arith.constant 0 : index
    %472 = vector.load %arg21[%c0_208, %c0_209] : memref<8x80xf32, #tpu.memory_space<vmem>>, vector<8x79xf32>
    %c0_210 = arith.constant 0 : index
    %c1_211 = arith.constant 1 : index
    %473 = vector.load %arg21[%c0_210, %c1_211] : memref<8x80xf32, #tpu.memory_space<vmem>>, vector<8x79xf32>
    %474 = arith.maximumf %472, %473 : vector<8x79xf32>
    %c0_212 = arith.constant 0 : index
    %c0_213 = arith.constant 0 : index
    %475 = vector.load %arg9[%c0_212, %c0_213] : memref<79x40xf32, #tpu.memory_space<vmem>>, vector<79x40xf32>
    %cst_214 = arith.constant dense<0.000000e+00> : vector<8x40xf32>
    %476 = tpu.matmul %474, %475, %cst_214 {dimension_numbers = #tpu.dot_dimension_numbers<[1], [0], [0], [1], [0, 0, 1, 1], [], []>} : vector<8x79xf32>, vector<79x40xf32>, vector<8x40xf32> -> vector<8x40xf32>
    %c0_215 = arith.constant 0 : index
    %c0_216 = arith.constant 0 : index
    %477 = vector.load %arg21[%c0_215, %c0_216] : memref<8x80xf32, #tpu.memory_space<vmem>>, vector<8x40xf32>
    tpu.vector_store %arg21[%c0_215, %c0_216], %476 {strides = array<i32>} : memref<8x80xf32, #tpu.memory_space<vmem>>, vector<8x40xf32>,
    %c0_217 = arith.constant 0 : index
    %c0_218 = arith.constant 0 : index
    %478 = vector.load %arg21[%c0_217, %c0_218] : memref<8x80xf32, #tpu.memory_space<vmem>>, vector<2x40xf32>
    %479 = vector.broadcast %325 : vector<1x1xf32> to vector<2x40xf32>
    %480 = arith.subf %478, %479 : vector<2x40xf32>
    %481 = vector.broadcast %332 : vector<1x1xf32> to vector<2x40xf32>
    %482 = arith.mulf %480, %481 : vector<2x40xf32>
    %c2_219 = arith.constant 2 : index
    %c0_220 = arith.constant 0 : index
    %483 = vector.load %arg21[%c2_219, %c0_220] : memref<8x80xf32, #tpu.memory_space<vmem>>, vector<2x40xf32>
    %484 = vector.broadcast %371 : vector<1x1xf32> to vector<2x40xf32>
    %485 = arith.subf %483, %484 : vector<2x40xf32>
    %486 = vector.broadcast %378 : vector<1x1xf32> to vector<2x40xf32>
    %487 = arith.mulf %485, %486 : vector<2x40xf32>
    %c4_221 = arith.constant 4 : index
    %c0_222 = arith.constant 0 : index
    %488 = vector.load %arg21[%c4_221, %c0_222] : memref<8x80xf32, #tpu.memory_space<vmem>>, vector<2x40xf32>
    %489 = vector.broadcast %417 : vector<1x1xf32> to vector<2x40xf32>
    %490 = arith.subf %488, %489 : vector<2x40xf32>
    %491 = vector.broadcast %424 : vector<1x1xf32> to vector<2x40xf32>
    %492 = arith.mulf %490, %491 : vector<2x40xf32>
    %c6_223 = arith.constant 6 : index
    %c0_224 = arith.constant 0 : index
    %493 = vector.load %arg21[%c6_223, %c0_224] : memref<8x80xf32, #tpu.memory_space<vmem>>, vector<2x40xf32>
    %494 = vector.broadcast %463 : vector<1x1xf32> to vector<2x40xf32>
    %495 = arith.subf %493, %494 : vector<2x40xf32>
    %496 = vector.broadcast %470 : vector<1x1xf32> to vector<2x40xf32>
    %497 = arith.mulf %495, %496 : vector<2x40xf32>
    %c0_225 = arith.constant 0 : index
    %c0_226 = arith.constant 0 : index
    %498 = vector.load %arg10[%c0_225, %c0_226] : memref<160x90xf32, #tpu.memory_space<vmem>>, vector<40x90xf32>
    %cst_227 = arith.constant dense<0.000000e+00> : vector<2x90xf32>
    %499 = tpu.matmul %482, %498, %cst_227 {dimension_numbers = #tpu.dot_dimension_numbers<[1], [0], [0], [1], [0, 0, 1, 1], [], []>} : vector<2x40xf32>, vector<40x90xf32>, vector<2x90xf32> -> vector<2x90xf32>
    %c40 = arith.constant 40 : index
    %c0_228 = arith.constant 0 : index
    %500 = vector.load %arg10[%c40, %c0_228] : memref<160x90xf32, #tpu.memory_space<vmem>>, vector<40x90xf32>
    %cst_229 = arith.constant dense<0.000000e+00> : vector<2x90xf32>
    %501 = tpu.matmul %487, %500, %cst_229 {dimension_numbers = #tpu.dot_dimension_numbers<[1], [0], [0], [1], [0, 0, 1, 1], [], []>} : vector<2x40xf32>, vector<40x90xf32>, vector<2x90xf32> -> vector<2x90xf32>
    %502 = arith.addf %499, %501 : vector<2x90xf32>
    %c80 = arith.constant 80 : index
    %c0_230 = arith.constant 0 : index
    %503 = vector.load %arg10[%c80, %c0_230] : memref<160x90xf32, #tpu.memory_space<vmem>>, vector<40x90xf32>
    %cst_231 = arith.constant dense<0.000000e+00> : vector<2x90xf32>
    %504 = tpu.matmul %492, %503, %cst_231 {dimension_numbers = #tpu.dot_dimension_numbers<[1], [0], [0], [1], [0, 0, 1, 1], [], []>} : vector<2x40xf32>, vector<40x90xf32>, vector<2x90xf32> -> vector<2x90xf32>
    %505 = arith.addf %502, %504 : vector<2x90xf32>
    %c120 = arith.constant 120 : index
    %c0_232 = arith.constant 0 : index
    %506 = vector.load %arg10[%c120, %c0_232] : memref<160x90xf32, #tpu.memory_space<vmem>>, vector<40x90xf32>
    %cst_233 = arith.constant dense<0.000000e+00> : vector<2x90xf32>
    %507 = tpu.matmul %497, %506, %cst_233 {dimension_numbers = #tpu.dot_dimension_numbers<[1], [0], [0], [1], [0, 0, 1, 1], [], []>} : vector<2x40xf32>, vector<40x90xf32>, vector<2x90xf32> -> vector<2x90xf32>
    %508 = arith.addf %505, %507 : vector<2x90xf32>
    %c0_234 = arith.constant 0 : index
    %c0_235 = arith.constant 0 : index
    %509 = vector.load %arg11[%c0_234, %c0_235] : memref<1x90xf32, #tpu.memory_space<vmem>>, vector<1x90xf32>
    %510 = vector.broadcast %509 : vector<1x90xf32> to vector<2x90xf32>
    %511 = arith.addf %508, %510 : vector<2x90xf32>
    %cst_236 = arith.constant 0.000000e+00 : f32
    %512 = vector.broadcast %cst_236 : f32 to vector<2x90xf32>
    %513 = arith.cmpf oge, %511, %512 : vector<2x90xf32>
    %cst_237 = arith.constant 1.000000e-01 : f32
    %514 = vector.broadcast %cst_237 : f32 to vector<2x90xf32>
    %515 = arith.mulf %514, %511 : vector<2x90xf32>
    %516 = arith.select %513, %511, %515 : vector<2x90xi1>, vector<2x90xf32>
    %c0_238 = arith.constant 0 : index
    %c0_239 = arith.constant 0 : index
    %517 = vector.load %arg12[%c0_238, %c0_239] : memref<90x16xf32, #tpu.memory_space<vmem>>, vector<90x8xf32>
    %cst_240 = arith.constant dense<0.000000e+00> : vector<2x8xf32>
    %518 = tpu.matmul %516, %517, %cst_240 {dimension_numbers = #tpu.dot_dimension_numbers<[1], [0], [0], [1], [0, 0, 1, 1], [], []>} : vector<2x90xf32>, vector<90x8xf32>, vector<2x8xf32> -> vector<2x8xf32>
    %c0_241 = arith.constant 0 : index
    %c0_242 = arith.constant 0 : index
    %519 = vector.load %arg13[%c0_241, %c0_242] : memref<1x16xf32, #tpu.memory_space<vmem>>, vector<1x8xf32>
    %520 = vector.broadcast %519 : vector<1x8xf32> to vector<2x8xf32>
    %521 = arith.addf %518, %520 : vector<2x8xf32>
    %c0_243 = arith.constant 0 : index
    %c0_244 = arith.constant 0 : index
    %522 = vector.load %arg14[%c0_243, %c0_244] : memref<2x8xf32, #tpu.memory_space<vmem>>, vector<2x8xf32>
    tpu.vector_store %arg14[%c0_243, %c0_244], %521 {strides = array<i32>} : memref<2x8xf32, #tpu.memory_space<vmem>>, vector<2x8xf32>,
    %c0_245 = arith.constant 0 : index
    %c8_246 = arith.constant 8 : index
    %523 = vector.load %arg12[%c0_245, %c8_246] : memref<90x16xf32, #tpu.memory_space<vmem>>, vector<90x8xf32>
    %cst_247 = arith.constant dense<0.000000e+00> : vector<2x8xf32>
    %524 = tpu.matmul %516, %523, %cst_247 {dimension_numbers = #tpu.dot_dimension_numbers<[1], [0], [0], [1], [0, 0, 1, 1], [], []>} : vector<2x90xf32>, vector<90x8xf32>, vector<2x8xf32> -> vector<2x8xf32>
    %c0_248 = arith.constant 0 : index
    %c8_249 = arith.constant 8 : index
    %525 = vector.load %arg13[%c0_248, %c8_249] : memref<1x16xf32, #tpu.memory_space<vmem>>, vector<1x8xf32>
    %526 = vector.broadcast %525 : vector<1x8xf32> to vector<2x8xf32>
    %527 = arith.addf %524, %526 : vector<2x8xf32>
    %528 = math.exp %527 : vector<2x8xf32>
    %c0_250 = arith.constant 0 : index
    %c0_251 = arith.constant 0 : index
    %529 = vector.load %arg15[%c0_250, %c0_251] : memref<2x8xf32, #tpu.memory_space<vmem>>, vector<2x8xf32>
    tpu.vector_store %arg15[%c0_250, %c0_251], %528 {strides = array<i32>} : memref<2x8xf32, #tpu.memory_space<vmem>>, vector<2x8xf32>,
    return
  }
}

</mosaic_0001>

<bundles_post_ra>
// kernel: encoder_block_forward.1
= control target key start
LH: loop header
LB: loop body
LE: loop exit
PB: predicated region body
PF: predicated region fallthrough
CT: control target
= control target key end

     0   :  { %21 = vsyncpa [#allocation12], 0  ;;  %s8740_s0 = inlined_call_operand.vmem [shape: f32[2,2000], index: 0, kind: input, shape index: {}]   ;;  %s8741_s1 = inlined_call_operand.vmem [shape: f32[10], index: 1, kind: input, shape index: {}]   ;;  %s8742_s2 = inlined_call_operand.hbm [shape: f32[2], index: 2, kind: input, shape index: {}]   ;;  %s8743_s3 = inlined_call_operand.vmem [shape: f32[20], index: 3, kind: input, shape index: {}]   ;;  %s8744_s4 = inlined_call_operand.hbm [shape: f32[2], index: 4, kind: input, shape index: {}]   ;;  %s8745_s5 = inlined_call_operand.vmem [shape: f32[24], index: 5, kind: input, shape index: {}]   ;;  %s8746_s6 = inlined_call_operand.hbm [shape: f32[4], index: 6, kind: input, shape index: {}]   ;;  %s8747_s7 = inlined_call_operand.hbm [shape: f32[1996,400], index: 7, kind: input, shape index: {}]   ;;  %s8748_s8 = inlined_call_operand.hbm [shape: f32[396,80], index: 8, kind: input, shape index: {}]   ;;  %s8749_s9 = inlined_call_operand.hbm [shape: f32[79,40], index: 9, kind: input, shape index: {}]   ;;  %s8750_s10 = inlined_call_operand.hbm [shape: f32[160,90], index: 10, kind: input, shape index: {}]   ;;  %s8751_s11 = inlined_call_operand.hbm [shape: f32[1,90], index: 11, kind: input, shape index: {}]   ;;  %s8752_s12 = inlined_call_operand.vmem [shape: f32[90,16], index: 12, kind: input, shape index: {}]   ;;  %s8753_s13 = inlined_call_operand.vmem [shape: f32[1,16], index: 13, kind: input, shape index: {}]   ;;  %s8754_s14 = inlined_call_operand.hbm [shape: f32[2,8], index: 14, kind: output, shape index: {0}]   ;;  %s8755_s15 = inlined_call_operand.hbm [shape: f32[2,8], index: 15, kind: output, shape index: {1}]  }
   0x1   :  { %22 = vsyncpa [#allocation11], 0 }
   0x2   :  { %23 = vsyncpa [#allocation15], 0 }
   0x3   :  { %24 = vsyncpa [#allocation17], 0 }
   0x4   :  { %25 = vsyncpa [#allocation9], 0 }
   0x5   :  { %26 = vsyncpa [#allocation22], 0 }
   0x6   :  { %27 = vsyncpa [#allocation25], 0 }
   0x7   :  { %28 = vsyncpa [#allocation10], 0  ;;  %s55_s20 = sshll.u32 %s8743_s3, 4  ;;  %s56_s20 = int_to_ptr.vmem [resolvable:$true] %s55_s20 }
   0x8   :  { %29 = vsyncpa [#allocation29], 0  ;;  %s64_s23 = sshll.u32 %s8744_s4, 4  ;;  %s6303_s24 = smov [#allocation14]   ;;  %s65_s23 = int_to_ptr.hbm [resolvable:$true] %s64_s23 }
   0x9   :  { %58 = dma.vmem_to_smem %s56_s20, 16, %s6303_s24, [#allocation15]  }
   0xa   :  { %s6304_s25 = smov [#allocation16]   ;;  %s103_s28 = sshll.u32 %s8748_s8, 4  ;;  %s104_s28 = int_to_ptr.hbm [resolvable:$true] %s103_s28 }
   0xb   :  { %67 = dma.hbm_to_smem %s65_s23, 16, %s6304_s25, [#allocation17]  }
   0xc   :  { %s6305_s29 = smov [#allocation21]   ;;  %s129_s17 = sshll.u32 %s8750_s10, 4  ;;  %s130_s17 = int_to_ptr.hbm [resolvable:$true] %s129_s17 }
   0xd   :  { %s105_s30 = sshll.u32 %s6305_s29, 4  ;;  %s6306_s18 = smov 128   ;;  %s106_s30 = int_to_ptr.vmem [resolvable:$true] %s105_s30 }
   0xe   :  { %s6307_s19 = smov 8   ;;  %s6308_s4 = smov [#allocation24]  }
   0xf   :  { %111 = dma.hbm_to_vmem [thread:$0]  %s104_s28, 6400, %s106_s30, [#allocation22], %s6306_s18, %s6306_s18, %s6307_s19  }
  0x10   :  { %s131_s20 = sshll.u32 %s6308_s4, 4  ;;  %s37_s8 = sshll.u32 %s8741_s1, 4  ;;  %s132_s20 = int_to_ptr.vmem [resolvable:$true] %s131_s20  ;;  %s38_s8 = int_to_ptr.vmem [resolvable:$true] %s37_s8 }
  0x11   :  { %137 = dma.hbm_to_vmem [thread:$0]  %s130_s17, 2560, %s132_s20, [#allocation25], %s6306_s18, %s6306_s18, %s6307_s19  }
  0x12   :  { %s46_s24 = sshll.u32 %s8742_s2, 4  ;;  %s6309_s25 = smov [#allocation8]   ;;  %s47_s24 = int_to_ptr.hbm [resolvable:$true] %s46_s24 }
  0x13   :  { %40 = dma.vmem_to_smem %s38_s8, 16, %s6309_s25, [#allocation12]  }
  0x14   :  { %s6310_s26 = smov [#allocation13]   ;;  %s73_s29 = sshll.u32 %s8745_s5, 4  ;;  %s74_s29 = int_to_ptr.vmem [resolvable:$true] %s73_s29 }
  0x15   :  { %49 = dma.hbm_to_smem %s47_s24, 16, %s6310_s26, [#allocation11]  }
  0x16   :  { %s82_s3 = sshll.u32 %s8746_s6, 4  ;;  %s6311_s16 = smov [#allocation18]   ;;  %s83_s3 = int_to_ptr.hbm [resolvable:$true] %s82_s3 }
  0x17   :  { %76 = dma.vmem_to_smem %s74_s29, 16, %s6311_s16, [#allocation15]  }
  0x18   :  { %s6312_s17 = smov [#allocation19]   ;;  %s90_s20 = sshll.u32 %s8747_s7, 4  ;;  %s91_s20 = int_to_ptr.hbm [resolvable:$true] %s90_s20 }
  0x19   :  { %85 = dma.hbm_to_smem %s83_s3, 16, %s6312_s17, [#allocation17]  }
  0x1a   :  { %s6313_s21 = smov [#allocation20]   ;;  %s116_s10 = sshll.u32 %s8749_s9, 4  ;;  %s117_s10 = int_to_ptr.hbm [resolvable:$true] %s116_s10 }
  0x1b   :  { %s92_s22 = sshll.u32 %s6313_s21, 4  ;;  %s6314_s23 = smov 512   ;;  %s93_s22 = int_to_ptr.vmem [resolvable:$true] %s92_s22 }
  0x1c   :  { %s6315_s24 = smov 32   ;;  %s6316_s6 = smov [#allocation23]  }
  0x1d   :  { %98 = dma.hbm_to_vmem [thread:$0]  %s91_s20, 128000, %s93_s22, [#allocation9], %s6314_s23, %s6314_s23, %s6315_s24  }
  0x1e   :  { %s118_s25 = sshll.u32 %s6316_s6, 4  ;;  %s143_s28 = sshll.u32 %s8751_s11, 4  ;;  %s119_s25 = int_to_ptr.vmem [resolvable:$true] %s118_s25  ;;  %s144_s28 = int_to_ptr.hbm [resolvable:$true] %s143_s28 }
  0x1f   :  { %124 = dma.hbm_to_vmem [thread:$0]  %s117_s10, 1280, %s119_s25, [#allocation22], %s6306_s18, %s6306_s18, %s6307_s19  }
  0x20   :  { %s6317_s7 = smov [#allocation26]  }
  0x21   :  { %s145_s29 = sshll.u32 %s6317_s7, 4  ;;  %s146_s29 = int_to_ptr.vmem [resolvable:$true] %s145_s29 }
  0x22   :  { %148 = dma.hbm_to_vmem [thread:$0]  %s144_s28, 16, %s146_s29, [#allocation25]  }
  0x23   :  { %6281 = dma.done.wait [#allocation12], 16  }
  0x24   :  { %6282 = vsyncadd [#allocation12], 4294967280 }
  0x25   :  { %6283 = dma.done.wait [#allocation11], 16  }
  0x26   :  { %6284 = vsyncadd [#allocation11], 4294967280 }
  0x27   :  { %6285 = dma.done.wait [#allocation15], 16  }
  0x28   :  { %6286 = vsyncadd [#allocation15], 4294967280 }
  0x29   :  { %6287 = dma.done.wait [#allocation17], 16  }
  0x2a   :  { %6288 = vsyncadd [#allocation17], 4294967280 }
  0x2b   :  { %6289 = dma.done.wait [#allocation15], 16  }
  0x2c   :  { %6290 = vsyncadd [#allocation15], 4294967280 }
  0x2d   :  { %6291 = dma.done.wait [#allocation17], 16  }
  0x2e   :  { %6292 = vsyncadd [#allocation17], 4294967280 }
  0x2f   :  { %6293 = dma.done.wait [#allocation9], 128000  }
  0x30   :  { %6294 = vsyncadd [#allocation9], 4294839296 }
  0x31   :  { %6295 = dma.done.wait [#allocation22], 7680  }
  0x32   :  { %6296 = vsyncadd [#allocation22], 4294959616 }
  0x33   :  { %6297 = dma.done.wait [#allocation25], 2576  }
  0x34   :  { %6298 = vsyncadd [#allocation25], 4294964720 }
  0x35   :  { %197 = sfence }
  0x36   :  { %v6456_v0 = vld [vmem:[%s8740_s0] sm:$0xff]  ;;  %s5782_s18 = sld [smem:[#allocation8 + $0x2]]  ;;  %v8756_v1 = vmov 0.0   ;;  %v6463_v2 = vld [vmem:[%s8740_s0 + $0x8] sm:$0xff]  ;;  %vm203_vm0 = vcmask 1042048   ;;  %v6469_v3 = vld [vmem:[%s8740_s0 + $0x10] sm:$0xff] }
  0x37   :  { %207 = vst [vmem:[#allocation2 + $0x2] sm:$0xff] %v6456_v0  ;;  %s5781_s19 = sld [smem:[#allocation8 + $0x1]]  ;;  %vm204_vm1 = vcmask 650242   ;;  %vm210_vm3 = vcmask 1041408   ;;  %vm211_vm4 = vcmask 1043458   ;;  %v201_v4 = vld [vmem:[%s8740_s0 + $0x18] sm:$0xff] }
  0x38   :  { %202 = vst [vmem:[#allocation2] sm:$0x3] %v8756_v1  ;;  %s5784_s17 = sld [smem:[#allocation8 + $0x4]]  ;;  %vm205_vm2 = vmor %vm204_vm1, %vm203_vm0  ;;  %vm213_vm6 = vcmask 1045508   ;;  %vm215_vm7 = vcmask 654342   ;;  %s6319_s21 = smov 126  }
  0x39   :  { %3943 = vst [vmem:[#allocation4] sm:$0xf] %v8756_v1  ;;  %s5783_s2 = sld [smem:[#allocation8 + $0x3]]  ;;  %vm212_vm5 = vmor %vm211_vm4, %vm210_vm3  ;;  %s6320_s0 = smov 127   ;;  %vm261_vm10 = vcmask 1045504   ;;  %vm263_vm11 = vcmask 1039360  }
  0x3a   :  { %4908 = vst [vmem:[#allocation6] sm:$0xf] %v8756_v1  ;;  %vm214_vm8 = vmor %vm213_vm6, %vm212_vm5  ;;  %s6321_s22 = smov 124   ;;  %s6322_s8 = smov 125   ;;  %vm303_vm12 = vcmask 1031168   ;;  %vm343_vm13 = vcmask 1022976  }
  0x3b   :  { %208 = vst [vmem:[#allocation2 + $0xa] sm:$0xff] %v6463_v2  ;;  %vm216_vm9 = vmor %vm215_vm7, %vm214_vm8  ;;  %s5786_s5 = sld [smem:[#allocation8 + $0x6]]  ;;  %vm383_vm14 = vcmask 1014784   ;;  %s6323_s28 = smov 2   ;;  %vm754_vm15 = vcmask 1043456   ;;  %vm475_vm0 = vcmask 15360  }
  0x3c   :  { %v282_v5 = vstv %s5782_s18  ;;  %209 = vst [vmem:[#allocation2 + $0x12] sm:$0xff] %v6469_v3  ;;  %s5787_s10 = sld [smem:[#allocation8 + $0x7]]  ;;  %vm1334_vm6 = vmor %vm215_vm7, %vm211_vm4  ;;  %vm2622_vm7 = vcmask 621568   ;;  %vm537_vm8 = vcmask 648192  }
  0x3d   :  { %v283_v6 = vmul.f32 %v282_v5, %v6456_v0  ;;  %206 = vst.msk [vmem:[#allocation2 + $0x20] sm:$0xf] %vm205_vm2, %v8756_v1  ;;  %v235_v7 = vstv %s5781_s19  ;;  %v284_v18 = vmul.f32 %v282_v5, %v6463_v2  ;;  %v285_v21 = vmul.f32 %v282_v5, %v6469_v3  ;;  %s5788_s23 = sld [smem:[#allocation8 + $0x8]] }
  0x3e   :  { %217 = vst.msk [vmem:[#allocation2 + $0x1a] sm:$0xff] %vm216_vm9, %v201_v4  ;;  %v362_v10 = vstv %s5784_s17  ;;  %s5789_s24 = sld [smem:[#allocation8 + $0x9]]  ;;  %vm786_vm2 = vcmask 652292  }
  0x3f   :  { %291 = vrot.lane.b32.xlu1 %v283_v6, %s6319_s21  ;;  %v6484_v8 = vld [vmem:[#allocation2] sm:$0xff]  ;;  %v363_v11 = vmul.f32 %v362_v10, %v6456_v0  ;;  %v322_v12 = vstv %s5783_s2  ;;  %v364_v24 = vmul.f32 %v362_v10, %v6463_v2  ;;  %v365_v27 = vmul.f32 %v362_v10, %v6469_v3  ;;  %s227_s6 = sld [smem:[#allocation8]]  ;;  %vm787_vm5 = vmor %vm786_vm2, %vm210_vm3 }
  0x40   :  { %v236_v9 = vmul.f32 %v235_v7, %v6484_v8  ;;  %v323_v13 = vmul.f32 %v322_v12, %v6456_v0  ;;  %v325_v22 = vmul.f32 %v322_v12, %v6469_v3  ;;  %v324_v23 = vmul.f32 %v322_v12, %v6463_v2  ;;  %s401_s25 = sld [smem:[#allocation13]] }
  0x41   :  { %371 = vrot.lane.b32.xlu2 %v363_v11, %s6321_s22  ;;  %v797_v32 = vstv %s5786_s5  ;;  %s5785_s26 = sld [smem:[#allocation8 + $0x5]] }
  0x42   :  { %246 = vrot.lane.b32.xlu0 %v236_v9, %s6320_s0  ;;  %v6491_v14 = vld [vmem:[#allocation2 + $0x8] sm:$0xff]  ;;  %v798_v33 = vmul.f32 %v797_v32, %v6484_v8  ;;  %v842_v34 = vstv %s5787_s10  ;;  %s5790_s27 = sld [smem:[#allocation13 + $0x1]] }
  0x43   :  { %v6493_v15 = vld [vmem:[#allocation2 + $0x10] sm:$0xff]  ;;  %v237_v16 = vmul.f32 %v235_v7, %v6491_v14  ;;  %v843_v35 = vmul.f32 %v842_v34, %v6456_v0  ;;  %v881_v36 = vstv %s5788_s23  ;;  %v799_v37 = vmul.f32 %v797_v32, %v6491_v14  ;;  %s7920_s7 = sld [smem:[#allocation14 + $0xc]] }
  0x44   :  { %v238_v17 = vmul.f32 %v235_v7, %v6493_v15  ;;  %v882_v38 = vmul.f32 %v881_v36, %v6456_v0  ;;  %v800_v39 = vmul.f32 %v797_v32, %v6493_v15  ;;  %v920_v40 = vstv %s5789_s24  ;;  %s7924_s29 = sld [smem:[#allocation14 + $0xb]] }
  0x45   :  { %v6501_v19 = vld [vmem:[#allocation2 + $0x18] sm:$0xff]  ;;  %v6512_v25 = vld [vmem:[#allocation2 + $0x20] sm:$0x3]  ;;  %v921_v41 = vmul.f32 %v920_v40, %v6456_v0  ;;  %v845_v43 = vmul.f32 %v842_v34, %v6469_v3  ;;  %v844_v44 = vmul.f32 %v842_v34, %v6463_v2  ;;  %v883_v45 = vmul.f32 %v881_v36, %v6463_v2  ;;  %s7928_s9 = sld [smem:[#allocation14 + $0x1]] }
  0x46   :  { %v239_v20 = vmul.f32 %v235_v7, %v6501_v19  ;;  %v240_v26 = vmul.f32 %v235_v7, %v6512_v25  ;;  %v226_v28 = vld [vmem:[#allocation2 + $0x1a] sm:$0xff]  ;;  %v801_v42 = vmul.f32 %v797_v32, %v6501_v19  ;;  %v922_v46 = vmul.f32 %v920_v40, %v6463_v2  ;;  %s7955_s11 = sld [smem:[#allocation14 + $0x2]] }
  0x47   :  { %331 = vrot.lane.b32.xlu1 %v323_v13, %s6322_s8  ;;  %v286_v29 = vmul.f32 %v282_v5, %v226_v28  ;;  %v366_v30 = vmul.f32 %v362_v10, %v226_v28  ;;  %v326_v31 = vmul.f32 %v322_v12, %v226_v28  ;;  %v884_v47 = vmul.f32 %v881_v36, %v6469_v3  ;;  %s7957_s18 = sld [smem:[#allocation14 + $0xd]] }
  0x48   :  { %v923_v48 = vmul.f32 %v920_v40, %v6469_v3  ;;  %v846_v49 = vmul.f32 %v842_v34, %v226_v28  ;;  %v802_v50 = vmul.f32 %v797_v32, %v6512_v25  ;;  %v885_v51 = vmul.f32 %v881_v36, %v226_v28  ;;  %s7959_s19 = sld [smem:[#allocation14 + $0xe]] }
  0x49   :  { %250 = vrot.lane.b32.xlu2 %v238_v17, %s6320_s0  ;;  %v924_v52 = vmul.f32 %v920_v40, %v226_v28  ;;  %v6556_v59 = vstv %s227_s6  ;;  %s7970_s1 = sld [smem:[#allocation14 + $0x4]] }
  0x4a   :  { %248 = vrot.lane.b32.xlu0 %v237_v16, %s6320_s0  ;;  %v229_v61 = vmul.f32 %v6556_v59, %v6484_v8  ;;  %s7972_s30 = sld [smem:[#allocation14 + $0x3]] }
  0x4b   :  { %s7986_s3 = sld [smem:[#allocation14 + $0x11]] }
  0x4c   :  { %s7988_s16 = sld [smem:[#allocation14 + $0x10]] }
  0x4d   :  { %s7990_s17 = sld [smem:[#allocation14 + $0x6]] }
  0x4e   :  { %s8021_s2 = sld [smem:[#allocation14 + $0x7]] }
  0x4f   :  { %293 = vrot.lane.b32.xlu1 %v284_v18, %s6319_s21  ;;  %s8023_s4 = sld [smem:[#allocation14 + $0x12]] }
  0x50   :  { %s8025_s20 = sld [smem:[#allocation14 + $0x13]] }
  0x51   :  { %295 = vrot.lane.b32.xlu2 %v285_v21, %s6319_s21  ;;  %v6565_v21 = vstv %s401_s25  ;;  %s8033_s5 = sld [smem:[#allocation14 + $0x8]] }
  0x52   :  { %252 = vrot.lane.b32.xlu0 %v239_v20, %s6320_s0  ;;  %s5817_s10 = sld [smem:[#allocation14 + $0x9]] }
  0x53   :  { %s5820_s23 = sld [smem:[#allocation14 + $0xa]] }
  0x54   :  { %s5825_s24 = sld [smem:[#allocation14 + $0xf]] }
  0x55   :  { %s3965_s6 = sld [smem:[#allocation14]] }
  0x56   :  { %s5803_s25 = sld [smem:[#allocation14 + $0x5]] }
  0x57   :  { %335 = vrot.lane.b32.xlu1 %v325_v22, %s6322_s8 }
  0x59   :  { %373 = vrot.lane.b32.xlu2 %v364_v24, %s6321_s22 }
  0x5a   :  { %333 = vrot.lane.b32.xlu0 %v324_v23, %s6322_s8 }
  0x5f   :  { %254 = vrot.lane.b32.xlu1 %v240_v26, %s6320_s0  ;;  %v230_v26 = vmul.f32 %v6556_v59, %v6491_v14 }
  0x61   :  { %297 = vrot.lane.b32.xlu2 %v286_v29, %s6319_s21 }
  0x62   :  { %375 = vrot.lane.b32.xlu0 %v365_v27, %s6321_s22 }
  0x67   :  { %377 = vrot.lane.b32.xlu1 %v366_v30, %s6321_s22 }
  0x69   :  { %808 = vrot.lane.b32.xlu2 %v798_v33, %s6320_s0 }
  0x6a   :  { %337 = vrot.lane.b32.xlu0 %v326_v31, %s6322_s8 }
  0x6f   :  { %851 = vrot.lane.b32.xlu1 %v843_v35, %s6319_s21 }
  0x71   :  { %890 = vrot.lane.b32.xlu2 %v882_v38, %s6322_s8 }
  0x72   :  { %810 = vrot.lane.b32.xlu0 %v799_v37, %s6320_s0  ;;  %v231_v37 = vmul.f32 %v6556_v59, %v6493_v15 }
  0x77   :  { %812 = vrot.lane.b32.xlu1 %v800_v39, %s6320_s0 }
  0x79   :  { %814 = vrot.lane.b32.xlu2 %v801_v42, %s6320_s0 }
  0x7a   :  { %929 = vrot.lane.b32.xlu0 %v921_v41, %s6321_s22 }
  0x7f   :  { %855 = vrot.lane.b32.xlu1 %v845_v43, %s6319_s21 }
  0x81   :  { %892 = vrot.lane.b32.xlu2 %v883_v45, %s6322_s8 }
  0x82   :  { %853 = vrot.lane.b32.xlu0 %v844_v44, %s6319_s21 }
  0x87   :  { %931 = vrot.lane.b32.xlu1 %v922_v46, %s6321_s22 }
  0x89   :  { %933 = vrot.lane.b32.xlu2 %v923_v48, %s6321_s22 }
  0x8a   :  { %894 = vrot.lane.b32.xlu0 %v884_v47, %s6322_s8 }
  0x8f   :  { %857 = vrot.lane.b32.xlu1 %v846_v49, %s6319_s21 }
  0x91   :  { %896 = vrot.lane.b32.xlu2 %v885_v51, %s6322_s8 }
  0x92   :  { %816 = vrot.lane.b32.xlu0 %v802_v50, %s6320_s0 }
  0x9a   :  { %935 = vrot.lane.b32.xlu0 %v924_v52, %s6321_s22 }
  0x9b   :  { %v372_v53 = vpop.permute.xlu2 %371 }
  0x9c   :  { %v379_v7 = vrot.slane %v372_v53, 6 }
  0x9e   :  { %v384_v20 = vsel %vm383_vm14, %v379_v7, %v372_v53 }
  0xa3   :  { %v251_v54 = vpop.permute.xlu2 %250 }
  0xa4   :  { %v258_v10 = vrot.slane %v251_v54, 2 }
  0xab   :  { %v6554_v57 = vpop.permute.xlu2 %295 }
  0xac   :  { %v301_v31 = vrot.slane %v6554_v57, 6 }
  0xb1   :  { %v292_v55 = vpop.permute.xlu1 %291 }
  0xb2   :  { %v299_v0 = vrot.slane %v292_v55, 6 }
  0xb3   :  { %v374_v11 = vpop.permute.xlu2 %373 }
  0xb4   :  { %v247_v56 = vpop.permute.xlu0 %246  ;;  %v304_v9 = vsel %vm303_vm12, %v299_v0, %v292_v55  ;;  %v380_v32 = vrot.slane %v374_v11, 6 }
  0xb5   :  { %v256_v62 = vrot.slane %v247_v56, 2 }
  0xb6   :  { %v385_v42 = vsel %vm210_vm3, %v379_v7, %v380_v32 }
  0xb7   :  { %v386_v52 = vsel %vm383_vm14, %v385_v42, %v374_v11 }
  0xb9   :  { %v332_v58 = vpop.permute.xlu1 %331 }
  0xba   :  { %v339_v3 = vrot.slane %v332_v58, 6 }
  0xbb   :  { %v298_v34 = vpop.permute.xlu2 %297 }
  0xbc   :  { %v249_v60 = vpop.permute.xlu0 %248  ;;  %v344_v13 = vsel %vm343_vm13, %v339_v3, %v332_v58  ;;  %v233_v58 = vmul.f32 %v6556_v59, %v6512_v25 }
  0xbd   :  { %v257_v63 = vrot.slane %v249_v60, 2 }
  0xbf   :  { %v262_v2 = vsel %vm261_vm10, %v256_v62, %v257_v63  ;;  %v265_v22 = vsel %vm261_vm10, %v257_v63, %v258_v10 }
  0xc0   :  { %v264_v4 = vsel %vm263_vm11, %v247_v56, %v262_v2  ;;  %v266_v30 = vsel %vm263_vm11, %v249_v60, %v265_v22 }
  0xc1   :  { %v276_v5 = vadd.f32 %v264_v4, %v229_v61  ;;  %v294_v6 = vpop.permute.xlu1 %293  ;;  %v277_v38 = vadd.f32 %v266_v30, %v230_v26 }
  0xc2   :  { %v300_v18 = vrot.slane %v294_v6, 6 }
  0xc3   :  { %v316_v12 = vadd.f32 %v304_v9, %v276_v5  ;;  %v6593_v56 = vpop.permute.xlu2 %808 }
  0xc4   :  { %v253_v16 = vpop.permute.xlu0 %252  ;;  %v305_v27 = vsel %vm210_vm3, %v299_v0, %v300_v18  ;;  %v307_v43 = vsel %vm210_vm3, %v300_v18, %v301_v31 }
  0xc5   :  { %v356_v17 = vadd.f32 %v344_v13, %v316_v12  ;;  %v259_v24 = vrot.slane %v253_v16, 2  ;;  %v306_v35 = vsel %vm303_vm12, %v305_v27, %v294_v6 }
  0xc6   :  { %v317_v44 = vadd.f32 %v306_v35, %v277_v38 }
  0xc7   :  { %v396_v23 = vadd.f32 %v384_v20, %v356_v17  ;;  %v267_v33 = vsel %vm261_vm10, %v258_v10, %v259_v24 }
  0xc8   :  { %v268_v41 = vsel %vm263_vm11, %v251_v54, %v267_v33  ;;  %v308_v54 = vsel %vm303_vm12, %v307_v43, %v6554_v57  ;;  %v302_v57 = vrot.slane %v298_v34, 6 }
  0xc9   :  { %v6571_v28 = vpop.permute.xlu1 %335  ;;  %v403_v29 = vadd.f32 %v6565_v21, %v396_v23  ;;  %v278_v51 = vadd.f32 %v268_v41, %v231_v37 }
  0xca   :  { %v341_v39 = vrot.slane %v6571_v28, 6  ;;  %v309_v12 = vsel %vm210_vm3, %v301_v31, %v302_v57 }
  0xcb   :  { %5949 = vtanh.f32 %v403_v29  ;;  %v318_v0 = vadd.f32 %v308_v54, %v278_v51  ;;  %v310_v26 = vsel %vm303_vm12, %v309_v12, %v298_v34 }
  0xcc   :  { %v334_v36 = vpop.permute.xlu0 %333 }
  0xcd   :  { %v340_v40 = vrot.slane %v334_v36, 6 }
  0xcf   :  { %v345_v45 = vsel %vm210_vm3, %v339_v3, %v340_v40  ;;  %v347_v48 = vsel %vm210_vm3, %v340_v40, %v341_v39  ;;  %v232_v3 = vmul.f32 %v6556_v59, %v6501_v19 }
  0xd0   :  { %v346_v46 = vsel %vm343_vm13, %v345_v45, %v334_v36  ;;  %v348_v60 = vsel %vm343_vm13, %v347_v48, %v6571_v28 }
  0xd1   :  { %v6586_v47 = vpop.eup %5949  ;;  %v357_v49 = vadd.f32 %v346_v46, %v317_v44  ;;  %v255_v50 = vpop.permute.xlu1 %254  ;;  %v358_v4 = vadd.f32 %v348_v60, %v318_v0 }
  0xd2   :  { %418 = vst [vmem:[#allocation1] ss:$4 sm:$0xff] %v6586_v47  ;;  %v260_v53 = vrot.slane %v255_v50, 2  ;;  %v280_v9 = vadd.f32 %v255_v50, %v233_v58 }
  0xd3   :  { %v397_v55 = vadd.f32 %v386_v52, %v357_v49 }
  0xd4   :  { %v376_v61 = vpop.permute.xlu0 %375  ;;  %v269_v63 = vsel %vm261_vm10, %v259_v24, %v260_v53  ;;  %v320_v22 = vadd.f32 %v302_v57, %v280_v9  ;;  %v6610_v24 = vpop.permute.xlu2 %890 }
  0xd5   :  { %v404_v62 = vadd.f32 %v6565_v21, %v397_v55  ;;  %v381_v2 = vrot.slane %v376_v61, 6  ;;  %v270_v7 = vsel %vm263_vm11, %v253_v16, %v269_v63 }
  0xd6   :  { %v279_v18 = vadd.f32 %v270_v7, %v232_v3 }
  0xd7   :  { %5951 = vtanh.f32 %v404_v62  ;;  %v387_v5 = vsel %vm210_vm3, %v380_v32, %v381_v2 }
  0xd8   :  { %v388_v6 = vsel %vm383_vm14, %v387_v5, %v376_v61  ;;  %v319_v27 = vadd.f32 %v310_v26, %v279_v18 }
  0xd9   :  { %v398_v10 = vadd.f32 %v388_v6, %v358_v4  ;;  %v378_v11 = vpop.permute.xlu1 %377  ;;  %v6619_v35 = vld.sshfl [vmem:[#allocation1] sm:$0xff pattern:$0x73625140]  ;;  %v6621_v36 = vld.sshfl [vmem:[#allocation1 + $0x8] sm:$0xff pattern:$0x73625140]  ;;  %v549_v4 = vmul.f32 %v6586_v47, %v6586_v47 }
  0xda   :  { %v382_v17 = vrot.slane %v378_v11, 6  ;;  %v6626_v38 = vld.sshfl [vmem:[#allocation1 + $0x10] sm:$0xff pattern:$0x73625140] }
  0xdb   :  { %v405_v13 = vadd.f32 %v6565_v21, %v398_v10  ;;  %v6628_v40 = vld.sshfl [vmem:[#allocation1 + $0x18] sm:$0xff pattern:$0x73625140] }
  0xdc   :  { %v338_v20 = vpop.permute.xlu0 %337  ;;  %v389_v16 = vsel %vm210_vm3, %v381_v2, %v382_v17  ;;  %v6635_v44 = vpop.permute.xlu2 %814 }
  0xdd   :  { %v6608_v59 = vpop.eup %5951  ;;  %5953 = vtanh.f32 %v405_v13  ;;  %v342_v23 = vrot.slane %v338_v20, 6  ;;  %v390_v34 = vsel %vm383_vm14, %v389_v16, %v378_v11  ;;  %v8763_v16 = vrot.slane %v6610_v24, 6 }
  0xde   :  { %420 = vst [vmem:[#allocation1 + $0x20] ss:$4 sm:$0xff] %v6608_v59  ;;  %v550_v2 = vmul.f32 %v6608_v59, %v6608_v59 }
  0xdf   :  { %v349_v28 = vsel %vm210_vm3, %v341_v39, %v342_v23  ;;  %v360_v29 = vadd.f32 %v342_v23, %v320_v22  ;;  %v818_v22 = vrot.slane %v6593_v56, 2 }
  0xe0   :  { %v350_v30 = vsel %vm343_vm13, %v349_v28, %v338_v20 }
  0xe1   :  { %v359_v31 = vadd.f32 %v350_v30, %v319_v27  ;;  %v400_v32 = vadd.f32 %v382_v17, %v360_v29  ;;  %v6617_v33 = vpop.permute.xlu1 %851  ;;  %v6694_v17 = vstv %s5785_s26  ;;  %s4188_s26 = sld [smem:[#allocation16]] }
  0xe2   :  { %v859_v10 = vrot.slane %v6617_v33, 6  ;;  %v792_v18 = vmul.f32 %v6694_v17, %v6491_v14 }
  0xe3   :  { %v6624_v37 = vpop.eup %5953  ;;  %v399_v39 = vadd.f32 %v390_v34, %v359_v31  ;;  %v407_v41 = vadd.f32 %v6565_v21, %v400_v32 }
  0xe4   :  { %429 = vst [vmem:[#allocation1] ss:$4 sm:$0xff] %v6624_v37  ;;  %v6632_v42 = vpop.permute.xlu0 %810  ;;  %v6663_v60 = vpop.permute.xlu2 %892  ;;  %v551_v32 = vmul.f32 %v6624_v37, %v6624_v37 }
  0xe5   :  { %v406_v43 = vadd.f32 %v6565_v21, %v399_v39  ;;  %5955 = vtanh.f32 %v407_v41  ;;  %v6641_v48 = vld.sshfl [vmem:[#allocation1 + $0x20] sm:$0xff pattern:$0x73625140]  ;;  %v6643_v49 = vld.sshfl [vmem:[#allocation1 + $0x28] sm:$0xff pattern:$0x73625140] }
  0xe6   :  { %v6645_v50 = vld.sshfl [vmem:[#allocation1 + $0x30] sm:$0xff pattern:$0x73625140]  ;;  %v6659_v58 = vld.sshfl [vmem:[#allocation1 + $0x38] sm:$0xff pattern:$0x73625140] }
  0xe7   :  { %5957 = vtanh.f32 %v406_v43  ;;  %v819_v7 = vrot.slane %v6632_v42, 2  ;;  %v8759_v28 = vrot.slane %v6663_v60, 6 }
  0xe9   :  { %v6637_v45 = vpop.permute.xlu1 %812  ;;  %v823_v1 = vsel %vm261_vm10, %v818_v22, %v819_v7 }
  0xea   :  { %v8762_v63 = vrot.slane %v6637_v45, 2 }
  0xeb   :  { %v6639_v46 = vpop.eup %5955  ;;  %v6647_v51 = vld.sshfl [vmem:[#allocation1] sm:$0xff pattern:$0x73625140]  ;;  %v6649_v52 = vld.sshfl [vmem:[#allocation1 + $0x8] sm:$0xff pattern:$0x73625140] }
  0xec   :  { %v6651_v53 = vld.sshfl [vmem:[#allocation1 + $0x10] sm:$0xff pattern:$0x73625140]  ;;  %v6653_v21 = vld.sshfl [vmem:[#allocation1 + $0x18] sm:$0xff pattern:$0x73625140]  ;;  %v6655_v54 = vpop.permute.xlu0 %929  ;;  %v825_v11 = vsel %vm261_vm10, %v819_v7, %v8762_v63  ;;  %v6692_v13 = vpop.permute.xlu2 %933 }
  0xed   :  { %v6657_v55 = vpop.eup %5957  ;;  %439 = vst [vmem:[#allocation1] ss:$4 sm:$0xff] %v6639_v46  ;;  %v826_v23 = vsel %vm263_vm11, %v6632_v42, %v825_v11  ;;  %v8761_v27 = vrot.slane %v6655_v54, 6 }
  0xee   :  { %430 = vst [vmem:[#allocation1 + $0x20] ss:$4 sm:$0xff] %v6657_v55  ;;  %v837_v34 = vadd.f32 %v826_v23, %v792_v18 }
  0xf1   :  { %v6665_v61 = vpop.permute.xlu1 %855 }
  0xf2   :  { %v861_v63 = vrot.slane %v6665_v61, 6 }
  0xf4   :  { %v6667_v62 = vld.sshfl [vmem:[#allocation1] sm:$0xff pattern:$0x73625140]  ;;  %v6670_v0 = vpop.permute.xlu0 %853 }
  0xf5   :  { %8778 = vst [vmem:[#allocation41_spill] sm:$0xff] %v6667_v62  ;;  %v6674_v3 = vld.sshfl [vmem:[#allocation1 + $0x20] sm:$0xff pattern:$0x73625140]  ;;  %v8758_v9 = vrot.slane %v6670_v0, 6 }
  0xf6   :  { %v6676_v57 = vld.sshfl [vmem:[#allocation1 + $0x28] sm:$0xff pattern:$0x73625140]  ;;  %v6680_v5 = vld.sshfl [vmem:[#allocation1 + $0x30] sm:$0xff pattern:$0x73625140] }
  0xf7   :  { %8779 = vst [vmem:[#allocation42_spill] sm:$0xff] %v6676_v57  ;;  %v6682_v6 = vld.sshfl [vmem:[#allocation1 + $0x38] sm:$0xff pattern:$0x73625140]  ;;  %v864_v20 = vsel %vm210_vm3, %v859_v10, %v8758_v9 }
  0xf8   :  { %8780 = vst [vmem:[#allocation43_spill] sm:$0xff] %v6680_v5  ;;  %v865_v31 = vsel %vm303_vm12, %v864_v20, %v6670_v0  ;;  %v553_v5 = vmul.f32 %v6639_v46, %v6639_v46 }
  0xf9   :  { %8781 = vst [vmem:[#allocation44_spill] sm:$0xff] %v6682_v6  ;;  %v6690_v12 = vpop.permute.xlu1 %931  ;;  %v876_v11 = vadd.f32 %v865_v31, %v837_v34  ;;  %v6748_v34 = vpop.permute.xlu2 %896 }
  0xfa   :  { %561 = vst [vmem:[#allocation1 + $0x20] ss:$4 sm:$0xff] %v550_v2  ;;  %v8760_v29 = vrot.slane %v6690_v12, 6  ;;  %v552_v2 = vmul.f32 %v6657_v55, %v6657_v55 }
  0xfb   :  { %559 = vst [vmem:[#allocation1] ss:$4 sm:$0xff] %v549_v4  ;;  %v903_v4 = vsel %vm210_vm3, %v8763_v16, %v8759_v28  ;;  %v791_v28 = vmul.f32 %v6694_v17, %v6484_v8  ;;  %v824_v8 = vsel %vm263_vm11, %v6593_v56, %v823_v1 }
  0xfc   :  { %v6704_v26 = vpop.permute.xlu0 %894  ;;  %v942_v18 = vsel %vm210_vm3, %v8761_v27, %v8760_v29  ;;  %v794_v29 = vmul.f32 %v6694_v17, %v6501_v19  ;;  %v904_v27 = vsel %vm343_vm13, %v903_v4, %v6663_v60 }
  0xfd   :  { %v943_v7 = vsel %vm383_vm14, %v942_v18, %v6690_v12  ;;  %v915_v16 = vadd.f32 %v904_v27, %v876_v11  ;;  %v900_v62 = vrot.slane %v6704_v26, 6  ;;  %v836_v1 = vadd.f32 %v824_v8, %v791_v28 }
  0xff   :  { %v954_v31 = vadd.f32 %v943_v7, %v915_v16  ;;  %v863_v16 = vsel %vm303_vm12, %v859_v10, %v6617_v33 }
 0x101   :  { %v6710_v14 = vld.sshfl [vmem:[#allocation1 + $0x30] sm:$0xff pattern:$0x73625140]  ;;  %v6712_v30 = vld.sshfl [vmem:[#allocation1 + $0x38] sm:$0xff pattern:$0x73625140]  ;;  %v6738_v20 = vpop.permute.xlu1 %857 }
 0x102   :  { %v6718_v39 = vld.sshfl [vmem:[#allocation1] sm:$0xff pattern:$0x73625140]  ;;  %v6720_v41 = vld.sshfl [vmem:[#allocation1 + $0x8] sm:$0xff pattern:$0x73625140] }
 0x103   :  { %v6722_v42 = vld.sshfl [vmem:[#allocation1 + $0x10] sm:$0xff pattern:$0x73625140]  ;;  %v6724_v43 = vld.sshfl [vmem:[#allocation1 + $0x18] sm:$0xff pattern:$0x73625140] }
 0x104   :  { %570 = vst [vmem:[#allocation1] ss:$4 sm:$0xff] %v551_v32  ;;  %v6740_v23 = vld.sshfl [vmem:[#allocation1 + $0x20] sm:$0xff pattern:$0x73625140]  ;;  %v821_v32 = vrot.slane %v6635_v44, 2  ;;  %v6757_v22 = vpop.permute.xlu0 %816 }
 0x105   :  { %v6743_v9 = vld.sshfl [vmem:[#allocation1 + $0x28] sm:$0xff pattern:$0x73625140]  ;;  %v8782_v4 = vrot.slane %v6738_v20, 6 }
 0x106   :  { %571 = vst [vmem:[#allocation1 + $0x20] ss:$4 sm:$0xff] %v552_v2  ;;  %v822_v2 = vrot.slane %v6757_v22, 2 }
 0x107   :  { %v868_v6 = vsel %vm210_vm3, %v861_v63, %v8782_v4 }
 0x108   :  { %v829_v18 = vsel %vm261_vm10, %v821_v32, %v822_v2  ;;  %v6783_v2 = vstv %s5790_s27  ;;  %v869_v28 = vsel %vm303_vm12, %v868_v6, %v6738_v20  ;;  %s5842_s27 = sld [smem:[#allocation16 + $0x1]] }
 0x109   :  { %v830_v56 = vsel %vm263_vm11, %v6635_v44, %v829_v18  ;;  %v961_v44 = vadd.f32 %v6783_v2, %v954_v31  ;;  %v8785_v18 = vrot.slane %v6748_v34, 6 }
 0x10a   :  { %v839_v7 = vadd.f32 %v830_v56, %v794_v29  ;;  %v875_v29 = vadd.f32 %v863_v16, %v836_v1  ;;  %v793_v16 = vmul.f32 %v6694_v17, %v6493_v15  ;;  %v8792_v15 = vrot.slane %v6670_v0, 6 }
 0x10b   :  { %v6773_v27 = vld.sshfl [vmem:[#allocation1] sm:$0xff pattern:$0x73625140]  ;;  %v6775_v11 = vld.sshfl [vmem:[#allocation1 + $0x8] sm:$0xff pattern:$0x73625140]  ;;  %v907_v57 = vsel %vm210_vm3, %v900_v62, %v8785_v18  ;;  %5959 = vtanh.f32 %v961_v44 }
 0x10c   :  { %v6779_v19 = vld.sshfl [vmem:[#allocation1 + $0x10] sm:$0xff pattern:$0x73625140]  ;;  %v6781_v4 = vld.sshfl [vmem:[#allocation1 + $0x18] sm:$0xff pattern:$0x73625140]  ;;  %v878_v33 = vadd.f32 %v869_v28, %v839_v7  ;;  %v6796_v56 = vpop.permute.xlu0 %935  ;;  %v908_v1 = vsel %vm343_vm13, %v907_v57, %v6748_v34  ;;  %v866_v44 = vsel %vm210_vm3, %v8792_v15, %v861_v63 }
 0x10d   :  { %8783 = vst [vmem:[#allocation45_spill] sm:$0xff] %v6781_v4  ;;  %v6787_v8 = vld.sshfl [vmem:[#allocation1 + $0x20] sm:$0xff pattern:$0x73625140]  ;;  %v8764_v28 = vrot.slane %v6796_v56, 6  ;;  %v8791_v57 = vrot.slane %v6655_v54, 6  ;;  %v867_v63 = vsel %vm303_vm12, %v866_v44, %v6665_v61 }
 0x10e   :  { %580 = vst [vmem:[#allocation1] ss:$4 sm:$0xff] %v553_v5  ;;  %v6794_v10 = vld.sshfl [vmem:[#allocation1 + $0x28] sm:$0xff pattern:$0x73625140]  ;;  %v8789_v5 = vrot.slane %v6610_v24, 6 }
 0x10f   :  { %8784 = vst [vmem:[#allocation46_spill] sm:$0xff] %v6787_v8  ;;  %v6798_v4 = vld.sshfl [vmem:[#allocation1 + $0x30] sm:$0xff pattern:$0x73625140]  ;;  %v8790_v8 = vrot.slane %v6637_v45, 2  ;;  %v8795_v61 = vrot.slane %v6690_v12, 6 }
 0x110   :  { %712 = vst [vmem:[#allocation1 + $0x10] ss:$2 sm:$0xff] %v6608_v59  ;;  %v6800_v6 = vld.sshfl [vmem:[#allocation1 + $0x38] sm:$0xff pattern:$0x73625140]  ;;  %v902_v31 = vsel %vm343_vm13, %v8789_v5, %v6610_v24  ;;  %v939_v59 = vrot.slane %v6692_v13, 6  ;;  %v917_v24 = vadd.f32 %v908_v1, %v878_v33 }
 0x111   :  { %8786 = vst [vmem:[#allocation47_spill] sm:$0xff] %v6794_v10  ;;  %v827_v7 = vsel %vm261_vm10, %v8790_v8, %v821_v32  ;;  %v914_v18 = vadd.f32 %v902_v31, %v875_v29 }
 0x112   :  { %8787 = vst [vmem:[#allocation48_spill] sm:$0xff] %v6798_v4  ;;  %v946_v32 = vsel %vm210_vm3, %v939_v59, %v8764_v28  ;;  %v828_v8 = vsel %vm263_vm11, %v6637_v45, %v827_v7  ;;  %v8794_v45 = vrot.slane %v6663_v60, 6 }
 0x113   :  { %8788 = vst [vmem:[#allocation49_spill] sm:$0xff] %v6800_v6  ;;  %v838_v28 = vadd.f32 %v828_v8, %v793_v16 }
 0x114   :  { %714 = vst [vmem:[#allocation1 + $0x20] ss:$2 sm:$0xff] %v6624_v37  ;;  %v947_v37 = vsel %vm383_vm14, %v946_v32, %v6796_v56  ;;  %v905_v29 = vsel %vm210_vm3, %v8794_v45, %v900_v62  ;;  %v944_v32 = vsel %vm210_vm3, %v8795_v61, %v939_v59  ;;  %v8797_v45 = vrot.slane %v6748_v34, 6 }
 0x115   :  { %716 = vst [vmem:[#allocation1 + $0x30] ss:$2 sm:$0xff] %v6657_v55  ;;  %v941_v55 = vsel %vm383_vm14, %v8791_v57, %v6655_v54  ;;  %v956_v33 = vadd.f32 %v947_v37, %v917_v24  ;;  %v6831_v5 = vld.sshfl [vmem:[#allocation1] sm:$0xff pattern:$0x73625140]  ;;  %v6841_v24 = vpop.eup %5959  ;;  %v906_v62 = vsel %vm343_vm13, %v905_v29, %v6704_v26  ;;  %v877_v8 = vadd.f32 %v867_v63, %v838_v28 }
 0x116   :  { %8793 = vst [vmem:[#allocation50_spill] sm:$0xff] %v6831_v5  ;;  %v953_v54 = vadd.f32 %v941_v55, %v914_v18  ;;  %v945_v57 = vsel %vm383_vm14, %v944_v32, %v6692_v13  ;;  %v8796_v13 = vrot.slane %v6738_v20, 6  ;;  %v1105_v20 = vmul.f32 %v6841_v24, %v6841_v24 }
 0x117   :  { %v719_v1 = vld.sshfl [vmem:[#allocation1 + $0x10] sm:$0xff pattern:$0x75643120]  ;;  %v963_v31 = vadd.f32 %v6783_v2, %v956_v33  ;;  %710 = vst [vmem:[#allocation1] ss:$2 sm:$0xff] %v6586_v47  ;;  %v795_v47 = vmul.f32 %v6694_v17, %v6512_v25  ;;  %v916_v37 = vadd.f32 %v906_v62, %v877_v8 }
 0x118   :  { %731 = vrot.lane.b32.xlu2 %v719_v1, %s6323_s28  ;;  %v960_v18 = vadd.f32 %v6783_v2, %v953_v54  ;;  %v720_v17 = vld.sshfl [vmem:[#allocation1 + $0x18] sm:$0xff pattern:$0x75643120]  ;;  %v8798_v54 = vrot.slane %v6796_v56, 6 }
 0x119   :  { %5961 = vtanh.f32 %v963_v31  ;;  %v840_v55 = vadd.f32 %v6757_v22, %v795_v47  ;;  %v955_v44 = vadd.f32 %v945_v57, %v916_v37 }
 0x11a   :  { %5963 = vtanh.f32 %v960_v18 }
 0x11b   :  { %v722_v0 = vld.sshfl [vmem:[#allocation1 + $0x28] sm:$0xff pattern:$0x75643120]  ;;  %v721_v7 = vld.sshfl [vmem:[#allocation1 + $0x20] sm:$0xff pattern:$0x75643120]  ;;  %v879_v28 = vadd.f32 %v8796_v13, %v840_v55 }
 0x11c   :  { %v6843_v16 = vld.sshfl [vmem:[#allocation1 + $0x30] sm:$0xff pattern:$0x75643120]  ;;  %v6845_v60 = vld.sshfl [vmem:[#allocation1 + $0x38] sm:$0xff pattern:$0x75643120]  ;;  %737 = vrot.lane.b32.xlu1 %v722_v0, %s6323_s28  ;;  %735 = vrot.lane.b32.xlu0 %v721_v7, %s6323_s28 }
 0x11d   :  { %977 = vst [vmem:[#allocation1 + $0x20] ss:$4 sm:$0xff] %v6841_v24  ;;  %v918_v29 = vadd.f32 %v8797_v45, %v879_v28 }
 0x11e   :  { %v717_v26 = vld.sshfl [vmem:[#allocation1] sm:$0xff pattern:$0x75643120]  ;;  %v718_v15 = vld.sshfl [vmem:[#allocation1 + $0x8] sm:$0xff pattern:$0x75643120] }
 0x11f   :  { %725 = vst [vmem:[#allocation1] ss:$2 sm:$0xff] %v6639_v46  ;;  %v5962_v25 = vpop.eup %5961  ;;  %v962_v46 = vadd.f32 %v6783_v2, %v955_v44  ;;  %v957_v63 = vadd.f32 %v8798_v54, %v918_v29 }
 0x120   :  { %v5964_v1 = vpop.eup %5963  ;;  %v1107_v37 = vmul.f32 %v5962_v25, %v5962_v25 }
 0x121   :  { %5965 = vtanh.f32 %v962_v46  ;;  %v964_v47 = vadd.f32 %v6783_v2, %v957_v63  ;;  %v1104_v54 = vmul.f32 %v5964_v1, %v5964_v1 }
 0x123   :  { %5967 = vtanh.f32 %v964_v47 }
 0x124   :  { %v6862_v12 = vld.sshfl [vmem:[#allocation1 + $0x20] sm:$0xff pattern:$0x73625140]  ;;  %v6864_v59 = vld.sshfl [vmem:[#allocation1 + $0x28] sm:$0xff pattern:$0x73625140]  ;;  %733 = vrot.lane.b32.xlu0 %v720_v17, %s6323_s28  ;;  %729 = vrot.lane.b32.xlu1 %v718_v15, %s6323_s28 }
 0x125   :  { %v6870_v22 = vld.sshfl [vmem:[#allocation1 + $0x30] sm:$0xff pattern:$0x73625140]  ;;  %v6872_v33 = vld.sshfl [vmem:[#allocation1 + $0x38] sm:$0xff pattern:$0x73625140] }
 0x126   :  { %987 = vst [vmem:[#allocation1 + $0x20] ss:$4 sm:$0xff] %v5962_v25  ;;  %v6877_v31 = vld.sshfl [vmem:[#allocation1] sm:$0xff pattern:$0x75643120] }
 0x127   :  { %975 = vst [vmem:[#allocation1] ss:$4 sm:$0xff] %v5964_v1  ;;  %v5966_v8 = vpop.eup %5965 }
 0x129   :  { %v5968_v44 = vpop.eup %5967 }
 0x12c   :  { %727 = vrot.lane.b32.xlu1 %v717_v26, %s6323_s28 }
 0x12d   :  { %v6884_v0 = vld.sshfl [vmem:[#allocation1 + $0x20] sm:$0xff pattern:$0x73625140]  ;;  %v6886_v7 = vld.sshfl [vmem:[#allocation1 + $0x28] sm:$0xff pattern:$0x73625140] }
 0x12e   :  { %8799 = vst [vmem:[#allocation51_spill] sm:$0xff] %v6884_v0  ;;  %v6888_v62 = vld.sshfl [vmem:[#allocation1 + $0x30] sm:$0xff pattern:$0x73625140] }
 0x12f   :  { %8800 = vst [vmem:[#allocation52_spill] sm:$0xff] %v6886_v7  ;;  %v6890_v34 = vld.sshfl [vmem:[#allocation1 + $0x38] sm:$0xff pattern:$0x73625140] }
 0x130   :  { %8801 = vst [vmem:[#allocation53_spill] sm:$0xff] %v6888_v62  ;;  %v6893_v61 = vld.sshfl [vmem:[#allocation1] sm:$0xff pattern:$0x73625140] }
 0x131   :  { %8802 = vst [vmem:[#allocation54_spill] sm:$0xff] %v6890_v34  ;;  %v6895_v32 = vld.sshfl [vmem:[#allocation1 + $0x8] sm:$0xff pattern:$0x73625140]  ;;  %v1106_v34 = vmul.f32 %v5966_v8, %v5966_v8 }
 0x132   :  { %1116 = vst [vmem:[#allocation1 + $0x20] ss:$4 sm:$0xff] %v1105_v20  ;;  %v6897_v18 = vld.sshfl [vmem:[#allocation1 + $0x10] sm:$0xff pattern:$0x73625140] }
 0x133   :  { %v6899_v56 = vld.sshfl [vmem:[#allocation1 + $0x18] sm:$0xff pattern:$0x73625140] }
 0x134   :  { %986 = vst [vmem:[#allocation1] ss:$4 sm:$0xff] %v5966_v8 }
 0x139   :  { %v6901_v57 = vld.sshfl [vmem:[#allocation1 + $0x20] sm:$0xff pattern:$0x73625140]  ;;  %v6903_v55 = vld.sshfl [vmem:[#allocation1 + $0x28] sm:$0xff pattern:$0x73625140] }
 0x13a   :  { %v6905_v26 = vld.sshfl [vmem:[#allocation1 + $0x30] sm:$0xff pattern:$0x73625140]  ;;  %v6907_v15 = vld.sshfl [vmem:[#allocation1 + $0x38] sm:$0xff pattern:$0x73625140] }
 0x13b   :  { %1126 = vst [vmem:[#allocation1 + $0x20] ss:$4 sm:$0xff] %v1107_v37  ;;  %v6909_v2 = vld.sshfl [vmem:[#allocation1] sm:$0xff pattern:$0x73625140] }
 0x13c   :  { %8803 = vst [vmem:[#allocation55_spill] sm:$0xff] %v6909_v2  ;;  %v6911_v17 = vld.sshfl [vmem:[#allocation1 + $0x8] sm:$0xff pattern:$0x73625140] }
 0x13d   :  { %8804 = vst [vmem:[#allocation56_spill] sm:$0xff] %v6911_v17  ;;  %v6913_v13 = vld.sshfl [vmem:[#allocation1 + $0x10] sm:$0xff pattern:$0x73625140] }
 0x13e   :  { %8805 = vst [vmem:[#allocation57_spill] sm:$0xff] %v6913_v13  ;;  %v6915_v28 = vld.sshfl [vmem:[#allocation1 + $0x18] sm:$0xff pattern:$0x73625140] }
 0x13f   :  { %8806 = vst [vmem:[#allocation58_spill] sm:$0xff] %v6915_v28 }
 0x140   :  { %996 = vst [vmem:[#allocation1] ss:$4 sm:$0xff] %v5968_v44 }
 0x142   :  { %v6917_v46 = vld.sshfl [vmem:[#allocation1 + $0x20] sm:$0xff pattern:$0x73625140]  ;;  %v6919_v45 = vld.sshfl [vmem:[#allocation1 + $0x28] sm:$0xff pattern:$0x73625140] }
 0x143   :  { %8807 = vst [vmem:[#allocation59_spill] sm:$0xff] %v6917_v46  ;;  %v6921_v29 = vld.sshfl [vmem:[#allocation1 + $0x30] sm:$0xff pattern:$0x73625140] }
 0x144   :  { %8808 = vst [vmem:[#allocation60_spill] sm:$0xff] %v6919_v45  ;;  %v6923_v20 = vld.sshfl [vmem:[#allocation1 + $0x38] sm:$0xff pattern:$0x73625140] }
 0x145   :  { %1263 = vst [vmem:[#allocation1 + $0x21] ss:$2 sm:$0xff] %v5966_v8 }
 0x146   :  { %8809 = vst [vmem:[#allocation61_spill] sm:$0xff] %v6921_v29 }
 0x147   :  { %8810 = vst [vmem:[#allocation62_spill] sm:$0xff] %v6923_v20  ;;  %v6925_v63 = vld.sshfl [vmem:[#allocation1] sm:$0xff pattern:$0x73625140] }
 0x148   :  { %1265 = vst [vmem:[#allocation1 + $0x31] ss:$2 sm:$0xff] %v5962_v25  ;;  %v1108_v25 = vmul.f32 %v5968_v44, %v5968_v44 }
 0x149   :  { %8811 = vst [vmem:[#allocation63_spill] sm:$0xff] %v6925_v63 }
 0x14a   :  { %1114 = vst [vmem:[#allocation1] ss:$4 sm:$0xff] %v1104_v54 }
 0x14c   :  { %v1271_v47 = vld.sshfl [vmem:[#allocation1 + $0x28] sm:$0xff pattern:$0x75643120]  ;;  %v1270_v37 = vld.sshfl [vmem:[#allocation1 + $0x20] sm:$0xff pattern:$0x75643120] }
 0x14d   :  { %1286 = vrot.lane.b32.xlu0 %v1271_v47, %s6323_s28  ;;  %1284 = vrot.lane.b32.xlu2 %v1270_v37, %s6323_s28 }
 0x14f   :  { %v1272_v6 = vld.sshfl [vmem:[#allocation1 + $0x30] sm:$0xff pattern:$0x75643120] }
 0x151   :  { %v6929_v62 = vld.sshfl [vmem:[#allocation1] sm:$0xff pattern:$0x73625140]  ;;  %v6931_v45 = vld.sshfl [vmem:[#allocation1 + $0x8] sm:$0xff pattern:$0x73625140] }
 0x152   :  { %v6933_v46 = vld.sshfl [vmem:[#allocation1 + $0x10] sm:$0xff pattern:$0x73625140]  ;;  %v6935_v29 = vld.sshfl [vmem:[#allocation1 + $0x18] sm:$0xff pattern:$0x73625140] }
 0x153   :  { %1125 = vst [vmem:[#allocation1] ss:$4 sm:$0xff] %v1106_v34 }
 0x15a   :  { %v6937_v20 = vld.sshfl [vmem:[#allocation1] sm:$0xff pattern:$0x73625140]  ;;  %v6939_v54 = vld.sshfl [vmem:[#allocation1 + $0x8] sm:$0xff pattern:$0x73625140] }
 0x15b   :  { %8812 = vst [vmem:[#allocation64_spill] sm:$0xff] %v6937_v20  ;;  %v6941_v63 = vld.sshfl [vmem:[#allocation1 + $0x10] sm:$0xff pattern:$0x73625140] }
 0x15c   :  { %8813 = vst [vmem:[#allocation65_spill] sm:$0xff] %v6939_v54  ;;  %v6943_v47 = vld.sshfl [vmem:[#allocation1 + $0x18] sm:$0xff pattern:$0x73625140] }
 0x15d   :  { %8814 = vst [vmem:[#allocation66_spill] sm:$0xff] %v6941_v63 }
 0x15e   :  { %8815 = vst [vmem:[#allocation67_spill] sm:$0xff] %v6943_v47 }
 0x15f   :  { %1135 = vst [vmem:[#allocation1] ss:$4 sm:$0xff] %v1108_v25 }
 0x160   :  { %1261 = vst [vmem:[#allocation1 + $0x11] ss:$2 sm:$0xff] %v6841_v24 }
 0x166   :  { %v6946_v8 = vld.sshfl [vmem:[#allocation1] sm:$0xff pattern:$0x73625140] }
 0x167   :  { %8816 = vst [vmem:[#allocation68_spill] sm:$0xff] %v6946_v8  ;;  %v1269_v37 = vld.sshfl [vmem:[#allocation1 + $0x18] sm:$0xff pattern:$0x75643120] }
 0x168   :  { %1259 = vst [vmem:[#allocation1 + $0x1] ss:$2 sm:$0xff] %v5964_v1  ;;  %1282 = vrot.lane.b32.xlu0 %v1269_v37, %s6323_s28  ;;  %v1268_v5 = vld.sshfl [vmem:[#allocation1 + $0x10] sm:$0xff pattern:$0x75643120] }
 0x169   :  { %1280 = vrot.lane.b32.xlu2 %v1268_v5, %s6323_s28  ;;  %v1273_v5 = vld.sshfl [vmem:[#allocation1 + $0x38] sm:$0xff pattern:$0x75643120] }
 0x16f   :  { %v1267_v34 = vld.sshfl [vmem:[#allocation1 + $0x8] sm:$0xff pattern:$0x75643120]  ;;  %v1266_v7 = vld.sshfl [vmem:[#allocation1] sm:$0xff pattern:$0x75643120] }
 0x170   :  { %1278 = vrot.lane.b32.xlu1 %v1267_v34, %s6323_s28  ;;  %1274 = vst [vmem:[#allocation1 + $0x1] ss:$2 sm:$0xff] %v5968_v44  ;;  %1288 = vrot.lane.b32.xlu0 %v1272_v6, %s6323_s28 }
 0x171   :  { %741 = vrot.lane.b32.xlu2 %v6845_v60, %s6323_s28 }
 0x172   :  { %v732_v25 = vpop.permute.xlu2 %731 }
 0x177   :  { %v1275_v24 = vld.sshfl [vmem:[#allocation1] sm:$0xff pattern:$0x75643120] }
 0x178   :  { %739 = vrot.lane.b32.xlu1 %v6843_v16, %s6323_s28  ;;  %1292 = vrot.lane.b32.xlu0 %v1275_v24, %s6323_s28  ;;  %v747_v24 = vrot.slane %v732_v25, 4 }
 0x179   :  { %1276 = vrot.lane.b32.xlu2 %v1266_v7, %s6323_s28 }
 0x180   :  { %1290 = vrot.lane.b32.xlu1 %v1273_v5, %s6323_s28 }
 0x181   :  { %743 = vrot.lane.b32.xlu2 %v6877_v31, %s6323_s28 }
 0x18e   :  { %v6961_v1 = vpop.permute.xlu1 %737  ;;  %v736_v6 = vpop.permute.xlu0 %735 }
 0x18f   :  { %v8765_v60 = vrot.slane %v6961_v1, 4  ;;  %v749_v44 = vrot.slane %v736_v6, 4 }
 0x191   :  { %v763_v16 = vsel %vm754_vm15, %v749_v44, %v8765_v60 }
 0x192   :  { %v764_v7 = vsel %vm475_vm0, %v736_v6, %v763_v16 }
 0x193   :  { %783 = vst [vmem:[#allocation3 + $0x20] sm:$0x33] %v764_v7 }
 0x196   :  { %v734_v37 = vpop.permute.xlu0 %733  ;;  %v730_v34 = vpop.permute.xlu1 %729 }
 0x197   :  { %v748_v31 = vrot.slane %v734_v37, 4  ;;  %v746_v5 = vrot.slane %v730_v34, 4 }
 0x199   :  { %v759_v8 = vsel %vm754_vm15, %v747_v24, %v748_v31  ;;  %v761_v47 = vsel %vm754_vm15, %v748_v31, %v749_v44  ;;  %v757_v0 = vsel %vm754_vm15, %v746_v5, %v747_v24 }
 0x19a   :  { %v760_v28 = vsel %vm475_vm0, %v732_v25, %v759_v8  ;;  %v762_v63 = vsel %vm475_vm0, %v734_v37, %v761_v47  ;;  %v758_v60 = vsel %vm475_vm0, %v730_v34, %v757_v0 }
 0x19b   :  { %781 = vst [vmem:[#allocation3 + $0x10] sm:$0x33] %v760_v28 }
 0x19c   :  { %782 = vst [vmem:[#allocation3 + $0x18] sm:$0x33] %v762_v63 }
 0x19d   :  { %780 = vst [vmem:[#allocation3 + $0x8] sm:$0x33] %v758_v60 }
 0x19e   :  { %v728_v6 = vpop.permute.xlu1 %727 }
 0x19f   :  { %v745_v16 = vrot.slane %v728_v6, 4 }
 0x1a1   :  { %v755_v7 = vsel %vm754_vm15, %v745_v16, %v746_v5 }
 0x1a2   :  { %v756_v4 = vsel %vm475_vm0, %v728_v6, %v755_v7 }
 0x1a3   :  { %779 = vst [vmem:[#allocation3] sm:$0x33] %v756_v4 }
 0x1a7   :  { %v1285_v54 = vpop.permute.xlu2 %1284 }
 0x1a8   :  { %v1298_v24 = vrot.slane %v1285_v54, 4 }
 0x1bf   :  { %v1287_v31 = vpop.permute.xlu0 %1286 }
 0x1c0   :  { %v1299_v13 = vrot.slane %v1287_v31, 4 }
 0x1c2   :  { %v1311_v8 = vsel %vm754_vm15, %v1298_v24, %v1299_v13 }
 0x1c3   :  { %v1281_v44 = vpop.permute.xlu2 %1280  ;;  %v1312_v47 = vsel %vm475_vm0, %v1285_v54, %v1311_v8 }
 0x1c4   :  { %1331 = vst [vmem:[#allocation3 + $0x20] sm:$0xcc] %v1312_v47  ;;  %v1296_v25 = vrot.slane %v1281_v44, 4 }
 0x1cb   :  { %v742_v0 = vpop.permute.xlu2 %741  ;;  %v6978_v28 = vld [vmem:[#allocation3 + $0x20] sm:$0xff] }
 0x1cc   :  { %1360 = vrot.lane.b32.xlu2 %v6978_v28, %s6320_s0  ;;  %v752_v34 = vrot.slane %v742_v0, 4 }
 0x1d3   :  { %v1277_v63 = vpop.permute.xlu2 %1276 }
 0x1d4   :  { %v1294_v20 = vrot.slane %v1277_v63, 4 }
 0x1da   :  { %v1283_v60 = vpop.permute.xlu0 %1282 }
 0x1db   :  { %v1297_v4 = vrot.slane %v1283_v60, 4  ;;  %v744_v37 = vpop.permute.xlu2 %743 }
 0x1dc   :  { %v753_v5 = vrot.slane %v744_v37, 4 }
 0x1dd   :  { %v1307_v6 = vsel %vm754_vm15, %v1296_v25, %v1297_v4  ;;  %v1309_v16 = vsel %vm754_vm15, %v1297_v4, %v1298_v24 }
 0x1de   :  { %v1308_v54 = vsel %vm475_vm0, %v1281_v44, %v1307_v6  ;;  %v1310_v7 = vsel %vm475_vm0, %v1283_v60, %v1309_v16  ;;  %v769_v8 = vsel %vm754_vm15, %v752_v34, %v753_v5 }
 0x1df   :  { %1329 = vst [vmem:[#allocation3 + $0x10] sm:$0xcc] %v1308_v54  ;;  %v770_v47 = vsel %vm475_vm0, %v742_v0, %v769_v8 }
 0x1e0   :  { %1330 = vst [vmem:[#allocation3 + $0x18] sm:$0xcc] %v1310_v7 }
 0x1e1   :  { %788 = vst.msk [vmem:[#allocation3 + $0x38] sm:$0x33] %vm787_vm5, %v770_v47 }
 0x1e2   :  { %v1279_v10 = vpop.permute.xlu1 %1278  ;;  %v1289_v37 = vpop.permute.xlu0 %1288 }
 0x1e3   :  { %v1295_v17 = vrot.slane %v1279_v10, 4  ;;  %v1300_v2 = vrot.slane %v1289_v37, 4 }
 0x1e5   :  { %v1303_v24 = vsel %vm754_vm15, %v1294_v20, %v1295_v17  ;;  %v1305_v44 = vsel %vm754_vm15, %v1295_v17, %v1296_v25  ;;  %v1313_v60 = vsel %vm754_vm15, %v1299_v13, %v1300_v2  ;;  %v8817_v13 = vrot.slane %v6961_v1, 4 }
 0x1e6   :  { %v1304_v4 = vsel %vm475_vm0, %v1277_v63, %v1303_v24  ;;  %v1306_v5 = vsel %vm475_vm0, %v1279_v10, %v1305_v44  ;;  %v1314_v6 = vsel %vm475_vm0, %v1287_v31, %v1313_v60  ;;  %v6995_v0 = vld [vmem:[#allocation3 + $0x10] sm:$0xff] }
 0x1e7   :  { %1327 = vst [vmem:[#allocation3] sm:$0xcc] %v1304_v4  ;;  %1411 = vrot.lane.b32.xlu1 %v6995_v0, %s6319_s21  ;;  %1356 = vrot.lane.b32.xlu2 %v6995_v0, %s6320_s0  ;;  %v7001_v20 = vld [vmem:[#allocation3 + $0x18] sm:$0xff] }
 0x1e8   :  { %1332 = vst [vmem:[#allocation3 + $0x28] sm:$0xcc] %v1314_v6  ;;  %1413 = vrot.lane.b32.xlu0 %v7001_v20, %s6319_s21  ;;  %v1696_v6 = vld [vmem:[#allocation20 + $0x3e0] sm:$0xff] }
 0x1e9   :  { %1328 = vst [vmem:[#allocation3 + $0x8] sm:$0xcc] %v1306_v5  ;;  %2657 = vmatpush.msra.mxu1 %v1696_v6  ;;  %v1808_v6 = vld [vmem:[#allocation20 + $0x760] sm:$0xff] }
 0x1ea   :  { %v740_v17 = vpop.permute.xlu1 %739  ;;  %v1293_v7 = vpop.permute.xlu0 %1292 }
 0x1eb   :  { %v751_v10 = vrot.slane %v740_v17, 4 }
 0x1ed   :  { %v765_v31 = vsel %vm754_vm15, %v8817_v13, %v751_v10  ;;  %v767_v63 = vsel %vm754_vm15, %v751_v10, %v752_v34  ;;  %v1824_v10 = vld [vmem:[#allocation20 + $0x7e0] sm:$0xff] }
 0x1ee   :  { %v766_v25 = vsel %vm475_vm0, %v6961_v1, %v765_v31  ;;  %v768_v16 = vsel %vm475_vm0, %v740_v17, %v767_v63  ;;  %v7012_v54 = vld [vmem:[#allocation3] sm:$0xff]  ;;  %v1302_v1 = vrot.slane %v1293_v7, 4  ;;  %2697 = vmatpush.msra.mxu3 %v1824_v10 }
 0x1ef   :  { %784 = vst [vmem:[#allocation3 + $0x28] sm:$0x33] %v766_v25  ;;  %1466 = vrot.lane.b32.xlu1 %v6995_v0, %s6322_s8  ;;  %1352 = vrot.lane.b32.xlu2 %v7012_v54, %s6320_s0  ;;  %v1760_v17 = vld [vmem:[#allocation20 + $0x5e0] sm:$0xff] }
 0x1f0   :  { %785 = vst [vmem:[#allocation3 + $0x30] sm:$0x33] %v768_v16  ;;  %v7018_v8 = vld [vmem:[#allocation3 + $0x8] sm:$0xff]  ;;  %2677 = vmatpush.msra.mxu2 %v1760_v17  ;;  %v1628_v13 = vld [vmem:[#allocation20 + $0x1c0] sm:$0xff] }
 0x1f1   :  { %1409 = vrot.lane.b32.xlu0 %v7018_v8, %s6319_s21  ;;  %v1692_v31 = vld [vmem:[#allocation20 + $0x3c0] sm:$0xff] }
 0x1f2   :  { %v1291_v34 = vpop.permute.xlu1 %1290  ;;  %v1756_v63 = vld [vmem:[#allocation20 + $0x5c0] sm:$0xff]  ;;  %2658 = vmatpush.msra.mxu1 %v1692_v31 }
 0x1f3   :  { %v1301_v47 = vrot.slane %v1291_v34, 4  ;;  %v1820_v25 = vld [vmem:[#allocation20 + $0x7c0] sm:$0xff]  ;;  %2678 = vmatpush.msra.mxu2 %v1756_v63 }
 0x1f4   :  { %v1624_v16 = vld [vmem:[#allocation20 + $0x1a0] sm:$0xff]  ;;  %2698 = vmatpush.msra.mxu3 %v1820_v25 }
 0x1f5   :  { %v1315_v24 = vsel %vm754_vm15, %v1300_v2, %v1301_v47  ;;  %v1317_v44 = vsel %vm754_vm15, %v1301_v47, %v1302_v1  ;;  %v1688_v7 = vld [vmem:[#allocation20 + $0x3a0] sm:$0xff] }
 0x1f6   :  { %v1316_v60 = vsel %vm475_vm0, %v1289_v37, %v1315_v24  ;;  %v1318_v4 = vsel %vm475_vm0, %v1291_v34, %v1317_v44  ;;  %v7052_v2 = vld [vmem:[#allocation3 + $0x28] sm:$0xff]  ;;  %v1752_v34 = vld [vmem:[#allocation20 + $0x5a0] sm:$0xff]  ;;  %2659 = vmatpush.msra.mxu1 %v1688_v7 }
 0x1f7   :  { %1333 = vst [vmem:[#allocation3 + $0x30] sm:$0xcc] %v1316_v60  ;;  %1521 = vrot.lane.b32.xlu1 %v6995_v0, %s6321_s22  ;;  %1407 = vrot.lane.b32.xlu2 %v7012_v54, %s6319_s21  ;;  %v1816_v1 = vld [vmem:[#allocation20 + $0x7a0] sm:$0xff] }
 0x1f8   :  { %1335 = vst.msk [vmem:[#allocation3 + $0x38] sm:$0xcc] %vm1334_vm6, %v1318_v4  ;;  %v1620_v47 = vld [vmem:[#allocation20 + $0x180] sm:$0xff]  ;;  %2679 = vmatpush.msra.mxu2 %v1752_v34  ;;  %2699 = vmatpush.msra.mxu3 %v1816_v1 }
 0x1f9   :  { %1464 = vrot.lane.b32.xlu0 %v7018_v8, %s6322_s8  ;;  %v1684_v24 = vld [vmem:[#allocation20 + $0x380] sm:$0xff] }
 0x1fa   :  { %v1748_v44 = vld [vmem:[#allocation20 + $0x580] sm:$0xff]  ;;  %2660 = vmatpush.msra.mxu1 %v1684_v24 }
 0x1fb   :  { %v1812_v60 = vld [vmem:[#allocation20 + $0x780] sm:$0xff]  ;;  %2680 = vmatpush.msra.mxu2 %v1748_v44 }
 0x1fc   :  { %v1616_v4 = vld [vmem:[#allocation20 + $0x160] sm:$0xff]  ;;  %2700 = vmatpush.msra.mxu3 %v1812_v60 }
 0x1fd   :  { %v1612_v17 = vld [vmem:[#allocation20 + $0x140] sm:$0xff] }
 0x1fe   :  { %v1342_v37 = vld [vmem:[#allocation3 + $0x30] sm:$0xff]  ;;  %v1740_v10 = vld [vmem:[#allocation20 + $0x540] sm:$0xff]  ;;  %2701 = vmatpush.msra.mxu3 %v1808_v6 }
 0x1ff   :  { %1358 = vrot.lane.b32.xlu1 %v7001_v20, %s6320_s0  ;;  %1462 = vrot.lane.b32.xlu2 %v7012_v54, %s6322_s8  ;;  %v1343_v5 = vld [vmem:[#allocation3 + $0x38] sm:$0xff] }
 0x200   :  { %v1736_v63 = vld [vmem:[#allocation20 + $0x520] sm:$0xff] }
 0x201   :  { %1519 = vrot.lane.b32.xlu0 %v7018_v8, %s6321_s22  ;;  %v1800_v25 = vld [vmem:[#allocation20 + $0x720] sm:$0xff] }
 0x202   :  { %v1668_v7 = vld [vmem:[#allocation20 + $0x300] sm:$0xff] }
 0x203   :  { %v1732_v34 = vld [vmem:[#allocation20 + $0x500] sm:$0xff] }
 0x204   :  { %v1796_v1 = vld [vmem:[#allocation20 + $0x700] sm:$0xff] }
 0x205   :  { %v1664_v24 = vld [vmem:[#allocation20 + $0x2e0] sm:$0xff] }
 0x206   :  { %v1728_v44 = vld [vmem:[#allocation20 + $0x4e0] sm:$0xff] }
 0x207   :  { %1354 = vrot.lane.b32.xlu1 %v7018_v8, %s6320_s0  ;;  %1468 = vrot.lane.b32.xlu2 %v7001_v20, %s6322_s8  ;;  %v1792_v60 = vld [vmem:[#allocation20 + $0x6e0] sm:$0xff] }
 0x208   :  { %v1656_v6 = vld [vmem:[#allocation20 + $0x2a0] sm:$0xff] }
 0x209   :  { %1517 = vrot.lane.b32.xlu0 %v7012_v54, %s6321_s22 }
 0x20f   :  { %1415 = vrot.lane.b32.xlu1 %v6978_v28, %s6319_s21  ;;  %1525 = vrot.lane.b32.xlu2 %v6978_v28, %s6321_s22 }
 0x211   :  { %1470 = vrot.lane.b32.xlu0 %v6978_v28, %s6322_s8  ;;  %v1632_v28 = vld [vmem:[#allocation20 + $0x1e0] sm:$0xff] }
 0x212   :  { %2637 = vmatpush.msra.mxu0 %v1632_v28  ;;  %v1744_v28 = vld [vmem:[#allocation20 + $0x560] sm:$0xff] }
 0x213   :  { %2681 = vmatpush.msra.mxu2 %v1744_v28  ;;  %v1592_v28 = vld [vmem:[#allocation20 + $0xa0] sm:$0xff] }
 0x214   :  { %2638 = vmatpush.msra.mxu0 %v1628_v13  ;;  %v1672_v13 = vld [vmem:[#allocation20 + $0x320] sm:$0xff] }
 0x215   :  { %2682 = vmatpush.msra.mxu2 %v1740_v10  ;;  %v1588_v10 = vld [vmem:[#allocation20 + $0x80] sm:$0xff] }
 0x216   :  { %2639 = vmatpush.msra.mxu0 %v1624_v16  ;;  %v1604_v16 = vld [vmem:[#allocation20 + $0x100] sm:$0xff] }
 0x217   :  { %1523 = vrot.lane.b32.xlu1 %v7001_v20, %s6321_s22  ;;  %1417 = vrot.lane.b32.xlu2 %v7052_v2, %s6319_s21 }
 0x218   :  { %2640 = vmatpush.msra.mxu0 %v1620_v47  ;;  %2683 = vmatpush.msra.mxu2 %v1736_v63  ;;  %v1600_v47 = vld [vmem:[#allocation20 + $0xe0] sm:$0xff] }
 0x219   :  { %1362 = vrot.lane.b32.xlu0 %v7052_v2, %s6320_s0  ;;  %v1584_v63 = vld [vmem:[#allocation20 + $0x60] sm:$0xff] }
 0x21a   :  { %2641 = vmatpush.msra.mxu0 %v1616_v4  ;;  %2684 = vmatpush.msra.mxu2 %v1732_v34  ;;  %v1772_v34 = vld [vmem:[#allocation20 + $0x640] sm:$0xff] }
 0x21c   :  { %2642 = vmatpush.msra.mxu0 %v1612_v17  ;;  %2685 = vmatpush.msra.mxu2 %v1728_v44  ;;  %v1720_v17 = vld [vmem:[#allocation20 + $0x4a0] sm:$0xff] }
 0x21d   :  { %v1704_v44 = vld [vmem:[#allocation20 + $0x420] sm:$0xff] }
 0x21f   :  { %1364 = vrot.lane.b32.xlu1 %v1342_v37, %s6320_s0  ;;  %1474 = vrot.lane.b32.xlu2 %v1342_v37, %s6322_s8 }
 0x221   :  { %1419 = vrot.lane.b32.xlu0 %v1342_v37, %s6319_s21 }
 0x226   :  { %v7076_v31 = vpop.permute.xlu2 %1360 }
 0x227   :  { %1472 = vrot.lane.b32.xlu1 %v7052_v2, %s6322_s8  ;;  %1366 = vrot.lane.b32.xlu2 %v1343_v5, %s6320_s0 }
 0x229   :  { %1527 = vrot.lane.b32.xlu0 %v7052_v2, %s6321_s22 }
 0x22f   :  { %1529 = vrot.lane.b32.xlu1 %v1342_v37, %s6321_s22  ;;  %1531 = vrot.lane.b32.xlu2 %v1343_v5, %s6321_s22  ;;  %v1680_v37 = vld [vmem:[#allocation20 + $0x360] sm:$0xff] }
 0x230   :  { %2661 = vmatpush.msra.mxu1 %v1680_v37  ;;  %v1788_v37 = vld [vmem:[#allocation20 + $0x6c0] sm:$0xff] }
 0x231   :  { %1421 = vrot.lane.b32.xlu0 %v1343_v5, %s6319_s21 }
 0x237   :  { %1476 = vrot.lane.b32.xlu1 %v1343_v5, %s6322_s8  ;;  %445 = vrot.lane.b32.xlu2 %v6626_v38, %s6323_s28  ;;  %v1676_v5 = vld [vmem:[#allocation20 + $0x340] sm:$0xff] }
 0x238   :  { %v1804_v38 = vld [vmem:[#allocation20 + $0x740] sm:$0xff]  ;;  %2662 = vmatpush.msra.mxu1 %v1676_v5 }
 0x239   :  { %441 = vrot.lane.b32.xlu0 %v6619_v35, %s6323_s28  ;;  %v1608_v35 = vld [vmem:[#allocation20 + $0x120] sm:$0xff]  ;;  %2702 = vmatpush.msra.mxu3 %v1804_v38 }
 0x23a   :  { %2643 = vmatpush.msra.mxu0 %v1608_v35  ;;  %2663 = vmatpush.msra.mxu1 %v1672_v13  ;;  %v1784_v5 = vld [vmem:[#allocation20 + $0x6a0] sm:$0xff] }
 0x23b   :  { %2703 = vmatpush.msra.mxu3 %v1800_v25  ;;  %v1652_v38 = vld [vmem:[#allocation20 + $0x280] sm:$0xff] }
 0x23c   :  { %2644 = vmatpush.msra.mxu0 %v1604_v16  ;;  %2664 = vmatpush.msra.mxu1 %v1668_v7  ;;  %v1716_v35 = vld [vmem:[#allocation20 + $0x480] sm:$0xff] }
 0x23d   :  { %2704 = vmatpush.msra.mxu3 %v1796_v1  ;;  %v1780_v13 = vld [vmem:[#allocation20 + $0x680] sm:$0xff] }
 0x23e   :  { %2645 = vmatpush.msra.mxu0 %v1600_v47  ;;  %2665 = vmatpush.msra.mxu1 %v1664_v24  ;;  %v1580_v25 = vld [vmem:[#allocation20 + $0x40] sm:$0xff] }
 0x23f   :  { %443 = vrot.lane.b32.xlu1 %v6621_v36, %s6323_s28  ;;  %584 = vrot.lane.b32.xlu2 %v6720_v41, %s6323_s28  ;;  %v1596_v36 = vld [vmem:[#allocation20 + $0xc0] sm:$0xff] }
 0x240   :  { %v1660_v41 = vld [vmem:[#allocation20 + $0x2c0] sm:$0xff]  ;;  %2705 = vmatpush.msra.mxu3 %v1792_v60  ;;  %2646 = vmatpush.msra.mxu0 %v1596_v36 }
 0x241   :  { %447 = vrot.lane.b32.xlu0 %v6628_v40, %s6323_s28  ;;  %v1724_v40 = vld [vmem:[#allocation20 + $0x4c0] sm:$0xff]  ;;  %v7084_v4 = vpop.permute.xlu2 %1356  ;;  %2666 = vmatpush.msra.mxu1 %v1660_v41 }
 0x242   :  { %2686 = vmatpush.msra.mxu2 %v1724_v40  ;;  %2706 = vmatpush.msra.mxu3 %v1788_v37  ;;  %v1644_v16 = vld [vmem:[#allocation20 + $0x240] sm:$0xff] }
 0x243   :  { %2647 = vmatpush.msra.mxu0 %v1592_v28  ;;  %2667 = vmatpush.msra.mxu1 %v1656_v6  ;;  %v1708_v7 = vld [vmem:[#allocation20 + $0x440] sm:$0xff] }
 0x244   :  { %2687 = vmatpush.msra.mxu2 %v1720_v17  ;;  %2707 = vmatpush.msra.mxu3 %v1784_v5  ;;  %v1576_v47 = vld [vmem:[#allocation20 + $0x20] sm:$0xff] }
 0x245   :  { %2648 = vmatpush.msra.mxu0 %v1588_v10  ;;  %2668 = vmatpush.msra.mxu1 %v1652_v38  ;;  %v1640_v24 = vld [vmem:[#allocation20 + $0x220] sm:$0xff] }
 0x246   :  { %2688 = vmatpush.msra.mxu2 %v1716_v35  ;;  %2708 = vmatpush.msra.mxu3 %v1780_v13  ;;  %v1768_v60 = vld [vmem:[#allocation20 + $0x620] sm:$0xff] }
 0x247   :  { %582 = vrot.lane.b32.xlu1 %v6718_v39, %s6323_s28  ;;  %588 = vrot.lane.b32.xlu2 %v6724_v43, %s6323_s28  ;;  %v1648_v39 = vld [vmem:[#allocation20 + $0x260] sm:$0xff] }
 0x248   :  { %v1712_v43 = vld [vmem:[#allocation20 + $0x460] sm:$0xff]  ;;  %2649 = vmatpush.msra.mxu0 %v1584_v63  ;;  %2669 = vmatpush.msra.mxu1 %v1648_v39 }
 0x249   :  { %586 = vrot.lane.b32.xlu0 %v6722_v42, %s6323_s28  ;;  %v1776_v42 = vld [vmem:[#allocation20 + $0x660] sm:$0xff]  ;;  %2689 = vmatpush.msra.mxu2 %v1712_v43  ;;  %v7096_v1 = vpop.permute.xlu2 %1352 }
 0x24a   :  { %2709 = vmatpush.msra.mxu3 %v1776_v42  ;;  %2650 = vmatpush.msra.mxu0 %v1580_v25  ;;  %v1636_v36 = vld [vmem:[#allocation20 + $0x200] sm:$0xff] }
 0x24b   :  { %2670 = vmatpush.msra.mxu1 %v1644_v16  ;;  %2690 = vmatpush.msra.mxu2 %v1708_v7  ;;  %v1764_v41 = vld [vmem:[#allocation20 + $0x600] sm:$0xff] }
 0x24c   :  { %2710 = vmatpush.msra.mxu3 %v1772_v34  ;;  %2651 = vmatpush.msra.mxu0 %v1576_v47  ;;  %v1952_v40 = vld [vmem:[#allocation20 + $0xbe0] sm:$0xff] }
 0x24d   :  { %2671 = vmatpush.msra.mxu1 %v1640_v24  ;;  %2691 = vmatpush.msra.mxu2 %v1704_v44  ;;  %v2016_v37 = vld [vmem:[#allocation20 + $0xde0] sm:$0xff] }
 0x24e   :  { %2711 = vmatpush.msra.mxu3 %v1768_v60  ;;  %v2080_v28 = vld [vmem:[#allocation20 + $0xfe0] sm:$0xff] }
 0x24f   :  { %449 = vrot.lane.b32.xlu1 %v6641_v48, %s6323_s28  ;;  %453 = vrot.lane.b32.xlu2 %v6645_v50, %s6323_s28  ;;  %v1572_v48 = vld [vmem:[#allocation20] sm:$0xff] }
 0x250   :  { %v1700_v50 = vld [vmem:[#allocation20 + $0x400] sm:$0xff]  ;;  %2652 = vmatpush.msra.mxu0 %v1572_v48  ;;  %2672 = vmatpush.msra.mxu1 %v1636_v36 }
 0x251   :  { %451 = vrot.lane.b32.xlu0 %v6643_v49, %s6323_s28  ;;  %v1888_v49 = vld [vmem:[#allocation20 + $0x9e0] sm:$0xff]  ;;  %2692 = vmatpush.msra.mxu2 %v1700_v50  ;;  %v7108_v13 = vpop.permute.xlu2 %1407 }
 0x252   :  { %2712 = vmatpush.msra.mxu3 %v1764_v41  ;;  %v1884_v6 = vld [vmem:[#allocation20 + $0x9c0] sm:$0xff]  ;;  %2717 = vmatpush.msrb.mxu0 %v1888_v49 }
 0x253   :  { %v1948_v17 = vld [vmem:[#allocation20 + $0xbc0] sm:$0xff]  ;;  %2737 = vmatpush.msrb.mxu1 %v1952_v40  ;;  %2757 = vmatpush.msrb.mxu2 %v2016_v37 }
 0x254   :  { %v2012_v5 = vld [vmem:[#allocation20 + $0xdc0] sm:$0xff]  ;;  %2777 = vmatpush.msrb.mxu3 %v2080_v28  ;;  %2718 = vmatpush.msrb.mxu0 %v1884_v6 }
 0x255   :  { %v2076_v38 = vld [vmem:[#allocation20 + $0xfc0] sm:$0xff]  ;;  %2738 = vmatpush.msrb.mxu1 %v1948_v17  ;;  %2758 = vmatpush.msrb.mxu2 %v2012_v5 }
 0x256   :  { %v1880_v35 = vld [vmem:[#allocation20 + $0x9a0] sm:$0xff]  ;;  %2778 = vmatpush.msrb.mxu3 %v2076_v38 }
 0x257   :  { %590 = vrot.lane.b32.xlu1 %v6740_v23, %s6323_s28  ;;  %1000 = vrot.lane.b32.xlu2 %v6895_v32, %s6323_s28  ;;  %v1944_v32 = vld [vmem:[#allocation20 + $0xba0] sm:$0xff] }
 0x258   :  { %v2008_v63 = vld [vmem:[#allocation20 + $0xda0] sm:$0xff]  ;;  %2719 = vmatpush.msrb.mxu0 %v1880_v35  ;;  %2739 = vmatpush.msrb.mxu1 %v1944_v32 }
 0x259   :  { %592 = vrot.lane.b32.xlu0 %v6743_v9, %s6323_s28  ;;  %v7106_v10 = vpop.permute.xlu1 %1411  ;;  %v2072_v9 = vld [vmem:[#allocation20 + $0xfa0] sm:$0xff]  ;;  %2759 = vmatpush.msrb.mxu2 %v2008_v63 }
 0x25a   :  { %v7110_v23 = vpop.permute.xlu0 %1413  ;;  %v1876_v39 = vld [vmem:[#allocation20 + $0x980] sm:$0xff]  ;;  %2779 = vmatpush.msrb.mxu3 %v2072_v9 }
 0x25b   :  { %v1940_v43 = vld [vmem:[#allocation20 + $0xb80] sm:$0xff]  ;;  %2720 = vmatpush.msrb.mxu0 %v1876_v39 }
 0x25c   :  { %v2004_v42 = vld [vmem:[#allocation20 + $0xd80] sm:$0xff]  ;;  %2740 = vmatpush.msrb.mxu1 %v1940_v43 }
 0x25d   :  { %v2068_v25 = vld [vmem:[#allocation20 + $0xf80] sm:$0xff]  ;;  %2760 = vmatpush.msrb.mxu2 %v2004_v42 }
 0x25e   :  { %v1872_v16 = vld [vmem:[#allocation20 + $0x960] sm:$0xff]  ;;  %2780 = vmatpush.msrb.mxu3 %v2068_v25 }
 0x25f   :  { %998 = vrot.lane.b32.xlu1 %v6893_v61, %s6323_s28  ;;  %594 = vrot.lane.b32.xlu2 %v6710_v14, %s6323_s28  ;;  %v1936_v7 = vld [vmem:[#allocation20 + $0xb60] sm:$0xff] }
 0x260   :  { %v2000_v34 = vld [vmem:[#allocation20 + $0xd60] sm:$0xff]  ;;  %2721 = vmatpush.msrb.mxu0 %v1872_v16  ;;  %2741 = vmatpush.msrb.mxu1 %v1936_v7 }
 0x261   :  { %1002 = vrot.lane.b32.xlu0 %v6897_v18, %s6323_s28  ;;  %v2064_v47 = vld [vmem:[#allocation20 + $0xf60] sm:$0xff]  ;;  %v7118_v24 = vpop.permute.xlu1 %1466  ;;  %2761 = vmatpush.msrb.mxu2 %v2000_v34  ;;  %v7122_v18 = vpop.permute.xlu2 %1462 }
 0x262   :  { %v1868_v44 = vld [vmem:[#allocation20 + $0x940] sm:$0xff]  ;;  %2781 = vmatpush.msrb.mxu3 %v2064_v47 }
 0x263   :  { %v1932_v60 = vld [vmem:[#allocation20 + $0xb40] sm:$0xff]  ;;  %v7120_v48 = vpop.permute.xlu0 %1409  ;;  %2722 = vmatpush.msrb.mxu0 %v1868_v44 }
 0x264   :  { %v1996_v61 = vld [vmem:[#allocation20 + $0xd40] sm:$0xff]  ;;  %2742 = vmatpush.msrb.mxu1 %v1932_v60 }
 0x265   :  { %v2060_v14 = vld [vmem:[#allocation20 + $0xf40] sm:$0xff]  ;;  %2762 = vmatpush.msrb.mxu2 %v1996_v61 }
 0x266   :  { %v1864_v36 = vld [vmem:[#allocation20 + $0x920] sm:$0xff]  ;;  %2782 = vmatpush.msrb.mxu3 %v2060_v14 }
 0x267   :  { %v1928_v50 = vld [vmem:[#allocation20 + $0xb20] sm:$0xff]  ;;  %2723 = vmatpush.msrb.mxu0 %v1864_v36  ;;  %455 = vrot.lane.b32.xlu1 %v6659_v58, %s6323_s28 }
 0x268   :  { %v1992_v41 = vld [vmem:[#allocation20 + $0xd20] sm:$0xff]  ;;  %2743 = vmatpush.msrb.mxu1 %v1928_v50  ;;  %1139 = vrot.lane.b32.xlu2 %v6931_v45, %s6323_s28  ;;  %v1424_v50 = vrot.slane %v7120_v48, 4 }
 0x269   :  { %v2056_v49 = vld [vmem:[#allocation20 + $0xf20] sm:$0xff]  ;;  %1004 = vrot.lane.b32.xlu0 %v6899_v56, %s6323_s28  ;;  %2763 = vmatpush.msrb.mxu2 %v1992_v41  ;;  %v7130_v5 = vpop.permute.xlu1 %1521  ;;  %v7134_v39 = vpop.permute.xlu2 %1468 }
 0x26a   :  { %v1860_v40 = vld [vmem:[#allocation20 + $0x900] sm:$0xff]  ;;  %2783 = vmatpush.msrb.mxu3 %v2056_v49 }
 0x26b   :  { %v1924_v37 = vld [vmem:[#allocation20 + $0xb00] sm:$0xff]  ;;  %2724 = vmatpush.msrb.mxu0 %v1860_v40  ;;  %v7132_v32 = vpop.permute.xlu0 %1464 }
 0x26c   :  { %v1988_v28 = vld [vmem:[#allocation20 + $0xd00] sm:$0xff]  ;;  %2744 = vmatpush.msrb.mxu1 %v1924_v37 }
 0x26d   :  { %v2052_v6 = vld [vmem:[#allocation20 + $0xf00] sm:$0xff]  ;;  %2764 = vmatpush.msrb.mxu2 %v1988_v28  ;;  %v1425_v28 = vrot.slane %v7106_v10, 4 }
 0x26e   :  { %v1856_v17 = vld [vmem:[#allocation20 + $0x8e0] sm:$0xff]  ;;  %2784 = vmatpush.msrb.mxu3 %v2052_v6 }
 0x26f   :  { %v1920_v38 = vld [vmem:[#allocation20 + $0xae0] sm:$0xff]  ;;  %2725 = vmatpush.msrb.mxu0 %v1856_v17  ;;  %1137 = vrot.lane.b32.xlu1 %v6929_v62, %s6323_s28 }
 0x270   :  { %v1984_v35 = vld [vmem:[#allocation20 + $0xce0] sm:$0xff]  ;;  %2745 = vmatpush.msrb.mxu1 %v1920_v38  ;;  %596 = vrot.lane.b32.xlu2 %v6712_v30, %s6323_s28 }
 0x271   :  { %v2048_v58 = vld [vmem:[#allocation20 + $0xee0] sm:$0xff]  ;;  %2765 = vmatpush.msrb.mxu2 %v1984_v35  ;;  %1141 = vrot.lane.b32.xlu0 %v6933_v46, %s6323_s28  ;;  %v7142_v47 = vpop.permute.xlu1 %1358  ;;  %v7152_v6 = vpop.permute.xlu2 %1525 }
 0x272   :  { %v1852_v45 = vld [vmem:[#allocation20 + $0x8c0] sm:$0xff]  ;;  %2785 = vmatpush.msrb.mxu3 %v2048_v58  ;;  %v1371_v17 = vrot.slane %v7142_v47, 4  ;;  %v1372_v58 = vrot.slane %v7076_v31, 4 }
 0x273   :  { %v1916_v63 = vld [vmem:[#allocation20 + $0xac0] sm:$0xff]  ;;  %2726 = vmatpush.msrb.mxu0 %v1852_v45  ;;  %v7144_v61 = vpop.permute.xlu0 %1519  ;;  %v1423_v45 = vrot.slane %v7108_v13, 4 }
 0x274   :  { %v1980_v9 = vld [vmem:[#allocation20 + $0xcc0] sm:$0xff]  ;;  %2746 = vmatpush.msrb.mxu1 %v1916_v63 }
 0x275   :  { %v2044_v56 = vld [vmem:[#allocation20 + $0xec0] sm:$0xff]  ;;  %2766 = vmatpush.msrb.mxu2 %v1980_v9 }
 0x276   :  { %v1848_v43 = vld [vmem:[#allocation20 + $0x8a0] sm:$0xff]  ;;  %2786 = vmatpush.msrb.mxu3 %v2044_v56 }
 0x277   :  { %v1912_v42 = vld [vmem:[#allocation20 + $0xaa0] sm:$0xff]  ;;  %2727 = vmatpush.msrb.mxu0 %v1848_v43  ;;  %457 = vrot.lane.b32.xlu1 %v6647_v51, %s6323_s28  ;;  %v1370_v51 = vrot.slane %v7084_v4, 4  ;;  %v1478_v43 = vrot.slane %v7122_v18, 4 }
 0x278   :  { %v1976_v25 = vld [vmem:[#allocation20 + $0xca0] sm:$0xff]  ;;  %2747 = vmatpush.msrb.mxu1 %v1912_v42  ;;  %459 = vrot.lane.b32.xlu2 %v6649_v52, %s6323_s28  ;;  %v1368_v52 = vrot.slane %v7096_v1, 4  ;;  %v1479_v42 = vrot.slane %v7132_v32, 4 }
 0x279   :  { %v2040_v16 = vld [vmem:[#allocation20 + $0xea0] sm:$0xff]  ;;  %2767 = vmatpush.msrb.mxu2 %v1976_v25  ;;  %1006 = vrot.lane.b32.xlu0 %v6862_v12, %s6323_s28  ;;  %v1355_v63 = vpop.permute.xlu1 %1354  ;;  %v1433_v12 = vsel %vm754_vm15, %v1424_v50, %v1425_v28 }
 0x27a   :  { %v1844_v7 = vld [vmem:[#allocation20 + $0x880] sm:$0xff]  ;;  %2787 = vmatpush.msrb.mxu3 %v2040_v16  ;;  %v1369_v25 = vrot.slane %v1355_v63, 4 }
 0x27b   :  { %v1908_v34 = vld [vmem:[#allocation20 + $0xa80] sm:$0xff]  ;;  %2728 = vmatpush.msrb.mxu0 %v1844_v7  ;;  %v1518_v16 = vpop.permute.xlu0 %1517 }
 0x27c   :  { %v1972_v44 = vld [vmem:[#allocation20 + $0xc80] sm:$0xff]  ;;  %2748 = vmatpush.msrb.mxu1 %v1908_v34 }
 0x27d   :  { %v2036_v60 = vld [vmem:[#allocation20 + $0xe80] sm:$0xff]  ;;  %2768 = vmatpush.msrb.mxu2 %v1972_v44  ;;  %v1426_v44 = vrot.slane %v7110_v23, 4 }
 0x27e   :  { %v1840_v62 = vld [vmem:[#allocation20 + $0x860] sm:$0xff]  ;;  %2788 = vmatpush.msrb.mxu3 %v2036_v60  ;;  %v1480_v60 = vrot.slane %v7118_v24, 4 }
 0x27f   :  { %v1904_v30 = vld [vmem:[#allocation20 + $0xa60] sm:$0xff]  ;;  %2729 = vmatpush.msrb.mxu0 %v1840_v62  ;;  %v1431_v62 = vsel %vm754_vm15, %v1423_v45, %v1424_v50  ;;  %1143 = vrot.lane.b32.xlu1 %v6935_v29, %s6323_s28 }
 0x280   :  { %v1968_v14 = vld [vmem:[#allocation20 + $0xc60] sm:$0xff]  ;;  %2749 = vmatpush.msrb.mxu1 %v1904_v30  ;;  %v1534_v30 = vrot.slane %v7144_v61, 4  ;;  %1145 = vrot.lane.b32.xlu2 %v6901_v57, %s6323_s28  ;;  %v1481_v57 = vrot.slane %v7134_v39, 4 }
 0x281   :  { %v2032_v36 = vld [vmem:[#allocation20 + $0xe60] sm:$0xff]  ;;  %2769 = vmatpush.msrb.mxu2 %v1968_v14  ;;  %598 = vrot.lane.b32.xlu0 %v6773_v27, %s6323_s28 }
 0x282   :  { %v1836_v46 = vld [vmem:[#allocation20 + $0x840] sm:$0xff]  ;;  %2789 = vmatpush.msrb.mxu3 %v2032_v36  ;;  %v1380_v36 = vsel %vm754_vm15, %v1370_v51, %v1371_v17 }
 0x283   :  { %v1900_v41 = vld [vmem:[#allocation20 + $0xa40] sm:$0xff]  ;;  %2730 = vmatpush.msrb.mxu0 %v1836_v46  ;;  %v1376_v46 = vsel %vm754_vm15, %v1368_v52, %v1369_v25  ;;  %v1488_v52 = vsel %vm754_vm15, %v1479_v42, %v1480_v60 }
 0x284   :  { %v1964_v49 = vld [vmem:[#allocation20 + $0xc40] sm:$0xff]  ;;  %2750 = vmatpush.msrb.mxu1 %v1900_v41  ;;  %v1378_v41 = vsel %vm754_vm15, %v1369_v25, %v1370_v51  ;;  %v1377_v50 = vsel %vm263_vm11, %v7096_v1, %v1376_v46  ;;  %v1382_v1 = vsel %vm754_vm15, %v1371_v17, %v1372_v58  ;;  %v7201_v17 = vpop.permute.xlu1 %1415 }
 0x285   :  { %v2028_v40 = vld [vmem:[#allocation20 + $0xe40] sm:$0xff]  ;;  %2770 = vmatpush.msrb.mxu2 %v1964_v49  ;;  %v1533_v49 = vrot.slane %v1518_v16, 4  ;;  %v1399_v45 = vmax.f32 %v7012_v54, %v1377_v50  ;;  %v1427_v25 = vrot.slane %v7201_v17, 4  ;;  %v1383_v27 = vsel %vm263_vm11, %v7142_v47, %v1382_v1 }
 0x286   :  { %v1832_v37 = vld [vmem:[#allocation20 + $0x820] sm:$0xff]  ;;  %2790 = vmatpush.msrb.mxu3 %v2028_v40  ;;  %v1434_v40 = vsel %vm303_vm12, %v7120_v48, %v1433_v12  ;;  %v1381_v48 = vsel %vm263_vm11, %v7084_v4, %v1380_v36  ;;  %v1435_v4 = vsel %vm754_vm15, %v1425_v28, %v1426_v44 }
 0x287   :  { %v1896_v38 = vld [vmem:[#allocation20 + $0xa20] sm:$0xff]  ;;  %2731 = vmatpush.msrb.mxu0 %v1832_v37  ;;  %v1535_v37 = vrot.slane %v7130_v5, 4  ;;  %v1436_v47 = vsel %vm303_vm12, %v7106_v10, %v1435_v4  ;;  %1008 = vrot.lane.b32.xlu1 %v6864_v59, %s6323_s28 }
 0x288   :  { %v1960_v35 = vld [vmem:[#allocation20 + $0xc20] sm:$0xff]  ;;  %2751 = vmatpush.msrb.mxu1 %v1896_v38  ;;  %v1379_v38 = vsel %vm263_vm11, %v1355_v63, %v1378_v41  ;;  %v1432_v63 = vsel %vm303_vm12, %v7108_v13, %v1431_v62  ;;  %v1489_v13 = vsel %vm343_vm13, %v7132_v32, %v1488_v52  ;;  %v1401_v32 = vmax.f32 %v6995_v0, %v1381_v48 }
 0x289   :  { %v2024_v9 = vld [vmem:[#allocation20 + $0xe20] sm:$0xff]  ;;  %2771 = vmatpush.msrb.mxu2 %v1960_v35  ;;  %v1486_v35 = vsel %vm754_vm15, %v1478_v43, %v1479_v42  ;;  %v1400_v51 = vmax.f32 %v7018_v8, %v1379_v38  ;;  %v1543_v8 = vsel %vm754_vm15, %v1534_v30, %v1535_v37  ;;  %v7204_v43 = vpop.permute.xlu2 %1417  ;;  %v1402_v0 = vmax.f32 %v7001_v20, %v1383_v27 }
 0x28a   :  { %v1828_v56 = vld [vmem:[#allocation20 + $0x800] sm:$0xff]  ;;  %2791 = vmatpush.msrb.mxu3 %v2024_v9  ;;  %v1454_v9 = vmax.f32 %v1399_v45, %v1432_v63  ;;  %v1487_v29 = vsel %vm343_vm13, %v7122_v18, %v1486_v35  ;;  %v1544_v18 = vsel %vm383_vm14, %v7144_v61, %v1543_v8  ;;  %v1490_v61 = vsel %vm754_vm15, %v1480_v60, %v1481_v57 }
 0x28b   :  { %v1892_v7 = vld [vmem:[#allocation20 + $0xa00] sm:$0xff]  ;;  %2732 = vmatpush.msrb.mxu0 %v1828_v56  ;;  %v1455_v54 = vmax.f32 %v1400_v51, %v1434_v40  ;;  %v1541_v56 = vsel %vm754_vm15, %v1533_v49, %v1534_v30  ;;  %v1437_v30 = vsel %vm754_vm15, %v1426_v44, %v1427_v25  ;;  %1010 = vrot.lane.b32.xlu2 %v6870_v22, %s6323_s28  ;;  %v1537_v60 = vrot.slane %v7152_v6, 4 }
 0x28c   :  { %v1956_v34 = vld [vmem:[#allocation20 + $0xc00] sm:$0xff]  ;;  %2752 = vmatpush.msrb.mxu1 %v1892_v7  ;;  %v1509_v42 = vmax.f32 %v1454_v9, %v1487_v29  ;;  %v7207_v7 = vpop.permute.xlu0 %1470  ;;  %v1542_v28 = vsel %vm383_vm14, %v1518_v16, %v1541_v56  ;;  %v1438_v36 = vsel %vm303_vm12, %v7110_v23, %v1437_v30  ;;  %v1456_v16 = vmax.f32 %v1401_v32, %v1436_v47  ;;  %v1524_v20 = vpop.permute.xlu1 %1523 }
 0x28d   :  { %v2020_v14 = vld [vmem:[#allocation20 + $0xe00] sm:$0xff]  ;;  %2772 = vmatpush.msrb.mxu2 %v1956_v34  ;;  %v1510_v12 = vmax.f32 %v1455_v54, %v1489_v13  ;;  %461 = vrot.lane.b32.xlu0 %v6651_v53, %s6323_s28  ;;  %v1457_v10 = vmax.f32 %v1402_v0, %v1438_v36  ;;  %v1491_v44 = vsel %vm343_vm13, %v7118_v24, %v1490_v61  ;;  %v1536_v46 = vrot.slane %v1524_v20, 4 }
 0x28e   :  { %2792 = vmatpush.msrb.mxu3 %v2020_v14  ;;  %v1564_v62 = vmax.f32 %v1509_v42, %v1542_v28  ;;  %v1482_v14 = vrot.slane %v7207_v7, 4  ;;  %v1511_v22 = vmax.f32 %v1456_v16, %v1491_v44  ;;  %v2144_v49 = vld [vmem:[#allocation20 + $0x11e0] sm:$0xff] }
 0x28f   :  { %v1565_v34 = vmax.f32 %v1510_v12, %v1544_v18  ;;  %v1545_v53 = vsel %vm754_vm15, %v1535_v37, %v1536_v46  ;;  %v1547_v38 = vsel %vm754_vm15, %v1536_v46, %v1537_v60  ;;  %v2208_v35 = vld [vmem:[#allocation20 + $0x13e0] sm:$0xff]  ;;  %600 = vrot.lane.b32.xlu1 %v6775_v11, %s6323_s28 }
 0x290   :  { %2580 = vst [vmem:[#allocation1] ss:$2 sm:$0xff] %v1564_v62  ;;  %v1492_v23 = vsel %vm754_vm15, %v1481_v57, %v1482_v14  ;;  %v2272_v52 = vld [vmem:[#allocation20 + $0x15e0] sm:$0xff]  ;;  %v1546_v45 = vsel %vm383_vm14, %v7130_v5, %v1545_v53 }
 0x291   :  { %2582 = vst [vmem:[#allocation1 + $0x10] ss:$2 sm:$0xff] %v1565_v34  ;;  %v1493_v59 = vsel %vm343_vm13, %v7134_v39, %v1492_v23  ;;  %v7241_v40 = vpop.permute.xlu2 %1474  ;;  %v2336_v51 = vld [vmem:[#allocation20 + $0x17e0] sm:$0xff]  ;;  %v1548_v39 = vsel %vm383_vm14, %v1524_v20, %v1547_v38  ;;  %v1566_v63 = vmax.f32 %v1511_v22, %v1546_v45  ;;  %v1428_v34 = vrot.slane %v7204_v43, 4 }
 0x292   :  { %v1512_v50 = vmax.f32 %v1457_v10, %v1493_v59  ;;  %v2140_v5 = vld [vmem:[#allocation20 + $0x11c0] sm:$0xff] }
 0x293   :  { %2584 = vst [vmem:[#allocation1 + $0x20] ss:$2 sm:$0xff] %v1566_v63  ;;  %v2204_v9 = vld [vmem:[#allocation20 + $0x13c0] sm:$0xff]  ;;  %602 = vrot.lane.b32.xlu2 %v6779_v19, %s6323_s28 }
 0x294   :  { %v7237_v41 = vpop.permute.xlu0 %1362  ;;  %v1567_v37 = vmax.f32 %v1512_v50, %v1548_v39  ;;  %v2268_v56 = vld [vmem:[#allocation20 + $0x15c0] sm:$0xff]  ;;  %v7263_v4 = vpop.permute.xlu1 %1364 }
 0x295   :  { %v1373_v24 = vrot.slane %v7237_v41, 4  ;;  %1147 = vrot.lane.b32.xlu0 %v6903_v55, %s6323_s28  ;;  %v2332_v29 = vld [vmem:[#allocation20 + $0x17c0] sm:$0xff] }
 0x296   :  { %2586 = vst [vmem:[#allocation1 + $0x30] ss:$2 sm:$0xff] %v1567_v37  ;;  %v2136_v12 = vld [vmem:[#allocation20 + $0x11a0] sm:$0xff] }
 0x297   :  { %v7255_v8 = vld.sshfl [vmem:[#allocation1] sm:$0xff pattern:$0x75316420]  ;;  %v7257_v54 = vld.sshfl [vmem:[#allocation1 + $0x8] sm:$0xff pattern:$0x75316420]  ;;  %v1384_v13 = vsel %vm754_vm15, %v1372_v58, %v1373_v24  ;;  %463 = vrot.lane.b32.xlu1 %v6653_v21, %s6323_s28 }
 0x298   :  { %v7251_v48 = vld.sshfl [vmem:[#allocation1 + $0x10] sm:$0xff pattern:$0x75316420]  ;;  %v7253_v1 = vld.sshfl [vmem:[#allocation1 + $0x18] sm:$0xff pattern:$0x75316420]  ;;  %2653 = vmatmul.f32.vlgmr.msra.gmra.mxu0 %v7255_v8  ;;  %2673 = vmatmul.f32.vlgmr.msra.gmra.mxu1 %v7257_v54  ;;  %v1385_v11 = vsel %vm263_vm11, %v7076_v31, %v1384_v13  ;;  %v1439_v31 = vsel %vm754_vm15, %v1427_v25, %v1428_v34 }
 0x299   :  { %8818 = vst [vmem:[#allocation69_spill] sm:$0xff] %v7251_v48  ;;  %2693 = vmatmul.f32.vlgmr.msra.gmra.mxu2 %v7251_v48  ;;  %2713 = vmatmul.f32.vlgmr.msra.gmra.mxu3 %v7253_v1  ;;  %v2200_v42 = vld [vmem:[#allocation20 + $0x13a0] sm:$0xff]  ;;  %v1374_v58 = vrot.slane %v7263_v4, 4  ;;  %v7280_v62 = vpop.permute.xlu2 %1366 }
 0x29a   :  { %8819 = vst [vmem:[#allocation70_spill] sm:$0xff] %v7253_v1  ;;  %2797 = vmatpush.msra.mxu0 %v2144_v49  ;;  %2817 = vmatpush.msra.mxu1 %v2208_v35  ;;  %v2264_v27 = vld [vmem:[#allocation20 + $0x15a0] sm:$0xff]  ;;  %v7289_v20 = vld.sshfl [vmem:[#allocation1 + $0x20] sm:$0xff pattern:$0x75316420]  ;;  %v1440_v49 = vsel %vm303_vm12, %v7201_v17, %v1439_v31 }
 0x29b   :  { %2837 = vmatpush.msra.mxu2 %v2272_v52  ;;  %2857 = vmatpush.msra.mxu3 %v2336_v51  ;;  %v2328_v32 = vld [vmem:[#allocation20 + $0x17a0] sm:$0xff]  ;;  %v1386_v16 = vsel %vm754_vm15, %v1373_v24, %v1374_v58  ;;  %8820 = vst [vmem:[#allocation71_spill] sm:$0xff] %v7289_v20  ;;  %v1484_v24 = vrot.slane %v7241_v40, 4 }
 0x29c   :  { %v7272_v57 = vpop.permute.xlu0 %1419  ;;  %2798 = vmatpush.msra.mxu0 %v2140_v5  ;;  %2818 = vmatpush.msra.mxu1 %v2204_v9  ;;  %v2132_v18 = vld [vmem:[#allocation20 + $0x1180] sm:$0xff]  ;;  %v1473_v46 = vpop.permute.xlu1 %1472  ;;  %v1387_v53 = vsel %vm263_vm11, %v7237_v41, %v1386_v16 }
 0x29d   :  { %2838 = vmatpush.msra.mxu2 %v2268_v56  ;;  %2858 = vmatpush.msra.mxu3 %v2332_v29  ;;  %v2196_v55 = vld [vmem:[#allocation20 + $0x1380] sm:$0xff]  ;;  %v1429_v23 = vrot.slane %v7272_v57, 4  ;;  %v7293_v25 = vld.sshfl [vmem:[#allocation1 + $0x30] sm:$0xff pattern:$0x75316420]  ;;  %v1483_v59 = vrot.slane %v1473_v46, 4 }
 0x29e   :  { %2799 = vmatpush.msra.mxu0 %v2136_v12  ;;  %v2260_v28 = vld [vmem:[#allocation20 + $0x1580] sm:$0xff]  ;;  %2819 = vmatpush.msra.mxu1 %v2200_v42  ;;  %8822 = vst [vmem:[#allocation73_spill] sm:$0xff] %v7293_v25  ;;  %v7301_v50 = vld.sshfl [vmem:[#allocation1 + $0x38] sm:$0xff pattern:$0x75316420] }
 0x29f   :  { %2839 = vmatpush.msra.mxu2 %v2264_v27  ;;  %v2324_v19 = vld [vmem:[#allocation20 + $0x1780] sm:$0xff]  ;;  %2859 = vmatpush.msra.mxu3 %v2328_v32  ;;  %8823 = vst [vmem:[#allocation74_spill] sm:$0xff] %v7301_v50  ;;  %v1494_v21 = vsel %vm754_vm15, %v1482_v14, %v1483_v59  ;;  %v1441_v41 = vsel %vm754_vm15, %v1428_v34, %v1429_v23 }
 0x2a0   :  { %v2128_v30 = vld [vmem:[#allocation20 + $0x1160] sm:$0xff]  ;;  %2800 = vmatpush.msra.mxu0 %v2132_v18  ;;  %2820 = vmatpush.msra.mxu1 %v2196_v55  ;;  %v1404_v14 = vmax.f32 %v7052_v2, %v1387_v53  ;;  %v1496_v39 = vsel %vm754_vm15, %v1483_v59, %v1484_v24  ;;  %v1442_v12 = vsel %vm303_vm12, %v7204_v43, %v1441_v41 }
 0x2a1   :  { %v2192_v36 = vld [vmem:[#allocation20 + $0x1360] sm:$0xff]  ;;  %2840 = vmatpush.msra.mxu2 %v2260_v28  ;;  %2860 = vmatpush.msra.mxu3 %v2324_v19  ;;  %v7332_v56 = vpop.permute.xlu2 %1531  ;;  %v1497_v42 = vsel %vm343_vm13, %v1473_v46, %v1496_v39 }
 0x2a2   :  { %v2256_v47 = vld [vmem:[#allocation20 + $0x1560] sm:$0xff]  ;;  %2801 = vmatpush.msra.mxu0 %v2128_v30  ;;  %2821 = vmatpush.msra.mxu1 %v2192_v36 }
 0x2a3   :  { %v6013_v0 = vld [vmem:[#allocation3 + $0x20] sm:$0xff]  ;;  %2841 = vmatpush.msra.mxu2 %v2256_v47  ;;  %1012 = vrot.lane.b32.xlu0 %v6872_v33, %s6323_s28 }
 0x2a4   :  { %v1403_v61 = vmax.f32 %v6013_v0, %v1385_v11  ;;  %v2320_v10 = vld [vmem:[#allocation20 + $0x1760] sm:$0xff]  ;;  %v7295_v22 = vpop.permute.xlu0 %1527  ;;  %465 = vrot.lane.b32.xlu2 %v6674_v3, %s6323_s28  ;;  %2733 = vmatmul.f32.vlgmr.msrb.gmra.mxu0 %v7289_v20  ;;  %v1495_v3 = vsel %vm343_vm13, %v7207_v7, %v1494_v21  ;;  %v7337_v18 = vpop.permute.xlu1 %1529  ;;  %v1459_v11 = vmax.f32 %v1404_v14, %v1442_v12 }
 0x2a5   :  { %v7291_v44 = vld.sshfl [vmem:[#allocation1 + $0x28] sm:$0xff pattern:$0x75316420]  ;;  %2861 = vmatpush.msra.mxu3 %v2320_v10  ;;  %v1538_v38 = vrot.slane %v7295_v22, 4  ;;  %2773 = vmatmul.f32.vlgmr.msrb.gmra.mxu2 %v7293_v25  ;;  %v1539_v34 = vrot.slane %v7337_v18, 4 }
 0x2a6   :  { %8821 = vst [vmem:[#allocation72_spill] sm:$0xff] %v7291_v44  ;;  %v2124_v17 = vld [vmem:[#allocation20 + $0x1140] sm:$0xff]  ;;  %v1458_v52 = vmax.f32 %v1403_v61, %v1440_v49  ;;  %2753 = vmatmul.f32.vlgmr.msrb.gmra.mxu1 %v7291_v44  ;;  %2793 = vmatmul.f32.vlgmr.msrb.gmra.mxu3 %v7301_v50  ;;  %v1514_v31 = vmax.f32 %v1459_v11, %v1497_v42 }
 0x2a7   :  { %v2188_v35 = vld [vmem:[#allocation20 + $0x1340] sm:$0xff]  ;;  %v1549_v45 = vsel %vm754_vm15, %v1537_v60, %v1538_v38  ;;  %2802 = vmatpush.msra.mxu0 %v2124_v17  ;;  %v1551_v0 = vsel %vm754_vm15, %v1538_v38, %v1539_v34  ;;  %1149 = vrot.lane.b32.xlu1 %v6905_v26, %s6323_s28 }
 0x2a8   :  { %v2252_v51 = vld [vmem:[#allocation20 + $0x1540] sm:$0xff]  ;;  %v1513_v63 = vmax.f32 %v1458_v52, %v1495_v3  ;;  %2822 = vmatpush.msra.mxu1 %v2188_v35  ;;  %v1550_v7 = vsel %vm383_vm14, %v7152_v6, %v1549_v45  ;;  %v1375_v6 = vrot.slane %v7280_v62, 4  ;;  %v1552_v16 = vsel %vm383_vm14, %v7295_v22, %v1551_v0  ;;  %v6015_v3 = vld [vmem:[#allocation3 + $0x30] sm:$0xff] }
 0x2a9   :  { %v2316_v33 = vld [vmem:[#allocation20 + $0x1740] sm:$0xff]  ;;  %2842 = vmatpush.msra.mxu2 %v2252_v51  ;;  %v1569_v49 = vmax.f32 %v1514_v31, %v1552_v16  ;;  %v7364_v45 = vpop.permute.xlu2 %445 }
 0x2aa   :  { %v2120_v37 = vld [vmem:[#allocation20 + $0x1120] sm:$0xff]  ;;  %2862 = vmatpush.msra.mxu3 %v2316_v33  ;;  %v1568_v13 = vmax.f32 %v1513_v63, %v1550_v7  ;;  %v1388_v47 = vsel %vm754_vm15, %v1374_v58, %v1375_v6  ;;  %v1390_v10 = vsel %vm263_vm11, %v7280_v62, %v1375_v6 }
 0x2ab   :  { %v2184_v5 = vld [vmem:[#allocation20 + $0x1320] sm:$0xff]  ;;  %2803 = vmatpush.msra.mxu0 %v2120_v37  ;;  %v1389_v53 = vsel %vm263_vm11, %v7263_v4, %v1388_v47  ;;  %2596 = vst [vmem:[#allocation1 + $0x10] ss:$2 sm:$0xff] %v1569_v49  ;;  %v1540_v4 = vrot.slane %v7332_v56, 4 }
 0x2ac   :  { %v2248_v9 = vld [vmem:[#allocation20 + $0x1520] sm:$0xff]  ;;  %2823 = vmatpush.msra.mxu1 %v2184_v5  ;;  %2595 = vst [vmem:[#allocation1] ss:$2 sm:$0xff] %v1568_v13  ;;  %v1422_v19 = vpop.permute.xlu0 %1421  ;;  %1151 = vrot.lane.b32.xlu2 %v6907_v15, %s6323_s28  ;;  %v1477_v33 = vpop.permute.xlu1 %1476  ;;  %v1405_v15 = vmax.f32 %v6015_v3, %v1389_v53 }
 0x2ad   :  { %v2312_v60 = vld [vmem:[#allocation20 + $0x1720] sm:$0xff]  ;;  %2843 = vmatpush.msra.mxu2 %v2248_v9  ;;  %v1430_v36 = vrot.slane %v1422_v19, 4  ;;  %v1485_v63 = vrot.slane %v1477_v33, 4  ;;  %v1553_v5 = vsel %vm754_vm15, %v1539_v34, %v1540_v4  ;;  %v1555_v6 = vsel %vm383_vm14, %v7332_v56, %v1540_v4  ;;  %v8826_v56 = vld [vmem:[#allocation42_spill] sm:$0xff] }
 0x2ae   :  { %v2116_v2 = vld [vmem:[#allocation20 + $0x1100] sm:$0xff]  ;;  %2863 = vmatpush.msra.mxu3 %v2312_v60 }
 0x2af   :  { %v2180_v29 = vld [vmem:[#allocation20 + $0x1300] sm:$0xff]  ;;  %2804 = vmatpush.msra.mxu0 %v2116_v2  ;;  %v1443_v58 = vsel %vm754_vm15, %v1429_v23, %v1430_v36  ;;  %v1445_v17 = vsel %vm303_vm12, %v1422_v19, %v1430_v36  ;;  %v1500_v12 = vsel %vm343_vm13, %v1477_v33, %v1485_v63  ;;  %v8825_v19 = vld [vmem:[#allocation55_spill] sm:$0xff] }
 0x2b0   :  { %v2244_v27 = vld [vmem:[#allocation20 + $0x1500] sm:$0xff]  ;;  %2824 = vmatpush.msra.mxu1 %v2180_v29  ;;  %v1444_v26 = vsel %vm303_vm12, %v7272_v57, %v1443_v58  ;;  %v1498_v29 = vsel %vm754_vm15, %v1484_v24, %v1485_v63  ;;  %1014 = vrot.lane.b32.xlu1 %v8825_v19, %s6323_s28 }
 0x2b1   :  { %v2308_v32 = vld [vmem:[#allocation20 + $0x1700] sm:$0xff]  ;;  %2844 = vmatpush.msra.mxu2 %v2244_v27  ;;  %v1460_v60 = vmax.f32 %v1405_v15, %v1444_v26  ;;  %v1499_v27 = vsel %vm343_vm13, %v7241_v40, %v1498_v29  ;;  %v8830_v15 = vld [vmem:[#allocation47_spill] sm:$0xff] }
 0x2b2   :  { %v2112_v55 = vld [vmem:[#allocation20 + $0x10e0] sm:$0xff]  ;;  %2864 = vmatpush.msra.mxu3 %v2308_v32  ;;  %v2601_v3 = vld.sshfl [vmem:[#allocation1 + $0x10] sm:$0xff pattern:$0x75316420] }
 0x2b3   :  { %v2176_v28 = vld [vmem:[#allocation20 + $0x12e0] sm:$0xff]  ;;  %2805 = vmatpush.msra.mxu0 %v2112_v55  ;;  %v1515_v11 = vmax.f32 %v1460_v60, %v1499_v27  ;;  %v1554_v55 = vsel %vm383_vm14, %v7337_v18, %v1553_v5 }
 0x2b4   :  { %v2240_v43 = vld [vmem:[#allocation20 + $0x14e0] sm:$0xff]  ;;  %2825 = vmatpush.msra.mxu1 %v2176_v28  ;;  %v7366_v37 = vpop.permute.xlu0 %441  ;;  %v7385_v31 = vpop.permute.xlu1 %443 }
 0x2b5   :  { %v2304_v30 = vld [vmem:[#allocation20 + $0x16e0] sm:$0xff]  ;;  %2845 = vmatpush.msra.mxu2 %v2240_v43 }
 0x2b6   :  { %v2108_v61 = vld [vmem:[#allocation20 + $0x10c0] sm:$0xff]  ;;  %2865 = vmatpush.msra.mxu3 %v2304_v30  ;;  %v1570_v30 = vmax.f32 %v1515_v11, %v1554_v55 }
 0x2b7   :  { %v2172_v46 = vld [vmem:[#allocation20 + $0x12c0] sm:$0xff]  ;;  %2806 = vmatpush.msra.mxu0 %v2108_v61 }
 0x2b8   :  { %v2236_v59 = vld [vmem:[#allocation20 + $0x14c0] sm:$0xff]  ;;  %2826 = vmatpush.msra.mxu1 %v2172_v46  ;;  %2597 = vst [vmem:[#allocation1 + $0x20] ss:$2 sm:$0xff] %v1570_v30 }
 0x2b9   :  { %v8824_v22 = vld [vmem:[#allocation45_spill] sm:$0xff]  ;;  %v6014_v52 = vld [vmem:[#allocation3 + $0x38] sm:$0xff]  ;;  %2846 = vmatpush.msra.mxu2 %v2236_v59  ;;  %v7389_v59 = vpop.permute.xlu2 %584 }
 0x2ba   :  { %604 = vrot.lane.b32.xlu0 %v8824_v22, %s6323_s28  ;;  %v2300_v38 = vld [vmem:[#allocation20 + $0x16c0] sm:$0xff]  ;;  %v1406_v21 = vmax.f32 %v6014_v52, %v1390_v10 }
 0x2bb   :  { %v2104_v62 = vld [vmem:[#allocation20 + $0x10a0] sm:$0xff]  ;;  %2866 = vmatpush.msra.mxu3 %v2300_v38 }
 0x2bc   :  { %v2168_v35 = vld [vmem:[#allocation20 + $0x12a0] sm:$0xff]  ;;  %2807 = vmatpush.msra.mxu0 %v2104_v62  ;;  %v1461_v7 = vmax.f32 %v1406_v21, %v1445_v17  ;;  %v7387_v16 = vpop.permute.xlu0 %447  ;;  %v2599_v17 = vld.sshfl [vmem:[#allocation1] sm:$0xff pattern:$0x75316420]  ;;  %v7391_v52 = vpop.permute.xlu1 %582 }
 0x2bd   :  { %v2232_v23 = vld [vmem:[#allocation20 + $0x14a0] sm:$0xff]  ;;  %2827 = vmatpush.msra.mxu1 %v2168_v35 }
 0x2be   :  { %v2296_v41 = vld [vmem:[#allocation20 + $0x16a0] sm:$0xff]  ;;  %2847 = vmatpush.msra.mxu2 %v2232_v23  ;;  %v1516_v32 = vmax.f32 %v1461_v7, %v1500_v12 }
 0x2bf   :  { %v2100_v51 = vld [vmem:[#allocation20 + $0x1080] sm:$0xff]  ;;  %2867 = vmatpush.msra.mxu3 %v2296_v41  ;;  %v8828_v41 = vld [vmem:[#allocation46_spill] sm:$0xff] }
 0x2c0   :  { %v2164_v14 = vld [vmem:[#allocation20 + $0x1280] sm:$0xff]  ;;  %2808 = vmatpush.msra.mxu0 %v2100_v51  ;;  %v1571_v34 = vmax.f32 %v1516_v32, %v1555_v6  ;;  %606 = vrot.lane.b32.xlu1 %v8828_v41, %s6323_s28 }
 0x2c1   :  { %v2228_v39 = vld [vmem:[#allocation20 + $0x1480] sm:$0xff]  ;;  %2828 = vmatpush.msra.mxu1 %v2164_v14  ;;  %v2602_v14 = vld.sshfl [vmem:[#allocation1 + $0x18] sm:$0xff pattern:$0x75316420]  ;;  %v7402_v7 = vpop.permute.xlu2 %588 }
 0x2c2   :  { %v2292_v57 = vld [vmem:[#allocation20 + $0x1680] sm:$0xff]  ;;  %2848 = vmatpush.msra.mxu2 %v2228_v39  ;;  %467 = vrot.lane.b32.xlu0 %v8826_v56, %s6323_s28  ;;  %2598 = vst [vmem:[#allocation1 + $0x30] ss:$2 sm:$0xff] %v1571_v34 }
 0x2c3   :  { %v2096_v9 = vld [vmem:[#allocation20 + $0x1060] sm:$0xff]  ;;  %2868 = vmatpush.msra.mxu3 %v2292_v57 }
 0x2c4   :  { %v2160_v13 = vld [vmem:[#allocation20 + $0x1260] sm:$0xff]  ;;  %2809 = vmatpush.msra.mxu0 %v2096_v9  ;;  %v7394_v26 = vpop.permute.xlu0 %586  ;;  %v7404_v27 = vpop.permute.xlu1 %449 }
 0x2c5   :  { %v2224_v2 = vld [vmem:[#allocation20 + $0x1460] sm:$0xff]  ;;  %2829 = vmatpush.msra.mxu1 %v2160_v13 }
 0x2c6   :  { %v2288_v42 = vld [vmem:[#allocation20 + $0x1660] sm:$0xff]  ;;  %2849 = vmatpush.msra.mxu2 %v2224_v2 }
 0x2c7   :  { %v2092_v24 = vld [vmem:[#allocation20 + $0x1040] sm:$0xff]  ;;  %2869 = vmatpush.msra.mxu3 %v2288_v42 }
 0x2c8   :  { %v2156_v28 = vld [vmem:[#allocation20 + $0x1240] sm:$0xff]  ;;  %2810 = vmatpush.msra.mxu0 %v2092_v24  ;;  %v8831_v24 = vld [vmem:[#allocation43_spill] sm:$0xff] }
 0x2c9   :  { %v2220_v40 = vld [vmem:[#allocation20 + $0x1440] sm:$0xff]  ;;  %2830 = vmatpush.msra.mxu1 %v2156_v28  ;;  %469 = vrot.lane.b32.xlu1 %v8831_v24, %s6323_s28  ;;  %v8837_v24 = vld [vmem:[#allocation58_spill] sm:$0xff] }
 0x2ca   :  { %v2284_v43 = vld [vmem:[#allocation20 + $0x1640] sm:$0xff]  ;;  %2850 = vmatpush.msra.mxu2 %v2220_v40 }
 0x2cb   :  { %v8827_v36 = vld [vmem:[#allocation56_spill] sm:$0xff]  ;;  %2870 = vmatpush.msra.mxu3 %v2284_v43  ;;  %v8832_v19 = vld [vmem:[#allocation57_spill] sm:$0xff] }
 0x2cc   :  { %1016 = vrot.lane.b32.xlu2 %v8827_v36, %s6323_s28  ;;  %v2088_v18 = vld [vmem:[#allocation20 + $0x1020] sm:$0xff]  ;;  %v7406_v6 = vpop.permute.xlu0 %451 }
 0x2cd   :  { %v2152_v47 = vld [vmem:[#allocation20 + $0x1220] sm:$0xff]  ;;  %2811 = vmatpush.msra.mxu0 %v2088_v18  ;;  %v7414_v18 = vpop.permute.xlu2 %453 }
 0x2ce   :  { %v2216_v0 = vld [vmem:[#allocation20 + $0x1420] sm:$0xff]  ;;  %2831 = vmatpush.msra.mxu1 %v2152_v47 }
 0x2cf   :  { %v2280_v61 = vld [vmem:[#allocation20 + $0x1620] sm:$0xff]  ;;  %2851 = vmatpush.msra.mxu2 %v2216_v0 }
 0x2d0   :  { %v2084_v10 = vld [vmem:[#allocation20 + $0x1000] sm:$0xff]  ;;  %2871 = vmatpush.msra.mxu3 %v2280_v61 }
 0x2d1   :  { %v2148_v46 = vld [vmem:[#allocation20 + $0x1200] sm:$0xff]  ;;  %2812 = vmatpush.msra.mxu0 %v2084_v10 }
 0x2d2   :  { %v2212_v49 = vld [vmem:[#allocation20 + $0x1400] sm:$0xff]  ;;  %2832 = vmatpush.msra.mxu1 %v2148_v46  ;;  %2813 = vmatmul.f32.vlgmr.msra.gmra.mxu0 %v2599_v17  ;;  %v7416_v46 = vpop.permute.xlu1 %590 }
 0x2d3   :  { %v2276_v58 = vld [vmem:[#allocation20 + $0x1600] sm:$0xff]  ;;  %2852 = vmatpush.msra.mxu2 %v2212_v49 }
 0x2d4   :  { %v2400_v53 = vld [vmem:[#allocation20 + $0x19e0] sm:$0xff]  ;;  %2872 = vmatpush.msra.mxu3 %v2276_v58  ;;  %608 = vrot.lane.b32.xlu2 %v8830_v15, %s6323_s28 }
 0x2d5   :  { %v2464_v22 = vld [vmem:[#allocation20 + $0x1be0] sm:$0xff]  ;;  %2877 = vmatpush.msrb.mxu0 %v2400_v53  ;;  %2853 = vmatmul.f32.vlgmr.msra.gmra.mxu2 %v2601_v3  ;;  %v1633_v3 = vld [vmem:[#allocation20 + $0x1e8] sm:$0xff] }
 0x2d6   :  { %v2528_v38 = vld [vmem:[#allocation20 + $0x1de0] sm:$0xff]  ;;  %2897 = vmatpush.msrb.mxu1 %v2464_v22  ;;  %2873 = vmatmul.f32.vlgmr.msra.gmra.mxu3 %v2602_v14 }
 0x2d7   :  { %v2568_v62 = vld [vmem:[#allocation20 + $0x1f20] sm:$0xf]  ;;  %2917 = vmatpush.msrb.mxu2 %v2528_v38  ;;  %v7418_v38 = vpop.permute.xlu0 %592 }
 0x2d8   :  { %v2600_v35 = vld.sshfl [vmem:[#allocation1 + $0x8] sm:$0xff pattern:$0x75316420]  ;;  %5791 = vmatpush.msk.msrb.mxu3 %vm754_vm15, %v2568_v62 }
 0x2d9   :  { %2833 = vmatmul.f32.vlgmr.msra.gmra.mxu1 %v2600_v35  ;;  %v2396_v23 = vld [vmem:[#allocation20 + $0x19c0] sm:$0xff] }
 0x2da   :  { %v2460_v21 = vld [vmem:[#allocation20 + $0x1bc0] sm:$0xff]  ;;  %2878 = vmatpush.msrb.mxu0 %v2396_v23  ;;  %v7426_v14 = vpop.permute.xlu1 %998 }
 0x2db   :  { %v2524_v4 = vld [vmem:[#allocation20 + $0x1dc0] sm:$0xff]  ;;  %2898 = vmatpush.msrb.mxu1 %v2460_v21 }
 0x2dc   :  { %v8829_v51 = vld [vmem:[#allocation64_spill] sm:$0xff]  ;;  %2918 = vmatpush.msrb.mxu2 %v2524_v4  ;;  %v8834_v23 = vld [vmem:[#allocation65_spill] sm:$0xff] }
 0x2dd   :  { %1153 = vrot.lane.b32.xlu0 %v8829_v51, %s6323_s28  ;;  %v2564_v33 = vld [vmem:[#allocation20 + $0x1f00] sm:$0xff]  ;;  %1155 = vrot.lane.b32.xlu1 %v8834_v23, %s6323_s28  ;;  %v8836_v51 = vld [vmem:[#allocation66_spill] sm:$0xff] }
 0x2de   :  { %v2392_v39 = vld [vmem:[#allocation20 + $0x19a0] sm:$0xff]  ;;  %2944 = vmatpush.msrb.mxu3 %v2564_v33  ;;  %v1825_v23 = vld [vmem:[#allocation20 + $0x7e8] sm:$0xff] }
 0x2df   :  { %v2456_v63 = vld [vmem:[#allocation20 + $0x1ba0] sm:$0xff]  ;;  %2879 = vmatpush.msrb.mxu0 %v2392_v39  ;;  %v7428_v39 = vpop.permute.xlu2 %1000 }
 0x2e0   :  { %v2520_v5 = vld [vmem:[#allocation20 + $0x1da0] sm:$0xff]  ;;  %2899 = vmatpush.msrb.mxu1 %v2456_v63  ;;  %v2606_v63 = vld.sshfl [vmem:[#allocation1 + $0x38] sm:$0xff pattern:$0x75316420] }
 0x2e1   :  { %v2560_v57 = vld [vmem:[#allocation20 + $0x1ee0] sm:$0xff]  ;;  %2919 = vmatpush.msrb.mxu2 %v2520_v5 }
 0x2e2   :  { %v2388_v9 = vld [vmem:[#allocation20 + $0x1980] sm:$0xff]  ;;  %2945 = vmatpush.msrb.mxu3 %v2560_v57 }
 0x2e3   :  { %v2452_v60 = vld [vmem:[#allocation20 + $0x1b80] sm:$0xff]  ;;  %2880 = vmatpush.msrb.mxu0 %v2388_v9  ;;  %v1629_v9 = vld [vmem:[#allocation20 + $0x1c8] sm:$0xff] }
 0x2e4   :  { %v2516_v13 = vld [vmem:[#allocation20 + $0x1d80] sm:$0xff]  ;;  %2900 = vmatpush.msrb.mxu1 %v2452_v60 }
 0x2e5   :  { %v2556_v2 = vld [vmem:[#allocation20 + $0x1ec0] sm:$0xff]  ;;  %2920 = vmatpush.msrb.mxu2 %v2516_v13  ;;  %1018 = vrot.lane.b32.xlu0 %v8832_v19, %s6323_s28  ;;  %v1617_v19 = vld [vmem:[#allocation20 + $0x168] sm:$0xff] }
 0x2e6   :  { %v2384_v29 = vld [vmem:[#allocation20 + $0x1960] sm:$0xff]  ;;  %2946 = vmatpush.msrb.mxu3 %v2556_v2  ;;  %1020 = vrot.lane.b32.xlu1 %v8837_v24, %s6323_s28  ;;  %v1681_v24 = vld [vmem:[#allocation20 + $0x368] sm:$0xff] }
 0x2e7   :  { %v2448_v12 = vld [vmem:[#allocation20 + $0x1b60] sm:$0xff]  ;;  %2881 = vmatpush.msrb.mxu0 %v2384_v29  ;;  %v1625_v29 = vld [vmem:[#allocation20 + $0x1a8] sm:$0xff] }
 0x2e8   :  { %v2512_v42 = vld [vmem:[#allocation20 + $0x1d60] sm:$0xff]  ;;  %2901 = vmatpush.msrb.mxu1 %v2448_v12 }
 0x2e9   :  { %v2552_v32 = vld [vmem:[#allocation20 + $0x1ea0] sm:$0xff]  ;;  %2921 = vmatpush.msrb.mxu2 %v2512_v42  ;;  %v7431_v42 = vpop.permute.xlu0 %1002 }
 0x2ea   :  { %v2380_v11 = vld [vmem:[#allocation20 + $0x1940] sm:$0xff]  ;;  %2947 = vmatpush.msrb.mxu3 %v2552_v32  ;;  %v1621_v32 = vld [vmem:[#allocation20 + $0x188] sm:$0xff] }
 0x2eb   :  { %v2444_v55 = vld [vmem:[#allocation20 + $0x1b40] sm:$0xff]  ;;  %2882 = vmatpush.msrb.mxu0 %v2380_v11 }
 0x2ec   :  { %v2508_v28 = vld [vmem:[#allocation20 + $0x1d40] sm:$0xff]  ;;  %2902 = vmatpush.msrb.mxu1 %v2444_v55 }
 0x2ed   :  { %v2548_v34 = vld [vmem:[#allocation20 + $0x1e80] sm:$0xff]  ;;  %2922 = vmatpush.msrb.mxu2 %v2508_v28 }
 0x2ee   :  { %v8833_v40 = vld [vmem:[#allocation44_spill] sm:$0xff]  ;;  %2948 = vmatpush.msrb.mxu3 %v2548_v34  ;;  %v8838_v28 = vld [vmem:[#allocation41_spill] sm:$0xff] }
 0x2ef   :  { %471 = vrot.lane.b32.xlu2 %v8833_v40, %s6323_s28  ;;  %v2376_v43 = vld [vmem:[#allocation20 + $0x1920] sm:$0xff]  ;;  %v8839_v40 = vld [vmem:[#allocation51_spill] sm:$0xff] }
 0x2f0   :  { %v2440_v30 = vld [vmem:[#allocation20 + $0x1b20] sm:$0xff]  ;;  %2883 = vmatpush.msrb.mxu0 %v2376_v43 }
 0x2f1   :  { %v2504_v56 = vld [vmem:[#allocation20 + $0x1d20] sm:$0xff]  ;;  %2903 = vmatpush.msrb.mxu1 %v2440_v30 }
 0x2f2   :  { %v2544_v36 = vld [vmem:[#allocation20 + $0x1e60] sm:$0xff]  ;;  %2923 = vmatpush.msrb.mxu2 %v2504_v56  ;;  %v7439_v56 = vpop.permute.xlu1 %455 }
 0x2f3   :  { %v2372_v47 = vld [vmem:[#allocation20 + $0x1900] sm:$0xff]  ;;  %2949 = vmatpush.msrb.mxu3 %v2544_v36 }
 0x2f4   :  { %v2436_v0 = vld [vmem:[#allocation20 + $0x1b00] sm:$0xff]  ;;  %2884 = vmatpush.msrb.mxu0 %v2372_v47  ;;  %v1613_v47 = vld [vmem:[#allocation20 + $0x148] sm:$0xff] }
 0x2f5   :  { %v2500_v61 = vld [vmem:[#allocation20 + $0x1d00] sm:$0xff]  ;;  %2904 = vmatpush.msrb.mxu1 %v2436_v0  ;;  %v7441_v0 = vpop.permute.xlu2 %594 }
 0x2f6   :  { %v2540_v10 = vld [vmem:[#allocation20 + $0x1e40] sm:$0xff]  ;;  %2924 = vmatpush.msrb.mxu2 %v2500_v61 }
 0x2f7   :  { %v2368_v49 = vld [vmem:[#allocation20 + $0x18e0] sm:$0xff]  ;;  %2950 = vmatpush.msrb.mxu3 %v2540_v10  ;;  %1157 = vrot.lane.b32.xlu2 %v8836_v51, %s6323_s28  ;;  %v1757_v51 = vld [vmem:[#allocation20 + $0x5c8] sm:$0xff] }
 0x2f8   :  { %v2432_v58 = vld [vmem:[#allocation20 + $0x1ae0] sm:$0xff]  ;;  %2885 = vmatpush.msrb.mxu0 %v2368_v49 }
 0x2f9   :  { %v2496_v53 = vld [vmem:[#allocation20 + $0x1ce0] sm:$0xff]  ;;  %2905 = vmatpush.msrb.mxu1 %v2432_v58  ;;  %v2603_v58 = vld.sshfl [vmem:[#allocation1 + $0x20] sm:$0xff pattern:$0x75316420] }
 0x2fa   :  { %v2536_v22 = vld [vmem:[#allocation20 + $0x1e20] sm:$0xff]  ;;  %2925 = vmatpush.msrb.mxu2 %v2496_v53 }
 0x2fb   :  { %v2364_v62 = vld [vmem:[#allocation20 + $0x18c0] sm:$0xff]  ;;  %2951 = vmatpush.msrb.mxu3 %v2536_v22  ;;  %v1609_v22 = vld [vmem:[#allocation20 + $0x128] sm:$0xff] }
 0x2fc   :  { %v2428_v17 = vld [vmem:[#allocation20 + $0x1ac0] sm:$0xff]  ;;  %2886 = vmatpush.msrb.mxu0 %v2364_v62  ;;  %v1697_v62 = vld [vmem:[#allocation20 + $0x3e8] sm:$0xff] }
 0x2fd   :  { %v2492_v35 = vld [vmem:[#allocation20 + $0x1cc0] sm:$0xff]  ;;  %2906 = vmatpush.msrb.mxu1 %v2428_v17  ;;  %v2605_v17 = vld.sshfl [vmem:[#allocation1 + $0x30] sm:$0xff pattern:$0x75316420] }
 0x2fe   :  { %v8835_v21 = vld [vmem:[#allocation48_spill] sm:$0xff]  ;;  %2926 = vmatpush.msrb.mxu2 %v2492_v35  ;;  %v1761_v35 = vld [vmem:[#allocation20 + $0x5e8] sm:$0xff] }
 0x2ff   :  { %610 = vrot.lane.b32.xlu0 %v8835_v21, %s6323_s28  ;;  %v2532_v4 = vld [vmem:[#allocation20 + $0x1e00] sm:$0xff]  ;;  %1022 = vrot.lane.b32.xlu2 %v8839_v40, %s6323_s28  ;;  %v7443_v21 = vpop.permute.xlu0 %1004 }
 0x300   :  { %v2360_v41 = vld [vmem:[#allocation20 + $0x18a0] sm:$0xff]  ;;  %2952 = vmatpush.msrb.mxu3 %v2532_v4  ;;  %v1605_v4 = vld [vmem:[#allocation20 + $0x108] sm:$0xff] }
 0x301   :  { %v2424_v33 = vld [vmem:[#allocation20 + $0x1aa0] sm:$0xff]  ;;  %2887 = vmatpush.msrb.mxu0 %v2360_v41  ;;  %5792 = vmatmul.msk.f32.vlgmr.msrb.gmra.mxu3 %vm2622_vm7, %v2606_v63  ;;  %v1693_v41 = vld [vmem:[#allocation20 + $0x3c8] sm:$0xff] }
 0x302   :  { %v2488_v15 = vld [vmem:[#allocation20 + $0x1ca0] sm:$0xff]  ;;  %2907 = vmatpush.msrb.mxu1 %v2424_v33  ;;  %2957 = vmatpush.msra.mxu3 %v1633_v3  ;;  %v1821_v33 = vld [vmem:[#allocation20 + $0x7c8] sm:$0xff] }
 0x303   :  { %v2356_v5 = vld [vmem:[#allocation20 + $0x1880] sm:$0xff]  ;;  %2927 = vmatpush.msrb.mxu2 %v2488_v15  ;;  %v1601_v3 = vld [vmem:[#allocation20 + $0xe8] sm:$0xff]  ;;  %v7445_v15 = vpop.permute.xlu1 %1137 }
 0x304   :  { %v2420_v57 = vld [vmem:[#allocation20 + $0x1a80] sm:$0xff]  ;;  %2888 = vmatpush.msrb.mxu0 %v2356_v5  ;;  %2958 = vmatpush.msra.mxu3 %v1629_v9  ;;  %v1689_v63 = vld [vmem:[#allocation20 + $0x3a8] sm:$0xff] }
 0x305   :  { %v2484_v60 = vld [vmem:[#allocation20 + $0x1c80] sm:$0xff]  ;;  %2908 = vmatpush.msrb.mxu1 %v2420_v57  ;;  %v1753_v5 = vld [vmem:[#allocation20 + $0x5a8] sm:$0xff]  ;;  %v7447_v57 = vpop.permute.xlu2 %1139 }
 0x306   :  { %v2352_v13 = vld [vmem:[#allocation20 + $0x1860] sm:$0xff]  ;;  %2928 = vmatpush.msrb.mxu2 %v2484_v60  ;;  %2959 = vmatpush.msra.mxu3 %v1625_v29  ;;  %v8841_v60 = vld [vmem:[#allocation67_spill] sm:$0xff] }
 0x307   :  { %v2416_v2 = vld [vmem:[#allocation20 + $0x1a60] sm:$0xff]  ;;  %2889 = vmatpush.msrb.mxu0 %v2352_v13  ;;  %473 = vrot.lane.b32.xlu0 %v8838_v28, %s6323_s28  ;;  %v1817_v13 = vld [vmem:[#allocation20 + $0x7a8] sm:$0xff]  ;;  %v7455_v40 = vpop.permute.xlu0 %1141 }
 0x308   :  { %v2480_v12 = vld [vmem:[#allocation20 + $0x1c60] sm:$0xff]  ;;  %2909 = vmatpush.msrb.mxu1 %v2416_v2  ;;  %2960 = vmatpush.msra.mxu3 %v1621_v32  ;;  %v1597_v2 = vld [vmem:[#allocation20 + $0xc8] sm:$0xff] }
 0x309   :  { %2929 = vmatpush.msrb.mxu2 %v2480_v12  ;;  %v2348_v11 = vld [vmem:[#allocation20 + $0x1840] sm:$0xff]  ;;  %v1685_v12 = vld [vmem:[#allocation20 + $0x388] sm:$0xff] }
 0x30a   :  { %v2412_v55 = vld [vmem:[#allocation20 + $0x1a40] sm:$0xff]  ;;  %2890 = vmatpush.msrb.mxu0 %v2348_v11  ;;  %2961 = vmatpush.msra.mxu3 %v1617_v19  ;;  %v1749_v32 = vld [vmem:[#allocation20 + $0x588] sm:$0xff] }
 0x30b   :  { %v2476_v34 = vld [vmem:[#allocation20 + $0x1c40] sm:$0xff]  ;;  %2910 = vmatpush.msrb.mxu1 %v2412_v55  ;;  %v1813_v11 = vld [vmem:[#allocation20 + $0x788] sm:$0xff] }
 0x30c   :  { %v2344_v43 = vld [vmem:[#allocation20 + $0x1820] sm:$0xff]  ;;  %2930 = vmatpush.msrb.mxu2 %v2476_v34  ;;  %2962 = vmatpush.msra.mxu3 %v1613_v47  ;;  %v1593_v55 = vld [vmem:[#allocation20 + $0xa8] sm:$0xff] }
 0x30d   :  { %v2408_v30 = vld [vmem:[#allocation20 + $0x1a20] sm:$0xff]  ;;  %2891 = vmatpush.msrb.mxu0 %v2344_v43  ;;  %v1745_v28 = vld [vmem:[#allocation20 + $0x568] sm:$0xff] }
 0x30e   :  { %v2472_v36 = vld [vmem:[#allocation20 + $0x1c20] sm:$0xff]  ;;  %2911 = vmatpush.msrb.mxu1 %v2408_v30  ;;  %2963 = vmatpush.msra.mxu3 %v1609_v22  ;;  %v1809_v34 = vld [vmem:[#allocation20 + $0x768] sm:$0xff]  ;;  %v7461_v22 = vpop.permute.xlu2 %596 }
 0x30f   :  { %v2340_v61 = vld [vmem:[#allocation20 + $0x1800] sm:$0xff]  ;;  %2931 = vmatpush.msrb.mxu2 %v2472_v36  ;;  %1159 = vrot.lane.b32.xlu0 %v8841_v60, %s6323_s28  ;;  %v1589_v19 = vld [vmem:[#allocation20 + $0x88] sm:$0xff]  ;;  %v7467_v60 = vpop.permute.xlu0 %1006 }
 0x310   :  { %v2404_v10 = vld [vmem:[#allocation20 + $0x1a00] sm:$0xff]  ;;  %2892 = vmatpush.msrb.mxu0 %v2340_v61  ;;  %2964 = vmatpush.msra.mxu3 %v1605_v4  ;;  %v1677_v43 = vld [vmem:[#allocation20 + $0x348] sm:$0xff] }
 0x311   :  { %v2468_v49 = vld [vmem:[#allocation20 + $0x1c00] sm:$0xff]  ;;  %2912 = vmatpush.msrb.mxu1 %v2404_v10  ;;  %2893 = vmatmul.f32.vlgmr.msrb.gmra.mxu0 %v2603_v58  ;;  %v1741_v30 = vld [vmem:[#allocation20 + $0x548] sm:$0xff]  ;;  %v7457_v10 = vpop.permute.xlu1 %457 }
 0x312   :  { %v2604_v53 = vld.sshfl [vmem:[#allocation1 + $0x28] sm:$0xff pattern:$0x75316420]  ;;  %2932 = vmatpush.msrb.mxu2 %v2468_v49  ;;  %2977 = vmatpush.msra.mxu0 %v1697_v62  ;;  %v1805_v36 = vld [vmem:[#allocation20 + $0x748] sm:$0xff]  ;;  %v8844_v62 = vld [vmem:[#allocation59_spill] sm:$0xff] }
 0x313   :  { %2913 = vmatmul.f32.vlgmr.msrb.gmra.mxu1 %v2604_v53  ;;  %2933 = vmatmul.f32.vlgmr.msrb.gmra.mxu2 %v2605_v17  ;;  %v8840_v9 = vld [vmem:[#allocation49_spill] sm:$0xff]  ;;  %v8842_v29 = vld [vmem:[#allocation52_spill] sm:$0xff]  ;;  %v8843_v49 = vld [vmem:[#allocation50_spill] sm:$0xff] }
 0x314   :  { %2997 = vmatpush.msra.mxu1 %v1761_v35  ;;  %3017 = vmatpush.msra.mxu2 %v1825_v23  ;;  %v1585_v47 = vld [vmem:[#allocation20 + $0x68] sm:$0xff]  ;;  %v8845_v17 = vld [vmem:[#allocation60_spill] sm:$0xff] }
 0x315   :  { %2978 = vmatpush.msra.mxu0 %v1693_v41  ;;  %612 = vrot.lane.b32.xlu1 %v8840_v9, %s6323_s28  ;;  %v1673_v61 = vld [vmem:[#allocation20 + $0x328] sm:$0xff] }
 0x316   :  { %2998 = vmatpush.msra.mxu1 %v1757_v51  ;;  %3018 = vmatpush.msra.mxu2 %v1821_v33  ;;  %v1737_v58 = vld [vmem:[#allocation20 + $0x528] sm:$0xff] }
 0x317   :  { %1024 = vrot.lane.b32.xlu2 %v8842_v29, %s6323_s28  ;;  %2965 = vmatpush.msra.mxu3 %v1601_v3  ;;  %v1801_v53 = vld [vmem:[#allocation20 + $0x728] sm:$0xff] }
 0x318   :  { %2979 = vmatpush.msra.mxu0 %v1689_v63  ;;  %2999 = vmatpush.msra.mxu1 %v1753_v5  ;;  %v1581_v35 = vld [vmem:[#allocation20 + $0x48] sm:$0xff] }
 0x319   :  { %3019 = vmatpush.msra.mxu2 %v1817_v13  ;;  %2966 = vmatpush.msra.mxu3 %v1597_v2  ;;  %v1669_v23 = vld [vmem:[#allocation20 + $0x308] sm:$0xff] }
 0x31a   :  { %2980 = vmatpush.msra.mxu0 %v1685_v12  ;;  %3000 = vmatpush.msra.mxu1 %v1749_v32  ;;  %v1733_v4 = vld [vmem:[#allocation20 + $0x508] sm:$0xff]  ;;  %v7469_v32 = vpop.permute.xlu1 %1143 }
 0x31b   :  { %3020 = vmatpush.msra.mxu2 %v1813_v11  ;;  %2967 = vmatpush.msra.mxu3 %v1593_v55  ;;  %v1797_v41 = vld [vmem:[#allocation20 + $0x708] sm:$0xff] }
 0x31c   :  { %2981 = vmatpush.msra.mxu0 %v1681_v24  ;;  %3001 = vmatpush.msra.mxu1 %v1745_v28  ;;  %v1577_v51 = vld [vmem:[#allocation20 + $0x28] sm:$0xff] }
 0x31d   :  { %3021 = vmatpush.msra.mxu2 %v1809_v34  ;;  %2968 = vmatpush.msra.mxu3 %v1589_v19  ;;  %v1665_v33 = vld [vmem:[#allocation20 + $0x2e8] sm:$0xff]  ;;  %v7475_v34 = vpop.permute.xlu2 %459  ;;  %v8848_v19 = vld [vmem:[#allocation63_spill] sm:$0xff] }
 0x31e   :  { %2982 = vmatpush.msra.mxu0 %v1677_v43  ;;  %3002 = vmatpush.msra.mxu1 %v1741_v30  ;;  %v1729_v3 = vld [vmem:[#allocation20 + $0x4e8] sm:$0xff] }
 0x31f   :  { %3022 = vmatpush.msra.mxu2 %v1805_v36  ;;  %614 = vrot.lane.b32.xlu1 %v8843_v49, %s6323_s28  ;;  %v1793_v63 = vld [vmem:[#allocation20 + $0x6e8] sm:$0xff] }
 0x320   :  { %1161 = vrot.lane.b32.xlu0 %v8844_v62, %s6323_s28  ;;  %1163 = vrot.lane.b32.xlu2 %v8845_v17, %s6323_s28  ;;  %v1573_v5 = vld [vmem:[#allocation20 + $0x8] sm:$0xff] }
 0x321   :  { %2969 = vmatpush.msra.mxu3 %v1585_v47  ;;  %2983 = vmatpush.msra.mxu0 %v1673_v61  ;;  %v1661_v9 = vld [vmem:[#allocation20 + $0x2c8] sm:$0xff] }
 0x322   :  { %3003 = vmatpush.msra.mxu1 %v1737_v58  ;;  %3023 = vmatpush.msra.mxu2 %v1801_v53  ;;  %v1725_v13 = vld [vmem:[#allocation20 + $0x4c8] sm:$0xff] }
 0x323   :  { %2970 = vmatpush.msra.mxu3 %v1581_v35  ;;  %2984 = vmatpush.msra.mxu0 %v1669_v23  ;;  %v1789_v2 = vld [vmem:[#allocation20 + $0x6c8] sm:$0xff]  ;;  %v7480_v35 = vpop.permute.xlu0 %598 }
 0x324   :  { %3004 = vmatpush.msra.mxu1 %v1733_v4  ;;  %3024 = vmatpush.msra.mxu2 %v1797_v41  ;;  %v1889_v29 = vld [vmem:[#allocation20 + $0x9e8] sm:$0xff] }
 0x325   :  { %2971 = vmatpush.msra.mxu3 %v1577_v51  ;;  %2985 = vmatpush.msra.mxu0 %v1665_v33  ;;  %v1657_v12 = vld [vmem:[#allocation20 + $0x2a8] sm:$0xff] }
 0x326   :  { %3005 = vmatpush.msra.mxu1 %v1729_v3  ;;  %3025 = vmatpush.msra.mxu2 %v1793_v63  ;;  %v8846_v11 = vld [vmem:[#allocation53_spill] sm:$0xff]  ;;  %v8847_v55 = vld [vmem:[#allocation54_spill] sm:$0xff]  ;;  %v7482_v63 = vpop.permute.xlu1 %1008 }
 0x327   :  { %2972 = vmatpush.msra.mxu3 %v1573_v5  ;;  %2986 = vmatpush.msra.mxu0 %v1661_v9  ;;  %v1721_v24 = vld [vmem:[#allocation20 + $0x4a8] sm:$0xff] }
 0x328   :  { %3006 = vmatpush.msra.mxu1 %v1725_v13  ;;  %3026 = vmatpush.msra.mxu2 %v1789_v2  ;;  %v1785_v28 = vld [vmem:[#allocation20 + $0x6a8] sm:$0xff] }
 0x329   :  { %1026 = vrot.lane.b32.xlu1 %v8846_v11, %s6323_s28  ;;  %1028 = vrot.lane.b32.xlu0 %v8847_v55, %s6323_s28  ;;  %v1885_v43 = vld [vmem:[#allocation20 + $0x9c8] sm:$0xff] }
 0x32a   :  { %1030 = vrot.lane.b32.xlu2 %v8848_v19, %s6323_s28  ;;  %2973 = vmatmul.f32.vlgmr.msra.gmra.mxu3 %v7255_v8  ;;  %v1653_v30 = vld [vmem:[#allocation20 + $0x288] sm:$0xff] }
 0x32b   :  { %3037 = vmatpush.msrb.mxu3 %v1889_v29  ;;  %2987 = vmatpush.msra.mxu0 %v1657_v12  ;;  %v1717_v36 = vld [vmem:[#allocation20 + $0x488] sm:$0xff]  ;;  %v7488_v29 = vpop.permute.xlu2 %1145 }
 0x32c   :  { %v1781_v47 = vld [vmem:[#allocation20 + $0x688] sm:$0xff]  ;;  %3007 = vmatpush.msra.mxu1 %v1721_v24  ;;  %3027 = vmatpush.msra.mxu2 %v1785_v28 }
 0x32d   :  { %v1881_v61 = vld [vmem:[#allocation20 + $0x9a8] sm:$0xff]  ;;  %3038 = vmatpush.msrb.mxu3 %v1885_v43  ;;  %2988 = vmatpush.msra.mxu0 %v1653_v30  ;;  %v7492_v30 = vpop.permute.xlu0 %461 }
 0x32e   :  { %v1649_v49 = vld [vmem:[#allocation20 + $0x268] sm:$0xff]  ;;  %3008 = vmatpush.msra.mxu1 %v1717_v36  ;;  %3028 = vmatpush.msra.mxu2 %v1781_v47 }
 0x32f   :  { %v1713_v58 = vld [vmem:[#allocation20 + $0x468] sm:$0xff]  ;;  %3039 = vmatpush.msrb.mxu3 %v1881_v61  ;;  %2989 = vmatpush.msra.mxu0 %v1649_v49 }
 0x330   :  { %v1777_v53 = vld [vmem:[#allocation20 + $0x668] sm:$0xff]  ;;  %3009 = vmatpush.msra.mxu1 %v1713_v58 }
 0x331   :  { %v1877_v62 = vld [vmem:[#allocation20 + $0x988] sm:$0xff]  ;;  %3029 = vmatpush.msra.mxu2 %v1777_v53 }
 0x332   :  { %v1645_v17 = vld [vmem:[#allocation20 + $0x248] sm:$0xff]  ;;  %3040 = vmatpush.msrb.mxu3 %v1877_v62 }
 0x333   :  { %v1709_v23 = vld [vmem:[#allocation20 + $0x448] sm:$0xff]  ;;  %2990 = vmatpush.msra.mxu0 %v1645_v17  ;;  %v7495_v17 = vpop.permute.xlu1 %600 }
 0x334   :  { %v1773_v4 = vld [vmem:[#allocation20 + $0x648] sm:$0xff]  ;;  %3010 = vmatpush.msra.mxu1 %v1709_v23  ;;  %v8851_v23 = vld [vmem:[#allocation68_spill] sm:$0xff] }
 0x335   :  { %v1873_v41 = vld [vmem:[#allocation20 + $0x968] sm:$0xff]  ;;  %3030 = vmatpush.msra.mxu2 %v1773_v4 }
 0x336   :  { %v1641_v51 = vld [vmem:[#allocation20 + $0x228] sm:$0xff]  ;;  %3041 = vmatpush.msrb.mxu3 %v1873_v41 }
 0x337   :  { %v1705_v33 = vld [vmem:[#allocation20 + $0x428] sm:$0xff]  ;;  %2991 = vmatpush.msra.mxu0 %v1641_v51  ;;  %v7499_v51 = vpop.permute.xlu2 %1010 }
 0x338   :  { %v1769_v3 = vld [vmem:[#allocation20 + $0x628] sm:$0xff]  ;;  %3011 = vmatpush.msra.mxu1 %v1705_v33 }
 0x339   :  { %v8849_v5 = vld [vmem:[#allocation61_spill] sm:$0xff]  ;;  %v8850_v9 = vld [vmem:[#allocation62_spill] sm:$0xff]  ;;  %3031 = vmatpush.msra.mxu2 %v1769_v3 }
 0x33a   :  { %1165 = vrot.lane.b32.xlu1 %v8849_v5, %s6323_s28  ;;  %1167 = vrot.lane.b32.xlu0 %v8850_v9, %s6323_s28  ;;  %v1869_v13 = vld [vmem:[#allocation20 + $0x948] sm:$0xff] }
 0x33b   :  { %v1637_v2 = vld [vmem:[#allocation20 + $0x208] sm:$0xff]  ;;  %3042 = vmatpush.msrb.mxu3 %v1869_v13 }
 0x33c   :  { %v1701_v12 = vld [vmem:[#allocation20 + $0x408] sm:$0xff]  ;;  %2992 = vmatpush.msra.mxu0 %v1637_v2 }
 0x33d   :  { %v1765_v11 = vld [vmem:[#allocation20 + $0x608] sm:$0xff]  ;;  %3012 = vmatpush.msra.mxu1 %v1701_v12  ;;  %2993 = vmatmul.f32.vlgmr.msra.gmra.mxu0 %v7257_v54 }
 0x33e   :  { %v1865_v55 = vld [vmem:[#allocation20 + $0x928] sm:$0xff]  ;;  %3032 = vmatpush.msra.mxu2 %v1765_v11  ;;  %3013 = vmatmul.f32.vlgmr.msra.gmra.mxu1 %v7251_v48 }
 0x33f   :  { %v1953_v24 = vld [vmem:[#allocation20 + $0xbe8] sm:$0xff]  ;;  %3033 = vmatmul.f32.vlgmr.msra.gmra.mxu2 %v7253_v1  ;;  %3043 = vmatpush.msrb.mxu3 %v1865_v55 }
 0x340   :  { %v2017_v28 = vld [vmem:[#allocation20 + $0xde8] sm:$0xff]  ;;  %3057 = vmatpush.msrb.mxu0 %v1953_v24 }
 0x341   :  { %v2081_v19 = vld [vmem:[#allocation20 + $0xfe8] sm:$0xff]  ;;  %3077 = vmatpush.msrb.mxu1 %v2017_v28  ;;  %v7501_v28 = vpop.permute.xlu0 %1147 }
 0x342   :  { %v1861_v43 = vld [vmem:[#allocation20 + $0x908] sm:$0xff]  ;;  %3097 = vmatpush.msrb.mxu2 %v2081_v19  ;;  %1169 = vrot.lane.b32.xlu1 %v8851_v23, %s6323_s28 }
 0x343   :  { %v1949_v36 = vld [vmem:[#allocation20 + $0xbc8] sm:$0xff]  ;;  %3044 = vmatpush.msrb.mxu3 %v1861_v43 }
 0x344   :  { %v2013_v47 = vld [vmem:[#allocation20 + $0xdc8] sm:$0xff]  ;;  %3058 = vmatpush.msrb.mxu0 %v1949_v36 }
 0x345   :  { %v2077_v61 = vld [vmem:[#allocation20 + $0xfc8] sm:$0xff]  ;;  %3078 = vmatpush.msrb.mxu1 %v2013_v47 }
 0x346   :  { %v1857_v49 = vld [vmem:[#allocation20 + $0x8e8] sm:$0xff]  ;;  %3098 = vmatpush.msrb.mxu2 %v2077_v61 }
 0x347   :  { %v1945_v58 = vld [vmem:[#allocation20 + $0xba8] sm:$0xff]  ;;  %3045 = vmatpush.msrb.mxu3 %v1857_v49 }
 0x348   :  { %v2009_v53 = vld [vmem:[#allocation20 + $0xda8] sm:$0xff]  ;;  %3059 = vmatpush.msrb.mxu0 %v1945_v58 }
 0x349   :  { %v2073_v62 = vld [vmem:[#allocation20 + $0xfa8] sm:$0xff]  ;;  %3079 = vmatpush.msrb.mxu1 %v2009_v53 }
 0x34a   :  { %v1853_v4 = vld [vmem:[#allocation20 + $0x8c8] sm:$0xff]  ;;  %3099 = vmatpush.msrb.mxu2 %v2073_v62  ;;  %v7503_v62 = vpop.permute.xlu1 %463 }
 0x34b   :  { %v1941_v41 = vld [vmem:[#allocation20 + $0xb88] sm:$0xff]  ;;  %3046 = vmatpush.msrb.mxu3 %v1853_v4 }
 0x34c   :  { %v2005_v33 = vld [vmem:[#allocation20 + $0xd88] sm:$0xff]  ;;  %3060 = vmatpush.msrb.mxu0 %v1941_v41  ;;  %v7505_v41 = vpop.permute.xlu2 %602 }
 0x34d   :  { %v2069_v3 = vld [vmem:[#allocation20 + $0xf88] sm:$0xff]  ;;  %3080 = vmatpush.msrb.mxu1 %v2005_v33 }
 0x34e   :  { %v1849_v5 = vld [vmem:[#allocation20 + $0x8a8] sm:$0xff]  ;;  %3100 = vmatpush.msrb.mxu2 %v2069_v3 }
 0x34f   :  { %v1937_v9 = vld [vmem:[#allocation20 + $0xb68] sm:$0xff]  ;;  %3047 = vmatpush.msrb.mxu3 %v1849_v5 }
 0x350   :  { %v2001_v13 = vld [vmem:[#allocation20 + $0xd68] sm:$0xff]  ;;  %3061 = vmatpush.msrb.mxu0 %v1937_v9 }
 0x351   :  { %v2065_v2 = vld [vmem:[#allocation20 + $0xf68] sm:$0xff]  ;;  %3081 = vmatpush.msrb.mxu1 %v2001_v13 }
 0x352   :  { %v1845_v12 = vld [vmem:[#allocation20 + $0x888] sm:$0xff]  ;;  %3101 = vmatpush.msrb.mxu2 %v2065_v2 }
 0x353   :  { %v1933_v11 = vld [vmem:[#allocation20 + $0xb48] sm:$0xff]  ;;  %3048 = vmatpush.msrb.mxu3 %v1845_v12 }
 0x354   :  { %v1997_v55 = vld [vmem:[#allocation20 + $0xd48] sm:$0xff]  ;;  %3062 = vmatpush.msrb.mxu0 %v1933_v11 }
 0x355   :  { %v2061_v24 = vld [vmem:[#allocation20 + $0xf48] sm:$0xff]  ;;  %3082 = vmatpush.msrb.mxu1 %v1997_v55 }
 0x356   :  { %v1841_v19 = vld [vmem:[#allocation20 + $0x868] sm:$0xff]  ;;  %3102 = vmatpush.msrb.mxu2 %v2061_v24  ;;  %v7507_v24 = vpop.permute.xlu0 %1012 }
 0x357   :  { %v1929_v43 = vld [vmem:[#allocation20 + $0xb28] sm:$0xff]  ;;  %3049 = vmatpush.msrb.mxu3 %v1841_v19 }
 0x358   :  { %v1993_v36 = vld [vmem:[#allocation20 + $0xd28] sm:$0xff]  ;;  %3063 = vmatpush.msrb.mxu0 %v1929_v43 }
 0x359   :  { %v2057_v47 = vld [vmem:[#allocation20 + $0xf28] sm:$0xff]  ;;  %3083 = vmatpush.msrb.mxu1 %v1993_v36 }
 0x35a   :  { %v1837_v61 = vld [vmem:[#allocation20 + $0x848] sm:$0xff]  ;;  %3103 = vmatpush.msrb.mxu2 %v2057_v47 }
 0x35b   :  { %v1925_v49 = vld [vmem:[#allocation20 + $0xb08] sm:$0xff]  ;;  %3050 = vmatpush.msrb.mxu3 %v1837_v61 }
 0x35c   :  { %v1989_v58 = vld [vmem:[#allocation20 + $0xd08] sm:$0xff]  ;;  %3064 = vmatpush.msrb.mxu0 %v1925_v49 }
 0x35d   :  { %v2053_v53 = vld [vmem:[#allocation20 + $0xf08] sm:$0xff]  ;;  %3084 = vmatpush.msrb.mxu1 %v1989_v58 }
 0x35e   :  { %v1833_v23 = vld [vmem:[#allocation20 + $0x828] sm:$0xff]  ;;  %3104 = vmatpush.msrb.mxu2 %v2053_v53 }
 0x35f   :  { %v1921_v4 = vld [vmem:[#allocation20 + $0xae8] sm:$0xff]  ;;  %3051 = vmatpush.msrb.mxu3 %v1833_v23  ;;  %v7510_v23 = vpop.permute.xlu1 %1149 }
 0x360   :  { %v1985_v33 = vld [vmem:[#allocation20 + $0xce8] sm:$0xff]  ;;  %3065 = vmatpush.msrb.mxu0 %v1921_v4 }
 0x361   :  { %v2049_v3 = vld [vmem:[#allocation20 + $0xee8] sm:$0xff]  ;;  %3085 = vmatpush.msrb.mxu1 %v1985_v33 }
 0x362   :  { %v1829_v5 = vld [vmem:[#allocation20 + $0x808] sm:$0xff]  ;;  %3105 = vmatpush.msrb.mxu2 %v2049_v3  ;;  %v7512_v3 = vpop.permute.xlu2 %465 }
 0x363   :  { %v1917_v9 = vld [vmem:[#allocation20 + $0xac8] sm:$0xff]  ;;  %3052 = vmatpush.msrb.mxu3 %v1829_v5 }
 0x364   :  { %v1981_v13 = vld [vmem:[#allocation20 + $0xcc8] sm:$0xff]  ;;  %3066 = vmatpush.msrb.mxu0 %v1917_v9  ;;  %3053 = vmatmul.f32.vlgmr.msrb.gmra.mxu3 %v7289_v20 }
 0x365   :  { %v2045_v2 = vld [vmem:[#allocation20 + $0xec8] sm:$0xff]  ;;  %3086 = vmatpush.msrb.mxu1 %v1981_v13 }
 0x366   :  { %v1913_v12 = vld [vmem:[#allocation20 + $0xaa8] sm:$0xff]  ;;  %3106 = vmatpush.msrb.mxu2 %v2045_v2 }
 0x367   :  { %v2145_v11 = vld [vmem:[#allocation20 + $0x11e8] sm:$0xff]  ;;  %3067 = vmatpush.msrb.mxu0 %v1913_v12 }
 0x368   :  { %v1977_v55 = vld [vmem:[#allocation20 + $0xca8] sm:$0xff]  ;;  %3117 = vmatpush.msra.mxu3 %v2145_v11 }
 0x369   :  { %v2041_v19 = vld [vmem:[#allocation20 + $0xea8] sm:$0xff]  ;;  %3087 = vmatpush.msrb.mxu1 %v1977_v55 }
 0x36a   :  { %v1909_v43 = vld [vmem:[#allocation20 + $0xa88] sm:$0xff]  ;;  %3107 = vmatpush.msrb.mxu2 %v2041_v19 }
 0x36b   :  { %v2141_v36 = vld [vmem:[#allocation20 + $0x11c8] sm:$0xff]  ;;  %3068 = vmatpush.msrb.mxu0 %v1909_v43 }
 0x36c   :  { %v1973_v47 = vld [vmem:[#allocation20 + $0xc88] sm:$0xff]  ;;  %3118 = vmatpush.msra.mxu3 %v2141_v36 }
 0x36d   :  { %v2037_v61 = vld [vmem:[#allocation20 + $0xe88] sm:$0xff]  ;;  %3088 = vmatpush.msrb.mxu1 %v1973_v47  ;;  %v7514_v47 = vpop.permute.xlu0 %604 }
 0x36e   :  { %v1905_v49 = vld [vmem:[#allocation20 + $0xa68] sm:$0xff]  ;;  %3108 = vmatpush.msrb.mxu2 %v2037_v61 }
 0x36f   :  { %v2137_v58 = vld [vmem:[#allocation20 + $0x11a8] sm:$0xff]  ;;  %3069 = vmatpush.msrb.mxu0 %v1905_v49 }
 0x370   :  { %v1969_v53 = vld [vmem:[#allocation20 + $0xc68] sm:$0xff]  ;;  %3119 = vmatpush.msra.mxu3 %v2137_v58 }
 0x371   :  { %v2033_v4 = vld [vmem:[#allocation20 + $0xe68] sm:$0xff]  ;;  %3089 = vmatpush.msrb.mxu1 %v1969_v53 }
 0x372   :  { %v1901_v33 = vld [vmem:[#allocation20 + $0xa48] sm:$0xff]  ;;  %3109 = vmatpush.msrb.mxu2 %v2033_v4 }
 0x373   :  { %v2133_v5 = vld [vmem:[#allocation20 + $0x1188] sm:$0xff]  ;;  %3070 = vmatpush.msrb.mxu0 %v1901_v33  ;;  %v7517_v33 = vpop.permute.xlu1 %1014 }
 0x374   :  { %v1965_v9 = vld [vmem:[#allocation20 + $0xc48] sm:$0xff]  ;;  %3120 = vmatpush.msra.mxu3 %v2133_v5 }
 0x375   :  { %v2029_v13 = vld [vmem:[#allocation20 + $0xe48] sm:$0xff]  ;;  %3090 = vmatpush.msrb.mxu1 %v1965_v9 }
 0x376   :  { %v1897_v2 = vld [vmem:[#allocation20 + $0xa28] sm:$0xff]  ;;  %3110 = vmatpush.msrb.mxu2 %v2029_v13  ;;  %v7521_v13 = vpop.permute.xlu2 %1151 }
 0x377   :  { %v2129_v12 = vld [vmem:[#allocation20 + $0x1168] sm:$0xff]  ;;  %3071 = vmatpush.msrb.mxu0 %v1897_v2 }
 0x378   :  { %v1961_v11 = vld [vmem:[#allocation20 + $0xc28] sm:$0xff]  ;;  %3121 = vmatpush.msra.mxu3 %v2129_v12 }
 0x379   :  { %v2025_v55 = vld [vmem:[#allocation20 + $0xe28] sm:$0xff]  ;;  %3091 = vmatpush.msrb.mxu1 %v1961_v11 }
 0x37a   :  { %v1893_v19 = vld [vmem:[#allocation20 + $0xa08] sm:$0xff]  ;;  %3111 = vmatpush.msrb.mxu2 %v2025_v55 }
 0x37b   :  { %v2125_v43 = vld [vmem:[#allocation20 + $0x1148] sm:$0xff]  ;;  %3072 = vmatpush.msrb.mxu0 %v1893_v19 }
 0x37c   :  { %v1957_v36 = vld [vmem:[#allocation20 + $0xc08] sm:$0xff]  ;;  %3122 = vmatpush.msra.mxu3 %v2125_v43  ;;  %3073 = vmatmul.f32.vlgmr.msrb.gmra.mxu0 %v7291_v44 }
 0x37d   :  { %v2021_v61 = vld [vmem:[#allocation20 + $0xe08] sm:$0xff]  ;;  %3092 = vmatpush.msrb.mxu1 %v1957_v36 }
 0x37e   :  { %v2121_v49 = vld [vmem:[#allocation20 + $0x1128] sm:$0xff]  ;;  %3112 = vmatpush.msrb.mxu2 %v2021_v61  ;;  %3093 = vmatmul.f32.vlgmr.msrb.gmra.mxu1 %v7293_v25 }
 0x37f   :  { %v2209_v58 = vld [vmem:[#allocation20 + $0x13e8] sm:$0xff]  ;;  %3113 = vmatmul.f32.vlgmr.msrb.gmra.mxu2 %v7301_v50  ;;  %3123 = vmatpush.msra.mxu3 %v2121_v49  ;;  %v7523_v49 = vpop.permute.xlu0 %467 }
 0x380   :  { %v2273_v53 = vld [vmem:[#allocation20 + $0x15e8] sm:$0xff]  ;;  %3137 = vmatpush.msra.mxu0 %v2209_v58 }
 0x381   :  { %v2337_v4 = vld [vmem:[#allocation20 + $0x17e8] sm:$0xff]  ;;  %3157 = vmatpush.msra.mxu1 %v2273_v53 }
 0x382   :  { %v2117_v5 = vld [vmem:[#allocation20 + $0x1108] sm:$0xff]  ;;  %3177 = vmatpush.msra.mxu2 %v2337_v4 }
 0x383   :  { %v2205_v9 = vld [vmem:[#allocation20 + $0x13c8] sm:$0xff]  ;;  %3124 = vmatpush.msra.mxu3 %v2117_v5 }
 0x384   :  { %v2269_v2 = vld [vmem:[#allocation20 + $0x15c8] sm:$0xff]  ;;  %3138 = vmatpush.msra.mxu0 %v2205_v9 }
 0x385   :  { %v2333_v12 = vld [vmem:[#allocation20 + $0x17c8] sm:$0xff]  ;;  %3158 = vmatpush.msra.mxu1 %v2269_v2 }
 0x386   :  { %v2113_v11 = vld [vmem:[#allocation20 + $0x10e8] sm:$0xff]  ;;  %3178 = vmatpush.msra.mxu2 %v2333_v12  ;;  %v476_v12 = vsel %vm475_vm0, %v7366_v37, %v7385_v31 }
 0x387   :  { %v2201_v55 = vld [vmem:[#allocation20 + $0x13a8] sm:$0xff]  ;;  %3125 = vmatpush.msra.mxu3 %v2113_v11  ;;  %v477_v11 = vsel %vm475_vm0, %v7385_v31, %v7364_v45  ;;  %v508_v44 = vsel %vm210_vm3, %v476_v12, 0.0  ;;  %v479_v12 = vsel %vm475_vm0, %v7387_v16, %v7404_v27 }
 0x388   :  { %v2265_v19 = vld [vmem:[#allocation20 + $0x15a8] sm:$0xff]  ;;  %3139 = vmatpush.msra.mxu0 %v2201_v55  ;;  %v509_v31 = vsel %vm210_vm3, %v477_v11, 0.0 }
 0x389   :  { %v2329_v43 = vld [vmem:[#allocation20 + $0x17a8] sm:$0xff]  ;;  %3159 = vmatpush.msra.mxu1 %v2265_v19 }
 0x38a   :  { %v2109_v36 = vld [vmem:[#allocation20 + $0x10c8] sm:$0xff]  ;;  %3179 = vmatpush.msra.mxu2 %v2329_v43  ;;  %v7531_v43 = vpop.permute.xlu1 %606 }
 0x38b   :  { %v2197_v61 = vld [vmem:[#allocation20 + $0x1388] sm:$0xff]  ;;  %3126 = vmatpush.msra.mxu3 %v2109_v36  ;;  %v7533_v36 = vpop.permute.xlu2 %1016 }
 0x38c   :  { %v2261_v50 = vld [vmem:[#allocation20 + $0x1588] sm:$0xff]  ;;  %3140 = vmatpush.msra.mxu0 %v2197_v61 }
 0x38d   :  { %v2325_v25 = vld [vmem:[#allocation20 + $0x1788] sm:$0xff]  ;;  %3160 = vmatpush.msra.mxu1 %v2261_v50 }
 0x38e   :  { %v2105_v58 = vld [vmem:[#allocation20 + $0x10a8] sm:$0xff]  ;;  %3180 = vmatpush.msra.mxu2 %v2325_v25 }
 0x38f   :  { %v2193_v53 = vld [vmem:[#allocation20 + $0x1368] sm:$0xff]  ;;  %3127 = vmatpush.msra.mxu3 %v2105_v58 }
 0x390   :  { %v2257_v4 = vld [vmem:[#allocation20 + $0x1568] sm:$0xff]  ;;  %3141 = vmatpush.msra.mxu0 %v2193_v53 }
 0x391   :  { %v2321_v5 = vld [vmem:[#allocation20 + $0x1768] sm:$0xff]  ;;  %3161 = vmatpush.msra.mxu1 %v2257_v4 }
 0x392   :  { %v2101_v9 = vld [vmem:[#allocation20 + $0x1088] sm:$0xff]  ;;  %3181 = vmatpush.msra.mxu2 %v2321_v5 }
 0x393   :  { %v2189_v2 = vld [vmem:[#allocation20 + $0x1348] sm:$0xff]  ;;  %3128 = vmatpush.msra.mxu3 %v2101_v9  ;;  %v510_v9 = vadd.f32 %v509_v31, %v508_v44 }
 0x394   :  { %v2253_v55 = vld [vmem:[#allocation20 + $0x1548] sm:$0xff]  ;;  %3142 = vmatpush.msra.mxu0 %v2189_v2  ;;  %v478_v2 = vsel %vm475_vm0, %v7364_v45, %v7387_v16 }
 0x395   :  { %v2317_v19 = vld [vmem:[#allocation20 + $0x1748] sm:$0xff]  ;;  %3162 = vmatpush.msra.mxu1 %v2253_v55  ;;  %v511_v45 = vsel %vm210_vm3, %v478_v2, 0.0  ;;  %v480_v2 = vsel %vm475_vm0, %v7404_v27, %v7406_v6 }
 0x396   :  { %v2097_v50 = vld [vmem:[#allocation20 + $0x1068] sm:$0xff]  ;;  %3182 = vmatpush.msra.mxu2 %v2317_v19  ;;  %v7543_v19 = vpop.permute.xlu0 %1153  ;;  %v512_v31 = vadd.f32 %v511_v45, %v510_v9  ;;  %v515_v45 = vsel %vm210_vm3, %v480_v2, 0.0  ;;  %v616_v2 = vsel %vm475_vm0, %v7391_v52, %v7389_v59 }
 0x397   :  { %v2185_v25 = vld [vmem:[#allocation20 + $0x1328] sm:$0xff]  ;;  %3129 = vmatpush.msra.mxu3 %v2097_v50 }
 0x398   :  { %v2249_v61 = vld [vmem:[#allocation20 + $0x1528] sm:$0xff]  ;;  %3143 = vmatpush.msra.mxu0 %v2185_v25 }
 0x399   :  { %v2313_v37 = vld [vmem:[#allocation20 + $0x1728] sm:$0xff]  ;;  %3163 = vmatpush.msra.mxu1 %v2249_v61 }
 0x39a   :  { %v2093_v58 = vld [vmem:[#allocation20 + $0x1048] sm:$0xff]  ;;  %3183 = vmatpush.msra.mxu2 %v2313_v37  ;;  %v513_v37 = vsel %vm210_vm3, %v479_v12, 0.0  ;;  %v7552_v12 = vpop.permute.xlu2 %608 }
 0x39b   :  { %v2181_v53 = vld [vmem:[#allocation20 + $0x1308] sm:$0xff]  ;;  %3130 = vmatpush.msra.mxu3 %v2093_v58 }
 0x39c   :  { %v2245_v4 = vld [vmem:[#allocation20 + $0x1508] sm:$0xff]  ;;  %3144 = vmatpush.msra.mxu0 %v2181_v53 }
 0x39d   :  { %v2309_v5 = vld [vmem:[#allocation20 + $0x1708] sm:$0xff]  ;;  %3164 = vmatpush.msra.mxu1 %v2245_v4  ;;  %v7547_v4 = vpop.permute.xlu1 %469 }
 0x39e   :  { %v2089_v20 = vld [vmem:[#allocation20 + $0x1028] sm:$0xff]  ;;  %3184 = vmatpush.msra.mxu2 %v2309_v5  ;;  %v514_v5 = vadd.f32 %v513_v37, %v512_v31 }
 0x39f   :  { %v2177_v1 = vld [vmem:[#allocation20 + $0x12e8] sm:$0xff]  ;;  %3131 = vmatpush.msra.mxu3 %v2089_v20 }
 0x3a0   :  { %v2241_v11 = vld [vmem:[#allocation20 + $0x14e8] sm:$0xff]  ;;  %3145 = vmatpush.msra.mxu0 %v2177_v1  ;;  %v516_v31 = vadd.f32 %v515_v45, %v514_v5 }
 0x3a1   :  { %v2305_v55 = vld [vmem:[#allocation20 + $0x16e8] sm:$0xff]  ;;  %3165 = vmatpush.msra.mxu1 %v2241_v11  ;;  %v6016_v11 = vld.sshfl [vmem:[#allocation1] sm:$0xff pattern:$0x75316420] }
 0x3a2   :  { %v2085_v50 = vld [vmem:[#allocation20 + $0x1008] sm:$0xff]  ;;  %3185 = vmatpush.msra.mxu2 %v2305_v55 }
 0x3a3   :  { %v2173_v25 = vld [vmem:[#allocation20 + $0x12c8] sm:$0xff]  ;;  %3132 = vmatpush.msra.mxu3 %v2085_v50 }
 0x3a4   :  { %v2237_v44 = vld [vmem:[#allocation20 + $0x14c8] sm:$0xff]  ;;  %3146 = vmatpush.msra.mxu0 %v2173_v25  ;;  %3133 = vmatmul.f32.vlgmr.msra.gmra.mxu3 %v6016_v11  ;;  %v617_v11 = vsel %vm475_vm0, %v7389_v59, %v7394_v26 }
 0x3a5   :  { %v2301_v61 = vld [vmem:[#allocation20 + $0x16c8] sm:$0xff]  ;;  %3166 = vmatpush.msra.mxu1 %v2237_v44 }
 0x3a6   :  { %v2169_v16 = vld [vmem:[#allocation20 + $0x12a8] sm:$0xff]  ;;  %3186 = vmatpush.msra.mxu2 %v2301_v61 }
 0x3a7   :  { %v2401_v58 = vld [vmem:[#allocation20 + $0x19e8] sm:$0xff]  ;;  %3147 = vmatpush.msra.mxu0 %v2169_v16  ;;  %v481_v16 = vsel %vm475_vm0, %v7406_v6, %v7414_v18 }
 0x3a8   :  { %v2233_v53 = vld [vmem:[#allocation20 + $0x14a8] sm:$0xff]  ;;  %3197 = vmatpush.msrb.mxu3 %v2401_v58  ;;  %v482_v58 = vsel %vm475_vm0, %v7414_v18, %v7439_v56  ;;  %v483_v18 = vsel %vm475_vm0, %v7439_v56, %v7457_v10 }
 0x3a9   :  { %v2297_v20 = vld [vmem:[#allocation20 + $0x16a8] sm:$0xff]  ;;  %3167 = vmatpush.msra.mxu1 %v2233_v53  ;;  %v519_v52 = vsel %vm210_vm3, %v482_v58, 0.0  ;;  %v521_v48 = vsel %vm210_vm3, %v483_v18, 0.0 }
 0x3aa   :  { %v2165_v1 = vld [vmem:[#allocation20 + $0x1288] sm:$0xff]  ;;  %3187 = vmatpush.msra.mxu2 %v2297_v20 }
 0x3ab   :  { %v2397_v9 = vld [vmem:[#allocation20 + $0x19c8] sm:$0xff]  ;;  %3148 = vmatpush.msra.mxu0 %v2165_v1  ;;  %v7561_v1 = vpop.permute.xlu0 %1018 }
 0x3ac   :  { %v2229_v55 = vld [vmem:[#allocation20 + $0x1488] sm:$0xff]  ;;  %3198 = vmatpush.msrb.mxu3 %v2397_v9 }
 0x3ad   :  { %v2293_v50 = vld [vmem:[#allocation20 + $0x1688] sm:$0xff]  ;;  %3168 = vmatpush.msra.mxu1 %v2229_v55 }
 0x3ae   :  { %v2161_v25 = vld [vmem:[#allocation20 + $0x1268] sm:$0xff]  ;;  %3188 = vmatpush.msra.mxu2 %v2293_v50  ;;  %v517_v50 = vsel %vm210_vm3, %v481_v16, 0.0 }
 0x3af   :  { %v2393_v44 = vld [vmem:[#allocation20 + $0x19a8] sm:$0xff]  ;;  %3149 = vmatpush.msra.mxu0 %v2161_v25  ;;  %v518_v45 = vadd.f32 %v517_v50, %v516_v31  ;;  %v618_v31 = vsel %vm475_vm0, %v7394_v26, %v7402_v7  ;;  %v6017_v26 = vld.sshfl [vmem:[#allocation1 + $0x8] sm:$0xff pattern:$0x75316420] }
 0x3b0   :  { %v2225_v61 = vld [vmem:[#allocation20 + $0x1468] sm:$0xff]  ;;  %3199 = vmatpush.msrb.mxu3 %v2393_v44  ;;  %v648_v44 = vsel %vm210_vm3, %v616_v2, 0.0  ;;  %v619_v2 = vsel %vm475_vm0, %v7402_v7, %v7416_v46  ;;  %v6019_v7 = vld.sshfl [vmem:[#allocation1 + $0x18] sm:$0xff pattern:$0x75316420] }
 0x3b1   :  { %v2289_v27 = vld [vmem:[#allocation20 + $0x1668] sm:$0xff]  ;;  %3169 = vmatpush.msra.mxu1 %v2225_v61  ;;  %v649_v61 = vsel %vm210_vm3, %v617_v11, 0.0  ;;  %v520_v58 = vadd.f32 %v519_v52, %v518_v45  ;;  %v653_v45 = vsel %vm210_vm3, %v619_v2, 0.0  ;;  %v1033_v2 = vsel %vm475_vm0, %v7428_v39, %v7431_v42 }
 0x3b2   :  { %v2157_v37 = vld [vmem:[#allocation20 + $0x1248] sm:$0xff]  ;;  %3189 = vmatpush.msra.mxu2 %v2289_v27 }
 0x3b3   :  { %v2389_v53 = vld [vmem:[#allocation20 + $0x1988] sm:$0xff]  ;;  %3150 = vmatpush.msra.mxu0 %v2157_v37  ;;  %v7576_v37 = vpop.permute.xlu1 %1155  ;;  %v522_v18 = vadd.f32 %v521_v48, %v520_v58 }
 0x3b4   :  { %v2221_v20 = vld [vmem:[#allocation20 + $0x1448] sm:$0xff]  ;;  %3200 = vmatpush.msrb.mxu3 %v2389_v53  ;;  %v7579_v53 = vpop.permute.xlu2 %471 }
 0x3b5   :  { %v2285_v6 = vld [vmem:[#allocation20 + $0x1648] sm:$0xff]  ;;  %3170 = vmatpush.msra.mxu1 %v2221_v20  ;;  %v650_v20 = vadd.f32 %v649_v61, %v648_v44  ;;  %v651_v61 = vsel %vm210_vm3, %v618_v31, 0.0 }
 0x3b6   :  { %v2153_v5 = vld [vmem:[#allocation20 + $0x1228] sm:$0xff]  ;;  %3190 = vmatpush.msra.mxu2 %v2285_v6 }
 0x3b7   :  { %v2385_v9 = vld [vmem:[#allocation20 + $0x1968] sm:$0xff]  ;;  %3151 = vmatpush.msra.mxu0 %v2153_v5  ;;  %v484_v5 = vsel %vm475_vm0, %v7457_v10, %v7475_v34  ;;  %v486_v10 = vsel %vm475_vm0, %v7492_v30, %v7503_v62 }
 0x3b8   :  { %v2217_v55 = vld [vmem:[#allocation20 + $0x1428] sm:$0xff]  ;;  %3201 = vmatpush.msrb.mxu3 %v2385_v9  ;;  %v485_v9 = vsel %vm475_vm0, %v7475_v34, %v7492_v30  ;;  %v7596_v34 = vpop.permute.xlu0 %610  ;;  %v652_v30 = vadd.f32 %v651_v61, %v650_v20 }
 0x3b9   :  { %v2281_v25 = vld [vmem:[#allocation20 + $0x1628] sm:$0xff]  ;;  %3171 = vmatpush.msra.mxu1 %v2217_v55 }
 0x3ba   :  { %v2149_v59 = vld [vmem:[#allocation20 + $0x1208] sm:$0xff]  ;;  %3191 = vmatpush.msra.mxu2 %v2281_v25  ;;  %v654_v20 = vadd.f32 %v653_v45, %v652_v30  ;;  %v488_v45 = vsel %vm475_vm0, %v7512_v3, %v7523_v49  ;;  %v621_v30 = vsel %vm475_vm0, %v7418_v38, %v7441_v0 }
 0x3bb   :  { %v2381_v56 = vld [vmem:[#allocation20 + $0x1948] sm:$0xff]  ;;  %3152 = vmatpush.msra.mxu0 %v2149_v59 }
 0x3bc   :  { %v2213_v27 = vld [vmem:[#allocation20 + $0x1408] sm:$0xff]  ;;  %3202 = vmatpush.msrb.mxu3 %v2381_v56  ;;  %3153 = vmatmul.f32.vlgmr.msra.gmra.mxu0 %v6017_v26  ;;  %v523_v56 = vsel %vm210_vm3, %v484_v5, 0.0  ;;  %v527_v5 = vsel %vm210_vm3, %v486_v10, 0.0  ;;  %v7623_v61 = vpop.permute.xlu2 %1157 }
 0x3bd   :  { %v2277_v16 = vld [vmem:[#allocation20 + $0x1608] sm:$0xff]  ;;  %3172 = vmatpush.msra.mxu1 %v2213_v27  ;;  %v525_v27 = vsel %vm210_vm3, %v485_v9, 0.0 }
 0x3be   :  { %v2377_v11 = vld [vmem:[#allocation20 + $0x1928] sm:$0xff]  ;;  %3192 = vmatpush.msra.mxu2 %v2277_v16 }
 0x3bf   :  { %v2465_v6 = vld [vmem:[#allocation20 + $0x1be8] sm:$0xff]  ;;  %3193 = vmatmul.f32.vlgmr.msra.gmra.mxu2 %v6019_v7  ;;  %3203 = vmatpush.msrb.mxu3 %v2377_v11  ;;  %v1032_v11 = vsel %vm475_vm0, %v7426_v14, %v7428_v39  ;;  %v620_v14 = vsel %vm475_vm0, %v7416_v46, %v7418_v38  ;;  %v7613_v7 = vpop.permute.xlu1 %1020  ;;  %v487_v46 = vsel %vm475_vm0, %v7503_v62, %v7512_v3 }
 0x3c0   :  { %v2529_v55 = vld [vmem:[#allocation20 + $0x1de8] sm:$0xff]  ;;  %3217 = vmatpush.msrb.mxu0 %v2465_v6  ;;  %v524_v6 = vadd.f32 %v523_v56, %v522_v18  ;;  %v1064_v39 = vsel %vm210_vm3, %v1032_v11, 0.0 }
 0x3c1   :  { %v2569_v50 = vld [vmem:[#allocation20 + $0x1f28] sm:$0xf]  ;;  %3237 = vmatpush.msrb.mxu1 %v2529_v55 }
 0x3c2   :  { %v6018_v52 = vld.sshfl [vmem:[#allocation1 + $0x10] sm:$0xff pattern:$0x75316420]  ;;  %5793 = vmatpush.msk.msrb.mxu2 %vm754_vm15, %v2569_v50  ;;  %v526_v18 = vadd.f32 %v525_v27, %v524_v6  ;;  %v655_v27 = vsel %vm210_vm3, %v620_v14, 0.0  ;;  %v489_v6 = vsel %vm475_vm0, %v7523_v49, %v7547_v4 }
 0x3c3   :  { %3173 = vmatmul.f32.vlgmr.msra.gmra.mxu1 %v6018_v52  ;;  %v2373_v25 = vld [vmem:[#allocation20 + $0x1908] sm:$0xff]  ;;  %v656_v11 = vadd.f32 %v655_v27, %v654_v20  ;;  %v1036_v20 = vsel %vm475_vm0, %v7467_v60, %v7482_v63  ;;  %v624_v27 = vsel %vm475_vm0, %v7480_v35, %v7495_v17 }
 0x3c4   :  { %v2461_v59 = vld [vmem:[#allocation20 + $0x1bc8] sm:$0xff]  ;;  %3204 = vmatpush.msrb.mxu3 %v2373_v25  ;;  %v1034_v25 = vsel %vm475_vm0, %v7431_v42, %v7443_v21 }
 0x3c5   :  { %v2525_v48 = vld [vmem:[#allocation20 + $0x1dc8] sm:$0xff]  ;;  %3218 = vmatpush.msrb.mxu0 %v2461_v59  ;;  %v1067_v3 = vsel %vm210_vm3, %v1034_v25, 0.0 }
 0x3c6   :  { %v2565_v44 = vld [vmem:[#allocation20 + $0x1f08] sm:$0xff]  ;;  %3238 = vmatpush.msrb.mxu1 %v2525_v48  ;;  %v1065_v48 = vsel %vm210_vm3, %v1033_v2, 0.0  ;;  %v529_v2 = vsel %vm210_vm3, %v487_v46, 0.0  ;;  %v623_v46 = vsel %vm475_vm0, %v7461_v22, %v7480_v35 }
 0x3c7   :  { %v2369_v16 = vld [vmem:[#allocation20 + $0x18e8] sm:$0xff]  ;;  %3264 = vmatpush.msrb.mxu2 %v2565_v44  ;;  %v528_v44 = vadd.f32 %v527_v5, %v526_v18  ;;  %v531_v5 = vsel %vm210_vm3, %v488_v45, 0.0 }
 0x3c8   :  { %v2457_v58 = vld [vmem:[#allocation20 + $0x1ba8] sm:$0xff]  ;;  %3205 = vmatpush.msrb.mxu3 %v2369_v16  ;;  %v1035_v16 = vsel %vm475_vm0, %v7443_v21, %v7467_v60  ;;  %v1066_v21 = vadd.f32 %v1065_v48, %v1064_v39  ;;  %v657_v39 = vsel %vm210_vm3, %v621_v30, 0.0 }
 0x3c9   :  { %v2521_v31 = vld [vmem:[#allocation20 + $0x1da8] sm:$0xff]  ;;  %3219 = vmatpush.msrb.mxu0 %v2457_v58  ;;  %v530_v49 = vadd.f32 %v529_v2, %v528_v44  ;;  %v658_v60 = vadd.f32 %v657_v39, %v656_v11  ;;  %v1037_v2 = vsel %vm475_vm0, %v7482_v63, %v7499_v51  ;;  %v1171_v63 = vsel %vm475_vm0, %v7445_v15, %v7447_v57  ;;  %v1698_v39 = vld [vmem:[#allocation20 + $0x3f0] sm:$0xff] }
 0x3ca   :  { %v2561_v26 = vld [vmem:[#allocation20 + $0x1ee8] sm:$0xff]  ;;  %3239 = vmatpush.msrb.mxu1 %v2521_v31  ;;  %v1068_v25 = vadd.f32 %v1067_v3, %v1066_v21  ;;  %v1039_v15 = vsel %vm475_vm0, %v7507_v24, %v7517_v33 }
 0x3cb   :  { %v2365_v9 = vld [vmem:[#allocation20 + $0x18c8] sm:$0xff]  ;;  %3265 = vmatpush.msrb.mxu2 %v2561_v26  ;;  %v532_v44 = vadd.f32 %v531_v5, %v530_v49 }
 0x3cc   :  { %v2453_v55 = vld [vmem:[#allocation20 + $0x1b88] sm:$0xff]  ;;  %3206 = vmatpush.msrb.mxu3 %v2365_v9 }
 0x3cd   :  { %v2517_v50 = vld [vmem:[#allocation20 + $0x1d88] sm:$0xff]  ;;  %3220 = vmatpush.msrb.mxu0 %v2453_v55  ;;  %v1069_v55 = vsel %vm210_vm3, %v1035_v16, 0.0 }
 0x3ce   :  { %v2557_v52 = vld [vmem:[#allocation20 + $0x1ec8] sm:$0xff]  ;;  %3240 = vmatpush.msrb.mxu1 %v2517_v50  ;;  %v474_v50 = vpop.permute.xlu0 %473 }
 0x3cf   :  { %v2361_v59 = vld [vmem:[#allocation20 + $0x18a8] sm:$0xff]  ;;  %3266 = vmatpush.msrb.mxu2 %v2557_v52  ;;  %v622_v52 = vsel %vm475_vm0, %v7441_v0, %v7461_v22  ;;  %v1070_v0 = vadd.f32 %v1069_v55, %v1068_v25  ;;  %v490_v22 = vsel %vm475_vm0, %v7547_v4, %v7579_v53  ;;  %v491_v3 = vsel %vm475_vm0, %v7579_v53, %v474_v50 }
 0x3d0   :  { %v2449_v10 = vld [vmem:[#allocation20 + $0x1b68] sm:$0xff]  ;;  %3207 = vmatpush.msrb.mxu3 %v2361_v59  ;;  %v533_v59 = vsel %vm210_vm3, %v489_v6, 0.0  ;;  %v7662_v6 = vpop.permute.xlu1 %612  ;;  %v659_v35 = vsel %vm210_vm3, %v622_v52, 0.0  ;;  %v663_v55 = vsel %vm210_vm3, %v624_v27, 0.0  ;;  %v535_v49 = vsel %vm210_vm3, %v490_v22, 0.0  ;;  %v1634_v52 = vld [vmem:[#allocation20 + $0x1f0] sm:$0xff] }
 0x3d1   :  { %v2513_v42 = vld [vmem:[#allocation20 + $0x1d68] sm:$0xff]  ;;  %3221 = vmatpush.msrb.mxu0 %v2449_v10  ;;  %v660_v4 = vadd.f32 %v659_v35, %v658_v60  ;;  %v1073_v25 = vsel %vm210_vm3, %v1037_v2, 0.0  ;;  %v1077_v22 = vsel %vm210_vm3, %v1039_v15, 0.0 }
 0x3d2   :  { %v2553_v56 = vld [vmem:[#allocation20 + $0x1ea8] sm:$0xff]  ;;  %3241 = vmatpush.msrb.mxu1 %v2513_v42 }
 0x3d3   :  { %v2357_v62 = vld [vmem:[#allocation20 + $0x1888] sm:$0xff]  ;;  %3267 = vmatpush.msrb.mxu2 %v2553_v56  ;;  %v1071_v56 = vsel %vm210_vm3, %v1036_v20, 0.0  ;;  %v1038_v20 = vsel %vm475_vm0, %v7499_v51, %v7507_v24  ;;  %v1172_v51 = vsel %vm475_vm0, %v7447_v57, %v7455_v40  ;;  %v626_v57 = vsel %vm475_vm0, %v7505_v41, %v7514_v47 }
 0x3d4   :  { %v2445_v58 = vld [vmem:[#allocation20 + $0x1b48] sm:$0xff]  ;;  %3208 = vmatpush.msrb.mxu3 %v2357_v62  ;;  %v1072_v5 = vadd.f32 %v1071_v56, %v1070_v0  ;;  %v1694_v0 = vld [vmem:[#allocation20 + $0x3d0] sm:$0xff]  ;;  %v1173_v56 = vsel %vm475_vm0, %v7455_v40, %v7469_v32  ;;  %v667_v35 = vsel %vm210_vm3, %v626_v57, 0.0 }
 0x3d5   :  { %v2509_v31 = vld [vmem:[#allocation20 + $0x1d48] sm:$0xff]  ;;  %3222 = vmatpush.msrb.mxu0 %v2445_v58  ;;  %v534_v58 = vadd.f32 %v533_v59, %v532_v44  ;;  %v625_v59 = vsel %vm475_vm0, %v7495_v17, %v7505_v41  ;;  %v1630_v17 = vld [vmem:[#allocation20 + $0x1d0] sm:$0xff]  ;;  %v1203_v41 = vsel %vm210_vm3, %v1171_v63, 0.0 }
 0x3d6   :  { %v2549_v26 = vld [vmem:[#allocation20 + $0x1e88] sm:$0xff]  ;;  %3242 = vmatpush.msrb.mxu1 %v2509_v31  ;;  %v661_v31 = vsel %vm210_vm3, %v623_v46, 0.0  ;;  %v1075_v46 = vsel %vm210_vm3, %v1038_v20, 0.0  ;;  %v7695_v24 = vpop.permute.xlu0 %1159  ;;  %v1074_v27 = vadd.f32 %v1073_v25, %v1072_v5  ;;  %v665_v40 = vsel %vm210_vm3, %v625_v59, 0.0  ;;  %v1622_v5 = vld [vmem:[#allocation20 + $0x190] sm:$0xff] }
 0x3d7   :  { %v2353_v9 = vld [vmem:[#allocation20 + $0x1868] sm:$0xff]  ;;  %3268 = vmatpush.msrb.mxu2 %v2549_v26  ;;  %v536_v50 = vadd.f32 %v535_v49, %v534_v58  ;;  %v627_v58 = vsel %vm475_vm0, %v7514_v47, %v7531_v43  ;;  %v1040_v47 = vsel %vm475_vm0, %v7517_v33, %v7533_v36  ;;  %v1041_v49 = vsel %vm475_vm0, %v7533_v36, %v7561_v1  ;;  %v1614_v57 = vld [vmem:[#allocation20 + $0x150] sm:$0xff] }
 0x3d8   :  { %v2441_v38 = vld [vmem:[#allocation20 + $0x1b28] sm:$0xff]  ;;  %3209 = vmatpush.msrb.mxu3 %v2353_v9  ;;  %v7669_v9 = vpop.permute.xlu2 %1022  ;;  %v669_v20 = vsel %vm210_vm3, %v627_v58, 0.0  ;;  %v1174_v33 = vsel %vm475_vm0, %v7469_v32, %v7488_v29  ;;  %v1175_v36 = vsel %vm475_vm0, %v7488_v29, %v7501_v28  ;;  %v1079_v25 = vsel %vm210_vm3, %v1040_v47, 0.0  ;;  %v1682_v32 = vld [vmem:[#allocation20 + $0x370] sm:$0xff] }
 0x3d9   :  { %v2505_v14 = vld [vmem:[#allocation20 + $0x1d28] sm:$0xff]  ;;  %3223 = vmatpush.msrb.mxu0 %v2441_v38  ;;  %v1042_v59 = vsel %vm475_vm0, %v7561_v1, %v7613_v7  ;;  %v629_v29 = vsel %vm475_vm0, %v7552_v12, %v7596_v34 }
 0x3da   :  { %v2545_v18 = vld [vmem:[#allocation20 + $0x1e68] sm:$0xff]  ;;  %3243 = vmatpush.msrb.mxu1 %v2505_v14  ;;  %v538_v14 = vsel %vm537_vm8, %v491_v3, 0.0  ;;  %v1076_v3 = vadd.f32 %v1075_v46, %v1074_v27  ;;  %v1210_v27 = vsel %vm210_vm3, %v1175_v36, 0.0 }
 0x3db   :  { %v2349_v10 = vld [vmem:[#allocation20 + $0x1848] sm:$0xff]  ;;  %3269 = vmatpush.msrb.mxu2 %v2545_v18  ;;  %v662_v18 = vadd.f32 %v661_v31, %v660_v4  ;;  %v539_v44 = vadd.f32 %v538_v14, %v536_v50  ;;  %v1690_v31 = vld [vmem:[#allocation20 + $0x3b0] sm:$0xff] }
 0x3dc   :  { %v2437_v48 = vld [vmem:[#allocation20 + $0x1b08] sm:$0xff]  ;;  %3210 = vmatpush.msrb.mxu3 %v2349_v10  ;;  %v1686_v14 = vld [vmem:[#allocation20 + $0x390] sm:$0xff] }
 0x3dd   :  { %v2501_v45 = vld [vmem:[#allocation20 + $0x1d08] sm:$0xff]  ;;  %3224 = vmatpush.msrb.mxu0 %v2437_v48  ;;  %v664_v60 = vadd.f32 %v663_v55, %v662_v18  ;;  %540 = vadd.xlane.f32.xlu2 %v539_v44  ;;  %v1078_v55 = vadd.f32 %v1077_v22, %v1076_v3  ;;  %v1678_v44 = vld [vmem:[#allocation20 + $0x350] sm:$0xff]  ;;  %v1043_v3 = vsel %vm475_vm0, %v7613_v7, %v7669_v9 }
 0x3de   :  { %v2541_v42 = vld [vmem:[#allocation20 + $0x1e48] sm:$0xff]  ;;  %3244 = vmatpush.msrb.mxu1 %v2501_v45  ;;  %v6020_v45 = vld.sshfl [vmem:[#allocation1 + $0x20] sm:$0xff pattern:$0x75316420]  ;;  %v1177_v7 = vsel %vm475_vm0, %v7510_v23, %v7521_v13 }
 0x3df   :  { %v2345_v16 = vld [vmem:[#allocation20 + $0x1828] sm:$0xff]  ;;  %3270 = vmatpush.msrb.mxu2 %v2541_v42  ;;  %v6021_v42 = vld.sshfl [vmem:[#allocation1 + $0x38] sm:$0xff pattern:$0x75316420]  ;;  %v666_v4 = vadd.f32 %v665_v40, %v664_v60  ;;  %v1081_v60 = vsel %vm210_vm3, %v1041_v49, 0.0  ;;  %v1080_v1 = vadd.f32 %v1079_v25, %v1078_v55 }
 0x3e0   :  { %v2433_v62 = vld [vmem:[#allocation20 + $0x1ae8] sm:$0xff]  ;;  %3211 = vmatpush.msrb.mxu3 %v2345_v16  ;;  %v7719_v50 = vpop.permute.xlu2 %1024  ;;  %v1602_v49 = vld [vmem:[#allocation20 + $0xf0] sm:$0xff] }
 0x3e1   :  { %v2497_v30 = vld [vmem:[#allocation20 + $0x1ce8] sm:$0xff]  ;;  %3225 = vmatpush.msrb.mxu0 %v2433_v62  ;;  %v1204_v62 = vsel %vm210_vm3, %v1172_v51, 0.0  ;;  %v668_v18 = vadd.f32 %v667_v35, %v666_v4  ;;  %v1606_v4 = vld [vmem:[#allocation20 + $0x110] sm:$0xff] }
 0x3e2   :  { %v2537_v11 = vld [vmem:[#allocation20 + $0x1e28] sm:$0xff]  ;;  %3245 = vmatpush.msrb.mxu1 %v2497_v30  ;;  %v1818_v25 = vld [vmem:[#allocation20 + $0x7b0] sm:$0xff] }
 0x3e3   :  { %v2341_v26 = vld [vmem:[#allocation20 + $0x1808] sm:$0xff]  ;;  %3271 = vmatpush.msrb.mxu2 %v2537_v11  ;;  %v1626_v11 = vld [vmem:[#allocation20 + $0x1b0] sm:$0xff] }
 0x3e4   :  { %v2429_v21 = vld [vmem:[#allocation20 + $0x1ac8] sm:$0xff]  ;;  %3212 = vmatpush.msrb.mxu3 %v2341_v26 }
 0x3e5   :  { %v2493_v53 = vld [vmem:[#allocation20 + $0x1cc8] sm:$0xff]  ;;  %3226 = vmatpush.msrb.mxu0 %v2429_v21  ;;  %3213 = vmatmul.f32.vlgmr.msrb.gmra.mxu3 %v6020_v45  ;;  %v1206_v21 = vsel %vm210_vm3, %v1173_v56, 0.0  ;;  %v7743_v56 = vpop.permute.xlu0 %1161 }
 0x3e6   :  { %v2533_v38 = vld [vmem:[#allocation20 + $0x1e08] sm:$0xff]  ;;  %3246 = vmatpush.msrb.mxu1 %v2493_v53  ;;  %3297 = vmatpush.msra.mxu3 %v1698_v39  ;;  %v615_v53 = vpop.permute.xlu1 %614  ;;  %v1618_v39 = vld [vmem:[#allocation20 + $0x170] sm:$0xff] }
 0x3e7   :  { %3272 = vmatpush.msrb.mxu2 %v2533_v38  ;;  %v2425_v10 = vld [vmem:[#allocation20 + $0x1aa8] sm:$0xff]  ;;  %v1205_v38 = vadd.f32 %v1204_v62, %v1203_v41  ;;  %v1082_v41 = vadd.f32 %v1081_v60, %v1080_v1  ;;  %v673_v62 = vsel %vm210_vm3, %v629_v29, 0.0  ;;  %v1214_v60 = vsel %vm210_vm3, %v1177_v7, 0.0  ;;  %v1814_v29 = vld [vmem:[#allocation20 + $0x790] sm:$0xff] }
 0x3e8   :  { %v2489_v48 = vld [vmem:[#allocation20 + $0x1ca8] sm:$0xff]  ;;  %5794 = vmatmul.msk.f32.vlgmr.msrb.gmra.mxu2 %vm2622_vm7, %v6021_v42  ;;  %3227 = vmatpush.msrb.mxu0 %v2425_v10  ;;  %v628_v10 = vsel %vm475_vm0, %v7531_v43, %v7552_v12  ;;  %v1208_v42 = vsel %vm210_vm3, %v1174_v33, 0.0  ;;  %v1176_v43 = vsel %vm475_vm0, %v7501_v28, %v7510_v23  ;;  %v630_v12 = vsel %vm475_vm0, %v7596_v34, %v7662_v6  ;;  %v1610_v28 = vld [vmem:[#allocation20 + $0x130] sm:$0xff]  ;;  %v7762_v33 = vpop.permute.xlu2 %1163 }
 0x3e9   :  { %3277 = vmatpush.msra.mxu2 %v1634_v52  ;;  %v2421_v16 = vld [vmem:[#allocation20 + $0x1a88] sm:$0xff]  ;;  %3247 = vmatpush.msrb.mxu1 %v2489_v48  ;;  %v1207_v51 = vadd.f32 %v1206_v21, %v1205_v38  ;;  %v670_v48 = vadd.f32 %v669_v20, %v668_v18  ;;  %v1674_v34 = vld [vmem:[#allocation20 + $0x330] sm:$0xff]  ;;  %v1212_v40 = vsel %vm210_vm3, %v1176_v43, 0.0  ;;  %v1085_v18 = vsel %vm210_vm3, %v1043_v3, 0.0 }
 0x3ea   :  { %v2485_v30 = vld [vmem:[#allocation20 + $0x1c88] sm:$0xff]  ;;  %3298 = vmatpush.msra.mxu3 %v1694_v0  ;;  %3228 = vmatpush.msrb.mxu0 %v2421_v16  ;;  %v671_v16 = vsel %vm210_vm3, %v628_v10, 0.0  ;;  %v1826_v21 = vld [vmem:[#allocation20 + $0x7f0] sm:$0xff] }
 0x3eb   :  { %3278 = vmatpush.msra.mxu2 %v1630_v17  ;;  %v2417_v26 = vld [vmem:[#allocation20 + $0x1a68] sm:$0xff]  ;;  %3248 = vmatpush.msrb.mxu1 %v2485_v30  ;;  %v1083_v17 = vsel %vm210_vm3, %v1042_v59, 0.0  ;;  %v1209_v22 = vadd.f32 %v1208_v42, %v1207_v51  ;;  %v672_v58 = vadd.f32 %v671_v16, %v670_v48  ;;  %v1762_v30 = vld [vmem:[#allocation20 + $0x5f0] sm:$0xff]  ;;  %v1044_v51 = vsel %vm475_vm0, %v7669_v9, %v7719_v50 }
 0x3ec   :  { %v2481_v2 = vld [vmem:[#allocation20 + $0x1c68] sm:$0xff]  ;;  %3299 = vmatpush.msra.mxu3 %v1690_v31  ;;  %3229 = vmatpush.msrb.mxu0 %v2417_v26  ;;  %v1084_v35 = vadd.f32 %v1083_v17, %v1082_v41  ;;  %v675_v31 = vsel %vm210_vm3, %v630_v12, 0.0  ;;  %v6022_v26 = vld.sshfl [vmem:[#allocation1 + $0x28] sm:$0xff pattern:$0x75316420]  ;;  %v1822_v20 = vld [vmem:[#allocation20 + $0x7d0] sm:$0xff] }
 0x3ed   :  { %3279 = vmatpush.msra.mxu2 %v1626_v11  ;;  %v2413_v63 = vld [vmem:[#allocation20 + $0x1a48] sm:$0xff]  ;;  %3249 = vmatpush.msrb.mxu1 %v2481_v2  ;;  %v631_v11 = vsel %vm475_vm0, %v7662_v6, %v615_v53  ;;  %v1211_v47 = vadd.f32 %v1210_v27, %v1209_v22  ;;  %v674_v2 = vadd.f32 %v673_v62, %v672_v58  ;;  %v1670_v6 = vld [vmem:[#allocation20 + $0x310] sm:$0xff] }
 0x3ee   :  { %v2477_v52 = vld [vmem:[#allocation20 + $0x1c48] sm:$0xff]  ;;  %3300 = vmatpush.msra.mxu3 %v1686_v14  ;;  %3230 = vmatpush.msrb.mxu0 %v2413_v63  ;;  %v1758_v53 = vld [vmem:[#allocation20 + $0x5d0] sm:$0xff]  ;;  %v1027_v38 = vpop.permute.xlu1 %1026  ;;  %v677_v55 = vsel %vm537_vm8, %v631_v11, 0.0  ;;  %v1178_v63 = vsel %vm475_vm0, %v7521_v13, %v7543_v19  ;;  %v1086_v36 = vadd.f32 %v1085_v18, %v1084_v35  ;;  %v1180_v22 = vsel %vm475_vm0, %v7576_v37, %v7623_v61 }
 0x3ef   :  { %3280 = vmatpush.msra.mxu2 %v1622_v5  ;;  %v2409_v15 = vld [vmem:[#allocation20 + $0x1a28] sm:$0xff]  ;;  %3250 = vmatpush.msrb.mxu1 %v2477_v52  ;;  %v1213_v14 = vadd.f32 %v1212_v40, %v1211_v47  ;;  %v676_v52 = vadd.f32 %v675_v31, %v674_v2  ;;  %v1754_v23 = vld [vmem:[#allocation20 + $0x5b0] sm:$0xff]  ;;  %v1045_v13 = vsel %vm475_vm0, %v7719_v50, %v1027_v38  ;;  %v1216_v9 = vsel %vm210_vm3, %v1178_v63, 0.0 }
 0x3f0   :  { %v2473_v46 = vld [vmem:[#allocation20 + $0x1c28] sm:$0xff]  ;;  %3301 = vmatpush.msra.mxu3 %v1682_v32  ;;  %3231 = vmatpush.msrb.mxu0 %v2409_v15  ;;  %v1598_v59 = vld [vmem:[#allocation20 + $0xd0] sm:$0xff]  ;;  %v1179_v32 = vsel %vm475_vm0, %v7543_v19, %v7576_v37  ;;  %v1089_v19 = vsel %vm210_vm3, %v1045_v13, 0.0  ;;  %v1031_v31 = vpop.permute.xlu2 %1030  ;;  %v1182_v37 = vsel %vm475_vm0, %v7695_v24, %v7743_v56 }
 0x3f1   :  { %3281 = vmatpush.msra.mxu2 %v1618_v39  ;;  %v2405_v45 = vld [vmem:[#allocation20 + $0x1a08] sm:$0xff]  ;;  %3251 = vmatpush.msrb.mxu1 %v2473_v46  ;;  %v1666_v39 = vld [vmem:[#allocation20 + $0x2f0] sm:$0xff]  ;;  %v678_v15 = vadd.f32 %v677_v55, %v676_v52  ;;  %v1215_v46 = vadd.f32 %v1214_v60, %v1213_v14  ;;  %v1224_v55 = vsel %vm210_vm3, %v1182_v37, 0.0 }
 0x3f2   :  { %v2469_v0 = vld [vmem:[#allocation20 + $0x1c08] sm:$0xff]  ;;  %3302 = vmatpush.msra.mxu3 %v1678_v44  ;;  %3232 = vmatpush.msrb.mxu0 %v2405_v45  ;;  %v1662_v10 = vld [vmem:[#allocation20 + $0x2d0] sm:$0xff]  ;;  %v1029_v44 = vpop.permute.xlu0 %1028  ;;  %v1218_v45 = vsel %vm210_vm3, %v1179_v32, 0.0 }
 0x3f3   :  { %3282 = vmatpush.msra.mxu2 %v1614_v57  ;;  %3252 = vmatpush.msrb.mxu1 %v2469_v0  ;;  %v6023_v5 = vld.sshfl [vmem:[#allocation1 + $0x30] sm:$0xff pattern:$0x75316420]  ;;  %v1750_v48 = vld [vmem:[#allocation20 + $0x590] sm:$0xff]  ;;  %v1087_v57 = vsel %vm210_vm3, %v1044_v51, 0.0  ;;  %v1217_v12 = vadd.f32 %v1216_v9, %v1215_v46  ;;  %v1046_v41 = vsel %vm475_vm0, %v1027_v38, %v1029_v44  ;;  %v1047_v2 = vsel %vm475_vm0, %v1029_v44, %v1031_v31 }
 0x3f4   :  { %3233 = vmatmul.f32.vlgmr.msrb.gmra.mxu0 %v6022_v26  ;;  %3253 = vmatmul.f32.vlgmr.msrb.gmra.mxu1 %v6023_v5  ;;  %v1594_v50 = vld [vmem:[#allocation20 + $0xb0] sm:$0xff]  ;;  %v1088_v17 = vadd.f32 %v1087_v57, %v1086_v36  ;;  %v1091_v26 = vsel %vm210_vm3, %v1046_v41, 0.0  ;;  %v1093_v63 = vsel %vm537_vm8, %v1047_v2, 0.0  ;;  %v1183_v36 = vsel %vm475_vm0, %v7743_v56, %v7762_v33 }
 0x3f5   :  { %3283 = vmatpush.msra.mxu2 %v1610_v28  ;;  %3303 = vmatpush.msra.mxu3 %v1674_v34  ;;  %v1658_v1 = vld [vmem:[#allocation20 + $0x2b0] sm:$0xff]  ;;  %v1219_v58 = vadd.f32 %v1218_v45, %v1217_v12  ;;  %v1181_v34 = vsel %vm475_vm0, %v7623_v61, %v7695_v24 }
 0x3f6   :  { %3317 = vmatpush.msra.mxu0 %v1762_v30  ;;  %3337 = vmatpush.msra.mxu1 %v1826_v21  ;;  %v1746_v42 = vld [vmem:[#allocation20 + $0x570] sm:$0xff]  ;;  %v1090_v16 = vadd.f32 %v1089_v19, %v1088_v17  ;;  %v7785_v35 = vpop.permute.xlu1 %1165  ;;  %v1222_v47 = vsel %vm210_vm3, %v1181_v34, 0.0 }
 0x3f7   :  { %3284 = vmatpush.msra.mxu2 %v1606_v4  ;;  %3304 = vmatpush.msra.mxu3 %v1670_v6  ;;  %v1810_v43 = vld [vmem:[#allocation20 + $0x770] sm:$0xff]  ;;  %v1220_v4 = vsel %vm210_vm3, %v1180_v22, 0.0 }
 0x3f8   :  { %3318 = vmatpush.msra.mxu0 %v1758_v53  ;;  %3338 = vmatpush.msra.mxu1 %v1822_v20  ;;  %v1590_v0 = vld [vmem:[#allocation20 + $0x90] sm:$0xff]  ;;  %v1092_v5 = vadd.f32 %v1091_v26, %v1090_v16  ;;  %v1221_v38 = vadd.f32 %v1220_v4, %v1219_v58  ;;  %v8852_v4 = vld [vmem:[#allocation69_spill] sm:$0xff] }
 0x3f9   :  { %3285 = vmatpush.msra.mxu2 %v1602_v49  ;;  %3305 = vmatpush.msra.mxu3 %v1666_v39  ;;  %v1654_v27 = vld [vmem:[#allocation20 + $0x290] sm:$0xff] }
 0x3fa   :  { %3319 = vmatpush.msra.mxu0 %v1754_v23  ;;  %3339 = vmatpush.msra.mxu1 %v1818_v25  ;;  %v1742_v62 = vld [vmem:[#allocation20 + $0x550] sm:$0xff]  ;;  %v1223_v14 = vadd.f32 %v1222_v47, %v1221_v38  ;;  %v1094_v39 = vadd.f32 %v1093_v63, %v1092_v5  ;;  %v1168_v60 = vpop.permute.xlu0 %1167 }
 0x3fb   :  { %3286 = vmatpush.msra.mxu2 %v1598_v59  ;;  %3306 = vmatpush.msra.mxu3 %v1662_v10  ;;  %v1806_v28 = vld [vmem:[#allocation20 + $0x750] sm:$0xff]  ;;  %v1184_v59 = vsel %vm475_vm0, %v7762_v33, %v7785_v35  ;;  %v1226_v10 = vsel %vm210_vm3, %v1183_v36, 0.0  ;;  %v1185_v44 = vsel %vm475_vm0, %v7785_v35, %v1168_v60 }
 0x3fc   :  { %3320 = vmatpush.msra.mxu0 %v1750_v48  ;;  %3340 = vmatpush.msra.mxu1 %v1814_v29  ;;  %v1586_v30 = vld [vmem:[#allocation20 + $0x70] sm:$0xff]  ;;  %v1225_v25 = vadd.f32 %v1224_v55, %v1223_v14  ;;  %v1228_v48 = vsel %vm210_vm3, %v1184_v59, 0.0  ;;  %v1230_v16 = vsel %vm210_vm3, %v1185_v44, 0.0 }
 0x3fd   :  { %679 = vadd.xlane.f32.xlu0 %v678_v15  ;;  %3287 = vmatpush.msra.mxu2 %v1594_v50  ;;  %v1650_v11 = vld [vmem:[#allocation20 + $0x270] sm:$0xff] }
 0x3fe   :  { %3307 = vmatpush.msra.mxu3 %v1658_v1  ;;  %3321 = vmatpush.msra.mxu0 %v1746_v42  ;;  %v1738_v40 = vld [vmem:[#allocation20 + $0x530] sm:$0xff]  ;;  %v1170_v29 = vpop.permute.xlu1 %1169  ;;  %v1227_v46 = vadd.f32 %v1226_v10, %v1225_v25 }
 0x3ff   :  { %3341 = vmatpush.msra.mxu1 %v1810_v43  ;;  %3288 = vmatpush.msra.mxu2 %v1590_v0  ;;  %v1802_v3 = vld [vmem:[#allocation20 + $0x730] sm:$0xff]  ;;  %v1186_v43 = vsel %vm475_vm0, %v1168_v60, %v1170_v29 }
 0x400   :  { %3308 = vmatpush.msra.mxu3 %v1654_v27  ;;  %3322 = vmatpush.msra.mxu0 %v1742_v62  ;;  %v1582_v61 = vld [vmem:[#allocation20 + $0x50] sm:$0xff]  ;;  %v1229_v19 = vadd.f32 %v1228_v48, %v1227_v46  ;;  %v1232_v41 = vsel %vm537_vm8, %v1186_v43, 0.0 }
 0x401   :  { %3342 = vmatpush.msra.mxu1 %v1806_v28  ;;  %v1646_v21 = vld [vmem:[#allocation20 + $0x250] sm:$0xff]  ;;  %3289 = vmatpush.msra.mxu2 %v1586_v30 }
 0x402   :  { %3309 = vmatpush.msra.mxu3 %v1650_v11  ;;  %v1734_v6 = vld [vmem:[#allocation20 + $0x510] sm:$0xff]  ;;  %3323 = vmatpush.msra.mxu0 %v1738_v40  ;;  %v1231_v22 = vadd.f32 %v1230_v16, %v1229_v19 }
 0x403   :  { %v1798_v53 = vld [vmem:[#allocation20 + $0x710] sm:$0xff]  ;;  %3343 = vmatpush.msra.mxu1 %v1802_v3  ;;  %3290 = vmatpush.msra.mxu2 %v1582_v61 }
 0x404   :  { %v1578_v24 = vld [vmem:[#allocation20 + $0x30] sm:$0xff]  ;;  %3310 = vmatpush.msra.mxu3 %v1646_v21  ;;  %3324 = vmatpush.msra.mxu0 %v1734_v6  ;;  %v1233_v40 = vadd.f32 %v1232_v41, %v1231_v22 }
 0x405   :  { %v1642_v7 = vld [vmem:[#allocation20 + $0x230] sm:$0xff]  ;;  %3344 = vmatpush.msra.mxu1 %v1798_v53  ;;  %3291 = vmatpush.msra.mxu2 %v1578_v24 }
 0x406   :  { %v1730_v20 = vld [vmem:[#allocation20 + $0x4f0] sm:$0xff]  ;;  %3311 = vmatpush.msra.mxu3 %v1642_v7  ;;  %1095 = vadd.xlane.f32.xlu1 %v1094_v39 }
 0x407   :  { %v1794_v49 = vld [vmem:[#allocation20 + $0x6f0] sm:$0xff]  ;;  %3325 = vmatpush.msra.mxu0 %v1730_v20  ;;  %1234 = vadd.xlane.f32.xlu2 %v1233_v40 }
 0x408   :  { %v1574_v18 = vld [vmem:[#allocation20 + $0x10] sm:$0xff]  ;;  %3345 = vmatpush.msra.mxu1 %v1794_v49 }
 0x409   :  { %v1638_v52 = vld [vmem:[#allocation20 + $0x210] sm:$0xff]  ;;  %3292 = vmatpush.msra.mxu2 %v1574_v18 }
 0x40a   :  { %v1726_v23 = vld [vmem:[#allocation20 + $0x4d0] sm:$0xff]  ;;  %3312 = vmatpush.msra.mxu3 %v1638_v52  ;;  %3293 = vmatmul.f32.vlgmr.msra.gmra.mxu2 %v7255_v8 }
 0x40b   :  { %v1790_v51 = vld [vmem:[#allocation20 + $0x6d0] sm:$0xff]  ;;  %3326 = vmatpush.msra.mxu0 %v1726_v23  ;;  %3313 = vmatmul.f32.vlgmr.msra.gmra.mxu3 %v7257_v54 }
 0x40c   :  { %v1890_v13 = vld [vmem:[#allocation20 + $0x9f0] sm:$0xff]  ;;  %3346 = vmatpush.msra.mxu1 %v1790_v51 }
 0x40d   :  { %v1954_v32 = vld [vmem:[#allocation20 + $0xbf0] sm:$0xff]  ;;  %3357 = vmatpush.msrb.mxu2 %v1890_v13 }
 0x40e   :  { %v1722_v15 = vld [vmem:[#allocation20 + $0x4b0] sm:$0xff]  ;;  %3377 = vmatpush.msrb.mxu3 %v1954_v32 }
 0x40f   :  { %v1786_v56 = vld [vmem:[#allocation20 + $0x6b0] sm:$0xff]  ;;  %3327 = vmatpush.msra.mxu0 %v1722_v15 }
 0x410   :  { %v1886_v9 = vld [vmem:[#allocation20 + $0x9d0] sm:$0xff]  ;;  %3347 = vmatpush.msra.mxu1 %v1786_v56 }
 0x411   :  { %v1950_v33 = vld [vmem:[#allocation20 + $0xbd0] sm:$0xff]  ;;  %3358 = vmatpush.msrb.mxu2 %v1886_v9 }
 0x412   :  { %v1718_v57 = vld [vmem:[#allocation20 + $0x490] sm:$0xff]  ;;  %3378 = vmatpush.msrb.mxu3 %v1950_v33 }
 0x413   :  { %v1782_v50 = vld [vmem:[#allocation20 + $0x690] sm:$0xff]  ;;  %3328 = vmatpush.msra.mxu0 %v1718_v57 }
 0x414   :  { %v1882_v1 = vld [vmem:[#allocation20 + $0x9b0] sm:$0xff]  ;;  %3348 = vmatpush.msra.mxu1 %v1782_v50 }
 0x415   :  { %v1946_v45 = vld [vmem:[#allocation20 + $0xbb0] sm:$0xff]  ;;  %3359 = vmatpush.msrb.mxu2 %v1882_v1 }
 0x416   :  { %v1714_v42 = vld [vmem:[#allocation20 + $0x470] sm:$0xff]  ;;  %3379 = vmatpush.msrb.mxu3 %v1946_v45 }
 0x417   :  { %v1778_v17 = vld [vmem:[#allocation20 + $0x670] sm:$0xff]  ;;  %3329 = vmatpush.msra.mxu0 %v1714_v42 }
 0x418   :  { %v1878_v12 = vld [vmem:[#allocation20 + $0x990] sm:$0xff]  ;;  %3349 = vmatpush.msra.mxu1 %v1778_v17 }
 0x419   :  { %v1942_v0 = vld [vmem:[#allocation20 + $0xb90] sm:$0xff]  ;;  %3360 = vmatpush.msrb.mxu2 %v1878_v12 }
 0x41a   :  { %v1710_v27 = vld [vmem:[#allocation20 + $0x450] sm:$0xff]  ;;  %3380 = vmatpush.msrb.mxu3 %v1942_v0  ;;  %v8855_v0 = vld [vmem:[#allocation72_spill] sm:$0xff] }
 0x41b   :  { %v1774_v62 = vld [vmem:[#allocation20 + $0x650] sm:$0xff]  ;;  %3330 = vmatpush.msra.mxu0 %v1710_v27 }
 0x41c   :  { %v1874_v28 = vld [vmem:[#allocation20 + $0x970] sm:$0xff]  ;;  %3350 = vmatpush.msra.mxu1 %v1774_v62 }
 0x41d   :  { %v1938_v58 = vld [vmem:[#allocation20 + $0xb70] sm:$0xff]  ;;  %3361 = vmatpush.msrb.mxu2 %v1874_v28 }
 0x41e   :  { %v1706_v34 = vld [vmem:[#allocation20 + $0x430] sm:$0xff]  ;;  %3381 = vmatpush.msrb.mxu3 %v1938_v58 }
 0x41f   :  { %v1770_v30 = vld [vmem:[#allocation20 + $0x630] sm:$0xff]  ;;  %3331 = vmatpush.msra.mxu0 %v1706_v34 }
 0x420   :  { %v1870_v11 = vld [vmem:[#allocation20 + $0x950] sm:$0xff]  ;;  %3351 = vmatpush.msra.mxu1 %v1770_v30  ;;  %v7815_v30 = vpop.f32.mrf.mxu0 }
 0x421   :  { %v1934_v3 = vld [vmem:[#allocation20 + $0xb50] sm:$0xff]  ;;  %3362 = vmatpush.msrb.mxu2 %v1870_v11  ;;  %v7817_v11 = vpop.f32.mrf.mxu3 }
 0x422   :  { %v1702_v35 = vld [vmem:[#allocation20 + $0x410] sm:$0xff]  ;;  %3382 = vmatpush.msrb.mxu3 %v1934_v3 }
 0x423   :  { %v1766_v31 = vld [vmem:[#allocation20 + $0x610] sm:$0xff]  ;;  %3332 = vmatpush.msra.mxu0 %v1702_v35 }
 0x424   :  { %v1866_v37 = vld [vmem:[#allocation20 + $0x930] sm:$0xff]  ;;  %3352 = vmatpush.msra.mxu1 %v1766_v31  ;;  %3333 = vmatmul.f32.vlgmr.msra.gmra.mxu0 %v8852_v4 }
 0x425   :  { %v1930_v26 = vld [vmem:[#allocation20 + $0xb30] sm:$0xff]  ;;  %3363 = vmatpush.msrb.mxu2 %v1866_v37 }
 0x426   :  { %v2018_v61 = vld [vmem:[#allocation20 + $0xdf0] sm:$0xff]  ;;  %3383 = vmatpush.msrb.mxu3 %v1930_v26 }
 0x427   :  { %v2082_v21 = vld [vmem:[#allocation20 + $0xff0] sm:$0xff]  ;;  %3397 = vmatpush.msrb.mxu0 %v2018_v61 }
 0x428   :  { %v8853_v47 = vld [vmem:[#allocation70_spill] sm:$0xff]  ;;  %3417 = vmatpush.msrb.mxu1 %v2082_v21  ;;  %v8854_v12 = vld [vmem:[#allocation71_spill] sm:$0xff] }
 0x429   :  { %3353 = vmatmul.f32.vlgmr.msra.gmra.mxu1 %v8853_v47  ;;  %v1862_v2 = vld [vmem:[#allocation20 + $0x910] sm:$0xff] }
 0x42a   :  { %v1926_v5 = vld [vmem:[#allocation20 + $0xb10] sm:$0xff]  ;;  %3364 = vmatpush.msrb.mxu2 %v1862_v2 }
 0x42b   :  { %v2014_v6 = vld [vmem:[#allocation20 + $0xdd0] sm:$0xff]  ;;  %3384 = vmatpush.msrb.mxu3 %v1926_v5 }
 0x42c   :  { %v2078_v53 = vld [vmem:[#allocation20 + $0xfd0] sm:$0xff]  ;;  %3398 = vmatpush.msrb.mxu0 %v2014_v6 }
 0x42d   :  { %v1858_v38 = vld [vmem:[#allocation20 + $0x8f0] sm:$0xff]  ;;  %3418 = vmatpush.msrb.mxu1 %v2078_v53 }
 0x42e   :  { %v1922_v24 = vld [vmem:[#allocation20 + $0xaf0] sm:$0xff]  ;;  %3365 = vmatpush.msrb.mxu2 %v1858_v38  ;;  %v7819_v38 = vpop.f32.mrf.mxu1 }
 0x42f   :  { %v2010_v7 = vld [vmem:[#allocation20 + $0xdb0] sm:$0xff]  ;;  %3385 = vmatpush.msrb.mxu3 %v1922_v24  ;;  %v7821_v24 = vpop.f32.mrf.mxu2 }
 0x430   :  { %v2074_v55 = vld [vmem:[#allocation20 + $0xfb0] sm:$0xff]  ;;  %3399 = vmatpush.msrb.mxu0 %v2010_v7 }
 0x431   :  { %v1854_v20 = vld [vmem:[#allocation20 + $0x8d0] sm:$0xff]  ;;  %3419 = vmatpush.msrb.mxu1 %v2074_v55 }
 0x432   :  { %v1918_v49 = vld [vmem:[#allocation20 + $0xad0] sm:$0xff]  ;;  %3366 = vmatpush.msrb.mxu2 %v1854_v20  ;;  %v7823_v20 = vpop.f32.mrf.mxu0 }
 0x433   :  { %v2006_v14 = vld [vmem:[#allocation20 + $0xd90] sm:$0xff]  ;;  %3386 = vmatpush.msrb.mxu3 %v1918_v49  ;;  %v7825_v49 = vpop.f32.mrf.mxu3 }
 0x434   :  { %v2070_v63 = vld [vmem:[#allocation20 + $0xf90] sm:$0xff]  ;;  %3400 = vmatpush.msrb.mxu0 %v2006_v14 }
 0x435   :  { %v1850_v18 = vld [vmem:[#allocation20 + $0x8b0] sm:$0xff]  ;;  %3420 = vmatpush.msrb.mxu1 %v2070_v63 }
 0x436   :  { %v1914_v52 = vld [vmem:[#allocation20 + $0xab0] sm:$0xff]  ;;  %3367 = vmatpush.msrb.mxu2 %v1850_v18  ;;  %v8856_v18 = vld [vmem:[#allocation73_spill] sm:$0xff] }
 0x437   :  { %v2002_v39 = vld [vmem:[#allocation20 + $0xd70] sm:$0xff]  ;;  %3387 = vmatpush.msrb.mxu3 %v1914_v52 }
 0x438   :  { %v2066_v23 = vld [vmem:[#allocation20 + $0xf70] sm:$0xff]  ;;  %3401 = vmatpush.msrb.mxu0 %v2002_v39 }
 0x439   :  { %v1846_v51 = vld [vmem:[#allocation20 + $0x890] sm:$0xff]  ;;  %3421 = vmatpush.msrb.mxu1 %v2066_v23 }
 0x43a   :  { %v1910_v36 = vld [vmem:[#allocation20 + $0xa90] sm:$0xff]  ;;  %3368 = vmatpush.msrb.mxu2 %v1846_v51 }
 0x43b   :  { %v1998_v25 = vld [vmem:[#allocation20 + $0xd50] sm:$0xff]  ;;  %3388 = vmatpush.msrb.mxu3 %v1910_v36 }
 0x43c   :  { %v2062_v59 = vld [vmem:[#allocation20 + $0xf50] sm:$0xff]  ;;  %3402 = vmatpush.msrb.mxu0 %v1998_v25 }
 0x43d   :  { %v1842_v13 = vld [vmem:[#allocation20 + $0x870] sm:$0xff]  ;;  %3422 = vmatpush.msrb.mxu1 %v2062_v59 }
 0x43e   :  { %v1906_v32 = vld [vmem:[#allocation20 + $0xa70] sm:$0xff]  ;;  %3369 = vmatpush.msrb.mxu2 %v1842_v13 }
 0x43f   :  { %v1994_v15 = vld [vmem:[#allocation20 + $0xd30] sm:$0xff]  ;;  %3389 = vmatpush.msrb.mxu3 %v1906_v32 }
 0x440   :  { %v2058_v10 = vld [vmem:[#allocation20 + $0xf30] sm:$0xff]  ;;  %3403 = vmatpush.msrb.mxu0 %v1994_v15 }
 0x441   :  { %v1838_v48 = vld [vmem:[#allocation20 + $0x850] sm:$0xff]  ;;  %3423 = vmatpush.msrb.mxu1 %v2058_v10 }
 0x442   :  { %v1902_v60 = vld [vmem:[#allocation20 + $0xa50] sm:$0xff]  ;;  %3370 = vmatpush.msrb.mxu2 %v1838_v48  ;;  %v7829_v48 = vpop.f32.mrf.mxu1 }
 0x443   :  { %v1990_v56 = vld [vmem:[#allocation20 + $0xd10] sm:$0xff]  ;;  %3390 = vmatpush.msrb.mxu3 %v1902_v60  ;;  %v7831_v60 = vpop.f32.mrf.mxu2 }
 0x444   :  { %v2054_v9 = vld [vmem:[#allocation20 + $0xf10] sm:$0xff]  ;;  %3404 = vmatpush.msrb.mxu0 %v1990_v56 }
 0x445   :  { %v1834_v29 = vld [vmem:[#allocation20 + $0x830] sm:$0xff]  ;;  %3424 = vmatpush.msrb.mxu1 %v2054_v9 }
 0x446   :  { %v1898_v46 = vld [vmem:[#allocation20 + $0xa30] sm:$0xff]  ;;  %3371 = vmatpush.msrb.mxu2 %v1834_v29 }
 0x447   :  { %v1986_v33 = vld [vmem:[#allocation20 + $0xcf0] sm:$0xff]  ;;  %3391 = vmatpush.msrb.mxu3 %v1898_v46 }
 0x448   :  { %v2050_v57 = vld [vmem:[#allocation20 + $0xef0] sm:$0xff]  ;;  %3405 = vmatpush.msrb.mxu0 %v1986_v33  ;;  %v7833_v33 = vpop.f32.mrf.mxu0 }
 0x449   :  { %v1830_v50 = vld [vmem:[#allocation20 + $0x810] sm:$0xff]  ;;  %3425 = vmatpush.msrb.mxu1 %v2050_v57  ;;  %v7835_v57 = vpop.f32.mrf.mxu3 }
 0x44a   :  { %v1894_v1 = vld [vmem:[#allocation20 + $0xa10] sm:$0xff]  ;;  %3372 = vmatpush.msrb.mxu2 %v1830_v50 }
 0x44b   :  { %v1982_v19 = vld [vmem:[#allocation20 + $0xcd0] sm:$0xff]  ;;  %3392 = vmatpush.msrb.mxu3 %v1894_v1  ;;  %3373 = vmatmul.f32.vlgmr.msrb.gmra.mxu2 %v8854_v12 }
 0x44c   :  { %v2046_v44 = vld [vmem:[#allocation20 + $0xed0] sm:$0xff]  ;;  %3406 = vmatpush.msrb.mxu0 %v1982_v19  ;;  %3393 = vmatmul.f32.vlgmr.msrb.gmra.mxu3 %v8855_v0 }
 0x44d   :  { %v2146_v45 = vld [vmem:[#allocation20 + $0x11f0] sm:$0xff]  ;;  %3426 = vmatpush.msrb.mxu1 %v2046_v44 }
 0x44e   :  { %v2210_v42 = vld [vmem:[#allocation20 + $0x13f0] sm:$0xff]  ;;  %3437 = vmatpush.msra.mxu2 %v2146_v45 }
 0x44f   :  { %v1978_v43 = vld [vmem:[#allocation20 + $0xcb0] sm:$0xff]  ;;  %3457 = vmatpush.msra.mxu3 %v2210_v42 }
 0x450   :  { %v2042_v17 = vld [vmem:[#allocation20 + $0xeb0] sm:$0xff]  ;;  %3407 = vmatpush.msrb.mxu0 %v1978_v43 }
 0x451   :  { %v2142_v27 = vld [vmem:[#allocation20 + $0x11d0] sm:$0xff]  ;;  %3427 = vmatpush.msrb.mxu1 %v2042_v17 }
 0x452   :  { %v2206_v16 = vld [vmem:[#allocation20 + $0x13d0] sm:$0xff]  ;;  %3438 = vmatpush.msra.mxu2 %v2142_v27 }
 0x453   :  { %v1974_v41 = vld [vmem:[#allocation20 + $0xc90] sm:$0xff]  ;;  %3458 = vmatpush.msra.mxu3 %v2206_v16 }
 0x454   :  { %v2038_v62 = vld [vmem:[#allocation20 + $0xe90] sm:$0xff]  ;;  %3408 = vmatpush.msrb.mxu0 %v1974_v41 }
 0x455   :  { %v2138_v28 = vld [vmem:[#allocation20 + $0x11b0] sm:$0xff]  ;;  %3428 = vmatpush.msrb.mxu1 %v2038_v62 }
 0x456   :  { %v2202_v22 = vld [vmem:[#allocation20 + $0x13b0] sm:$0xff]  ;;  %3439 = vmatpush.msra.mxu2 %v2138_v28  ;;  %v7837_v28 = vpop.f32.mrf.mxu1 }
 0x457   :  { %v1970_v58 = vld [vmem:[#allocation20 + $0xc70] sm:$0xff]  ;;  %3459 = vmatpush.msra.mxu3 %v2202_v22  ;;  %v7839_v22 = vpop.f32.mrf.mxu2 }
 0x458   :  { %v2034_v34 = vld [vmem:[#allocation20 + $0xe70] sm:$0xff]  ;;  %3409 = vmatpush.msrb.mxu0 %v1970_v58 }
 0x459   :  { %v2134_v40 = vld [vmem:[#allocation20 + $0x1190] sm:$0xff]  ;;  %3429 = vmatpush.msrb.mxu1 %v2034_v34 }
 0x45a   :  { %v2198_v3 = vld [vmem:[#allocation20 + $0x1390] sm:$0xff]  ;;  %3440 = vmatpush.msra.mxu2 %v2134_v40 }
 0x45b   :  { %v1966_v35 = vld [vmem:[#allocation20 + $0xc50] sm:$0xff]  ;;  %3460 = vmatpush.msra.mxu3 %v2198_v3 }
 0x45c   :  { %v2030_v31 = vld [vmem:[#allocation20 + $0xe50] sm:$0xff]  ;;  %3410 = vmatpush.msrb.mxu0 %v1966_v35  ;;  %v7841_v35 = vpop.f32.mrf.mxu3 }
 0x45d   :  { %v2130_v37 = vld [vmem:[#allocation20 + $0x1170] sm:$0xff]  ;;  %3430 = vmatpush.msrb.mxu1 %v2030_v31  ;;  %v7843_v31 = vpop.f32.mrf.mxu0 }
 0x45e   :  { %v2194_v26 = vld [vmem:[#allocation20 + $0x1370] sm:$0xff]  ;;  %3441 = vmatpush.msra.mxu2 %v2130_v37 }
 0x45f   :  { %v1962_v61 = vld [vmem:[#allocation20 + $0xc30] sm:$0xff]  ;;  %3461 = vmatpush.msra.mxu3 %v2194_v26 }
 0x460   :  { %v2026_v21 = vld [vmem:[#allocation20 + $0xe30] sm:$0xff]  ;;  %3411 = vmatpush.msrb.mxu0 %v1962_v61 }
 0x461   :  { %v2126_v2 = vld [vmem:[#allocation20 + $0x1150] sm:$0xff]  ;;  %3431 = vmatpush.msrb.mxu1 %v2026_v21 }
 0x462   :  { %v2190_v5 = vld [vmem:[#allocation20 + $0x1350] sm:$0xff]  ;;  %3442 = vmatpush.msra.mxu2 %v2126_v2 }
 0x463   :  { %v1958_v6 = vld [vmem:[#allocation20 + $0xc10] sm:$0xff]  ;;  %3462 = vmatpush.msra.mxu3 %v2190_v5 }
 0x464   :  { %v2022_v53 = vld [vmem:[#allocation20 + $0xe10] sm:$0xff]  ;;  %3412 = vmatpush.msrb.mxu0 %v1958_v6  ;;  %v2675_v6 = vadd.f32 %v7819_v38, %v7815_v30 }
 0x465   :  { %v2122_v7 = vld [vmem:[#allocation20 + $0x1130] sm:$0xff]  ;;  %3432 = vmatpush.msrb.mxu1 %v2022_v53  ;;  %3413 = vmatmul.f32.vlgmr.msrb.gmra.mxu0 %v8856_v18 }
 0x466   :  { %v2186_v55 = vld [vmem:[#allocation20 + $0x1330] sm:$0xff]  ;;  %3443 = vmatpush.msra.mxu2 %v2122_v7 }
 0x467   :  { %v2274_v14 = vld [vmem:[#allocation20 + $0x15f0] sm:$0xff]  ;;  %3463 = vmatpush.msra.mxu3 %v2186_v55  ;;  %v2695_v55 = vadd.f32 %v7821_v24, %v2675_v6  ;;  %v2994_v24 = vpop.f32.mrf.mxu0 }
 0x468   :  { %v2338_v63 = vld [vmem:[#allocation20 + $0x17f0] sm:$0xff]  ;;  %3477 = vmatpush.msra.mxu0 %v2274_v14 }
 0x469   :  { %v8857_v52 = vld [vmem:[#allocation74_spill] sm:$0xff]  ;;  %3497 = vmatpush.msra.mxu1 %v2338_v63 }
 0x46a   :  { %3433 = vmatmul.f32.vlgmr.msrb.gmra.mxu1 %v8857_v52  ;;  %v2118_v39 = vld [vmem:[#allocation20 + $0x1110] sm:$0xff] }
 0x46b   :  { %v2182_v23 = vld [vmem:[#allocation20 + $0x1310] sm:$0xff]  ;;  %3444 = vmatpush.msra.mxu2 %v2118_v39  ;;  %v7848_v39 = vpop.f32.mrf.mxu1 }
 0x46c   :  { %v2270_v51 = vld [vmem:[#allocation20 + $0x15d0] sm:$0xff]  ;;  %3464 = vmatpush.msra.mxu3 %v2182_v23  ;;  %v7850_v23 = vpop.f32.mrf.mxu2 }
 0x46d   :  { %v2334_v36 = vld [vmem:[#allocation20 + $0x17d0] sm:$0xff]  ;;  %3478 = vmatpush.msra.mxu0 %v2270_v51  ;;  %v6024_v51 = vld.sshfl [vmem:[#allocation1] sm:$0xff pattern:$0x75316420] }
 0x46e   :  { %v2114_v25 = vld [vmem:[#allocation20 + $0x10f0] sm:$0xff]  ;;  %3498 = vmatpush.msra.mxu1 %v2334_v36  ;;  %v6025_v36 = vld.sshfl [vmem:[#allocation1 + $0x8] sm:$0xff pattern:$0x75316420] }
 0x46f   :  { %v2178_v59 = vld [vmem:[#allocation20 + $0x12f0] sm:$0xff]  ;;  %3445 = vmatpush.msra.mxu2 %v2114_v25 }
 0x470   :  { %v2266_v13 = vld [vmem:[#allocation20 + $0x15b0] sm:$0xff]  ;;  %3465 = vmatpush.msra.mxu3 %v2178_v59 }
 0x471   :  { %v2330_v32 = vld [vmem:[#allocation20 + $0x17b0] sm:$0xff]  ;;  %3479 = vmatpush.msra.mxu0 %v2266_v13  ;;  %v2974_v13 = vpop.f32.mrf.mxu3 }
 0x472   :  { %v2110_v15 = vld [vmem:[#allocation20 + $0x10d0] sm:$0xff]  ;;  %3499 = vmatpush.msra.mxu1 %v2330_v32 }
 0x473   :  { %v2174_v10 = vld [vmem:[#allocation20 + $0x12d0] sm:$0xff]  ;;  %3446 = vmatpush.msra.mxu2 %v2110_v15 }
 0x474   :  { %v2262_v56 = vld [vmem:[#allocation20 + $0x1590] sm:$0xff]  ;;  %3466 = vmatpush.msra.mxu3 %v2174_v10  ;;  %v2715_v10 = vadd.f32 %v7817_v11, %v2695_v55 }
 0x475   :  { %v2326_v9 = vld [vmem:[#allocation20 + $0x1790] sm:$0xff]  ;;  %3480 = vmatpush.msra.mxu0 %v2262_v56 }
 0x476   :  { %v2106_v29 = vld [vmem:[#allocation20 + $0x10b0] sm:$0xff]  ;;  %3500 = vmatpush.msra.mxu1 %v2326_v9 }
 0x477   :  { %v2170_v46 = vld [vmem:[#allocation20 + $0x12b0] sm:$0xff]  ;;  %3447 = vmatpush.msra.mxu2 %v2106_v29 }
 0x478   :  { %v2258_v50 = vld [vmem:[#allocation20 + $0x1570] sm:$0xff]  ;;  %3467 = vmatpush.msra.mxu3 %v2170_v46 }
 0x479   :  { %v2322_v1 = vld [vmem:[#allocation20 + $0x1770] sm:$0xff]  ;;  %3481 = vmatpush.msra.mxu0 %v2258_v50  ;;  %v2995_v50 = vadd.f32 %v2994_v24, %v2974_v13 }
 0x47a   :  { %v2102_v19 = vld [vmem:[#allocation20 + $0x1090] sm:$0xff]  ;;  %3501 = vmatpush.msra.mxu1 %v2322_v1 }
 0x47b   :  { %v2166_v44 = vld [vmem:[#allocation20 + $0x1290] sm:$0xff]  ;;  %3448 = vmatpush.msra.mxu2 %v2102_v19 }
 0x47c   :  { %v2254_v45 = vld [vmem:[#allocation20 + $0x1550] sm:$0xff]  ;;  %3468 = vmatpush.msra.mxu3 %v2166_v44 }
 0x47d   :  { %v2318_v42 = vld [vmem:[#allocation20 + $0x1750] sm:$0xff]  ;;  %3482 = vmatpush.msra.mxu0 %v2254_v45 }
 0x47e   :  { %v2098_v43 = vld [vmem:[#allocation20 + $0x1070] sm:$0xff]  ;;  %3502 = vmatpush.msra.mxu1 %v2318_v42  ;;  %v2735_v42 = vadd.f32 %v7823_v20, %v2715_v10 }
 0x47f   :  { %v2162_v17 = vld [vmem:[#allocation20 + $0x1270] sm:$0xff]  ;;  %3449 = vmatpush.msra.mxu2 %v2098_v43 }
 0x480   :  { %v2250_v27 = vld [vmem:[#allocation20 + $0x1530] sm:$0xff]  ;;  %3469 = vmatpush.msra.mxu3 %v2162_v17  ;;  %v3014_v17 = vpop.f32.mrf.mxu1  ;;  %v2755_v20 = vadd.f32 %v7829_v48, %v2735_v42 }
 0x481   :  { %v2314_v16 = vld [vmem:[#allocation20 + $0x1730] sm:$0xff]  ;;  %3483 = vmatpush.msra.mxu0 %v2250_v27  ;;  %v3034_v27 = vpop.f32.mrf.mxu2 }
 0x482   :  { %v2094_v41 = vld [vmem:[#allocation20 + $0x1050] sm:$0xff]  ;;  %3503 = vmatpush.msra.mxu1 %v2314_v16 }
 0x483   :  { %v2158_v62 = vld [vmem:[#allocation20 + $0x1250] sm:$0xff]  ;;  %3450 = vmatpush.msra.mxu2 %v2094_v41 }
 0x484   :  { %v2246_v58 = vld [vmem:[#allocation20 + $0x1510] sm:$0xff]  ;;  %3470 = vmatpush.msra.mxu3 %v2158_v62  ;;  %v3015_v62 = vadd.f32 %v3014_v17, %v2995_v50 }
 0x485   :  { %v2310_v34 = vld [vmem:[#allocation20 + $0x1710] sm:$0xff]  ;;  %3484 = vmatpush.msra.mxu0 %v2246_v58 }
 0x486   :  { %v2090_v40 = vld [vmem:[#allocation20 + $0x1030] sm:$0xff]  ;;  %3504 = vmatpush.msra.mxu1 %v2310_v34 }
 0x487   :  { %v2154_v3 = vld [vmem:[#allocation20 + $0x1230] sm:$0xff]  ;;  %3451 = vmatpush.msra.mxu2 %v2090_v40  ;;  %v3054_v40 = vpop.f32.mrf.mxu3 }
 0x488   :  { %v2242_v37 = vld [vmem:[#allocation20 + $0x14f0] sm:$0xff]  ;;  %3471 = vmatpush.msra.mxu3 %v2154_v3  ;;  %v3035_v3 = vadd.f32 %v3034_v27, %v3015_v62  ;;  %v3094_v10 = vpop.f32.mrf.mxu1 }
 0x489   :  { %v2306_v26 = vld [vmem:[#allocation20 + $0x16f0] sm:$0xff]  ;;  %3485 = vmatpush.msra.mxu0 %v2242_v37 }
 0x48a   :  { %v2086_v61 = vld [vmem:[#allocation20 + $0x1010] sm:$0xff]  ;;  %3505 = vmatpush.msra.mxu1 %v2306_v26  ;;  %v3055_v6 = vadd.f32 %v3054_v40, %v3035_v3 }
 0x48b   :  { %v2150_v21 = vld [vmem:[#allocation20 + $0x1210] sm:$0xff]  ;;  %3452 = vmatpush.msra.mxu2 %v2086_v61  ;;  %v3074_v61 = vpop.f32.mrf.mxu0 }
 0x48c   :  { %v2238_v2 = vld [vmem:[#allocation20 + $0x14d0] sm:$0xff]  ;;  %3472 = vmatpush.msra.mxu3 %v2150_v21  ;;  %3453 = vmatmul.f32.vlgmr.msra.gmra.mxu2 %v6024_v51  ;;  %v3075_v51 = vadd.f32 %v3074_v61, %v3055_v6 }
 0x48d   :  { %v2302_v5 = vld [vmem:[#allocation20 + $0x16d0] sm:$0xff]  ;;  %3486 = vmatpush.msra.mxu0 %v2238_v2  ;;  %3473 = vmatmul.f32.vlgmr.msra.gmra.mxu3 %v6025_v36 }
 0x48e   :  { %v2402_v53 = vld [vmem:[#allocation20 + $0x19f0] sm:$0xff]  ;;  %3506 = vmatpush.msra.mxu1 %v2302_v5  ;;  %v2775_v5 = vadd.f32 %v7831_v60, %v2755_v20  ;;  %v541_v60 = vpop.xlane.xlu2 %540  ;;  %v3095_v50 = vadd.f32 %v3094_v10, %v3075_v51 }
 0x48f   :  { %v2466_v7 = vld [vmem:[#allocation20 + $0x1bf0] sm:$0xff]  ;;  %3517 = vmatpush.msrb.mxu2 %v2402_v53  ;;  %v6026_v53 = vld.sshfl [vmem:[#allocation1 + $0x10] sm:$0xff pattern:$0x75316420]  ;;  %v542_v13 = vsel %vm210_vm3, %v541_v60, 0.0 }
 0x490   :  { %v2234_v14 = vld [vmem:[#allocation20 + $0x14b0] sm:$0xff]  ;;  %3537 = vmatpush.msrb.mxu3 %v2466_v7  ;;  %v2795_v24 = vadd.f32 %v7825_v49, %v2775_v5 }
 0x491   :  { %v2298_v63 = vld [vmem:[#allocation20 + $0x16b0] sm:$0xff]  ;;  %3487 = vmatpush.msra.mxu0 %v2234_v14 }
 0x492   :  { %v2398_v30 = vld [vmem:[#allocation20 + $0x19d0] sm:$0xff]  ;;  %3507 = vmatpush.msra.mxu1 %v2298_v63 }
 0x493   :  { %v2462_v38 = vld [vmem:[#allocation20 + $0x1bd0] sm:$0xff]  ;;  %3518 = vmatpush.msrb.mxu2 %v2398_v30 }
 0x494   :  { %v2230_v25 = vld [vmem:[#allocation20 + $0x1490] sm:$0xff]  ;;  %3538 = vmatpush.msrb.mxu3 %v2462_v38  ;;  %v6324_v38 = vmov 4000.0  }
 0x495   :  { %v2294_v59 = vld [vmem:[#allocation20 + $0x1690] sm:$0xff]  ;;  %3488 = vmatpush.msra.mxu0 %v2230_v25  ;;  %5969 = vrcp.f32 %v6324_v38 }
 0x496   :  { %v2394_v32 = vld [vmem:[#allocation20 + $0x19b0] sm:$0xff]  ;;  %3508 = vmatpush.msra.mxu1 %v2294_v59 }
 0x497   :  { %v2458_v15 = vld [vmem:[#allocation20 + $0x1bb0] sm:$0xff]  ;;  %3519 = vmatpush.msrb.mxu2 %v2394_v32 }
 0x498   :  { %v2226_v56 = vld [vmem:[#allocation20 + $0x1470] sm:$0xff]  ;;  %3539 = vmatpush.msrb.mxu3 %v2458_v15 }
 0x499   :  { %v2290_v9 = vld [vmem:[#allocation20 + $0x1670] sm:$0xff]  ;;  %3489 = vmatpush.msra.mxu0 %v2226_v56  ;;  %v3114_v56 = vpop.f32.mrf.mxu2 }
 0x49a   :  { %v2390_v29 = vld [vmem:[#allocation20 + $0x1990] sm:$0xff]  ;;  %3509 = vmatpush.msra.mxu1 %v2290_v9 }
 0x49b   :  { %v2454_v46 = vld [vmem:[#allocation20 + $0x1b90] sm:$0xff]  ;;  %3520 = vmatpush.msrb.mxu2 %v2390_v29 }
 0x49c   :  { %v2222_v1 = vld [vmem:[#allocation20 + $0x1450] sm:$0xff]  ;;  %3540 = vmatpush.msrb.mxu3 %v2454_v46  ;;  %v2815_v46 = vadd.f32 %v7833_v33, %v2795_v24 }
 0x49d   :  { %v2286_v19 = vld [vmem:[#allocation20 + $0x1650] sm:$0xff]  ;;  %3490 = vmatpush.msra.mxu0 %v2222_v1 }
 0x49e   :  { %v2386_v44 = vld [vmem:[#allocation20 + $0x1970] sm:$0xff]  ;;  %3510 = vmatpush.msra.mxu1 %v2286_v19  ;;  %v2835_v62 = vadd.f32 %v7837_v28, %v2815_v46  ;;  %v680_v46 = vpop.xlane.xlu0 %679 }
 0x49f   :  { %v2450_v45 = vld [vmem:[#allocation20 + $0x1b70] sm:$0xff]  ;;  %3521 = vmatpush.msrb.mxu2 %v2386_v44  ;;  %v543_v44 = vrot.slane %v542_v13, 4 }
 0x4a0   :  { %v2218_v11 = vld [vmem:[#allocation20 + $0x1430] sm:$0xff]  ;;  %3541 = vmatpush.msrb.mxu3 %v2450_v45  ;;  %v3134_v45 = vpop.f32.mrf.mxu3  ;;  %v2855_v61 = vadd.f32 %v7839_v22, %v2835_v62 }
 0x4a1   :  { %v2282_v43 = vld [vmem:[#allocation20 + $0x1630] sm:$0xff]  ;;  %3491 = vmatpush.msra.mxu0 %v2218_v11  ;;  %v7860_v11 = vpop.eup %5969  ;;  %v544_v20 = vadd.f32 %v543_v44, %v542_v13  ;;  %v681_v44 = vsel %vm210_vm3, %v680_v46, 0.0  ;;  %v1671_v46 = vld [vmem:[#allocation20 + $0x318] sm:$0xff] }
 0x4a2   :  { %v2382_v16 = vld [vmem:[#allocation20 + $0x1950] sm:$0xff]  ;;  %3511 = vmatpush.msra.mxu1 %v2282_v43  ;;  %v3115_v43 = vadd.f32 %v3114_v56, %v3095_v50  ;;  %v1635_v56 = vld [vmem:[#allocation20 + $0x1f8] sm:$0xff]  ;;  %vm693_vm9 = vweird.f32 %v7860_v11 }
 0x4a3   :  { %v2446_v41 = vld [vmem:[#allocation20 + $0x1b50] sm:$0xff]  ;;  %3522 = vmatpush.msrb.mxu2 %v2382_v16  ;;  %v3154_v16 = vpop.f32.mrf.mxu0  ;;  %v6028_v50 = vld.sshfl [vmem:[#allocation1 + $0x20] sm:$0xff pattern:$0x75316420] }
 0x4a4   :  { %v2214_v58 = vld [vmem:[#allocation20 + $0x1410] sm:$0xff]  ;;  %3542 = vmatpush.msrb.mxu3 %v2446_v41 }
 0x4a5   :  { %v2278_v34 = vld [vmem:[#allocation20 + $0x1610] sm:$0xff]  ;;  %3492 = vmatpush.msra.mxu0 %v2214_v58  ;;  %v3135_v58 = vadd.f32 %v3134_v45, %v3115_v43 }
 0x4a6   :  { %v2378_v37 = vld [vmem:[#allocation20 + $0x1930] sm:$0xff]  ;;  %3512 = vmatpush.msra.mxu1 %v2278_v34  ;;  %3493 = vmatmul.f32.vlgmr.msra.gmra.mxu0 %v6026_v53  ;;  %v545_v53 = vrot.slane %v544_v20, 2 }
 0x4a7   :  { %v2442_v26 = vld [vmem:[#allocation20 + $0x1b30] sm:$0xff]  ;;  %3523 = vmatpush.msrb.mxu2 %v2378_v37 }
 0x4a8   :  { %v2530_v21 = vld [vmem:[#allocation20 + $0x1df0] sm:$0xff]  ;;  %3543 = vmatpush.msrb.mxu3 %v2442_v26  ;;  %v689_v26 = vmul.f32 4000.0, %v7860_v11  ;;  %v3214_v13 = vpop.f32.mrf.mxu3 }
 0x4a9   :  { %v2570_v2 = vld [vmem:[#allocation20 + $0x1f30] sm:$0xf]  ;;  %3557 = vmatpush.msrb.mxu0 %v2530_v21  ;;  %v3155_v21 = vadd.f32 %v3154_v16, %v3135_v58  ;;  %v682_v16 = vrot.slane %v681_v44, 4  ;;  %v1691_v58 = vld [vmem:[#allocation20 + $0x3b8] sm:$0xff] }
 0x4aa   :  { %v6027_v7 = vld.sshfl [vmem:[#allocation1 + $0x18] sm:$0xff pattern:$0x75316420]  ;;  %5795 = vmatpush.msk.msrb.mxu1 %vm754_vm15, %v2570_v2 }
 0x4ab   :  { %3513 = vmatmul.f32.vlgmr.msra.gmra.mxu1 %v6027_v7  ;;  %v2374_v55 = vld [vmem:[#allocation20 + $0x1910] sm:$0xff]  ;;  %v3234_v45 = vpop.f32.mrf.mxu0 }
 0x4ac   :  { %v2438_v14 = vld [vmem:[#allocation20 + $0x1b10] sm:$0xff]  ;;  %3524 = vmatpush.msrb.mxu2 %v2374_v55 }
 0x4ad   :  { %v2526_v48 = vld [vmem:[#allocation20 + $0x1dd0] sm:$0xff]  ;;  %3544 = vmatpush.msrb.mxu3 %v2438_v14  ;;  %v3174_v14 = vpop.f32.mrf.mxu1 }
 0x4ae   :  { %v2566_v63 = vld [vmem:[#allocation20 + $0x1f10] sm:$0xff]  ;;  %3558 = vmatpush.msrb.mxu0 %v2526_v48  ;;  %v3194_v48 = vpop.f32.mrf.mxu2 }
 0x4af   :  { %v2370_v36 = vld [vmem:[#allocation20 + $0x18f0] sm:$0xff]  ;;  %3584 = vmatpush.msrb.mxu1 %v2566_v63  ;;  %v690_v63 = vsub.f32 1.0, %v689_v26 }
 0x4b0   :  { %v2434_v30 = vld [vmem:[#allocation20 + $0x1af0] sm:$0xff]  ;;  %3525 = vmatpush.msrb.mxu2 %v2370_v36  ;;  %v2875_v36 = vadd.f32 %v7835_v57, %v2855_v61  ;;  %v1699_v57 = vld [vmem:[#allocation20 + $0x3f8] sm:$0xff] }
 0x4b1   :  { %v2522_v25 = vld [vmem:[#allocation20 + $0x1db0] sm:$0xff]  ;;  %3545 = vmatpush.msrb.mxu3 %v2434_v30  ;;  %v3175_v30 = vadd.f32 %v3174_v14, %v3155_v21  ;;  %v691_v10 = vmul.f32 %v7860_v11, %v690_v63  ;;  %v1687_v61 = vld [vmem:[#allocation20 + $0x398] sm:$0xff] }
 0x4b2   :  { %v2562_v59 = vld [vmem:[#allocation20 + $0x1ef0] sm:$0xff]  ;;  %3559 = vmatpush.msrb.mxu0 %v2522_v25  ;;  %v2895_v24 = vadd.f32 %v7843_v31, %v2875_v36  ;;  %v1747_v63 = vld [vmem:[#allocation20 + $0x578] sm:$0xff] }
 0x4b3   :  { %v2366_v32 = vld [vmem:[#allocation20 + $0x18d0] sm:$0xff]  ;;  %3585 = vmatpush.msrb.mxu1 %v2562_v59 }
 0x4b4   :  { %v2430_v15 = vld [vmem:[#allocation20 + $0x1ad0] sm:$0xff]  ;;  %3526 = vmatpush.msrb.mxu2 %v2366_v32  ;;  %v3195_v32 = vadd.f32 %v3194_v48, %v3175_v30  ;;  %v1619_v48 = vld [vmem:[#allocation20 + $0x178] sm:$0xff] }
 0x4b5   :  { %v2518_v9 = vld [vmem:[#allocation20 + $0x1d90] sm:$0xff]  ;;  %3546 = vmatpush.msrb.mxu3 %v2430_v15  ;;  %v546_v15 = vadd.f32 %v545_v53, %v544_v20  ;;  %v1755_v20 = vld [vmem:[#allocation20 + $0x5b8] sm:$0xff] }
 0x4b6   :  { %v2558_v29 = vld [vmem:[#allocation20 + $0x1ed0] sm:$0xff]  ;;  %3560 = vmatpush.msrb.mxu0 %v2518_v9  ;;  %v1763_v9 = vld [vmem:[#allocation20 + $0x5f8] sm:$0xff]  ;;  %v3274_v21 = vpop.f32.mrf.mxu2 }
 0x4b7   :  { %v2362_v1 = vld [vmem:[#allocation20 + $0x18b0] sm:$0xff]  ;;  %3586 = vmatpush.msrb.mxu1 %v2558_v29  ;;  %v3215_v29 = vadd.f32 %v3214_v13, %v3195_v32  ;;  %v1679_v30 = vld [vmem:[#allocation20 + $0x358] sm:$0xff] }
 0x4b8   :  { %v2426_v19 = vld [vmem:[#allocation20 + $0x1ab0] sm:$0xff]  ;;  %3527 = vmatpush.msrb.mxu2 %v2362_v1  ;;  %v6029_v1 = vld.sshfl [vmem:[#allocation1 + $0x28] sm:$0xff pattern:$0x75316420]  ;;  %v1675_v13 = vld [vmem:[#allocation20 + $0x338] sm:$0xff] }
 0x4b9   :  { %v2514_v49 = vld [vmem:[#allocation20 + $0x1d70] sm:$0xff]  ;;  %3547 = vmatpush.msrb.mxu3 %v2426_v19  ;;  %v1695_v19 = vld [vmem:[#allocation20 + $0x3d8] sm:$0xff] }
 0x4ba   :  { %v2554_v42 = vld [vmem:[#allocation20 + $0x1eb0] sm:$0xff]  ;;  %3561 = vmatpush.msrb.mxu0 %v2514_v49  ;;  %v2915_v49 = vadd.f32 %v7848_v39, %v2895_v24  ;;  %v1627_v39 = vld [vmem:[#allocation20 + $0x1b8] sm:$0xff] }
 0x4bb   :  { %v2358_v17 = vld [vmem:[#allocation20 + $0x1890] sm:$0xff]  ;;  %3587 = vmatpush.msrb.mxu1 %v2554_v42  ;;  %v547_v42 = vrot.slane %v546_v15, 1  ;;  %v1611_v32 = vld [vmem:[#allocation20 + $0x138] sm:$0xff] }
 0x4bc   :  { %v2422_v27 = vld [vmem:[#allocation20 + $0x1a90] sm:$0xff]  ;;  %3528 = vmatpush.msrb.mxu2 %v2358_v17  ;;  %v1631_v17 = vld [vmem:[#allocation20 + $0x1d8] sm:$0xff] }
 0x4bd   :  { %v2510_v33 = vld [vmem:[#allocation20 + $0x1d50] sm:$0xff]  ;;  %3548 = vmatpush.msrb.mxu3 %v2422_v27  ;;  %v1759_v27 = vld [vmem:[#allocation20 + $0x5d8] sm:$0xff] }
 0x4be   :  { %v2550_v41 = vld [vmem:[#allocation20 + $0x1e90] sm:$0xff]  ;;  %3562 = vmatpush.msrb.mxu0 %v2510_v33  ;;  %v3235_v33 = vadd.f32 %v3234_v45, %v3215_v29  ;;  %v1607_v29 = vld [vmem:[#allocation20 + $0x118] sm:$0xff] }
 0x4bf   :  { %v2354_v34 = vld [vmem:[#allocation20 + $0x1870] sm:$0xff]  ;;  %3588 = vmatpush.msrb.mxu1 %v2550_v41  ;;  %v692_v41 = vadd.f32 %v7860_v11, %v691_v10  ;;  %v1827_v10 = vld [vmem:[#allocation20 + $0x7f8] sm:$0xff] }
 0x4c0   :  { %v2418_v40 = vld [vmem:[#allocation20 + $0x1a70] sm:$0xff]  ;;  %3529 = vmatpush.msrb.mxu2 %v2354_v34  ;;  %v3254_v34 = vpop.f32.mrf.mxu1 }
 0x4c1   :  { %v2506_v3 = vld [vmem:[#allocation20 + $0x1d30] sm:$0xff]  ;;  %3549 = vmatpush.msrb.mxu3 %v2418_v40  ;;  %v2935_v40 = vadd.f32 %v7850_v23, %v2915_v49  ;;  %v7877_v53 = vsel %vm693_vm9, %v7860_v11, %v692_v41  ;;  %v1603_v49 = vld [vmem:[#allocation20 + $0xf8] sm:$0xff] }
 0x4c2   :  { %v2546_v37 = vld [vmem:[#allocation20 + $0x1e70] sm:$0xff]  ;;  %3563 = vmatpush.msrb.mxu0 %v2506_v3  ;;  %v683_v3 = vadd.f32 %v682_v16, %v681_v44  ;;  %v1663_v41 = vld [vmem:[#allocation20 + $0x2d8] sm:$0xff] }
 0x4c3   :  { %v2350_v2 = vld [vmem:[#allocation20 + $0x1850] sm:$0xff]  ;;  %3589 = vmatpush.msrb.mxu1 %v2546_v37  ;;  %v3255_v37 = vadd.f32 %v3254_v34, %v3235_v33  ;;  %v2955_v14 = vadd.f32 %v7841_v35, %v2935_v40  ;;  %v1599_v33 = vld [vmem:[#allocation20 + $0xd8] sm:$0xff] }
 0x4c4   :  { %v2414_v5 = vld [vmem:[#allocation20 + $0x1a50] sm:$0xff]  ;;  %3530 = vmatpush.msrb.mxu2 %v2350_v2  ;;  %v548_v2 = vadd.f32 %v547_v42, %v546_v15  ;;  %v1739_v15 = vld [vmem:[#allocation20 + $0x538] sm:$0xff] }
 0x4c5   :  { %v2502_v28 = vld [vmem:[#allocation20 + $0x1d10] sm:$0xff]  ;;  %3550 = vmatpush.msrb.mxu3 %v2414_v5  ;;  %v1623_v5 = vld [vmem:[#allocation20 + $0x198] sm:$0xff]  ;;  %v3275_v23 = vadd.f32 %v3274_v21, %v3255_v37 }
 0x4c6   :  { %v2542_v6 = vld [vmem:[#allocation20 + $0x1e50] sm:$0xff]  ;;  %3564 = vmatpush.msrb.mxu0 %v2502_v28  ;;  %v1751_v28 = vld [vmem:[#allocation20 + $0x598] sm:$0xff] }
 0x4c7   :  { %v2346_v7 = vld [vmem:[#allocation20 + $0x1830] sm:$0xff]  ;;  %3590 = vmatpush.msrb.mxu1 %v2542_v6  ;;  %v684_v6 = vrot.slane %v683_v3, 2  ;;  %v1667_v42 = vld [vmem:[#allocation20 + $0x2f8] sm:$0xff] }
 0x4c8   :  { %v2410_v55 = vld [vmem:[#allocation20 + $0x1a30] sm:$0xff]  ;;  %3531 = vmatpush.msrb.mxu2 %v2346_v7  ;;  %v1595_v34 = vld [vmem:[#allocation20 + $0xb8] sm:$0xff] }
 0x4c9   :  { %v2498_v22 = vld [vmem:[#allocation20 + $0x1cf0] sm:$0xff]  ;;  %3551 = vmatpush.msrb.mxu3 %v2410_v55  ;;  %v1683_v55 = vld [vmem:[#allocation20 + $0x378] sm:$0xff] }
 0x4ca   :  { %v2538_v51 = vld [vmem:[#allocation20 + $0x1e30] sm:$0xff]  ;;  %3565 = vmatpush.msrb.mxu0 %v2498_v22  ;;  %v685_v22 = vadd.f32 %v684_v6, %v683_v3  ;;  %v1659_v40 = vld [vmem:[#allocation20 + $0x2b8] sm:$0xff] }
 0x4cb   :  { %v2342_v38 = vld [vmem:[#allocation20 + $0x1810] sm:$0xff]  ;;  %3591 = vmatpush.msrb.mxu1 %v2538_v51  ;;  %v3921_v51 = vrot.slane %v3275_v23, 4  ;;  %v1811_v3 = vld [vmem:[#allocation20 + $0x778] sm:$0xff] }
 0x4cc   :  { %v2406_v60 = vld [vmem:[#allocation20 + $0x1a10] sm:$0xff]  ;;  %3532 = vmatpush.msrb.mxu2 %v2342_v38  ;;  %v7881_v38 = vmul.f32 %v7877_v53, %v548_v2  ;;  %v686_v11 = vrot.slane %v685_v22, 1  ;;  %v1591_v37 = vld [vmem:[#allocation20 + $0x98] sm:$0xff] }
 0x4cd   :  { %v2494_v25 = vld [vmem:[#allocation20 + $0x1cd0] sm:$0xff]  ;;  %3552 = vmatpush.msrb.mxu3 %v2406_v60  ;;  %3533 = vmatmul.f32.vlgmr.msrb.gmra.mxu2 %v6028_v50  ;;  %v1615_v60 = vld [vmem:[#allocation20 + $0x158] sm:$0xff]  ;;  %v3923_v35 = vsel %vm754_vm15, %v2955_v14, %v3921_v51 }
 0x4ce   :  { %v2534_v59 = vld [vmem:[#allocation20 + $0x1e10] sm:$0xff]  ;;  %3566 = vmatpush.msrb.mxu0 %v2494_v25  ;;  %3553 = vmatmul.f32.vlgmr.msrb.gmra.mxu3 %v6029_v1  ;;  %v1743_v25 = vld [vmem:[#allocation20 + $0x558] sm:$0xff]  ;;  %3927 = vst [vmem:[#allocation3] sm:$0xff] %v3923_v35  ;;  %v687_v24 = vadd.f32 %v686_v11, %v685_v22  ;;  %v6031_v1 = vld.sshfl [vmem:[#allocation1 + $0x30] sm:$0xff pattern:$0x75316420] }
 0x4cf   :  { %3592 = vmatpush.msrb.mxu1 %v2534_v59  ;;  %v2490_v31 = vld [vmem:[#allocation20 + $0x1cb0] sm:$0xff]  ;;  %3617 = vmatpush.msra.mxu2 %v1699_v57  ;;  %v1096_v57 = vpop.xlane.xlu1 %1095  ;;  %v1807_v21 = vld [vmem:[#allocation20 + $0x758] sm:$0xff] }
 0x4d0   :  { %v6030_v43 = vld.sshfl [vmem:[#allocation1 + $0x38] sm:$0xff pattern:$0x75316420]  ;;  %3637 = vmatpush.msra.mxu3 %v1763_v9  ;;  %3567 = vmatpush.msrb.mxu0 %v2490_v31  ;;  %v696_v9 = vmul.f32 %v7877_v53, %v687_v24  ;;  %v1097_v50 = vsel %vm210_vm3, %v1096_v57, 0.0  ;;  %v1735_v31 = vld [vmem:[#allocation20 + $0x518] sm:$0xff] }
 0x4d1   :  { %5796 = vmatmul.msk.f32.vlgmr.msrb.gmra.mxu1 %vm2622_vm7, %v6030_v43  ;;  %v2486_v62 = vld [vmem:[#allocation20 + $0x1c90] sm:$0xff]  ;;  %3618 = vmatpush.msra.mxu2 %v1695_v19  ;;  %v1823_v19 = vld [vmem:[#allocation20 + $0x7d8] sm:$0xff]  ;;  %v1098_v44 = vrot.slane %v1097_v50, 4 }
 0x4d2   :  { %3597 = vmatpush.msra.mxu1 %v1635_v56  ;;  %3638 = vmatpush.msra.mxu3 %v1759_v27  ;;  %v2482_v26 = vld [vmem:[#allocation20 + $0x1c70] sm:$0xff]  ;;  %v697_v56 = vmul.f32 %v7881_v38, %v7881_v38  ;;  %v1731_v43 = vld [vmem:[#allocation20 + $0x4f8] sm:$0xff] }
 0x4d3   :  { %3568 = vmatpush.msrb.mxu0 %v2486_v62  ;;  %3619 = vmatpush.msra.mxu2 %v1691_v58  ;;  %v2478_v7 = vld [vmem:[#allocation20 + $0x1c50] sm:$0xff]  ;;  %v1099_v27 = vadd.f32 %v1098_v44, %v1097_v50  ;;  %v1727_v62 = vld [vmem:[#allocation20 + $0x4d8] sm:$0xff] }
 0x4d4   :  { %3598 = vmatpush.msra.mxu1 %v1631_v17  ;;  %3639 = vmatpush.msra.mxu3 %v1755_v20  ;;  %v2474_v36 = vld [vmem:[#allocation20 + $0x1c30] sm:$0xff]  ;;  %v698_v45 = vsub.f32 %v696_v9, %v697_v56  ;;  %v1819_v17 = vld [vmem:[#allocation20 + $0x7b8] sm:$0xff] }
 0x4d5   :  { %3569 = vmatpush.msrb.mxu0 %v2482_v26  ;;  %3620 = vmatpush.msra.mxu2 %v1687_v61  ;;  %v2470_v59 = vld [vmem:[#allocation20 + $0x1c10] sm:$0xff]  ;;  %v1815_v58 = vld [vmem:[#allocation20 + $0x798] sm:$0xff]  ;;  %v3931_v50 = vld [vmem:[#allocation3] sm:$0x33] }
 0x4d6   :  { %3599 = vmatpush.msra.mxu1 %v1627_v39  ;;  %3640 = vmatpush.msra.mxu3 %v1751_v28  ;;  %v7888_v16 = vadd.f32 1e-05, %v698_v45  ;;  %v1100_v39 = vrot.slane %v1099_v27, 2  ;;  %v1723_v20 = vld [vmem:[#allocation20 + $0x4b8] sm:$0xff] }
 0x4d7   :  { %3570 = vmatpush.msrb.mxu0 %v2478_v7  ;;  %3621 = vmatpush.msra.mxu2 %v1683_v55  ;;  %v1655_v26 = vld [vmem:[#allocation20 + $0x298] sm:$0xff] }
 0x4d8   :  { %3600 = vmatpush.msra.mxu1 %v1623_v5  ;;  %3641 = vmatpush.msra.mxu3 %v1747_v63  ;;  %5971 = vrsqrt.f32 %v7888_v16  ;;  %v1719_v61 = vld [vmem:[#allocation20 + $0x498] sm:$0xff]  ;;  %v1101_v2 = vadd.f32 %v1100_v39, %v1099_v27  ;;  %vm706_vm2 = vweird.f32 %v7888_v16 }
 0x4d9   :  { %3571 = vmatpush.msrb.mxu0 %v2474_v36  ;;  %3622 = vmatpush.msra.mxu2 %v1679_v30  ;;  %v1587_v5 = vld [vmem:[#allocation20 + $0x78] sm:$0xff] }
 0x4da   :  { %3601 = vmatpush.msra.mxu1 %v1619_v48  ;;  %3642 = vmatpush.msra.mxu3 %v1743_v25  ;;  %v1651_v28 = vld [vmem:[#allocation20 + $0x278] sm:$0xff]  ;;  %v1235_v48 = vpop.xlane.xlu2 %1234  ;;  %v1102_v30 = vrot.slane %v1101_v2, 1 }
 0x4db   :  { %3572 = vmatpush.msrb.mxu0 %v2470_v59  ;;  %3623 = vmatpush.msra.mxu2 %v1675_v13  ;;  %v1715_v6 = vld [vmem:[#allocation20 + $0x478] sm:$0xff]  ;;  %v1236_v36 = vsel %vm210_vm3, %v1235_v48, 0.0 }
 0x4dc   :  { %3602 = vmatpush.msra.mxu1 %v1615_v60  ;;  %3573 = vmatmul.f32.vlgmr.msrb.gmra.mxu0 %v6031_v1  ;;  %v1803_v23 = vld [vmem:[#allocation20 + $0x738] sm:$0xff]  ;;  %v1237_v25 = vrot.slane %v1236_v36, 4  ;;  %v1103_v9 = vadd.f32 %v1102_v30, %v1101_v2 }
 0x4dd   :  { %3643 = vmatpush.msra.mxu3 %v1739_v15  ;;  %3657 = vmatpush.msra.mxu0 %v1827_v10  ;;  %v1583_v55 = vld [vmem:[#allocation20 + $0x58] sm:$0xff] }
 0x4de   :  { %3603 = vmatpush.msra.mxu1 %v1611_v32  ;;  %3624 = vmatpush.msra.mxu2 %v1671_v46  ;;  %v7891_v7 = vpop.eup %5971  ;;  %v1647_v14 = vld [vmem:[#allocation20 + $0x258] sm:$0xff]  ;;  %v1238_v15 = vadd.f32 %v1237_v25, %v1236_v36 }
 0x4df   :  { %3644 = vmatpush.msra.mxu3 %v1735_v31  ;;  %3658 = vmatpush.msra.mxu0 %v1823_v19  ;;  %v701_v63 = vmul.f32 %v7891_v7, %v7888_v16  ;;  %v1711_v22 = vld [vmem:[#allocation20 + $0x458] sm:$0xff]  ;;  %vm707_vm10 = vweird.f32 %v7891_v7 }
 0x4e0   :  { %3604 = vmatpush.msra.mxu1 %v1607_v29  ;;  %3625 = vmatpush.msra.mxu2 %v1667_v42  ;;  %v1799_v51 = vld [vmem:[#allocation20 + $0x718] sm:$0xff]  ;;  %v1239_v29 = vrot.slane %v1238_v15, 2  ;;  %vm708_vm5 = vmor %vm706_vm2, %vm707_vm10  ;;  %vm3944_vm2 = vcmask 1043584  }
 0x4e1   :  { %3645 = vmatpush.msra.mxu3 %v1731_v43  ;;  %3659 = vmatpush.msra.mxu0 %v1819_v17  ;;  %v1579_v11 = vld [vmem:[#allocation20 + $0x38] sm:$0xff]  ;;  %v702_v35 = vmul.f32 %v7891_v7, %v701_v63  ;;  %v3933_v43 = vsub.f32 %v3931_v50, %v7881_v38  ;;  %v7906_v17 = vmul.f32 %v1103_v9, %v7877_v53 }
 0x4e2   :  { %3605 = vmatpush.msra.mxu1 %v1603_v49  ;;  %3626 = vmatpush.msra.mxu2 %v1663_v41  ;;  %v1643_v60 = vld [vmem:[#allocation20 + $0x238] sm:$0xff]  ;;  %v1240_v44 = vadd.f32 %v1239_v29, %v1238_v15 }
 0x4e3   :  { %3646 = vmatpush.msra.mxu3 %v1727_v62  ;;  %3660 = vmatpush.msra.mxu0 %v1815_v58  ;;  %v1707_v59 = vld [vmem:[#allocation20 + $0x438] sm:$0xff]  ;;  %v703_v10 = vmul.f32 0.5, %v702_v35 }
 0x4e4   :  { %3606 = vmatpush.msra.mxu1 %v1599_v33  ;;  %3627 = vmatpush.msra.mxu2 %v1659_v40  ;;  %v1795_v13 = vld [vmem:[#allocation20 + $0x6f8] sm:$0xff]  ;;  %v1241_v16 = vrot.slane %v1240_v44, 1 }
 0x4e5   :  { %3647 = vmatpush.msra.mxu3 %v1723_v20  ;;  %3661 = vmatpush.msra.mxu0 %v1811_v3  ;;  %v1575_v24 = vld [vmem:[#allocation20 + $0x18] sm:$0xff]  ;;  %v704_v46 = vsub.f32 1.5, %v703_v10  ;;  %v1245_v20 = vmul.f32 %v7906_v17, %v7906_v17 }
 0x4e6   :  { %3607 = vmatpush.msra.mxu1 %v1595_v34  ;;  %3628 = vmatpush.msra.mxu2 %v1655_v26  ;;  %v1639_v32 = vld [vmem:[#allocation20 + $0x218] sm:$0xff]  ;;  %v1242_v58 = vadd.f32 %v1241_v16, %v1240_v44 }
 0x4e7   :  { %3648 = vmatpush.msra.mxu3 %v1719_v61  ;;  %3662 = vmatpush.msra.mxu0 %v1807_v21  ;;  %v1703_v57 = vld [vmem:[#allocation20 + $0x418] sm:$0xff]  ;;  %v705_v45 = vmul.f32 %v7891_v7, %v704_v46 }
 0x4e8   :  { %3608 = vmatpush.msra.mxu1 %v1591_v37  ;;  %3629 = vmatpush.msra.mxu2 %v1651_v28  ;;  %v1791_v56 = vld [vmem:[#allocation20 + $0x6d8] sm:$0xff]  ;;  %v1244_v3 = vmul.f32 %v1242_v58, %v7877_v53 }
 0x4e9   :  { %3649 = vmatpush.msra.mxu3 %v1715_v6  ;;  %3663 = vmatpush.msra.mxu0 %v1803_v23  ;;  %v1891_v1 = vld [vmem:[#allocation20 + $0x9f8] sm:$0xff] }
 0x4ea   :  { %3609 = vmatpush.msra.mxu1 %v1587_v5  ;;  %3630 = vmatpush.msra.mxu2 %v1647_v14  ;;  %v1955_v31 = vld [vmem:[#allocation20 + $0xbf8] sm:$0xff]  ;;  %v1246_v2 = vsub.f32 %v1244_v3, %v1245_v20  ;;  %v7941_v3 = vstv %s7928_s9  ;;  %s5860_s9 = sld [smem:[#allocation18 + $0xb]] }
 0x4eb   :  { %3650 = vmatpush.msra.mxu3 %v1711_v22  ;;  %3664 = vmatpush.msra.mxu0 %v1799_v51  ;;  %v2019_v19 = vld [vmem:[#allocation20 + $0xdf8] sm:$0xff] }
 0x4ec   :  { %3610 = vmatpush.msra.mxu1 %v1583_v55  ;;  %3631 = vmatpush.msra.mxu2 %v1643_v60  ;;  %v1787_v49 = vld [vmem:[#allocation20 + $0x6b8] sm:$0xff] }
 0x4ed   :  { %3651 = vmatpush.msra.mxu3 %v1707_v59  ;;  %3665 = vmatpush.msra.mxu0 %v1795_v13  ;;  %v1887_v42 = vld [vmem:[#allocation20 + $0x9d8] sm:$0xff] }
 0x4ee   :  { %3611 = vmatpush.msra.mxu1 %v1579_v11  ;;  %3632 = vmatpush.msra.mxu2 %v1639_v32  ;;  %v1951_v27 = vld [vmem:[#allocation20 + $0xbd8] sm:$0xff] }
 0x4ef   :  { %3652 = vmatpush.msra.mxu3 %v1703_v57  ;;  %3666 = vmatpush.msra.mxu0 %v1791_v56  ;;  %v2015_v33 = vld [vmem:[#allocation20 + $0xdd8] sm:$0xff] }
 0x4f0   :  { %3612 = vmatpush.msra.mxu1 %v1575_v24  ;;  %3633 = vmatmul.f32.vlgmr.msra.gmra.mxu2 %v7257_v54  ;;  %v1783_v54 = vld [vmem:[#allocation20 + $0x698] sm:$0xff] }
 0x4f1   :  { %3613 = vmatmul.f32.vlgmr.msra.gmra.mxu1 %v7255_v8  ;;  %3653 = vmatmul.f32.vlgmr.msra.gmra.mxu3 %v8852_v4  ;;  %v7910_v8 = vsel %vm708_vm5, %v7891_v7, %v705_v45  ;;  %v1883_v41 = vld [vmem:[#allocation20 + $0x9b8] sm:$0xff]  ;;  %v7916_v7 = vadd.f32 1e-05, %v1246_v2 }
 0x4f2   :  { %3677 = vmatpush.msrb.mxu1 %v1891_v1  ;;  %3697 = vmatpush.msrb.mxu2 %v1955_v31  ;;  %v3935_v62 = vmul.f32 %v3933_v43, %v7910_v8  ;;  %v1947_v34 = vld [vmem:[#allocation20 + $0xbb8] sm:$0xff] }
 0x4f3   :  { %3717 = vmatpush.msrb.mxu3 %v2019_v19  ;;  %3667 = vmatpush.msra.mxu0 %v1787_v49  ;;  %v2011_v40 = vld [vmem:[#allocation20 + $0xdb8] sm:$0xff]  ;;  %5973 = vrsqrt.f32 %v7916_v7  ;;  %vm1254_vm9 = vweird.f32 %v7916_v7 }
 0x4f4   :  { %3678 = vmatpush.msrb.mxu1 %v1887_v42  ;;  %3698 = vmatpush.msrb.mxu2 %v1951_v27  ;;  %v1779_v4 = vld [vmem:[#allocation20 + $0x678] sm:$0xff]  ;;  %3947 = vst [vmem:[#allocation4 + $0x4] sm:$0x33] %v3935_v62  ;;  %v4366_v62 = vstv %s7920_s7  ;;  %s5849_s7 = sld [smem:[#allocation18 + $0x4]] }
 0x4f5   :  { %3718 = vmatpush.msrb.mxu3 %v2015_v33  ;;  %v1879_v39 = vld [vmem:[#allocation20 + $0x998] sm:$0xff]  ;;  %3668 = vmatpush.msra.mxu0 %v1783_v54 }
 0x4f6   :  { %3679 = vmatpush.msrb.mxu1 %v1883_v41  ;;  %v1943_v37 = vld [vmem:[#allocation20 + $0xb98] sm:$0xff]  ;;  %3699 = vmatpush.msrb.mxu2 %v1947_v34  ;;  %v7936_v34 = vstv %s7924_s29  ;;  %s5851_s29 = sld [smem:[#allocation18 + $0x5]] }
 0x4f7   :  { %v2007_v26 = vld [vmem:[#allocation20 + $0xd98] sm:$0xff]  ;;  %3719 = vmatpush.msrb.mxu3 %v2011_v40  ;;  %3669 = vmatpush.msra.mxu0 %v1779_v4  ;;  %v3937_v40 = vld [vmem:[#allocation3] sm:$0xcc] }
 0x4f8   :  { %v1775_v61 = vld [vmem:[#allocation20 + $0x658] sm:$0xff]  ;;  %3680 = vmatpush.msrb.mxu1 %v1879_v39  ;;  %3700 = vmatpush.msrb.mxu2 %v1943_v37  ;;  %v3939_v37 = vsub.f32 %v3937_v40, %v7906_v17 }
 0x4f9   :  { %v1875_v21 = vld [vmem:[#allocation20 + $0x978] sm:$0xff]  ;;  %3720 = vmatpush.msrb.mxu3 %v2007_v26  ;;  %3670 = vmatpush.msra.mxu0 %v1775_v61  ;;  %v7922_v24 = vpop.eup %5973 }
 0x4fa   :  { %v1939_v5 = vld [vmem:[#allocation20 + $0xb78] sm:$0xff]  ;;  %3681 = vmatpush.msrb.mxu1 %v1875_v21  ;;  %vm1255_vm6 = vweird.f32 %v7922_v24 }
 0x4fb   :  { %v2003_v28 = vld [vmem:[#allocation20 + $0xd78] sm:$0xff]  ;;  %3701 = vmatpush.msrb.mxu2 %v1939_v5  ;;  %v7932_v41 = vld [vmem:[#allocation4 + $0x4] sm:$0x33]  ;;  %vm1256_vm10 = vmor %vm1254_vm9, %vm1255_vm6  ;;  %vm3948_vm9 = vcmask 128004  }
 0x4fc   :  { %v1771_v6 = vld [vmem:[#allocation20 + $0x638] sm:$0xff]  ;;  %3721 = vmatpush.msrb.mxu3 %v2003_v28  ;;  %v3955_v58 = vld [vmem:[#allocation4] sm:$0x33]  ;;  %v4367_v28 = vmul.f32 %v4366_v62, %v7932_v41 }
 0x4fd   :  { %v1871_v23 = vld [vmem:[#allocation20 + $0x958] sm:$0xff]  ;;  %3671 = vmatpush.msra.mxu0 %v1771_v6  ;;  %v4340_v6 = vmul.f32 %v7936_v34, %v3955_v58 }
 0x4fe   :  { %v1935_v53 = vld [vmem:[#allocation20 + $0xb58] sm:$0xff]  ;;  %3682 = vmatpush.msrb.mxu1 %v1871_v23  ;;  %4371 = vrot.lane.b32.xlu2 %v4367_v28, %s6319_s21 }
 0x4ff   :  { %v1999_v55 = vld [vmem:[#allocation20 + $0xd58] sm:$0xff]  ;;  %3702 = vmatpush.msrb.mxu2 %v1935_v53  ;;  %4346 = vrot.lane.b32.xlu0 %v4340_v6, %s6320_s0  ;;  %v8012_v6 = vstv %s7990_s17  ;;  %s5874_s17 = sld [smem:[#allocation18 + $0x13]] }
 0x500   :  { %v1767_v14 = vld [vmem:[#allocation20 + $0x618] sm:$0xff]  ;;  %3722 = vmatpush.msrb.mxu3 %v1999_v55 }
 0x501   :  { %v1867_v48 = vld [vmem:[#allocation20 + $0x938] sm:$0xff]  ;;  %3672 = vmatpush.msra.mxu0 %v1767_v14 }
 0x502   :  { %v1931_v63 = vld [vmem:[#allocation20 + $0xb38] sm:$0xff]  ;;  %3683 = vmatpush.msrb.mxu1 %v1867_v48  ;;  %3673 = vmatmul.f32.vlgmr.msra.gmra.mxu0 %v8853_v47  ;;  %v1249_v47 = vmul.f32 %v7922_v24, %v7916_v7  ;;  %v3972_v7 = vmul.f32 %v7941_v3, %v3955_v58 }
 0x503   :  { %v1995_v22 = vld [vmem:[#allocation20 + $0xd38] sm:$0xff]  ;;  %3703 = vmatpush.msrb.mxu2 %v1931_v63 }
 0x504   :  { %v2083_v51 = vld [vmem:[#allocation20 + $0xff8] sm:$0xff]  ;;  %3723 = vmatpush.msrb.mxu3 %v1995_v22  ;;  %v1250_v29 = vmul.f32 %v7922_v24, %v1249_v47  ;;  %3978 = vrot.lane.b32.xlu1 %v3972_v7, %s6320_s0 }
 0x505   :  { %v1863_v36 = vld [vmem:[#allocation20 + $0x918] sm:$0xff]  ;;  %3737 = vmatpush.msrb.mxu0 %v2083_v51 }
 0x506   :  { %v1927_v30 = vld [vmem:[#allocation20 + $0xb18] sm:$0xff]  ;;  %3684 = vmatpush.msrb.mxu1 %v1863_v36  ;;  %v1251_v19 = vmul.f32 0.5, %v1250_v29 }
 0x507   :  { %v1991_v11 = vld [vmem:[#allocation20 + $0xd18] sm:$0xff]  ;;  %3704 = vmatpush.msrb.mxu2 %v1927_v30 }
 0x508   :  { %v2079_v60 = vld [vmem:[#allocation20 + $0xfd8] sm:$0xff]  ;;  %3724 = vmatpush.msrb.mxu3 %v1991_v11  ;;  %v1252_v43 = vsub.f32 1.5, %v1251_v19 }
 0x509   :  { %v1859_v25 = vld [vmem:[#allocation20 + $0x8f8] sm:$0xff]  ;;  %3738 = vmatpush.msrb.mxu0 %v2079_v60 }
 0x50a   :  { %v1923_v35 = vld [vmem:[#allocation20 + $0xaf8] sm:$0xff]  ;;  %3685 = vmatpush.msrb.mxu1 %v1859_v25  ;;  %v1253_v4 = vmul.f32 %v7922_v24, %v1252_v43  ;;  %v4040_v43 = vstv %s7970_s1  ;;  %s5864_s1 = sld [smem:[#allocation18 + $0xd]] }
 0x50b   :  { %v1987_v59 = vld [vmem:[#allocation20 + $0xcf8] sm:$0xff]  ;;  %3705 = vmatpush.msrb.mxu2 %v1923_v35 }
 0x50c   :  { %v2075_v13 = vld [vmem:[#allocation20 + $0xfb8] sm:$0xff]  ;;  %3725 = vmatpush.msrb.mxu3 %v1987_v59  ;;  %v7947_v21 = vsel %vm1256_vm10, %v7922_v24, %v1253_v4  ;;  %v3998_v59 = vstv %s7955_s11  ;;  %v4408_v24 = vstv %s7959_s19  ;;  %vm3952_vm10 = vcmask 130054   ;;  %s5858_s11 = sld [smem:[#allocation18 + $0xa]] }
 0x50d   :  { %v1855_v32 = vld [vmem:[#allocation20 + $0x8d8] sm:$0xff]  ;;  %3739 = vmatpush.msrb.mxu0 %v2075_v13  ;;  %v3941_v23 = vmul.f32 %v3939_v37, %v7947_v21  ;;  %v4387_v13 = vstv %s7957_s18  ;;  %s5868_s18 = sld [smem:[#allocation18 + $0x10]] }
 0x50e   :  { %v1919_v15 = vld [vmem:[#allocation20 + $0xad8] sm:$0xff]  ;;  %3686 = vmatpush.msrb.mxu1 %v1855_v32  ;;  %v3999_v32 = vmul.f32 %v3998_v59, %v7932_v41  ;;  %s5855_s19 = sld [smem:[#allocation18 + $0x8]] }
 0x50f   :  { %v1983_v10 = vld [vmem:[#allocation20 + $0xcd8] sm:$0xff]  ;;  %3706 = vmatpush.msrb.mxu2 %v1919_v15  ;;  %3951 = vst [vmem:[#allocation4 + $0x4] sm:$0xcc] %v3941_v23  ;;  %v4388_v15 = vmul.f32 %v4387_v13, %v7932_v41 }
 0x510   :  { %v2071_v57 = vld [vmem:[#allocation20 + $0xf98] sm:$0xff]  ;;  %3726 = vmatpush.msrb.mxu3 %v1983_v10  ;;  %v4409_v10 = vmul.f32 %v4408_v24, %v7932_v41  ;;  %4003 = vrot.lane.b32.xlu2 %v3999_v32, %s6319_s21 }
 0x511   :  { %v1851_v56 = vld [vmem:[#allocation20 + $0x8b8] sm:$0xff]  ;;  %3740 = vmatpush.msrb.mxu0 %v2071_v57  ;;  %4392 = vrot.lane.b32.xlu0 %v4388_v15, %s6322_s8 }
 0x512   :  { %v1915_v9 = vld [vmem:[#allocation20 + $0xab8] sm:$0xff]  ;;  %3687 = vmatpush.msrb.mxu1 %v1851_v56  ;;  %4413 = vrot.lane.b32.xlu1 %v4409_v10, %s6321_s22 }
 0x513   :  { %v1979_v46 = vld [vmem:[#allocation20 + $0xcb8] sm:$0xff]  ;;  %3707 = vmatpush.msrb.mxu2 %v1915_v9 }
 0x514   :  { %v2067_v50 = vld [vmem:[#allocation20 + $0xf78] sm:$0xff]  ;;  %3727 = vmatpush.msrb.mxu3 %v1979_v46 }
 0x515   :  { %v1847_v1 = vld [vmem:[#allocation20 + $0x898] sm:$0xff]  ;;  %3741 = vmatpush.msrb.mxu0 %v2067_v50 }
 0x516   :  { %v1911_v31 = vld [vmem:[#allocation20 + $0xa98] sm:$0xff]  ;;  %3688 = vmatpush.msrb.mxu1 %v1847_v1 }
 0x517   :  { %v1975_v44 = vld [vmem:[#allocation20 + $0xc98] sm:$0xff]  ;;  %3708 = vmatpush.msrb.mxu2 %v1911_v31 }
 0x518   :  { %v2063_v45 = vld [vmem:[#allocation20 + $0xf58] sm:$0xff]  ;;  %3728 = vmatpush.msrb.mxu3 %v1975_v44 }
 0x519   :  { %v1843_v49 = vld [vmem:[#allocation20 + $0x878] sm:$0xff]  ;;  %3742 = vmatpush.msrb.mxu0 %v2063_v45 }
 0x51a   :  { %v1907_v42 = vld [vmem:[#allocation20 + $0xa78] sm:$0xff]  ;;  %3689 = vmatpush.msrb.mxu1 %v1843_v49 }
 0x51b   :  { %v1971_v27 = vld [vmem:[#allocation20 + $0xc78] sm:$0xff]  ;;  %3709 = vmatpush.msrb.mxu2 %v1907_v42 }
 0x51c   :  { %v2059_v33 = vld [vmem:[#allocation20 + $0xf38] sm:$0xff]  ;;  %3729 = vmatpush.msrb.mxu3 %v1971_v27  ;;  %v4019_v27 = vstv %s7972_s30  ;;  %s5865_s30 = sld [smem:[#allocation18 + $0xe]] }
 0x51d   :  { %v1839_v16 = vld [vmem:[#allocation20 + $0x858] sm:$0xff]  ;;  %3743 = vmatpush.msrb.mxu0 %v2059_v33  ;;  %v4020_v58 = vmul.f32 %v4019_v27, %v7932_v41 }
 0x51e   :  { %v1903_v54 = vld [vmem:[#allocation20 + $0xa58] sm:$0xff]  ;;  %3690 = vmatpush.msrb.mxu1 %v1839_v16 }
 0x51f   :  { %v1967_v39 = vld [vmem:[#allocation20 + $0xc58] sm:$0xff]  ;;  %3710 = vmatpush.msrb.mxu2 %v1903_v54  ;;  %v4041_v54 = vmul.f32 %v4040_v43, %v7932_v41  ;;  %4024 = vrot.lane.b32.xlu0 %v4020_v58, %s6322_s8  ;;  %v8009_v41 = vstv %s7988_s16  ;;  %s5870_s16 = sld [smem:[#allocation18 + $0x11]] }
 0x520   :  { %v2055_v20 = vld [vmem:[#allocation20 + $0xf18] sm:$0xff]  ;;  %3730 = vmatpush.msrb.mxu3 %v1967_v39 }
 0x521   :  { %v1835_v26 = vld [vmem:[#allocation20 + $0x838] sm:$0xff]  ;;  %3744 = vmatpush.msrb.mxu0 %v2055_v20  ;;  %4045 = vrot.lane.b32.xlu2 %v4041_v54, %s6321_s22 }
 0x522   :  { %v1899_v61 = vld [vmem:[#allocation20 + $0xa38] sm:$0xff]  ;;  %3691 = vmatpush.msrb.mxu1 %v1835_v26  ;;  %v8003_v26 = vld [vmem:[#allocation4 + $0x4] sm:$0xcc] }
 0x523   :  { %v1963_v2 = vld [vmem:[#allocation20 + $0xc38] sm:$0xff]  ;;  %3711 = vmatpush.msrb.mxu2 %v1899_v61  ;;  %v4482_v61 = vstv %s7986_s3  ;;  %s5875_s3 = sld [smem:[#allocation18 + $0x14]] }
 0x524   :  { %v2051_v5 = vld [vmem:[#allocation20 + $0xef8] sm:$0xff]  ;;  %3731 = vmatpush.msrb.mxu3 %v1963_v2  ;;  %v8006_v2 = vld [vmem:[#allocation4] sm:$0xcc] }
 0x525   :  { %v1831_v53 = vld [vmem:[#allocation20 + $0x818] sm:$0xff]  ;;  %3745 = vmatpush.msrb.mxu0 %v2051_v5 }
 0x526   :  { %v1895_v55 = vld [vmem:[#allocation20 + $0xa18] sm:$0xff]  ;;  %3692 = vmatpush.msrb.mxu1 %v1831_v53 }
 0x527   :  { %v1959_v14 = vld [vmem:[#allocation20 + $0xc18] sm:$0xff]  ;;  %3712 = vmatpush.msrb.mxu2 %v1895_v55  ;;  %3693 = vmatmul.f32.vlgmr.msrb.gmra.mxu1 %v8854_v12 }
 0x528   :  { %v2047_v48 = vld [vmem:[#allocation20 + $0xed8] sm:$0xff]  ;;  %3732 = vmatpush.msrb.mxu3 %v1959_v14  ;;  %3713 = vmatmul.f32.vlgmr.msrb.gmra.mxu2 %v8855_v0  ;;  %v4483_v14 = vmul.f32 %v4482_v61, %v8003_v26 }
 0x529   :  { %v2147_v63 = vld [vmem:[#allocation20 + $0x11f8] sm:$0xff]  ;;  %3746 = vmatpush.msrb.mxu0 %v2047_v48  ;;  %3733 = vmatmul.f32.vlgmr.msrb.gmra.mxu3 %v8856_v18  ;;  %v4450_v48 = vmul.f32 %v8009_v41, %v8006_v2 }
 0x52a   :  { %v2211_v22 = vld [vmem:[#allocation20 + $0x13f8] sm:$0xff]  ;;  %3757 = vmatpush.msra.mxu1 %v2147_v63 }
 0x52b   :  { %v2275_v51 = vld [vmem:[#allocation20 + $0x15f8] sm:$0xff]  ;;  %3777 = vmatpush.msra.mxu2 %v2211_v22 }
 0x52c   :  { %v2043_v36 = vld [vmem:[#allocation20 + $0xeb8] sm:$0xff]  ;;  %3797 = vmatpush.msra.mxu3 %v2275_v51  ;;  %v4082_v51 = vmul.f32 %v8012_v6, %v8006_v2 }
 0x52d   :  { %v2143_v30 = vld [vmem:[#allocation20 + $0x11d8] sm:$0xff]  ;;  %3747 = vmatpush.msrb.mxu0 %v2043_v36 }
 0x52e   :  { %v2207_v11 = vld [vmem:[#allocation20 + $0x13d8] sm:$0xff]  ;;  %3758 = vmatpush.msra.mxu1 %v2143_v30 }
 0x52f   :  { %v2271_v60 = vld [vmem:[#allocation20 + $0x15d8] sm:$0xff]  ;;  %3778 = vmatpush.msra.mxu2 %v2207_v11 }
 0x530   :  { %v2039_v25 = vld [vmem:[#allocation20 + $0xe98] sm:$0xff]  ;;  %3798 = vmatpush.msra.mxu3 %v2271_v60 }
 0x531   :  { %v2139_v35 = vld [vmem:[#allocation20 + $0x11b8] sm:$0xff]  ;;  %3748 = vmatpush.msrb.mxu0 %v2039_v25 }
 0x532   :  { %v2203_v12 = vld [vmem:[#allocation20 + $0x13b8] sm:$0xff]  ;;  %3759 = vmatpush.msra.mxu1 %v2139_v35 }
 0x533   :  { %v2267_v0 = vld [vmem:[#allocation20 + $0x15b8] sm:$0xff]  ;;  %3779 = vmatpush.msra.mxu2 %v2203_v12  ;;  %v5834_v12 = vrot.slane %v4483_v14, 10 }
 0x534   :  { %v2035_v18 = vld [vmem:[#allocation20 + $0xe78] sm:$0xff]  ;;  %3799 = vmatpush.msra.mxu3 %v2267_v0  ;;  %v5830_v0 = vrot.slane %v4450_v48, 10 }
 0x535   :  { %v2135_v47 = vld [vmem:[#allocation20 + $0x1198] sm:$0xff]  ;;  %3749 = vmatpush.msrb.mxu0 %v2035_v18  ;;  %v5808_v18 = vrot.slane %v4082_v51, 10  ;;  %4491 = vrot.lane.b32.xlu2 %v5834_v12, %s6319_s21  ;;  %v4139_v51 = vstv %s8033_s5  ;;  %s5847_s5 = sld [smem:[#allocation18 + $0x3]] }
 0x536   :  { %v2199_v57 = vld [vmem:[#allocation20 + $0x1398] sm:$0xff]  ;;  %3760 = vmatpush.msra.mxu1 %v2135_v47  ;;  %4462 = vrot.lane.b32.xlu0 %v5830_v0, %s6320_s0  ;;  %v4140_v12 = vmul.f32 %v4139_v51, %v8003_v26 }
 0x537   :  { %v2263_v56 = vld [vmem:[#allocation20 + $0x1598] sm:$0xff]  ;;  %3780 = vmatpush.msra.mxu2 %v2199_v57  ;;  %4094 = vrot.lane.b32.xlu1 %v5808_v18, %s6320_s0 }
 0x538   :  { %v2031_v9 = vld [vmem:[#allocation20 + $0xe58] sm:$0xff]  ;;  %3800 = vmatpush.msra.mxu3 %v2263_v56 }
 0x539   :  { %v2131_v29 = vld [vmem:[#allocation20 + $0x1178] sm:$0xff]  ;;  %3750 = vmatpush.msrb.mxu0 %v2031_v9 }
 0x53a   :  { %v2195_v46 = vld [vmem:[#allocation20 + $0x1378] sm:$0xff]  ;;  %3761 = vmatpush.msra.mxu1 %v2131_v29 }
 0x53b   :  { %v2259_v50 = vld [vmem:[#allocation20 + $0x1578] sm:$0xff]  ;;  %3781 = vmatpush.msra.mxu2 %v2195_v46 }
 0x53c   :  { %v2027_v1 = vld [vmem:[#allocation20 + $0xe38] sm:$0xff]  ;;  %3801 = vmatpush.msra.mxu3 %v2259_v50 }
 0x53d   :  { %v2127_v31 = vld [vmem:[#allocation20 + $0x1158] sm:$0xff]  ;;  %3751 = vmatpush.msrb.mxu0 %v2027_v1 }
 0x53e   :  { %v2191_v19 = vld [vmem:[#allocation20 + $0x1358] sm:$0xff]  ;;  %3762 = vmatpush.msra.mxu1 %v2127_v31  ;;  %v4114_v31 = vstv %s8021_s2  ;;  %s5878_s2 = sld [smem:[#allocation18 + $0x16]] }
 0x53f   :  { %v2255_v44 = vld [vmem:[#allocation20 + $0x1558] sm:$0xff]  ;;  %3782 = vmatpush.msra.mxu2 %v2191_v19  ;;  %v4115_v54 = vmul.f32 %v4114_v31, %v8003_v26 }
 0x540   :  { %v2023_v45 = vld [vmem:[#allocation20 + $0xe18] sm:$0xff]  ;;  %3802 = vmatpush.msra.mxu3 %v2255_v44 }
 0x541   :  { %v2123_v49 = vld [vmem:[#allocation20 + $0x1138] sm:$0xff]  ;;  %3752 = vmatpush.msrb.mxu0 %v2023_v45  ;;  %v4507_v45 = vstv %s8023_s4  ;;  %s5880_s4 = sld [smem:[#allocation18 + $0x17]] }
 0x542   :  { %v2187_v42 = vld [vmem:[#allocation20 + $0x1338] sm:$0xff]  ;;  %3763 = vmatpush.msra.mxu1 %v2123_v49  ;;  %3753 = vmatmul.f32.vlgmr.msrb.gmra.mxu0 %v8857_v52  ;;  %v4532_v49 = vstv %s8025_s20  ;;  %v4508_v58 = vmul.f32 %v4507_v45, %v8003_v26  ;;  %s4919_s20 = sld [smem:[#allocation18]] }
 0x543   :  { %v2251_v33 = vld [vmem:[#allocation20 + $0x1538] sm:$0xff]  ;;  %3783 = vmatpush.msra.mxu2 %v2187_v42 }
 0x544   :  { %v2339_v16 = vld [vmem:[#allocation20 + $0x17f8] sm:$0xff]  ;;  %3803 = vmatpush.msra.mxu3 %v2251_v33 }
 0x545   :  { %v2119_v40 = vld [vmem:[#allocation20 + $0x1118] sm:$0xff]  ;;  %3817 = vmatpush.msra.mxu0 %v2339_v16 }
 0x546   :  { %v2183_v4 = vld [vmem:[#allocation20 + $0x1318] sm:$0xff]  ;;  %3764 = vmatpush.msra.mxu1 %v2119_v40  ;;  %v4533_v40 = vmul.f32 %v4532_v49, %v8003_v26 }
 0x547   :  { %v2247_v39 = vld [vmem:[#allocation20 + $0x1518] sm:$0xff]  ;;  %3784 = vmatpush.msra.mxu2 %v2183_v4 }
 0x548   :  { %v2335_v20 = vld [vmem:[#allocation20 + $0x17d8] sm:$0xff]  ;;  %3804 = vmatpush.msra.mxu3 %v2247_v39 }
 0x549   :  { %v2115_v37 = vld [vmem:[#allocation20 + $0x10f8] sm:$0xff]  ;;  %3818 = vmatpush.msra.mxu0 %v2335_v20 }
 0x54a   :  { %v2179_v52 = vld [vmem:[#allocation20 + $0x12f8] sm:$0xff]  ;;  %3765 = vmatpush.msra.mxu1 %v2115_v37 }
 0x54b   :  { %v2243_v5 = vld [vmem:[#allocation20 + $0x14f8] sm:$0xff]  ;;  %3785 = vmatpush.msra.mxu2 %v2179_v52  ;;  %v6033_v52 = vld.sshfl [vmem:[#allocation1 + $0x8] sm:$0xff pattern:$0x75316420] }
 0x54c   :  { %v2331_v28 = vld [vmem:[#allocation20 + $0x17b8] sm:$0xff]  ;;  %3805 = vmatpush.msra.mxu3 %v2243_v5  ;;  %v6034_v5 = vld.sshfl [vmem:[#allocation1 + $0x10] sm:$0xff pattern:$0x75316420] }
 0x54d   :  { %v2111_v23 = vld [vmem:[#allocation20 + $0x10d8] sm:$0xff]  ;;  %3819 = vmatpush.msra.mxu0 %v2331_v28  ;;  %v5812_v28 = vrot.slane %v4115_v54, 10 }
 0x54e   :  { %v2175_v7 = vld [vmem:[#allocation20 + $0x12d8] sm:$0xff]  ;;  %3766 = vmatpush.msra.mxu1 %v2111_v23  ;;  %v5837_v23 = vrot.slane %v4508_v58, 10 }
 0x54f   :  { %v2239_v53 = vld [vmem:[#allocation20 + $0x14d8] sm:$0xff]  ;;  %3786 = vmatpush.msra.mxu2 %v2175_v7  ;;  %v5840_v7 = vrot.slane %v4533_v40, 10  ;;  %4123 = vrot.lane.b32.xlu2 %v5812_v28, %s6319_s21 }
 0x550   :  { %v2327_v55 = vld [vmem:[#allocation20 + $0x1798] sm:$0xff]  ;;  %3806 = vmatpush.msra.mxu3 %v2239_v53  ;;  %4516 = vrot.lane.b32.xlu0 %v5837_v23, %s6322_s8 }
 0x551   :  { %v2107_v63 = vld [vmem:[#allocation20 + $0x10b8] sm:$0xff]  ;;  %3820 = vmatpush.msra.mxu0 %v2327_v55  ;;  %4541 = vrot.lane.b32.xlu1 %v5840_v7, %s6321_s22 }
 0x552   :  { %v2171_v22 = vld [vmem:[#allocation20 + $0x12b8] sm:$0xff]  ;;  %3767 = vmatpush.msra.mxu1 %v2107_v63 }
 0x553   :  { %v2235_v36 = vld [vmem:[#allocation20 + $0x14b8] sm:$0xff]  ;;  %3787 = vmatpush.msra.mxu2 %v2171_v22 }
 0x554   :  { %v2323_v30 = vld [vmem:[#allocation20 + $0x1778] sm:$0xff]  ;;  %3807 = vmatpush.msra.mxu3 %v2235_v36 }
 0x555   :  { %v2103_v11 = vld [vmem:[#allocation20 + $0x1098] sm:$0xff]  ;;  %3821 = vmatpush.msra.mxu0 %v2323_v30 }
 0x556   :  { %v2167_v60 = vld [vmem:[#allocation20 + $0x1298] sm:$0xff]  ;;  %3768 = vmatpush.msra.mxu1 %v2103_v11 }
 0x557   :  { %v2231_v25 = vld [vmem:[#allocation20 + $0x1498] sm:$0xff]  ;;  %3788 = vmatpush.msra.mxu2 %v2167_v60 }
 0x558   :  { %v2319_v35 = vld [vmem:[#allocation20 + $0x1758] sm:$0xff]  ;;  %3808 = vmatpush.msra.mxu3 %v2231_v25 }
 0x559   :  { %v2099_v32 = vld [vmem:[#allocation20 + $0x1078] sm:$0xff]  ;;  %3822 = vmatpush.msra.mxu0 %v2319_v35 }
 0x55a   :  { %v2163_v15 = vld [vmem:[#allocation20 + $0x1278] sm:$0xff]  ;;  %3769 = vmatpush.msra.mxu1 %v2099_v32 }
 0x55b   :  { %v2227_v47 = vld [vmem:[#allocation20 + $0x1478] sm:$0xff]  ;;  %3789 = vmatpush.msra.mxu2 %v2163_v15 }
 0x55c   :  { %v2315_v10 = vld [vmem:[#allocation20 + $0x1738] sm:$0xff]  ;;  %3809 = vmatpush.msra.mxu3 %v2227_v47 }
 0x55d   :  { %v2095_v57 = vld [vmem:[#allocation20 + $0x1058] sm:$0xff]  ;;  %3823 = vmatpush.msra.mxu0 %v2315_v10  ;;  %v5815_v10 = vrot.slane %v4140_v12, 10 }
 0x55e   :  { %v2159_v56 = vld [vmem:[#allocation20 + $0x1258] sm:$0xff]  ;;  %3770 = vmatpush.msra.mxu1 %v2095_v57 }
 0x55f   :  { %v2223_v9 = vld [vmem:[#allocation20 + $0x1458] sm:$0xff]  ;;  %3790 = vmatpush.msra.mxu2 %v2159_v56  ;;  %4148 = vrot.lane.b32.xlu0 %v5815_v10, %s6322_s8 }
 0x560   :  { %v2311_v29 = vld [vmem:[#allocation20 + $0x1718] sm:$0xff]  ;;  %3810 = vmatpush.msra.mxu3 %v2223_v9 }
 0x561   :  { %v2091_v46 = vld [vmem:[#allocation20 + $0x1038] sm:$0xff]  ;;  %3824 = vmatpush.msra.mxu0 %v2311_v29 }
 0x562   :  { %v2155_v50 = vld [vmem:[#allocation20 + $0x1238] sm:$0xff]  ;;  %3771 = vmatpush.msra.mxu1 %v2091_v46 }
 0x563   :  { %v2219_v1 = vld [vmem:[#allocation20 + $0x1438] sm:$0xff]  ;;  %3791 = vmatpush.msra.mxu2 %v2155_v50 }
 0x564   :  { %v2307_v19 = vld [vmem:[#allocation20 + $0x16f8] sm:$0xff]  ;;  %3811 = vmatpush.msra.mxu3 %v2219_v1 }
 0x565   :  { %v2087_v44 = vld [vmem:[#allocation20 + $0x1018] sm:$0xff]  ;;  %3825 = vmatpush.msra.mxu0 %v2307_v19 }
 0x566   :  { %v2151_v42 = vld [vmem:[#allocation20 + $0x1218] sm:$0xff]  ;;  %3772 = vmatpush.msra.mxu1 %v2087_v44 }
 0x567   :  { %v2215_v33 = vld [vmem:[#allocation20 + $0x1418] sm:$0xff]  ;;  %3792 = vmatpush.msra.mxu2 %v2151_v42  ;;  %v6035_v42 = vld.sshfl [vmem:[#allocation1 + $0x18] sm:$0xff pattern:$0x75316420] }
 0x568   :  { %v2303_v16 = vld [vmem:[#allocation20 + $0x16d8] sm:$0xff]  ;;  %3812 = vmatpush.msra.mxu3 %v2215_v33  ;;  %3793 = vmatmul.f32.vlgmr.msra.gmra.mxu2 %v6033_v52 }
 0x569   :  { %v2403_v4 = vld [vmem:[#allocation20 + $0x19f8] sm:$0xff]  ;;  %3826 = vmatpush.msra.mxu0 %v2303_v16  ;;  %3813 = vmatmul.f32.vlgmr.msra.gmra.mxu3 %v6034_v5 }
 0x56a   :  { %v2467_v39 = vld [vmem:[#allocation20 + $0x1bf8] sm:$0xff]  ;;  %3837 = vmatpush.msrb.mxu1 %v2403_v4 }
 0x56b   :  { %v6032_v20 = vld.sshfl [vmem:[#allocation1] sm:$0xff pattern:$0x75316420]  ;;  %3857 = vmatpush.msrb.mxu2 %v2467_v39 }
 0x56c   :  { %3773 = vmatmul.f32.vlgmr.msra.gmra.mxu1 %v6032_v20  ;;  %v2531_v37 = vld [vmem:[#allocation20 + $0x1df8] sm:$0xff] }
 0x56d   :  { %v2299_v53 = vld [vmem:[#allocation20 + $0x16b8] sm:$0xff]  ;;  %3877 = vmatpush.msrb.mxu3 %v2531_v37 }
 0x56e   :  { %v2399_v55 = vld [vmem:[#allocation20 + $0x19d8] sm:$0xff]  ;;  %3827 = vmatpush.msra.mxu0 %v2299_v53 }
 0x56f   :  { %v2463_v14 = vld [vmem:[#allocation20 + $0x1bd8] sm:$0xff]  ;;  %3838 = vmatpush.msrb.mxu1 %v2399_v55 }
 0x570   :  { %v2527_v48 = vld [vmem:[#allocation20 + $0x1dd8] sm:$0xff]  ;;  %3858 = vmatpush.msrb.mxu2 %v2463_v14 }
 0x571   :  { %v2295_v63 = vld [vmem:[#allocation20 + $0x1698] sm:$0xff]  ;;  %3878 = vmatpush.msrb.mxu3 %v2527_v48 }
 0x572   :  { %v2395_v22 = vld [vmem:[#allocation20 + $0x19b8] sm:$0xff]  ;;  %3828 = vmatpush.msra.mxu0 %v2295_v63 }
 0x573   :  { %v2459_v36 = vld [vmem:[#allocation20 + $0x1bb8] sm:$0xff]  ;;  %3839 = vmatpush.msrb.mxu1 %v2395_v22 }
 0x574   :  { %v2523_v30 = vld [vmem:[#allocation20 + $0x1db8] sm:$0xff]  ;;  %3859 = vmatpush.msrb.mxu2 %v2459_v36 }
 0x575   :  { %v2291_v11 = vld [vmem:[#allocation20 + $0x1678] sm:$0xff]  ;;  %3879 = vmatpush.msrb.mxu3 %v2523_v30 }
 0x576   :  { %v2391_v60 = vld [vmem:[#allocation20 + $0x1998] sm:$0xff]  ;;  %3829 = vmatpush.msra.mxu0 %v2291_v11 }
 0x577   :  { %v2455_v25 = vld [vmem:[#allocation20 + $0x1b98] sm:$0xff]  ;;  %3840 = vmatpush.msrb.mxu1 %v2391_v60 }
 0x578   :  { %v2519_v35 = vld [vmem:[#allocation20 + $0x1d98] sm:$0xff]  ;;  %3860 = vmatpush.msrb.mxu2 %v2455_v25 }
 0x579   :  { %v2287_v0 = vld [vmem:[#allocation20 + $0x1658] sm:$0xff]  ;;  %3880 = vmatpush.msrb.mxu3 %v2519_v35 }
 0x57a   :  { %v2387_v18 = vld [vmem:[#allocation20 + $0x1978] sm:$0xff]  ;;  %3830 = vmatpush.msra.mxu0 %v2287_v0 }
 0x57b   :  { %v2451_v32 = vld [vmem:[#allocation20 + $0x1b78] sm:$0xff]  ;;  %3841 = vmatpush.msrb.mxu1 %v2387_v18 }
 0x57c   :  { %v2515_v15 = vld [vmem:[#allocation20 + $0x1d78] sm:$0xff]  ;;  %3861 = vmatpush.msrb.mxu2 %v2451_v32 }
 0x57d   :  { %v2283_v47 = vld [vmem:[#allocation20 + $0x1638] sm:$0xff]  ;;  %3881 = vmatpush.msrb.mxu3 %v2515_v15 }
 0x57e   :  { %v2383_v57 = vld [vmem:[#allocation20 + $0x1958] sm:$0xff]  ;;  %3831 = vmatpush.msra.mxu0 %v2283_v47 }
 0x57f   :  { %v2447_v56 = vld [vmem:[#allocation20 + $0x1b58] sm:$0xff]  ;;  %3842 = vmatpush.msrb.mxu1 %v2383_v57 }
 0x580   :  { %v2511_v9 = vld [vmem:[#allocation20 + $0x1d58] sm:$0xff]  ;;  %3862 = vmatpush.msrb.mxu2 %v2447_v56 }
 0x581   :  { %v2279_v29 = vld [vmem:[#allocation20 + $0x1618] sm:$0xff]  ;;  %3882 = vmatpush.msrb.mxu3 %v2511_v9 }
 0x582   :  { %v2379_v46 = vld [vmem:[#allocation20 + $0x1938] sm:$0xff]  ;;  %3832 = vmatpush.msra.mxu0 %v2279_v29  ;;  %v6037_v29 = vld.sshfl [vmem:[#allocation1 + $0x28] sm:$0xff pattern:$0x75316420] }
 0x583   :  { %v2443_v50 = vld [vmem:[#allocation20 + $0x1b38] sm:$0xff]  ;;  %3833 = vmatmul.f32.vlgmr.msra.gmra.mxu0 %v6035_v42  ;;  %3843 = vmatpush.msrb.mxu1 %v2379_v46  ;;  %v6038_v46 = vld.sshfl [vmem:[#allocation1 + $0x30] sm:$0xff pattern:$0x75316420]  ;;  %v3334_v42 = vpop.f32.mrf.mxu0 }
 0x584   :  { %v2507_v1 = vld [vmem:[#allocation20 + $0x1d38] sm:$0xff]  ;;  %3863 = vmatpush.msrb.mxu2 %v2443_v50  ;;  %v6039_v50 = vld.sshfl [vmem:[#allocation1 + $0x38] sm:$0xff pattern:$0x75316420] }
 0x585   :  { %v2571_v19 = vld [vmem:[#allocation20 + $0x1f38] sm:$0xf]  ;;  %3883 = vmatpush.msrb.mxu3 %v2507_v1  ;;  %v3294_v1 = vpop.f32.mrf.mxu2 }
 0x586   :  { %v2375_v44 = vld [vmem:[#allocation20 + $0x1918] sm:$0xff]  ;;  %5797 = vmatpush.msk.msrb.mxu0 %vm754_vm15, %v2571_v19  ;;  %v3354_v19 = vpop.f32.mrf.mxu1 }
 0x587   :  { %v2439_v33 = vld [vmem:[#allocation20 + $0x1b18] sm:$0xff]  ;;  %3844 = vmatpush.msrb.mxu1 %v2375_v44  ;;  %v3314_v44 = vpop.f32.mrf.mxu3 }
 0x588   :  { %v2503_v16 = vld [vmem:[#allocation20 + $0x1d18] sm:$0xff]  ;;  %3864 = vmatpush.msrb.mxu2 %v2439_v33 }
 0x589   :  { %v2567_v54 = vld [vmem:[#allocation20 + $0x1f18] sm:$0xff]  ;;  %3884 = vmatpush.msrb.mxu3 %v2503_v16 }
 0x58a   :  { %v2371_v58 = vld [vmem:[#allocation20 + $0x18f8] sm:$0xff]  ;;  %3904 = vmatpush.msrb.mxu0 %v2567_v54 }
 0x58b   :  { %v2435_v40 = vld [vmem:[#allocation20 + $0x1af8] sm:$0xff]  ;;  %3845 = vmatpush.msrb.mxu1 %v2371_v58  ;;  %v3414_v58 = vpop.f32.mrf.mxu0 }
 0x58c   :  { %v2499_v4 = vld [vmem:[#allocation20 + $0x1cf8] sm:$0xff]  ;;  %3865 = vmatpush.msrb.mxu2 %v2435_v40 }
 0x58d   :  { %v2563_v39 = vld [vmem:[#allocation20 + $0x1ef8] sm:$0xff]  ;;  %3885 = vmatpush.msrb.mxu3 %v2499_v4  ;;  %v3374_v33 = vpop.f32.mrf.mxu2 }
 0x58e   :  { %v2367_v20 = vld [vmem:[#allocation20 + $0x18d8] sm:$0xff]  ;;  %3905 = vmatpush.msrb.mxu0 %v2563_v39  ;;  %v3434_v16 = vpop.f32.mrf.mxu1 }
 0x58f   :  { %v2431_v37 = vld [vmem:[#allocation20 + $0x1ad8] sm:$0xff]  ;;  %3846 = vmatpush.msrb.mxu1 %v2367_v20  ;;  %v3394_v54 = vpop.f32.mrf.mxu3 }
 0x590   :  { %v2495_v52 = vld [vmem:[#allocation20 + $0x1cd8] sm:$0xff]  ;;  %3866 = vmatpush.msrb.mxu2 %v2431_v37 }
 0x591   :  { %v2559_v5 = vld [vmem:[#allocation20 + $0x1ed8] sm:$0xff]  ;;  %3886 = vmatpush.msrb.mxu3 %v2495_v52 }
 0x592   :  { %v2363_v28 = vld [vmem:[#allocation20 + $0x18b8] sm:$0xff]  ;;  %3906 = vmatpush.msrb.mxu0 %v2559_v5  ;;  %v3315_v5 = vadd.f32 %v3314_v44, %v3294_v1  ;;  %v8858_v1 = vmov 0.0  }
 0x593   :  { %v2427_v23 = vld [vmem:[#allocation20 + $0x1ab8] sm:$0xff]  ;;  %3847 = vmatpush.msrb.mxu1 %v2363_v28  ;;  %v3494_v20 = vpop.f32.mrf.mxu0 }
 0x594   :  { %v2491_v7 = vld [vmem:[#allocation20 + $0x1cb8] sm:$0xff]  ;;  %3867 = vmatpush.msrb.mxu2 %v2427_v23 }
 0x595   :  { %v2555_v53 = vld [vmem:[#allocation20 + $0x1eb8] sm:$0xff]  ;;  %3887 = vmatpush.msrb.mxu3 %v2491_v7  ;;  %v3454_v40 = vpop.f32.mrf.mxu2  ;;  %v3335_v7 = vadd.f32 %v3334_v42, %v3315_v5 }
 0x596   :  { %v2359_v55 = vld [vmem:[#allocation20 + $0x1898] sm:$0xff]  ;;  %3907 = vmatpush.msrb.mxu0 %v2555_v53  ;;  %v3514_v4 = vpop.f32.mrf.mxu1 }
 0x597   :  { %v2423_v14 = vld [vmem:[#allocation20 + $0x1a98] sm:$0xff]  ;;  %3848 = vmatpush.msrb.mxu1 %v2359_v55  ;;  %v3474_v39 = vpop.f32.mrf.mxu3 }
 0x598   :  { %v2487_v48 = vld [vmem:[#allocation20 + $0x1c98] sm:$0xff]  ;;  %3868 = vmatpush.msrb.mxu2 %v2423_v14  ;;  %v3355_v14 = vadd.f32 %v3354_v19, %v3335_v7 }
 0x599   :  { %v2551_v63 = vld [vmem:[#allocation20 + $0x1e98] sm:$0xff]  ;;  %3888 = vmatpush.msrb.mxu3 %v2487_v48 }
 0x59a   :  { %v2355_v22 = vld [vmem:[#allocation20 + $0x1878] sm:$0xff]  ;;  %3908 = vmatpush.msrb.mxu0 %v2551_v63  ;;  %v3375_v63 = vadd.f32 %v3374_v33, %v3355_v14 }
 0x59b   :  { %v2419_v36 = vld [vmem:[#allocation20 + $0x1a78] sm:$0xff]  ;;  %3849 = vmatpush.msrb.mxu1 %v2355_v22  ;;  %v3574_v23 = vpop.f32.mrf.mxu0 }
 0x59c   :  { %v2483_v30 = vld [vmem:[#allocation20 + $0x1c78] sm:$0xff]  ;;  %3869 = vmatpush.msrb.mxu2 %v2419_v36 }
 0x59d   :  { %v2547_v11 = vld [vmem:[#allocation20 + $0x1e78] sm:$0xff]  ;;  %3889 = vmatpush.msrb.mxu3 %v2483_v30  ;;  %v3534_v52 = vpop.f32.mrf.mxu2 }
 0x59e   :  { %v2351_v60 = vld [vmem:[#allocation20 + $0x1858] sm:$0xff]  ;;  %3909 = vmatpush.msrb.mxu0 %v2547_v11  ;;  %v3594_v37 = vpop.f32.mrf.mxu1 }
 0x59f   :  { %v2415_v25 = vld [vmem:[#allocation20 + $0x1a58] sm:$0xff]  ;;  %3850 = vmatpush.msrb.mxu1 %v2351_v60  ;;  %v3554_v28 = vpop.f32.mrf.mxu3  ;;  %v3395_v60 = vadd.f32 %v3394_v54, %v3375_v63 }
 0x5a0   :  { %v2479_v35 = vld [vmem:[#allocation20 + $0x1c58] sm:$0xff]  ;;  %3870 = vmatpush.msrb.mxu2 %v2415_v25 }
 0x5a1   :  { %v2543_v12 = vld [vmem:[#allocation20 + $0x1e58] sm:$0xff]  ;;  %3890 = vmatpush.msrb.mxu3 %v2479_v35 }
 0x5a2   :  { %v2347_v0 = vld [vmem:[#allocation20 + $0x1838] sm:$0xff]  ;;  %3910 = vmatpush.msrb.mxu0 %v2543_v12  ;;  %v3415_v12 = vadd.f32 %v3414_v58, %v3395_v60 }
 0x5a3   :  { %v2411_v18 = vld [vmem:[#allocation20 + $0x1a38] sm:$0xff]  ;;  %3851 = vmatpush.msrb.mxu1 %v2347_v0  ;;  %v3674_v36 = vpop.f32.mrf.mxu0 }
 0x5a4   :  { %v2475_v32 = vld [vmem:[#allocation20 + $0x1c38] sm:$0xff]  ;;  %3871 = vmatpush.msrb.mxu2 %v2411_v18 }
 0x5a5   :  { %v2539_v15 = vld [vmem:[#allocation20 + $0x1e38] sm:$0xff]  ;;  %3891 = vmatpush.msrb.mxu3 %v2475_v32  ;;  %v3634_v55 = vpop.f32.mrf.mxu2  ;;  %v3435_v32 = vadd.f32 %v3434_v16, %v3415_v12 }
 0x5a6   :  { %v2343_v47 = vld [vmem:[#allocation20 + $0x1818] sm:$0xff]  ;;  %3911 = vmatpush.msrb.mxu0 %v2539_v15  ;;  %v3614_v53 = vpop.f32.mrf.mxu1 }
 0x5a7   :  { %v2407_v10 = vld [vmem:[#allocation20 + $0x1a18] sm:$0xff]  ;;  %3852 = vmatpush.msrb.mxu1 %v2343_v47  ;;  %v3635_v48 = vadd.f32 %v3634_v55, %v3614_v53  ;;  %v3654_v22 = vpop.f32.mrf.mxu3 }
 0x5a8   :  { %v2471_v57 = vld [vmem:[#allocation20 + $0x1c18] sm:$0xff]  ;;  %3872 = vmatpush.msrb.mxu2 %v2407_v10  ;;  %v3455_v10 = vadd.f32 %v3454_v40, %v3435_v32 }
 0x5a9   :  { %v2535_v56 = vld [vmem:[#allocation20 + $0x1e18] sm:$0xff]  ;;  %3892 = vmatpush.msrb.mxu3 %v2471_v57  ;;  %3873 = vmatmul.f32.vlgmr.msrb.gmra.mxu2 %v6037_v29  ;;  %v3655_v30 = vadd.f32 %v3654_v22, %v3635_v48 }
 0x5aa   :  { %3912 = vmatpush.msrb.mxu0 %v2535_v56  ;;  %v6036_v9 = vld.sshfl [vmem:[#allocation1 + $0x20] sm:$0xff pattern:$0x75316420]  ;;  %3893 = vmatmul.f32.vlgmr.msrb.gmra.mxu3 %v6038_v46  ;;  %v3475_v46 = vadd.f32 %v3474_v39, %v3455_v10 }
 0x5ab   :  { %3853 = vmatmul.f32.vlgmr.msrb.gmra.mxu1 %v6036_v9  ;;  %5798 = vmatmul.msk.f32.vlgmr.msrb.gmra.mxu0 %vm2622_vm7, %v6039_v50  ;;  %v3675_v25 = vadd.f32 %v3674_v36, %v3655_v30  ;;  %vm3928_vm7 = vcmask 130052  }
 0x5ac   :  { %vm3945_vm5 = vmor %vm3928_vm7, %vm3944_vm2  ;;  %v3495_v19 = vadd.f32 %v3494_v20, %v3475_v46 }
 0x5ad   :  { %v3714_v35 = vpop.f32.mrf.mxu2  ;;  %3946 = vst.msk [vmem:[#allocation4 + $0x10] sm:$0xff] %vm3945_vm5, %v8858_v1  ;;  %vm3929_vm6 = vmor %vm3928_vm7, %vm754_vm15 }
 0x5ae   :  { %v3694_v11 = vpop.f32.mrf.mxu1  ;;  %v3515_v16 = vadd.f32 %v3514_v4, %v3495_v19  ;;  %vm8062_vm2 = vmor %vm3948_vm9, %vm210_vm3 }
 0x5af   :  { %v3695_v0 = vadd.f32 %v3694_v11, %v3675_v25  ;;  %v3734_v15 = vpop.f32.mrf.mxu3  ;;  %vm8069_vm7 = vmor %vm3952_vm10, %vm211_vm4  ;;  %vm4814_vm4 = vcmask 97280  }
 0x5b0   :  { %v3535_v40 = vadd.f32 %v3534_v52, %v3515_v16  ;;  %v4164_v16 = vstv %s5817_s10  ;;  %s5853_s10 = sld [smem:[#allocation18 + $0x6]] }
 0x5b1   :  { %v3715_v18 = vadd.f32 %v3714_v35, %v3695_v0 }
 0x5b2   :  { %v3555_v55 = vadd.f32 %v3554_v28, %v3535_v40  ;;  %v8142_v40 = vpop.permute.xlu2 %4371 }
 0x5b3   :  { %v3735_v57 = vadd.f32 %v3734_v15, %v3715_v18 }
 0x5b4   :  { %v3575_v39 = vadd.f32 %v3574_v23, %v3555_v55 }
 0x5b6   :  { %v3595_v30 = vadd.f32 %v3594_v37, %v3575_v39 }
 0x5bf   :  { %v3754_v47 = vpop.f32.mrf.mxu0 }
 0x5c0   :  { %v3755_v9 = vadd.f32 %v3754_v47, %v3735_v57 }
 0x5e9   :  { %v3774_v56 = vpop.f32.mrf.mxu1 }
 0x5ea   :  { %v3775_v50 = vadd.f32 %v3774_v56, %v3755_v9 }
 0x5eb   :  { %v3794_v29 = vpop.f32.mrf.mxu2 }
 0x5ec   :  { %v3795_v44 = vadd.f32 %v3794_v29, %v3775_v50  ;;  %v3814_v42 = vpop.f32.mrf.mxu3 }
 0x5ee   :  { %v3815_v54 = vadd.f32 %v3814_v42, %v3795_v44 }
 0x600   :  { %v3834_v33 = vpop.f32.mrf.mxu0 }
 0x601   :  { %v3835_v5 = vadd.f32 %v3834_v33, %v3815_v54  ;;  %v4165_v54 = vmul.f32 %v4164_v16, %v8003_v26 }
 0x628   :  { %v3854_v58 = vpop.f32.mrf.mxu1  ;;  %v3914_v22 = vpop.f32.mrf.mxu0 }
 0x629   :  { %v3855_v7 = vadd.f32 %v3854_v58, %v3835_v5  ;;  %v8146_v5 = vpop.permute.xlu2 %4003 }
 0x62c   :  { %v3874_v53 = vpop.f32.mrf.mxu2 }
 0x62d   :  { %v3875_v14 = vadd.f32 %v3874_v53, %v3855_v7  ;;  %v3894_v48 = vpop.f32.mrf.mxu3  ;;  %v4347_v53 = vpop.permute.xlu0 %4346 }
 0x62f   :  { %v3895_v63 = vadd.f32 %v3894_v48, %v3875_v14  ;;  %v3979_v48 = vpop.permute.xlu1 %3978 }
 0x631   :  { %v3915_v36 = vadd.f32 %v3914_v22, %v3895_v63  ;;  %v8149_v55 = vpop.permute.xlu2 %4045 }
 0x633   :  { %v3922_v11 = vrot.slane %v3915_v36, 4 }
 0x635   :  { %v3924_v4 = vsel %vm754_vm15, %v3595_v30, %v3922_v11  ;;  %v8151_v26 = vpop.permute.xlu0 %4392  ;;  %v4334_v30 = vstv %s5820_s23  ;;  %v4352_v11 = vrot.slane %v4347_v53, 4  ;;  %s5856_s23 = sld [smem:[#allocation18 + $0x9]] }
 0x636   :  { %3930 = vst.msk [vmem:[#allocation3 + $0x8] sm:$0xff] %vm3929_vm6, %v3924_v4 }
 0x637   :  { %v8161_v22 = vpop.permute.xlu1 %4413 }
 0x63d   :  { %v3932_v20 = vld [vmem:[#allocation3 + $0x8] sm:$0x33]  ;;  %v3938_v52 = vld [vmem:[#allocation3 + $0x8] sm:$0xcc]  ;;  %v8155_v14 = vpop.permute.xlu0 %4024 }
 0x63e   :  { %v3934_v28 = vsub.f32 %v3932_v20, %v7881_v38  ;;  %v3940_v60 = vsub.f32 %v3938_v52, %v7906_v17  ;;  %v4375_v20 = vrot.slane %v8142_v40, 4 }
 0x640   :  { %v3936_v37 = vmul.f32 %v3934_v28, %v7910_v8  ;;  %v3942_v25 = vmul.f32 %v3940_v60, %v7947_v21  ;;  %v6040_v28 = vld [vmem:[#allocation4] sm:$0x33] }
 0x641   :  { %v4335_v60 = vmul.f32 %v6040_v28, %v4334_v30 }
 0x642   :  { %3950 = vst.msk [vmem:[#allocation4 + $0xc] sm:$0x33] %vm8062_vm2, %v3936_v37  ;;  %v4396_v37 = vrot.slane %v8151_v26, 4 }
 0x643   :  { %3954 = vst.msk [vmem:[#allocation4 + $0xc] sm:$0xcc] %vm8069_vm7, %v3942_v25 }
 0x645   :  { %v8159_v63 = vpop.permute.xlu0 %4462 }
 0x649   :  { %v8077_v38 = vld [vmem:[#allocation4 + $0x8] sm:$0x33]  ;;  %v8079_v17 = vld [vmem:[#allocation4 + $0x10] sm:$0x3] }
 0x64a   :  { %v4341_v8 = vmul.f32 %v7936_v34, %v8077_v38  ;;  %v4342_v21 = vmul.f32 %v7936_v34, %v8079_v17  ;;  %v3973_v12 = vmul.f32 %v7941_v3, %v8077_v38  ;;  %v3959_v0 = vld [vmem:[#allocation4 + $0xc] sm:$0x33]  ;;  %v3974_v32 = vmul.f32 %v7941_v3, %v8079_v17  ;;  %v8107_v57 = vld [vmem:[#allocation4 + $0x8] sm:$0xcc] }
 0x64b   :  { %v4389_v18 = vmul.f32 %v4387_v13, %v3959_v0  ;;  %v4368_v15 = vmul.f32 %v4366_v62, %v3959_v0  ;;  %v4021_v34 = vmul.f32 %v4019_v27, %v3959_v0  ;;  %v4410_v47 = vmul.f32 %v4408_v24, %v3959_v0  ;;  %v8105_v13 = vld [vmem:[#allocation4 + $0x10] sm:$0xc] }
 0x64c   :  { %4348 = vrot.lane.b32.xlu2 %v4341_v8, %s6320_s0  ;;  %4350 = vrot.lane.b32.xlu0 %v4342_v21, %s6320_s0  ;;  %v4000_v10 = vmul.f32 %v3998_v59, %v3959_v0  ;;  %v4452_v62 = vmul.f32 %v8009_v41, %v8105_v13  ;;  %v4451_v3 = vmul.f32 %v8009_v41, %v8107_v57  ;;  %v3964_v56 = vld [vmem:[#allocation4 + $0xc] sm:$0xcc]  ;;  %v8167_v8 = vstv %s5825_s24  ;;  %s5876_s24 = sld [smem:[#allocation18 + $0x15]] }
 0x64d   :  { %3980 = vrot.lane.b32.xlu1 %v3973_v12, %s6320_s0  ;;  %v4042_v59 = vmul.f32 %v4040_v43, %v3959_v0  ;;  %v4509_v9 = vmul.f32 %v4507_v45, %v3964_v56  ;;  %v4084_v29 = vmul.f32 %v8012_v6, %v8105_v13  ;;  %v4083_v41 = vmul.f32 %v8012_v6, %v8107_v57 }
 0x64e   :  { %v5832_v24 = vrot.slane %v4452_v62, 10  ;;  %v5831_v27 = vrot.slane %v4451_v3, 10  ;;  %v4141_v19 = vmul.f32 %v4139_v51, %v3964_v56  ;;  %v4534_v45 = vmul.f32 %v4532_v49, %v3964_v56 }
 0x64f   :  { %v5838_v46 = vrot.slane %v4509_v9, 10  ;;  %v5810_v50 = vrot.slane %v4084_v29, 10  ;;  %v5809_v43 = vrot.slane %v4083_v41, 10  ;;  %v4484_v44 = vmul.f32 %v4482_v61, %v3964_v56 }
 0x650   :  { %v5816_v42 = vrot.slane %v4141_v19, 10  ;;  %v5841_v33 = vrot.slane %v4534_v45, 10  ;;  %v4116_v58 = vmul.f32 %v4114_v31, %v3964_v56  ;;  %v5818_v51 = vrot.slane %v4165_v54, 10  ;;  %v8153_v31 = vpop.permute.xlu2 %4491 }
 0x651   :  { %v5835_v6 = vrot.slane %v4484_v44, 10  ;;  %v4166_v61 = vmul.f32 %v4164_v16, %v3964_v56  ;;  %v4377_v12 = vsel %vm303_vm12, %v4375_v20, %v8142_v40  ;;  %v4417_v0 = vrot.slane %v8161_v22, 4 }
 0x652   :  { %v5813_v49 = vrot.slane %v4116_v58, 10  ;;  %v4007_v44 = vrot.slane %v8146_v5, 4 }
 0x653   :  { %v5819_v7 = vrot.slane %v4166_v61, 10  ;;  %v4419_v62 = vsel %vm383_vm14, %v4417_v0, %v8161_v22  ;;  %v4049_v61 = vrot.slane %v8149_v55, 4 }
 0x654   :  { %4394 = vrot.lane.b32.xlu2 %v4389_v18, %s6322_s8  ;;  %3982 = vrot.lane.b32.xlu0 %v3974_v32, %s6320_s0  ;;  %v8172_v18 = vpop.permute.xlu0 %4516  ;;  %v8174_v32 = vpop.permute.xlu1 %4094 }
 0x655   :  { %4373 = vrot.lane.b32.xlu1 %v4368_v15, %s6319_s21 }
 0x658   :  { %v8157_v39 = vpop.permute.xlu2 %4123 }
 0x65c   :  { %4026 = vrot.lane.b32.xlu2 %v4021_v34, %s6322_s8  ;;  %4415 = vrot.lane.b32.xlu0 %v4410_v47, %s6321_s22  ;;  %v4430_v34 = vmul.f32 %v8167_v8, %v8006_v2  ;;  %v4398_v47 = vsel %vm343_vm13, %v4396_v37, %v8151_v26  ;;  %v8186_v56 = vpop.permute.xlu0 %4148  ;;  %v8188_v9 = vpop.permute.xlu1 %4541 }
 0x65d   :  { %4005 = vrot.lane.b32.xlu1 %v4000_v10, %s6319_s21 }
 0x664   :  { %4466 = vrot.lane.b32.xlu2 %v5832_v24, %s6320_s0  ;;  %4464 = vrot.lane.b32.xlu0 %v5831_v27, %s6320_s0  ;;  %v5826_v24 = vrot.slane %v4430_v34, 10 }
 0x665   :  { %4047 = vrot.lane.b32.xlu1 %v4042_v59, %s6321_s22 }
 0x66c   :  { %4518 = vrot.lane.b32.xlu2 %v5838_v46, %s6322_s8  ;;  %4098 = vrot.lane.b32.xlu0 %v5810_v50, %s6320_s0  ;;  %v3966_v50 = vstv %s3965_s6  ;;  %s5873_s6 = sld [smem:[#allocation18 + $0x12]] }
 0x66d   :  { %4096 = vrot.lane.b32.xlu1 %v5809_v43, %s6320_s0  ;;  %v3984_v43 = vrot.slane %v3979_v48, 4 }
 0x674   :  { %4150 = vrot.lane.b32.xlu2 %v5816_v42, %s6322_s8  ;;  %4543 = vrot.lane.b32.xlu0 %v5841_v33, %s6321_s22  ;;  %v3967_v33 = vmul.f32 %v6040_v28, %v3966_v50 }
 0x675   :  { %4493 = vrot.lane.b32.xlu1 %v5835_v6, %s6319_s21  ;;  %v4028_v6 = vrot.slane %v8155_v14, 4 }
 0x67c   :  { %4173 = vrot.lane.b32.xlu2 %v5818_v51, %s6321_s22  ;;  %v8199_v51 = vstv %s5803_s25  ;;  %s5862_s25 = sld [smem:[#allocation19 + $0x1]] }
 0x67d   :  { %4125 = vrot.lane.b32.xlu1 %v5813_v49, %s6319_s21  ;;  %v4009_v49 = vsel %vm303_vm12, %v4007_v44, %v8146_v5  ;;  %v4336_v5 = vmul.f32 %v4334_v30, %v8077_v38  ;;  %v4064_v22 = vmul.f32 %v8199_v51, %v8105_v13 }
 0x685   :  { %4175 = vrot.lane.b32.xlu1 %v5819_v7, %s6321_s22 }
 0x6a6   :  { %v4349_v36 = vpop.permute.xlu2 %4348 }
 0x6a7   :  { %v4353_v4 = vrot.slane %v4349_v36, 4 }
 0x6a9   :  { %v4355_v52 = vsel %vm754_vm15, %v4352_v11, %v4353_v4  ;;  %v4030_v11 = vsel %vm343_vm13, %v4028_v6, %v8155_v14 }
 0x6aa   :  { %v4356_v25 = vsel %vm263_vm11, %v4347_v53, %v4355_v52 }
 0x6ab   :  { %v4362_v21 = vadd.f32 %v4356_v25, %v4335_v60 }
 0x6ad   :  { %v4383_v15 = vadd.f32 %v4377_v12, %v4362_v21 }
 0x6ae   :  { %v4395_v3 = vpop.permute.xlu2 %4394 }
 0x6af   :  { %v4404_v10 = vadd.f32 %v4398_v47, %v4383_v15  ;;  %v4397_v7 = vrot.slane %v4395_v3, 4  ;;  %v4051_v15 = vsel %vm383_vm14, %v4049_v61, %v8149_v55 }
 0x6b1   :  { %v4425_v27 = vadd.f32 %v4419_v62, %v4404_v10  ;;  %v4399_v14 = vsel %vm754_vm15, %v4396_v37, %v4397_v7 }
 0x6b3   :  { %v8184_v59 = vadd.f32 %v5826_v24, %v4425_v27  ;;  %v4400_v27 = vsel %vm343_vm13, %v4399_v14, %v4395_v3  ;;  %v3968_v3 = vmul.f32 %v3966_v50, %v8077_v38 }
 0x6b6   :  { %v8190_v29 = vpop.permute.xlu2 %4026 }
 0x6be   :  { %v4351_v41 = vpop.permute.xlu0 %4350  ;;  %v8196_v54 = vpop.permute.xlu2 %4466 }
 0x6bf   :  { %v3981_v46 = vpop.permute.xlu1 %3980  ;;  %v4354_v19 = vrot.slane %v4351_v41, 4 }
 0x6c0   :  { %v3985_v45 = vrot.slane %v3981_v46, 4 }
 0x6c1   :  { %v4357_v58 = vsel %vm754_vm15, %v4353_v4, %v4354_v19  ;;  %v4062_v4 = vmul.f32 %v8199_v51, %v8006_v2 }
 0x6c2   :  { %v3987_v42 = vsel %vm754_vm15, %v3984_v43, %v3985_v45  ;;  %v4358_v52 = vsel %vm263_vm11, %v4349_v36, %v4357_v58 }
 0x6c3   :  { %v3988_v16 = vsel %vm263_vm11, %v3979_v48, %v3987_v42  ;;  %v4337_v48 = vmul.f32 %v4334_v30, %v8079_v17  ;;  %v4363_v34 = vadd.f32 %v4358_v52, %v4336_v5  ;;  %v5804_v2 = vrot.slane %v4062_v4, 10 }
 0x6c4   :  { %v3994_v40 = vadd.f32 %v3988_v16, %v3967_v33 }
 0x6c5   :  { %v4364_v12 = vadd.f32 %v4351_v41, %v4337_v48  ;;  %v4432_v41 = vmul.f32 %v8167_v8, %v8105_v13 }
 0x6c6   :  { %v3983_v53 = vpop.permute.xlu0 %3982  ;;  %v4015_v26 = vadd.f32 %v4009_v49, %v3994_v40  ;;  %v8224_v19 = vpop.permute.xlu2 %4518  ;;  %v3969_v40 = vmul.f32 %v3966_v50, %v8079_v17 }
 0x6c7   :  { %v4374_v28 = vpop.permute.xlu1 %4373  ;;  %v3986_v60 = vrot.slane %v3983_v53, 4 }
 0x6c8   :  { %v4036_v25 = vadd.f32 %v4030_v11, %v4015_v26  ;;  %v4376_v21 = vrot.slane %v4374_v28, 4  ;;  %v4029_v26 = vrot.slane %v8190_v29, 4  ;;  %v5828_v11 = vrot.slane %v4432_v41, 10 }
 0x6c9   :  { %v3989_v24 = vsel %vm754_vm15, %v3985_v45, %v3986_v60  ;;  %v4431_v45 = vmul.f32 %v8167_v8, %v8107_v57  ;;  %v3996_v52 = vadd.f32 %v3983_v53, %v3969_v40  ;;  %v4470_v40 = vrot.slane %v8196_v54, 4 }
 0x6ca   :  { %v4378_v36 = vsel %vm754_vm15, %v4375_v20, %v4376_v21  ;;  %v4385_v10 = vadd.f32 %v4376_v21, %v4364_v12  ;;  %v4057_v62 = vadd.f32 %v4051_v15, %v4036_v25  ;;  %v3990_v16 = vsel %vm263_vm11, %v3981_v46, %v3989_v24 }
 0x6cb   :  { %v4379_v47 = vsel %vm303_vm12, %v4378_v36, %v4374_v28  ;;  %v3995_v28 = vadd.f32 %v3990_v16, %v3968_v3  ;;  %v5827_v17 = vrot.slane %v4431_v45, 10  ;;  %v4468_v21 = vrot.slane %v8159_v63, 4 }
 0x6cc   :  { %v4384_v30 = vadd.f32 %v4379_v47, %v4363_v34  ;;  %v8222_v43 = vadd.f32 %v5804_v2, %v4057_v62  ;;  %v4406_v20 = vadd.f32 %v4397_v7, %v4385_v10  ;;  %v4063_v47 = vmul.f32 %v8199_v51, %v8107_v57 }
 0x6cd   :  { %v4520_v10 = vrot.slane %v8172_v18, 4  ;;  %v5806_v2 = vrot.slane %v4064_v22, 10  ;;  %v4189_v22 = vstv %s4188_s26  ;;  %s8492_s26 = sld [smem:[#allocation18 + $0xc]] }
 0x6ce   :  { %v4416_v37 = vpop.permute.xlu0 %4415  ;;  %v4405_v42 = vadd.f32 %v4400_v27, %v4384_v30  ;;  %v8245_v14 = vpop.permute.xlu2 %4150 }
 0x6cf   :  { %v4418_v33 = vrot.slane %v4416_v37, 4  ;;  %v4006_v58 = vpop.permute.xlu1 %4005 }
 0x6d0   :  { %v4008_v49 = vrot.slane %v4006_v58, 4 }
 0x6d1   :  { %v4420_v48 = vsel %vm754_vm15, %v4417_v0, %v4418_v33  ;;  %v4427_v7 = vadd.f32 %v4418_v33, %v4406_v20  ;;  %v4031_v0 = vsel %vm754_vm15, %v4028_v6, %v4029_v26 }
 0x6d2   :  { %v4421_v46 = vsel %vm383_vm14, %v4420_v48, %v4416_v37  ;;  %v4010_v4 = vsel %vm754_vm15, %v4007_v44, %v4008_v49  ;;  %v4017_v25 = vadd.f32 %v4008_v49, %v3996_v52  ;;  %v4495_v44 = vrot.slane %v8153_v31, 4 }
 0x6d3   :  { %v4426_v8 = vadd.f32 %v4421_v46, %v4405_v42  ;;  %v8237_v60 = vadd.f32 %v5828_v11, %v4427_v7  ;;  %v4011_v38 = vsel %vm303_vm12, %v4010_v4, %v4006_v58  ;;  %v4032_v13 = vsel %vm343_vm13, %v4031_v0, %v8190_v29 }
 0x6d4   :  { %v4016_v50 = vadd.f32 %v4011_v38, %v3995_v28  ;;  %v4038_v34 = vadd.f32 %v4029_v26, %v4017_v25  ;;  %v4497_v51 = vsel %vm303_vm12, %v4495_v44, %v8153_v31  ;;  %v5805_v42 = vrot.slane %v4063_v47, 10 }
 0x6d5   :  { %v4446_v5 = vadd.f32 %v5827_v17, %v4426_v8  ;;  %v4152_v49 = vrot.slane %v8186_v56, 4  ;;  %v4521_v7 = vrot.slane %v8224_v19, 4 }
 0x6d6   :  { %v4465_v53 = vpop.permute.xlu0 %4464  ;;  %v4037_v24 = vadd.f32 %v4032_v13, %v4016_v50  ;;  %v8267_v31 = vpop.permute.xlu2 %4173 }
 0x6d7   :  { %v4469_v12 = vrot.slane %v4465_v53, 4  ;;  %v4048_v15 = vpop.permute.xlu1 %4047  ;;  %v4177_v52 = vrot.slane %v8267_v31, 4  ;;  %v4154_v4 = vsel %vm343_vm13, %v4152_v49, %v8186_v56  ;;  %v4523_v25 = vsel %vm754_vm15, %v4520_v10, %v4521_v7 }
 0x6d8   :  { %v4050_v36 = vrot.slane %v4048_v15, 4  ;;  %v4524_v47 = vsel %vm343_vm13, %v4523_v25, %v8224_v19  ;;  %v4557_v19 = vstv %s5842_s27  ;;  %s8494_s27 = sld [smem:[#allocation18 + $0xf]] }
 0x6d9   :  { %v4471_v6 = vsel %vm754_vm15, %v4468_v21, %v4469_v12  ;;  %v4473_v26 = vsel %vm754_vm15, %v4469_v12, %v4470_v40 }
 0x6da   :  { %v4472_v62 = vsel %vm263_vm11, %v8159_v63, %v4471_v6  ;;  %v4052_v30 = vsel %vm754_vm15, %v4049_v61, %v4050_v36  ;;  %v4059_v27 = vadd.f32 %v4050_v36, %v4038_v34  ;;  %v4522_v63 = vsel %vm343_vm13, %v4520_v10, %v8172_v18 }
 0x6db   :  { %v4478_v41 = vadd.f32 %v4472_v62, %v8184_v59  ;;  %v4053_v57 = vsel %vm383_vm14, %v4052_v30, %v4048_v15  ;;  %v4100_v61 = vrot.slane %v8174_v32, 4  ;;  %v4127_v59 = vrot.slane %v8157_v39, 4 }
 0x6dc   :  { %v4058_v29 = vadd.f32 %v4053_v57, %v4037_v24  ;;  %v4079_v37 = vadd.f32 %v5806_v2, %v4059_v27  ;;  %v4474_v8 = vsel %vm263_vm11, %v4465_v53, %v4473_v26  ;;  %v4153_v24 = vrot.slane %v8245_v14, 4 }
 0x6dd   :  { %v4503_v20 = vadd.f32 %v4497_v51, %v4478_v41  ;;  %v4129_v48 = vsel %vm303_vm12, %v4127_v59, %v8157_v39  ;;  %v4179_v39 = vsel %vm383_vm14, %v4177_v52, %v8267_v31  ;;  %v4479_v0 = vadd.f32 %v4474_v8, %v4446_v5 }
 0x6de   :  { %v4099_v33 = vpop.permute.xlu0 %4098  ;;  %v4078_v16 = vadd.f32 %v5805_v42, %v4058_v29  ;;  %v4480_v27 = vadd.f32 %v8196_v54, %v8237_v60 }
 0x6df   :  { %v4528_v55 = vadd.f32 %v4522_v63, %v4503_v20  ;;  %v4097_v58 = vpop.permute.xlu1 %4096  ;;  %v4102_v21 = vrot.slane %v4099_v33, 4  ;;  %v4112_v41 = vadd.f32 %v4099_v33, %v4079_v37 }
 0x6e0   :  { %v4101_v45 = vrot.slane %v4097_v58, 4 }
 0x6e2   :  { %v4103_v3 = vsel %vm754_vm15, %v4100_v61, %v4101_v45  ;;  %v4105_v10 = vsel %vm754_vm15, %v4101_v45, %v4102_v21  ;;  %v4155_v45 = vsel %vm754_vm15, %v4152_v49, %v4153_v24 }
 0x6e3   :  { %v4104_v18 = vsel %vm263_vm11, %v8174_v32, %v4103_v3  ;;  %v4106_v30 = vsel %vm263_vm11, %v4097_v58, %v4105_v10  ;;  %v4156_v33 = vsel %vm343_vm13, %v4155_v45, %v8245_v14 }
 0x6e4   :  { %v4110_v11 = vadd.f32 %v4104_v18, %v8222_v43  ;;  %v4545_v43 = vrot.slane %v8188_v9, 4  ;;  %v4111_v63 = vadd.f32 %v4106_v30, %v4078_v16 }
 0x6e6   :  { %v4135_v46 = vadd.f32 %v4129_v48, %v4110_v11  ;;  %v4544_v28 = vpop.permute.xlu0 %4543 }
 0x6e7   :  { %v4494_v38 = vpop.permute.xlu1 %4493  ;;  %v4546_v32 = vrot.slane %v4544_v28, 4 }
 0x6e8   :  { %v4496_v17 = vrot.slane %v4494_v38, 4  ;;  %v4160_v50 = vadd.f32 %v4154_v4, %v4135_v46 }
 0x6e9   :  { %v4548_v15 = vsel %vm754_vm15, %v4545_v43, %v4546_v32 }
 0x6ea   :  { %v4498_v12 = vsel %vm754_vm15, %v4495_v44, %v4496_v17  ;;  %v4185_v56 = vadd.f32 %v4179_v39, %v4160_v50  ;;  %v4549_v6 = vsel %vm383_vm14, %v4548_v15, %v4544_v28  ;;  %v4547_v44 = vsel %vm383_vm14, %v4545_v43, %v8188_v9 }
 0x6eb   :  { %v4499_v53 = vsel %vm303_vm12, %v4498_v12, %v4494_v38  ;;  %v4553_v57 = vadd.f32 %v4547_v44, %v4528_v55  ;;  %v4505_v9 = vadd.f32 %v4496_v17, %v4480_v27 }
 0x6ec   :  { %v4504_v34 = vadd.f32 %v4499_v53, %v4479_v0  ;;  %v4190_v36 = vadd.f32 %v4189_v22, %v4185_v56 }
 0x6ed   :  { %v4558_v58 = vadd.f32 %v4557_v19, %v4553_v57  ;;  %v4530_v54 = vadd.f32 %v4521_v7, %v4505_v9 }
 0x6ee   :  { %v4529_v13 = vadd.f32 %v4524_v47, %v4504_v34  ;;  %5975 = vtanh.f32 %v4190_v36 }
 0x6ef   :  { %v4126_v5 = vpop.permute.xlu1 %4125  ;;  %v4555_v49 = vadd.f32 %v4546_v32, %v4530_v54 }
 0x6f0   :  { %v4554_v2 = vadd.f32 %v4549_v6, %v4529_v13  ;;  %v4128_v62 = vrot.slane %v4126_v5, 4 }
 0x6f1   :  { %v4560_v8 = vadd.f32 %v4557_v19, %v4555_v49  ;;  %v4767_v49 = vld [vmem:[#allocation21 + $0x78] sm:$0xff] }
 0x6f2   :  { %v4559_v51 = vadd.f32 %v4557_v19, %v4554_v2  ;;  %v4130_v29 = vsel %vm754_vm15, %v4127_v59, %v4128_v62  ;;  %v4137_v61 = vadd.f32 %v4128_v62, %v4112_v41  ;;  %4820 = vmatpush.msra.mxu0 %v4767_v49 }
 0x6f3   :  { %v4131_v42 = vsel %vm303_vm12, %v4130_v29, %v4126_v5 }
 0x6f4   :  { %v5976_v20 = vpop.eup %5975  ;;  %5977 = vtanh.f32 %v4559_v51  ;;  %v4136_v40 = vadd.f32 %v4131_v42, %v4111_v63  ;;  %v4162_v60 = vadd.f32 %v4153_v24, %v4137_v61 }
 0x6f5   :  { %4199 = vst [vmem:[#allocation1] ss:$2 sm:$0xff] %v5976_v20  ;;  %5979 = vtanh.f32 %v4558_v58  ;;  %v4244_v26 = vmul.f32 %v5976_v20, %v5976_v20 }
 0x6f6   :  { %v4161_v59 = vadd.f32 %v4156_v33, %v4136_v40 }
 0x6f7   :  { %v4176_v31 = vpop.permute.xlu1 %4175 }
 0x6f8   :  { %v4178_v37 = vrot.slane %v4176_v31, 4 }
 0x6fa   :  { %v5978_v55 = vpop.eup %5977  ;;  %v4180_v16 = vsel %vm754_vm15, %v4177_v52, %v4178_v37  ;;  %v4187_v3 = vadd.f32 %v4178_v37, %v4162_v60 }
 0x6fb   :  { %v4181_v18 = vsel %vm383_vm14, %v4180_v16, %v4176_v31  ;;  %v4677_v11 = vrot.slane %v5978_v55, 6  ;;  %v5980_v4 = vpop.eup %5979  ;;  %v4612_v6 = vmul.f32 %v5978_v55, %v5978_v55  ;;  %v4799_v16 = vld [vmem:[#allocation21 + $0x178] sm:$0xff] }
 0x6fc   :  { %v4186_v48 = vadd.f32 %v4181_v18, %v4161_v59  ;;  %v4192_v46 = vadd.f32 %v4189_v22, %v4187_v3  ;;  %v8306_v28 = vld.sshfl [vmem:[#allocation1] sm:$0xff pattern:$0x75316420]  ;;  %v8308_v7 = vld.sshfl [vmem:[#allocation1 + $0x8] sm:$0xff pattern:$0x75316420]  ;;  %v4611_v12 = vmul.f32 %v5980_v4, %v5980_v4  ;;  %4860 = vmatpush.msra.mxu2 %v4799_v16 }
 0x6fd   :  { %4681 = vrot.lane.b32.xlu1 %v4677_v11, %s6323_s28  ;;  %4250 = vst [vmem:[#allocation1] ss:$2 sm:$0xff] %v4244_v26  ;;  %v4676_v52 = vrot.slane %v5980_v4, 6  ;;  %v4798_v3 = vld [vmem:[#allocation21 + $0x170] sm:$0xff]  ;;  %v4797_v18 = vld [vmem:[#allocation21 + $0x168] sm:$0xff]  ;;  %v4796_v26 = vld [vmem:[#allocation21 + $0x160] sm:$0xff] }
 0x6fe   :  { %v4191_v14 = vadd.f32 %v4189_v22, %v4186_v48  ;;  %5981 = vtanh.f32 %v4192_v46  ;;  %4861 = vmatpush.msra.mxu2 %v4798_v3  ;;  %v4795_v11 = vld [vmem:[#allocation21 + $0x158] sm:$0xff]  ;;  %v4794_v46 = vld [vmem:[#allocation21 + $0x150] sm:$0xff] }
 0x6ff   :  { %v4783_v48 = vld [vmem:[#allocation21 + $0xf8] sm:$0xff] }
 0x700   :  { %5983 = vtanh.f32 %v4191_v14  ;;  %4862 = vmatpush.msra.mxu2 %v4797_v18  ;;  %4840 = vmatpush.msra.mxu1 %v4783_v48  ;;  %v4793_v14 = vld [vmem:[#allocation21 + $0x148] sm:$0xff] }
 0x701   :  { %5985 = vtanh.f32 %v4560_v8  ;;  %v4781_v8 = vld [vmem:[#allocation21 + $0xe8] sm:$0xff] }
 0x702   :  { %4863 = vmatpush.msra.mxu2 %v4796_v26 }
 0x704   :  { %v5982_v38 = vpop.eup %5981  ;;  %v8311_v17 = vld.sshfl [vmem:[#allocation1 + $0x8] sm:$0xff pattern:$0x75316420]  ;;  %v8313_v32 = vld.sshfl [vmem:[#allocation1] sm:$0xff pattern:$0x75316420]  ;;  %4864 = vmatpush.msra.mxu2 %v4795_v11 }
 0x705   :  { %4203 = vst [vmem:[#allocation1 + $0x20] ss:$2 sm:$0xff] %v5982_v38  ;;  %4679 = vrot.lane.b32.xlu1 %v4676_v52, %s6323_s28  ;;  %4320 = vrot.lane.b32.xlu2 %v5982_v38, %s6323_s28  ;;  %v4246_v25 = vmul.f32 %v5982_v38, %v5982_v38  ;;  %v4792_v38 = vld [vmem:[#allocation21 + $0x140] sm:$0xff] }
 0x706   :  { %v5984_v50 = vpop.eup %5983  ;;  %4567 = vst [vmem:[#allocation1] ss:$2 sm:$0xff] %v5980_v4  ;;  %v4765_v4 = vld [vmem:[#allocation21 + $0x68] sm:$0xff]  ;;  %4865 = vmatpush.msra.mxu2 %v4794_v46 }
 0x707   :  { %4201 = vst [vmem:[#allocation1 + $0x10] ss:$2 sm:$0xff] %v5984_v50  ;;  %4318 = vrot.lane.b32.xlu0 %v5984_v50, %s6323_s28  ;;  %v5986_v43 = vpop.eup %5985  ;;  %v4245_v22 = vmul.f32 %v5984_v50, %v5984_v50  ;;  %v4791_v50 = vld [vmem:[#allocation21 + $0x138] sm:$0xff] }
 0x708   :  { %v4678_v0 = vrot.slane %v5986_v43, 6  ;;  %v4613_v10 = vmul.f32 %v5986_v43, %v5986_v43  ;;  %4866 = vmatpush.msra.mxu2 %v4793_v14 }
 0x70a   :  { %4867 = vmatpush.msra.mxu2 %v4792_v38 }
 0x70c   :  { %v8318_v39 = vld.sshfl [vmem:[#allocation1 + $0x20] sm:$0xff pattern:$0x75316420]  ;;  %4868 = vmatpush.msra.mxu2 %v4791_v50 }
 0x70d   :  { %4316 = vrot.lane.b32.xlu2 %v5976_v20, %s6323_s28  ;;  %v4572_v21 = vld.sshfl [vmem:[#allocation1] sm:$0xff pattern:$0x75316420]  ;;  %4254 = vst [vmem:[#allocation1 + $0x20] ss:$2 sm:$0xff] %v4246_v25 }
 0x70e   :  { %v4207_v56 = vld.sshfl [vmem:[#allocation1 + $0x18] sm:$0xff pattern:$0x75316420]  ;;  %v4206_v53 = vld.sshfl [vmem:[#allocation1 + $0x10] sm:$0xff pattern:$0x75316420] }
 0x70f   :  { %4683 = vrot.lane.b32.xlu0 %v4678_v0, %s6323_s28  ;;  %4252 = vst [vmem:[#allocation1 + $0x10] ss:$2 sm:$0xff] %v4245_v22  ;;  %v4573_v15 = vld.sshfl [vmem:[#allocation1 + $0x8] sm:$0xff pattern:$0x75316420]  ;;  %v4779_v25 = vld [vmem:[#allocation21 + $0xd8] sm:$0xff] }
 0x710   :  { %4617 = vst [vmem:[#allocation1] ss:$2 sm:$0xff] %v4611_v12  ;;  %v4762_v22 = vld [vmem:[#allocation21 + $0x50] sm:$0xff]  ;;  %v4789_v12 = vld [vmem:[#allocation21 + $0x128] sm:$0xff] }
 0x711   :  { %v4778_v0 = vld [vmem:[#allocation21 + $0xd0] sm:$0xff] }
 0x714   :  { %v4259_v34 = vld.sshfl [vmem:[#allocation1 + $0x20] sm:$0xff pattern:$0x75316420] }
 0x715   :  { %4571 = vst [vmem:[#allocation1 + $0x20] ss:$2 sm:$0xff] %v5986_v43  ;;  %v4763_v43 = vld [vmem:[#allocation21 + $0x58] sm:$0xff] }
 0x716   :  { %v4257_v36 = vld.sshfl [vmem:[#allocation1 + $0x10] sm:$0xff pattern:$0x75316420]  ;;  %v4258_v47 = vld.sshfl [vmem:[#allocation1 + $0x18] sm:$0xff pattern:$0x75316420] }
 0x717   :  { %4569 = vst [vmem:[#allocation1 + $0x10] ss:$2 sm:$0xff] %v5978_v55  ;;  %v4623_v23 = vld.sshfl [vmem:[#allocation1 + $0x8] sm:$0xff pattern:$0x75316420] }
 0x718   :  { %v4622_v35 = vld.sshfl [vmem:[#allocation1] sm:$0xff pattern:$0x75316420] }
 0x71c   :  { %v4576_v13 = vld.sshfl [vmem:[#allocation1 + $0x20] sm:$0xff pattern:$0x75316420] }
 0x71d   :  { %4621 = vst [vmem:[#allocation1 + $0x20] ss:$2 sm:$0xff] %v4613_v10  ;;  %v4787_v10 = vld [vmem:[#allocation21 + $0x118] sm:$0xff] }
 0x71e   :  { %v4574_v5 = vld.sshfl [vmem:[#allocation1 + $0x10] sm:$0xff pattern:$0x75316420]  ;;  %v4575_v44 = vld.sshfl [vmem:[#allocation1 + $0x18] sm:$0xff pattern:$0x75316420] }
 0x71f   :  { %4619 = vst [vmem:[#allocation1 + $0x10] ss:$2 sm:$0xff] %v4612_v6  ;;  %v4775_v6 = vld [vmem:[#allocation21 + $0xb8] sm:$0xff] }
 0x724   :  { %v4626_v59 = vld.sshfl [vmem:[#allocation1 + $0x20] sm:$0xff pattern:$0x75316420] }
 0x726   :  { %v4625_v33 = vld.sshfl [vmem:[#allocation1 + $0x18] sm:$0xff pattern:$0x75316420]  ;;  %v4624_v55 = vld.sshfl [vmem:[#allocation1 + $0x10] sm:$0xff pattern:$0x75316420] }
 0x75f   :  { %v4321_v2 = vpop.permute.xlu2 %4320 }
 0x760   :  { %v4324_v57 = vrot.slane %v4321_v2, 4  ;;  %v4774_v2 = vld [vmem:[#allocation21 + $0xb0] sm:$0xff] }
 0x767   :  { %v4317_v24 = vpop.permute.xlu2 %4316 }
 0x768   :  { %v4322_v51 = vrot.slane %v4317_v24, 4 }
 0x76f   :  { %v4682_v62 = vpop.permute.xlu1 %4681 }
 0x770   :  { %v4686_v27 = vrot.slane %v4682_v62, 4 }
 0x777   :  { %v4680_v30 = vpop.permute.xlu1 %4679 }
 0x778   :  { %v4685_v19 = vrot.slane %v4680_v30, 4 }
 0x779   :  { %v4319_v41 = vpop.permute.xlu0 %4318 }
 0x77a   :  { %v4688_v29 = vsel %vm754_vm15, %v4685_v19, %v4686_v27  ;;  %v4323_v42 = vrot.slane %v4319_v41, 4 }
 0x77b   :  { %v4689_v20 = vsel %vm475_vm0, %v4680_v30, %v4688_v29  ;;  %v4757_v30 = vld [vmem:[#allocation21 + $0x28] sm:$0xff]  ;;  %v4772_v29 = vld [vmem:[#allocation21 + $0xa0] sm:$0xff] }
 0x77c   :  { %4694 = vst [vmem:[#allocation5] sm:$0xcc] %v4689_v20  ;;  %v4325_v63 = vsel %vm754_vm15, %v4322_v51, %v4323_v42  ;;  %v4327_v9 = vsel %vm754_vm15, %v4323_v42, %v4324_v57  ;;  %v4800_v57 = vld [vmem:[#allocation21 + $0x180] sm:$0xff]  ;;  %v4755_v42 = vld [vmem:[#allocation21 + $0x18] sm:$0xff] }
 0x77d   :  { %v4326_v61 = vsel %vm475_vm0, %v4317_v24, %v4325_v63  ;;  %v4328_v45 = vsel %vm475_vm0, %v4319_v41, %v4327_v9  ;;  %v4801_v24 = vld [vmem:[#allocation21 + $0x188] sm:$0xf]  ;;  %v4784_v41 = vld [vmem:[#allocation21 + $0x100] sm:$0xff]  ;;  %v4771_v20 = vld [vmem:[#allocation21 + $0x98] sm:$0xff] }
 0x77e   :  { %4331 = vst [vmem:[#allocation5] sm:$0x33] %v4326_v61  ;;  %5843 = vmatpush.msk.msra.mxu3 %vm754_vm15, %v4801_v24  ;;  %v4756_v51 = vld [vmem:[#allocation21 + $0x20] sm:$0xff] }
 0x77f   :  { %4332 = vst.msk [vmem:[#allocation5 + $0x8] sm:$0x33] %vm8062_vm2, %v4328_v45  ;;  %v4754_v45 = vld [vmem:[#allocation21 + $0x10] sm:$0xff] }
 0x780   :  { %4895 = vmatpush.msra.mxu3 %v4800_v57 }
 0x781   :  { %v4684_v58 = vpop.permute.xlu0 %4683 }
 0x782   :  { %v4687_v40 = vrot.slane %v4684_v58, 4  ;;  %v4770_v58 = vld [vmem:[#allocation21 + $0x90] sm:$0xff] }
 0x784   :  { %v4690_v31 = vsel %vm754_vm15, %v4686_v27, %v4687_v40  ;;  %v4773_v27 = vld [vmem:[#allocation21 + $0xa8] sm:$0xff] }
 0x785   :  { %v4691_v54 = vsel %vm475_vm0, %v4682_v62, %v4690_v31  ;;  %v8332_v60 = vld [vmem:[#allocation5] sm:$0xff]  ;;  %v4785_v62 = vld [vmem:[#allocation21 + $0x108] sm:$0xff] }
 0x786   :  { %4695 = vst.msk [vmem:[#allocation5 + $0x8] sm:$0xcc] %vm8069_vm7, %v4691_v54  ;;  %4700 = vrot.lane.b32.xlu1 %v8332_v60, %s6320_s0  ;;  %v4753_v31 = vld [vmem:[#allocation21 + $0x8] sm:$0xff] }
 0x787   :  { %v4769_v54 = vld [vmem:[#allocation21 + $0x88] sm:$0xff] }
 0x78d   :  { %v8338_v37 = vld [vmem:[#allocation5 + $0x8] sm:$0xff] }
 0x78e   :  { %4702 = vrot.lane.b32.xlu0 %v8338_v37, %s6320_s0  ;;  %4715 = vrot.lane.b32.xlu2 %v8338_v37, %s6319_s21 }
 0x78f   :  { %4741 = vrot.lane.b32.xlu1 %v8338_v37, %s6321_s22 }
 0x796   :  { %4728 = vrot.lane.b32.xlu0 %v8338_v37, %s6322_s8  ;;  %4713 = vrot.lane.b32.xlu2 %v8332_v60, %s6319_s21 }
 0x797   :  { %4209 = vrot.lane.b32.xlu1 %v8306_v28, %s6323_s28  ;;  %v4766_v28 = vld [vmem:[#allocation21 + $0x70] sm:$0xff] }
 0x798   :  { %4821 = vmatpush.msra.mxu0 %v4766_v28 }
 0x79a   :  { %4822 = vmatpush.msra.mxu0 %v4765_v4 }
 0x79e   :  { %4726 = vrot.lane.b32.xlu0 %v8332_v60, %s6322_s8  ;;  %4739 = vrot.lane.b32.xlu2 %v8332_v60, %s6321_s22  ;;  %s5846_s22 = sld [smem:[#allocation18 + $0x2]] }
 0x79f   :  { %4215 = vrot.lane.b32.xlu1 %v4207_v56, %s6323_s28  ;;  %v4761_v56 = vld [vmem:[#allocation21 + $0x48] sm:$0xff]  ;;  %s5845_s8 = sld [smem:[#allocation18 + $0x1]] }
 0x7a6   :  { %4213 = vrot.lane.b32.xlu2 %v4206_v53, %s6323_s28  ;;  %4211 = vrot.lane.b32.xlu0 %v8308_v7, %s6323_s28  ;;  %v4782_v7 = vld [vmem:[#allocation21 + $0xf0] sm:$0xff]  ;;  %v4777_v53 = vld [vmem:[#allocation21 + $0xc8] sm:$0xff] }
 0x7a7   :  { %4264 = vrot.lane.b32.xlu1 %v4257_v36, %s6323_s28  ;;  %4841 = vmatpush.msra.mxu1 %v4782_v7  ;;  %v4776_v36 = vld [vmem:[#allocation21 + $0xc0] sm:$0xff] }
 0x7a9   :  { %4842 = vmatpush.msra.mxu1 %v4781_v8 }
 0x7ae   :  { %4262 = vrot.lane.b32.xlu2 %v8311_v17, %s6323_s28  ;;  %4260 = vrot.lane.b32.xlu0 %v8313_v32, %s6323_s28  ;;  %v4764_v17 = vld [vmem:[#allocation21 + $0x60] sm:$0xff] }
 0x7af   :  { %4577 = vrot.lane.b32.xlu1 %v4572_v21, %s6323_s28  ;;  %v4780_v32 = vld [vmem:[#allocation21 + $0xe0] sm:$0xff]  ;;  %4823 = vmatpush.msra.mxu0 %v4764_v17 }
 0x7b0   :  { %4843 = vmatpush.msra.mxu1 %v4780_v32 }
 0x7b1   :  { %4824 = vmatpush.msra.mxu0 %v4763_v43 }
 0x7b2   :  { %4844 = vmatpush.msra.mxu1 %v4779_v25 }
 0x7b3   :  { %4825 = vmatpush.msra.mxu0 %v4762_v22 }
 0x7b4   :  { %4845 = vmatpush.msra.mxu1 %v4778_v0 }
 0x7b5   :  { %4826 = vmatpush.msra.mxu0 %v4761_v56 }
 0x7b6   :  { %4266 = vrot.lane.b32.xlu2 %v4258_v47, %s6323_s28  ;;  %4217 = vrot.lane.b32.xlu0 %v8318_v39, %s6323_s28  ;;  %v4790_v39 = vld [vmem:[#allocation21 + $0x130] sm:$0xff] }
 0x7b7   :  { %4268 = vrot.lane.b32.xlu1 %v4259_v34, %s6323_s28  ;;  %4869 = vmatpush.msra.mxu2 %v4790_v39  ;;  %v4760_v34 = vld [vmem:[#allocation21 + $0x40] sm:$0xff] }
 0x7b8   :  { %4846 = vmatpush.msra.mxu1 %v4777_v53  ;;  %4827 = vmatpush.msra.mxu0 %v4760_v34 }
 0x7b9   :  { %4870 = vmatpush.msra.mxu2 %v4789_v12 }
 0x7ba   :  { %4847 = vmatpush.msra.mxu1 %v4776_v36 }
 0x7bc   :  { %4848 = vmatpush.msra.mxu1 %v4775_v6 }
 0x7be   :  { %4581 = vrot.lane.b32.xlu2 %v4574_v5, %s6323_s28  ;;  %4579 = vrot.lane.b32.xlu0 %v4573_v15, %s6323_s28  ;;  %v4788_v15 = vld [vmem:[#allocation21 + $0x120] sm:$0xff]  ;;  %v4786_v5 = vld [vmem:[#allocation21 + $0x110] sm:$0xff] }
 0x7bf   :  { %4629 = vrot.lane.b32.xlu1 %v4623_v23, %s6323_s28  ;;  %4871 = vmatpush.msra.mxu2 %v4788_v15 }
 0x7c0   :  { %4849 = vmatpush.msra.mxu1 %v4774_v2 }
 0x7c1   :  { %4872 = vmatpush.msra.mxu2 %v4787_v10 }
 0x7c2   :  { %4850 = vmatpush.msra.mxu1 %v4773_v27 }
 0x7c3   :  { %4873 = vmatpush.msra.mxu2 %v4786_v5 }
 0x7c4   :  { %4851 = vmatpush.msra.mxu1 %v4772_v29 }
 0x7c5   :  { %4874 = vmatpush.msra.mxu2 %v4785_v62 }
 0x7c6   :  { %4583 = vrot.lane.b32.xlu0 %v4575_v44, %s6323_s28  ;;  %4627 = vrot.lane.b32.xlu2 %v4622_v35, %s6323_s28  ;;  %v4758_v44 = vld [vmem:[#allocation21 + $0x30] sm:$0xff]  ;;  %v4752_v35 = vld [vmem:[#allocation21] sm:$0xff] }
 0x7c7   :  { %4633 = vrot.lane.b32.xlu1 %v4625_v33, %s6323_s28  ;;  %4875 = vmatpush.msra.mxu2 %v4784_v41 }
 0x7c8   :  { %4852 = vmatpush.msra.mxu1 %v4771_v20 }
 0x7ca   :  { %4853 = vmatpush.msra.mxu1 %v4770_v58 }
 0x7cc   :  { %4854 = vmatpush.msra.mxu1 %v4769_v54 }
 0x7ce   :  { %4631 = vrot.lane.b32.xlu0 %v4624_v55, %s6323_s28  ;;  %4585 = vrot.lane.b32.xlu2 %v4576_v13, %s6323_s28  ;;  %v4759_v13 = vld [vmem:[#allocation21 + $0x38] sm:$0xff] }
 0x7cf   :  { %4828 = vmatpush.msra.mxu0 %v4759_v13 }
 0x7d1   :  { %4829 = vmatpush.msra.mxu0 %v4758_v44 }
 0x7d3   :  { %4830 = vmatpush.msra.mxu0 %v4757_v30 }
 0x7d5   :  { %4831 = vmatpush.msra.mxu0 %v4756_v51 }
 0x7d6   :  { %4635 = vrot.lane.b32.xlu0 %v4626_v59, %s6323_s28  ;;  %v4768_v59 = vld [vmem:[#allocation21 + $0x80] sm:$0xff]  ;;  %s5854_s28 = sld [smem:[#allocation18 + $0x7]] }
 0x7d7   :  { %4832 = vmatpush.msra.mxu0 %v4755_v42  ;;  %4855 = vmatpush.msra.mxu1 %v4768_v59 }
 0x7d9   :  { %4833 = vmatpush.msra.mxu0 %v4754_v45 }
 0x7db   :  { %4834 = vmatpush.msra.mxu0 %v4753_v31 }
 0x7dd   :  { %4835 = vmatpush.msra.mxu0 %v4752_v35 }
 0x7e8   :  { %v8379_v52 = vpop.permute.xlu2 %4715 }
 0x7e9   :  { %v4718_v23 = vrot.slane %v8379_v52, 4 }
 0x7eb   :  { %v4721_v18 = vsel %vm303_vm12, %v8379_v52, %v4718_v23 }
 0x7f0   :  { %v8381_v21 = vpop.permute.xlu2 %4713 }
 0x7f8   :  { %v8383_v47 = vpop.permute.xlu1 %4700  ;;  %v8385_v19 = vpop.permute.xlu2 %4739 }
 0x7f9   :  { %v4704_v16 = vrot.slane %v8383_v47, 4  ;;  %v4743_v50 = vrot.slane %v8385_v19, 4 }
 0x800   :  { %v4703_v63 = vpop.permute.xlu0 %4702  ;;  %v4214_v55 = vpop.permute.xlu2 %4213 }
 0x801   :  { %v4705_v9 = vrot.slane %v4703_v63, 4  ;;  %v4742_v61 = vpop.permute.xlu1 %4741 }
 0x802   :  { %v4744_v11 = vrot.slane %v4742_v61, 4 }
 0x803   :  { %v4708_v40 = vsel %vm263_vm11, %v4703_v63, %v4705_v9  ;;  %v4706_v26 = vsel %vm754_vm15, %v4704_v16, %v4705_v9 }
 0x804   :  { %v4712_v33 = vmax.f32 %v8338_v37, %v4708_v40  ;;  %v4717_v37 = vrot.slane %v8381_v21, 4  ;;  %v4707_v14 = vsel %vm263_vm11, %v8383_v47, %v4706_v26  ;;  %v4747_v4 = vsel %vm383_vm14, %v4742_v61, %v4744_v11 }
 0x805   :  { %v4711_v38 = vmax.f32 %v8332_v60, %v4707_v14  ;;  %v4745_v22 = vsel %vm754_vm15, %v4743_v50, %v4744_v11 }
 0x806   :  { %v4725_v46 = vmax.f32 %v4712_v33, %v4721_v18  ;;  %v4719_v52 = vsel %vm754_vm15, %v4717_v37, %v4718_v23  ;;  %v4746_v60 = vsel %vm383_vm14, %v8385_v19, %v4745_v22  ;;  %vm4909_vm14 = vcmask 1044096  }
 0x807   :  { %v4720_v39 = vsel %vm303_vm12, %v8381_v21, %v4719_v52 }
 0x808   :  { %v4729_v3 = vpop.permute.xlu0 %4728  ;;  %v4263_v17 = vpop.permute.xlu2 %4262  ;;  %v4724_v0 = vmax.f32 %v4711_v38, %v4720_v39 }
 0x809   :  { %v4731_v49 = vrot.slane %v4729_v3, 4  ;;  %v4210_v48 = vpop.permute.xlu1 %4209 }
 0x80b   :  { %v4734_v28 = vsel %vm343_vm13, %v4729_v3, %v4731_v49 }
 0x80c   :  { %v4738_v7 = vmax.f32 %v4725_v46, %v4734_v28 }
 0x80e   :  { %v4751_v8 = vmax.f32 %v4738_v7, %v4747_v4 }
 0x810   :  { %4806 = vst [vmem:[#allocation1 + $0x10] ss:$2 sm:$0xff] %v4751_v8  ;;  %v4727_v32 = vpop.permute.xlu0 %4726  ;;  %v4267_v10 = vpop.permute.xlu2 %4266 }
 0x811   :  { %v4730_v43 = vrot.slane %v4727_v32, 4  ;;  %v4216_v25 = vpop.permute.xlu1 %4215 }
 0x812   :  { %v4221_v51 = vsel %vm475_vm0, %v4214_v55, %v4216_v25 }
 0x813   :  { %v4732_v12 = vsel %vm754_vm15, %v4730_v43, %v4731_v49  ;;  %v4230_v9 = vsel %vm210_vm3, %v4221_v51, 0.0  ;;  %vm4910_vm15 = vcmask 654340  }
 0x814   :  { %v4733_v56 = vsel %vm343_vm13, %v4727_v32, %v4732_v12  ;;  %vm4232_vm13 = vcmask 123904   ;;  %vm4911_vm5 = vmor %vm4910_vm15, %vm4909_vm14  ;;  %vm5471_vm14 = vcmask 326656  }
 0x815   :  { %v4737_v53 = vmax.f32 %v4724_v0, %v4733_v56  ;;  %4912 = vst.msk [vmem:[#allocation6 + $0x4] sm:$0xff] %vm4911_vm5, %v8858_v1 }
 0x817   :  { %v4750_v15 = vmax.f32 %v4737_v53, %v4746_v60  ;;  %v4809_v34 = vld.sshfl [vmem:[#allocation1 + $0x10] sm:$0xff pattern:$0x75316420]  ;;  %v4810_v36 = vld.sshfl [vmem:[#allocation1 + $0x18] sm:$0xff pattern:$0x75316420] }
 0x818   :  { %4876 = vmatmul.f32.vlgmr.msra.gmra.mxu2 %v4809_v34  ;;  %5844 = vmatmul.msk.f32.vlgmr.msra.gmra.mxu3 %vm4814_vm4, %v4810_v36  ;;  %v4212_v47 = vpop.permute.xlu0 %4211  ;;  %v4582_v57 = vpop.permute.xlu2 %4581  ;;  %v6325_v36 = vmov 800.0  }
 0x819   :  { %4804 = vst [vmem:[#allocation1] ss:$2 sm:$0xff] %v4750_v15  ;;  %v4265_v21 = vpop.permute.xlu1 %4264  ;;  %v4219_v13 = vsel %vm475_vm0, %v4210_v48, %v4212_v47  ;;  %v4220_v6 = vsel %vm475_vm0, %v4212_v47, %v4214_v55  ;;  %5987 = vrcp.f32 %v6325_v36  ;;  %v4933_v36 = vstv %s5846_s22  ;;  %s6326_s22 = smov 1  }
 0x81a   :  { %v4227_v30 = vsel %vm210_vm3, %v4219_v13, 0.0  ;;  %v4228_v27 = vsel %vm210_vm3, %v4220_v6, 0.0  ;;  %v4271_v19 = vsel %vm475_vm0, %v4263_v17, %v4265_v21  ;;  %v4272_v20 = vsel %vm475_vm0, %v4265_v21, %v4267_v10 }
 0x81b   :  { %v4229_v29 = vadd.f32 %v4228_v27, %v4227_v30  ;;  %v4279_v42 = vsel %vm210_vm3, %v4271_v19, 0.0  ;;  %v4281_v45 = vsel %vm210_vm3, %v4272_v20, 0.0 }
 0x81d   :  { %v4231_v58 = vadd.f32 %v4230_v9, %v4229_v29 }
 0x81f   :  { %v5988_v47 = vpop.eup %5987 }
 0x820   :  { %v4261_v5 = vpop.permute.xlu0 %4260  ;;  %v4807_v44 = vld.sshfl [vmem:[#allocation1] sm:$0xff pattern:$0x75316420]  ;;  %v4808_v2 = vld.sshfl [vmem:[#allocation1 + $0x8] sm:$0xff pattern:$0x75316420]  ;;  %v4628_v16 = vpop.permute.xlu2 %4627  ;;  %vm4299_vm6 = vweird.f32 %v5988_v47 }
 0x821   :  { %v4270_v62 = vsel %vm475_vm0, %v4261_v5, %v4263_v17  ;;  %v4578_v24 = vpop.permute.xlu1 %4577  ;;  %4836 = vmatmul.f32.vlgmr.msra.gmra.mxu0 %v4807_v44  ;;  %4856 = vmatmul.f32.vlgmr.msra.gmra.mxu1 %v4808_v2  ;;  %v4295_v21 = vmul.f32 800.0, %v5988_v47 }
 0x822   :  { %v4278_v41 = vsel %vm210_vm3, %v4270_v62, 0.0 }
 0x823   :  { %v4280_v63 = vadd.f32 %v4279_v42, %v4278_v41  ;;  %v4296_v5 = vsub.f32 1.0, %v4295_v21 }
 0x825   :  { %v4282_v23 = vadd.f32 %v4281_v45, %v4280_v63 }
 0x828   :  { %v4218_v61 = vpop.permute.xlu0 %4217  ;;  %v4586_v48 = vpop.permute.xlu2 %4585 }
 0x829   :  { %v4222_v40 = vsel %vm475_vm0, %v4216_v25, %v4218_v61  ;;  %v4269_v31 = vpop.permute.xlu1 %4268 }
 0x82a   :  { %v4233_v54 = vsel %vm4232_vm13, %v4222_v40, 0.0  ;;  %v4273_v35 = vsel %vm475_vm0, %v4267_v10, %v4269_v31 }
 0x82b   :  { %v4234_v33 = vadd.f32 %v4233_v54, %v4231_v58  ;;  %v4283_v55 = vsel %vm4232_vm13, %v4273_v35, 0.0 }
 0x82c   :  { %v4284_v59 = vadd.f32 %v4283_v55, %v4282_v23 }
 0x82d   :  { %4235 = vadd.xlane.f32.xlu2 %v4234_v33 }
 0x82e   :  { %4285 = vadd.xlane.f32.xlu1 %v4284_v59 }
 0x830   :  { %v4580_v3 = vpop.permute.xlu0 %4579 }
 0x831   :  { %v4587_v18 = vsel %vm475_vm0, %v4578_v24, %v4580_v3  ;;  %v4588_v26 = vsel %vm475_vm0, %v4580_v3, %v4582_v57  ;;  %v4630_v14 = vpop.permute.xlu1 %4629 }
 0x832   :  { %v4595_v11 = vsel %vm210_vm3, %v4587_v18, 0.0  ;;  %v4596_v49 = vsel %vm210_vm3, %v4588_v26, 0.0  ;;  %v4637_v32 = vsel %vm475_vm0, %v4628_v16, %v4630_v14 }
 0x833   :  { %v4597_v37 = vadd.f32 %v4596_v49, %v4595_v11  ;;  %v4645_v25 = vsel %vm210_vm3, %v4637_v32, 0.0 }
 0x838   :  { %v4584_v46 = vpop.permute.xlu0 %4583 }
 0x839   :  { %v4589_v28 = vsel %vm475_vm0, %v4582_v57, %v4584_v46  ;;  %v4590_v7 = vsel %vm475_vm0, %v4584_v46, %v4586_v48  ;;  %v4634_v39 = vpop.permute.xlu1 %4633  ;;  %v4297_v57 = vmul.f32 %v5988_v47, %v4296_v5 }
 0x83a   :  { %v4598_v4 = vsel %vm210_vm3, %v4589_v28, 0.0  ;;  %v4600_v52 = vsel %vm4232_vm13, %v4590_v7, 0.0 }
 0x83b   :  { %v4599_v8 = vadd.f32 %v4598_v4, %v4597_v37  ;;  %v4298_v63 = vadd.f32 %v5988_v47, %v4297_v57 }
 0x83d   :  { %v4601_v38 = vadd.f32 %v4600_v52, %v4599_v8  ;;  %v4300_v40 = vsel %vm4299_vm6, %v5988_v47, %v4298_v63  ;;  %v4923_v47 = vstv %s5845_s8  ;;  %v5096_v63 = vstv %s5860_s9  ;;  %s5872_s8 = sld [smem:[#allocation19 + $0x2]]  ;;  %s6329_s9 = smov [#allocation27]  }
 0x83f   :  { %4602 = vadd.xlane.f32.xlu0 %v4601_v38 }
 0x840   :  { %v4632_v17 = vpop.permute.xlu0 %4631 }
 0x841   :  { %v4638_v50 = vsel %vm475_vm0, %v4630_v14, %v4632_v17  ;;  %v4639_v22 = vsel %vm475_vm0, %v4632_v17, %v4634_v39 }
 0x842   :  { %v4646_v43 = vsel %vm210_vm3, %v4638_v50, 0.0  ;;  %v4648_v12 = vsel %vm210_vm3, %v4639_v22, 0.0 }
 0x843   :  { %v4647_v0 = vadd.f32 %v4646_v43, %v4645_v25 }
 0x845   :  { %v4649_v53 = vadd.f32 %v4648_v12, %v4647_v0 }
 0x848   :  { %v4636_v56 = vpop.permute.xlu0 %4635 }
 0x849   :  { %v4640_v60 = vsel %vm475_vm0, %v4634_v39, %v4636_v56  ;;  %vm4900_vm0 = vcmask 650240  }
 0x84a   :  { %v4650_v15 = vsel %vm4232_vm13, %v4640_v60, 0.0 }
 0x84b   :  { %v4651_v34 = vadd.f32 %v4650_v15, %v4649_v53 }
 0x84d   :  { %4652 = vadd.xlane.f32.xlu2 %v4651_v34 }
 0x89b   :  { %v4877_v44 = vpop.f32.mrf.mxu2  ;;  %v4897_v27 = vpop.f32.mrf.mxu3 }
 0x89e   :  { %v4837_v10 = vpop.f32.mrf.mxu0  ;;  %v4857_v13 = vpop.f32.mrf.mxu1 }
 0x89f   :  { %v4858_v6 = vadd.f32 %v4857_v13, %v4837_v10 }
 0x8a0   :  { %v4236_v2 = vpop.xlane.xlu2 %4235 }
 0x8a1   :  { %v4878_v62 = vadd.f32 %v4877_v44, %v4858_v6  ;;  %v4286_v24 = vpop.xlane.xlu1 %4285  ;;  %v4237_v30 = vsel %vm210_vm3, %v4236_v2, 0.0  ;;  %v5056_v44 = vstv %s5854_s28  ;;  %s5882_s28 = sld [smem:[#allocation19 + $0x3]] }
 0x8a2   :  { %v4287_v19 = vsel %vm210_vm3, %v4286_v24, 0.0  ;;  %v4238_v41 = vrot.slane %v4237_v30, 4 }
 0x8a3   :  { %v4898_v1 = vadd.f32 %v4897_v27, %v4878_v62  ;;  %v4288_v51 = vrot.slane %v4287_v19, 4 }
 0x8a4   :  { %v4239_v29 = vadd.f32 %v4238_v41, %v4237_v30 }
 0x8a5   :  { %4901 = vst.msk [vmem:[#allocation5] sm:$0xf] %vm4900_vm0, %v4898_v1  ;;  %v4289_v42 = vadd.f32 %v4288_v51, %v4287_v19 }
 0x8a6   :  { %v4240_v20 = vrot.slane %v4239_v29, 2 }
 0x8a7   :  { %v4290_v9 = vrot.slane %v4289_v42, 2 }
 0x8a8   :  { %v4241_v61 = vadd.f32 %v4240_v20, %v4239_v29  ;;  %v4963_v20 = vstv %s5851_s29 }
 0x8a9   :  { %v4291_v45 = vadd.f32 %v4290_v9, %v4289_v42  ;;  %v4951_v42 = vstv %s5849_s7 }
 0x8aa   :  { %v4242_v58 = vrot.slane %v4241_v61, 1 }
 0x8ab   :  { %v4292_v31 = vrot.slane %v4291_v45, 1 }
 0x8ac   :  { %v4243_v54 = vadd.f32 %v4242_v58, %v4241_v61  ;;  %v4902_v50 = vld [vmem:[#allocation5] sm:$0x3]  ;;  %v4905_v41 = vld [vmem:[#allocation5] sm:$0xc] }
 0x8ad   :  { %v4293_v23 = vadd.f32 %v4292_v31, %v4291_v45 }
 0x8ae   :  { %v4301_v35 = vmul.f32 %v4300_v40, %v4243_v54 }
 0x8af   :  { %v4302_v33 = vmul.f32 %v4300_v40, %v4293_v23  ;;  %v5084_v23 = vstv %s5858_s11  ;;  %s6328_s11 = smov 120  }
 0x8b0   :  { %v4303_v55 = vmul.f32 %v4301_v35, %v4301_v35  ;;  %v4903_v43 = vsub.f32 %v4902_v50, %v4301_v35  ;;  %v5209_v35 = vstv %s5868_s18 }
 0x8b2   :  { %v4304_v59 = vsub.f32 %v4302_v33, %v4303_v55  ;;  %v4603_v16 = vpop.xlane.xlu0 %4602  ;;  %v5066_v55 = vstv %s5855_s19 }
 0x8b3   :  { %v4604_v3 = vsel %vm210_vm3, %v4603_v16, 0.0 }
 0x8b4   :  { %v4305_v18 = vadd.f32 1e-05, %v4304_v59  ;;  %v4605_v26 = vrot.slane %v4604_v3, 4 }
 0x8b6   :  { %5989 = vrsqrt.f32 %v4305_v18  ;;  %v4606_v11 = vadd.f32 %v4605_v26, %v4604_v3  ;;  %vm4312_vm10 = vweird.f32 %v4305_v18  ;;  %v5181_v26 = vstv %s5864_s1  ;;  %s5749_s1 = sshll.u32 %s8754_s14, 4  ;;  %s5750_s1 = int_to_ptr.hbm [resolvable:$true] %s5749_s1 }
 0x8b8   :  { %v4607_v49 = vrot.slane %v4606_v11, 2 }
 0x8ba   :  { %v4608_v37 = vadd.f32 %v4607_v49, %v4606_v11  ;;  %v5191_v11 = vstv %s5865_s30  ;;  %v5316_v49 = vstv %s5875_s3  ;;  %s6330_s30 = smov [#allocation28]  }
 0x8bb   :  { %s5758_s3 = sshll.u32 %s6330_s30, 4  ;;  %s5759_s3 = int_to_ptr.vmem [resolvable:$true] %s5758_s3 }
 0x8bc   :  { %v5990_v48 = vpop.eup %5989  ;;  %v4609_v8 = vrot.slane %v4608_v37, 1 }
 0x8bd   :  { %v4307_v46 = vmul.f32 %v5990_v48, %v4305_v18  ;;  %vm4313_vm9 = vweird.f32 %v5990_v48 }
 0x8be   :  { %vm4314_vm2 = vmor %vm4312_vm10, %vm4313_vm9  ;;  %v4610_v25 = vadd.f32 %v4609_v8, %v4608_v37 }
 0x8bf   :  { %v4308_v28 = vmul.f32 %v5990_v48, %v4307_v46 }
 0x8c0   :  { %v4653_v7 = vpop.xlane.xlu2 %4652  ;;  %v4661_v56 = vmul.f32 %v4610_v25, %v4300_v40 }
 0x8c1   :  { %v4309_v14 = vmul.f32 0.5, %v4308_v28  ;;  %v4654_v4 = vsel %vm210_vm3, %v4653_v7, 0.0  ;;  %v5221_v28 = vstv %s5870_s16 }
 0x8c2   :  { %v4655_v52 = vrot.slane %v4654_v4, 4  ;;  %v4663_v15 = vmul.f32 %v4661_v56, %v4661_v56  ;;  %v4906_v57 = vsub.f32 %v4905_v41, %v4661_v56 }
 0x8c3   :  { %v4310_v38 = vsub.f32 1.5, %v4309_v14  ;;  %v5306_v14 = vstv %s5874_s17 }
 0x8c4   :  { %v4656_v17 = vadd.f32 %v4655_v52, %v4654_v4  ;;  %v5334_v52 = vstv %s5878_s2  ;;  %s5760_s2 = sshll.u32 %s8755_s15, 4  ;;  %s5761_s2 = int_to_ptr.hbm [resolvable:$true] %s5760_s2 }
 0x8c5   :  { %v4311_v32 = vmul.f32 %v5990_v48, %v4310_v38  ;;  %v5346_v38 = vstv %s5880_s4 }
 0x8c6   :  { %v4657_v39 = vrot.slane %v4656_v17, 2 }
 0x8c7   :  { %v4315_v22 = vsel %vm4314_vm2, %v5990_v48, %v4311_v32 }
 0x8c8   :  { %v4904_v0 = vmul.f32 %v4903_v43, %v4315_v22  ;;  %v4658_v12 = vadd.f32 %v4657_v39, %v4656_v17  ;;  %v4920_v22 = vstv %s4919_s20 }
 0x8ca   :  { %4913 = vst.msk [vmem:[#allocation6 + $0x4] sm:$0x3] %vm537_vm8, %v4904_v0  ;;  %v4659_v53 = vrot.slane %v4658_v12, 1 }
 0x8cc   :  { %v4660_v60 = vadd.f32 %v4659_v53, %v4658_v12 }
 0x8ce   :  { %v4662_v34 = vmul.f32 %v4660_v60, %v4300_v40 }
 0x8d0   :  { %v4664_v21 = vsub.f32 %v4662_v34, %v4663_v15  ;;  %v4943_v15 = vstv %s5847_s5 }
 0x8d1   :  { %v8448_v10 = vld [vmem:[#allocation6 + $0x4] sm:$0x3] }
 0x8d2   :  { %v4665_v13 = vadd.f32 1e-05, %v4664_v21  ;;  %v4934_v6 = vmul.f32 %v4933_v36, %v8448_v10  ;;  %v4924_v5 = vmul.f32 %v4923_v47, %v8448_v10  ;;  %v5057_v62 = vmul.f32 %v5056_v44, %v8448_v10  ;;  %v8475_v0 = vld [vmem:[#allocation6] sm:$0x33] }
 0x8d3   :  { %v5067_v16 = vmul.f32 %v5066_v55, %v8448_v10  ;;  %v5182_v48 = vmul.f32 %v5181_v26, %v8448_v10  ;;  %v5192_v46 = vmul.f32 %v5191_v11, %v8448_v10  ;;  %v5317_v37 = vmul.f32 %v5316_v49, %v8448_v10 }
 0x8d4   :  { %5991 = vrsqrt.f32 %v4665_v13  ;;  %4936 = vrot.lane.b32.xlu0 %v4934_v6, %s6319_s21  ;;  %4926 = vrot.lane.b32.xlu1 %v4924_v5, %s6320_s0  ;;  %vm4672_vm4 = vweird.f32 %v4665_v13  ;;  %v5307_v8 = vmul.f32 %v5306_v14, %v8448_v10  ;;  %v4921_v53 = vmul.f32 %v4920_v22, %v8475_v0 }
 0x8d5   :  { %v5303_v14 = vstv %s5873_s6 }
 0x8da   :  { %v5992_v2 = vpop.eup %5991 }
 0x8db   :  { %v4667_v24 = vmul.f32 %v5992_v2, %v4665_v13  ;;  %vm4673_vm7 = vweird.f32 %v5992_v2 }
 0x8dc   :  { %5059 = vrot.lane.b32.xlu1 %v5057_v62, %s6320_s0  ;;  %vm4674_vm13 = vmor %vm4672_vm4, %vm4673_vm7 }
 0x8dd   :  { %v4668_v30 = vmul.f32 %v5992_v2, %v4667_v24 }
 0x8df   :  { %v4669_v27 = vmul.f32 0.5, %v4668_v30 }
 0x8e1   :  { %v4670_v19 = vsub.f32 1.5, %v4669_v27 }
 0x8e3   :  { %v4671_v1 = vmul.f32 %v5992_v2, %v4670_v19 }
 0x8e5   :  { %v4675_v51 = vsel %vm4674_vm13, %v5992_v2, %v4671_v1 }
 0x8e6   :  { %v4907_v29 = vmul.f32 %v4906_v57, %v4675_v51 }
 0x8e8   :  { %4914 = vst.msk [vmem:[#allocation6 + $0x4] sm:$0xc] %vm204_vm1, %v4907_v29  ;;  %vm4986_vm1 = vcmask 7168  }
 0x8ef   :  { %v4918_v9 = vld [vmem:[#allocation6 + $0x4] sm:$0xc] }
 0x8f0   :  { %v4952_v61 = vmul.f32 %v4951_v42, %v4918_v9  ;;  %v4964_v45 = vmul.f32 %v4963_v20, %v4918_v9  ;;  %v5097_v58 = vmul.f32 %v5096_v63, %v4918_v9  ;;  %v5085_v33 = vmul.f32 %v5084_v23, %v4918_v9  ;;  %v8479_v34 = vld [vmem:[#allocation6] sm:$0xcc] }
 0x8f1   :  { %v5210_v59 = vmul.f32 %v5209_v35, %v4918_v9  ;;  %v5222_v7 = vmul.f32 %v5221_v28, %v4918_v9  ;;  %v5335_v17 = vmul.f32 %v5334_v52, %v4918_v9  ;;  %v5347_v32 = vmul.f32 %v5346_v38, %v4918_v9 }
 0x8f2   :  { %v5850_v40 = vrot.slane %v4952_v61, 10  ;;  %v5852_v31 = vrot.slane %v4964_v45, 10  ;;  %v5861_v54 = vrot.slane %v5097_v58, 10  ;;  %v5859_v3 = vrot.slane %v5085_v33, 10 }
 0x8f3   :  { %v5869_v18 = vrot.slane %v5210_v59, 10  ;;  %v5871_v4 = vrot.slane %v5222_v7, 10  ;;  %v5879_v50 = vrot.slane %v5335_v17, 10  ;;  %v5881_v43 = vrot.slane %v5347_v32, 10 }
 0x8f4   :  { %4956 = vrot.lane.b32.xlu2 %v5850_v40, %s6320_s0  ;;  %4968 = vrot.lane.b32.xlu0 %v5852_v31, %s6319_s21  ;;  %v4944_v21 = vmul.f32 %v4943_v15, %v8479_v34  ;;  %v5053_v20 = vstv %s5853_s10  ;;  %v5076_v45 = vstv %s5856_s23 }
 0x8f5   :  { %5101 = vrot.lane.b32.xlu1 %v5861_v54, %s6319_s21  ;;  %v5054_v58 = vmul.f32 %v5053_v20, %v8475_v0  ;;  %v5077_v54 = vmul.f32 %v5076_v45, %v8479_v34  ;;  %v5108_v38 = vstv %s5862_s25  ;;  %v5233_v45 = vstv %s5872_s8 }
 0x8f6   :  { %v5848_v44 = vrot.slane %v4944_v21, 10 }
 0x8f7   :  { %v5857_v59 = vrot.slane %v5077_v54, 10 }
 0x8fc   :  { %5069 = vrot.lane.b32.xlu2 %v5067_v16, %s6319_s21  ;;  %5089 = vrot.lane.b32.xlu0 %v5859_v3, %s6320_s0 }
 0x8fd   :  { %5214 = vrot.lane.b32.xlu1 %v5869_v18, %s6320_s0 }
 0x904   :  { %5184 = vrot.lane.b32.xlu2 %v5182_v48, %s6320_s0  ;;  %5194 = vrot.lane.b32.xlu0 %v5192_v46, %s6319_s21  ;;  %v5326_v46 = vstv %s5876_s24 }
 0x905   :  { %5319 = vrot.lane.b32.xlu1 %v5317_v37, %s6319_s21 }
 0x90c   :  { %5226 = vrot.lane.b32.xlu2 %v5871_v4, %s6319_s21  ;;  %5309 = vrot.lane.b32.xlu0 %v5307_v8, %s6320_s0 }
 0x914   :  { %5339 = vrot.lane.b32.xlu2 %v5879_v50, %s6320_s0  ;;  %5351 = vrot.lane.b32.xlu0 %v5881_v43, %s6319_s21  ;;  %s4974_s21 = sld [smem:[#allocation19]]  ;;  %v5327_v50 = vmul.f32 %v5326_v46, %v8479_v34  ;;  %v5304_v43 = vmul.f32 %v5303_v14, %v8475_v0 }
 0x916   :  { %v5877_v15 = vrot.slane %v5327_v50, 10 }
 0x91a   :  { %v4975_v41 = vstv %s4974_s21 }
 0x946   :  { %v4927_v25 = vpop.permute.xlu1 %4926  ;;  %v4937_v12 = vpop.permute.xlu0 %4936 }
 0x947   :  { %v4928_v39 = vrot.slane %v4927_v25, 4  ;;  %v4938_v60 = vrot.slane %v4937_v12, 4 }
 0x949   :  { %v4929_v56 = vsel %vm263_vm11, %v4928_v39, %v4927_v25  ;;  %v4939_v13 = vsel %vm303_vm12, %v4938_v60, %v4937_v12 }
 0x94a   :  { %v4931_v36 = vadd.f32 %v4929_v56, %v4921_v53  ;;  %v5178_v56 = vstv %s8492_s26 }
 0x94c   :  { %v4941_v5 = vadd.f32 %v4939_v13, %v4931_v36  ;;  %v5201_v36 = vstv %s8494_s27 }
 0x94e   :  { %v4957_v47 = vpop.permute.xlu2 %4956  ;;  %v5060_v10 = vpop.permute.xlu1 %5059  ;;  %v4949_v62 = vadd.f32 %v5848_v44, %v4941_v5  ;;  %v5202_v44 = vmul.f32 %v5201_v36, %v8479_v34 }
 0x94f   :  { %v4958_v6 = vrot.slane %v4957_v47, 4  ;;  %v5061_v29 = vrot.slane %v5060_v10, 4 }
 0x951   :  { %v4959_v2 = vsel %vm263_vm11, %v4958_v6, %v4957_v47  ;;  %v5062_v61 = vsel %vm263_vm11, %v5061_v29, %v5060_v10  ;;  %v5179_v6 = vmul.f32 %v5178_v56, %v8475_v0 }
 0x952   :  { %v4961_v27 = vadd.f32 %v4959_v2, %v4949_v62  ;;  %v5064_v31 = vadd.f32 %v5062_v61, %v5054_v58 }
 0x956   :  { %v5070_v57 = vpop.permute.xlu2 %5069 }
 0x957   :  { %v5071_v63 = vrot.slane %v5070_v57, 4 }
 0x959   :  { %v5072_v40 = vsel %vm303_vm12, %v5071_v63, %v5070_v57 }
 0x95a   :  { %v5074_v55 = vadd.f32 %v5072_v40, %v5064_v31 }
 0x95c   :  { %v5082_v18 = vadd.f32 %v5857_v59, %v5074_v55 }
 0x95e   :  { %v5185_v4 = vpop.permute.xlu2 %5184 }
 0x95f   :  { %v5186_v25 = vrot.slane %v5185_v4, 4 }
 0x961   :  { %v5187_v13 = vsel %vm263_vm11, %v5186_v25, %v5185_v4 }
 0x962   :  { %v5189_v62 = vadd.f32 %v5187_v13, %v5179_v6 }
 0x966   :  { %v4969_v24 = vpop.permute.xlu0 %4968  ;;  %v5227_v0 = vpop.permute.xlu2 %5226 }
 0x967   :  { %v4970_v30 = vrot.slane %v4969_v24, 4  ;;  %v5102_v19 = vpop.permute.xlu1 %5101  ;;  %v5228_v34 = vrot.slane %v5227_v0, 4 }
 0x968   :  { %v5103_v26 = vrot.slane %v5102_v19, 4 }
 0x969   :  { %v4971_v1 = vsel %vm303_vm12, %v4970_v30, %v4969_v24  ;;  %v5867_v30 = vrot.slane %v5202_v44, 10 }
 0x96a   :  { %v4973_v51 = vadd.f32 %v4971_v1, %v4961_v27  ;;  %v5104_v7 = vsel %vm303_vm12, %v5103_v26, %v5102_v19 }
 0x96c   :  { %v4976_v42 = vadd.f32 %v4975_v41, %v4973_v51 }
 0x96e   :  { %5993 = vtanh.f32 %v4976_v42  ;;  %v5090_v9 = vpop.permute.xlu0 %5089  ;;  %v5340_v54 = vpop.permute.xlu2 %5339 }
 0x96f   :  { %v8489_v23 = vpop.permute.xlu1 %5214  ;;  %v5091_v35 = vrot.slane %v5090_v9, 4  ;;  %v5341_v59 = vrot.slane %v5340_v54, 4 }
 0x970   :  { %v5216_v1 = vrot.slane %v8489_v23, 4 }
 0x971   :  { %v5092_v3 = vsel %vm263_vm11, %v5091_v35, %v5090_v9  ;;  %v5229_v9 = vsel %vm303_vm12, %v5228_v34, %v5227_v0  ;;  %v5439_v34 = vld [vmem:[#allocation23 + $0x30] sm:$0xff] }
 0x972   :  { %v5094_v11 = vadd.f32 %v5092_v3, %v5082_v18  ;;  %v5217_v51 = vsel %vm263_vm11, %v5216_v1, %v8489_v23  ;;  %v5342_v3 = vsel %vm263_vm11, %v5341_v59, %v5340_v54  ;;  %v5441_v1 = vld [vmem:[#allocation23 + $0x40] sm:$0xff] }
 0x974   :  { %v5994_v33 = vpop.eup %5993  ;;  %v5106_v8 = vadd.f32 %v5104_v7, %v5094_v11  ;;  %v5358_v7 = vstv %s5882_s28 }
 0x975   :  { %4979 = vst [vmem:[#allocation1] ss:$2 sm:$0xff] %v5994_v33  ;;  %v4999_v49 = vmul.f32 %v5994_v33, %v5994_v33 }
 0x976   :  { %v5195_v16 = vpop.permute.xlu0 %5194  ;;  %v5109_v22 = vadd.f32 %v5108_v38, %v5106_v8 }
 0x977   :  { %v5320_v48 = vpop.permute.xlu1 %5319  ;;  %v5196_v53 = vrot.slane %v5195_v16, 4 }
 0x978   :  { %v5321_v17 = vrot.slane %v5320_v48, 4  ;;  %5995 = vtanh.f32 %v5109_v22 }
 0x979   :  { %v5197_v2 = vsel %vm303_vm12, %v5196_v53, %v5195_v16 }
 0x97a   :  { %v5322_v60 = vsel %vm303_vm12, %v5321_v17, %v5320_v48  ;;  %v5199_v24 = vadd.f32 %v5197_v2, %v5189_v62 }
 0x97c   :  { %v8496_v37 = vld.sshfl [vmem:[#allocation1] sm:$0xff pattern:$0x75316420]  ;;  %v8498_v28 = vld.sshfl [vmem:[#allocation1 + $0x8] sm:$0xff pattern:$0x75316420]  ;;  %v5207_v57 = vadd.f32 %v5867_v30, %v5199_v24 }
 0x97d   :  { %5001 = vst [vmem:[#allocation1] ss:$2 sm:$0xff] %v4999_v49 }
 0x97e   :  { %v5310_v52 = vpop.permute.xlu0 %5309  ;;  %v5996_v27 = vpop.eup %5995  ;;  %v5219_v29 = vadd.f32 %v5217_v51, %v5207_v57  ;;  %v5440_v57 = vld [vmem:[#allocation23 + $0x38] sm:$0xff] }
 0x97f   :  { %v5311_v32 = vrot.slane %v5310_v52, 4  ;;  %v5131_v42 = vmul.f32 %v5996_v27, %v5996_v27 }
 0x980   :  { %v5231_v61 = vadd.f32 %v5229_v9, %v5219_v29  ;;  %v5438_v29 = vld [vmem:[#allocation23 + $0x28] sm:$0xff]  ;;  %v5436_v9 = vld [vmem:[#allocation23 + $0x18] sm:$0xff] }
 0x981   :  { %v5312_v39 = vsel %vm263_vm11, %v5311_v32, %v5310_v52  ;;  %vm5447_vm11 = vcmask 1046528  }
 0x982   :  { %v5314_v12 = vadd.f32 %v5312_v39, %v5304_v43  ;;  %v5234_v58 = vadd.f32 %v5233_v45, %v5231_v61  ;;  %v5435_v45 = vld [vmem:[#allocation23 + $0x10] sm:$0xff] }
 0x984   :  { %v5324_v47 = vadd.f32 %v5322_v60, %v5314_v12  ;;  %v8507_v21 = vld.sshfl [vmem:[#allocation1] sm:$0xff pattern:$0x75316420]  ;;  %v8509_v10 = vld.sshfl [vmem:[#allocation1 + $0x8] sm:$0xff pattern:$0x75316420]  ;;  %5997 = vtanh.f32 %v5234_v58 }
 0x985   :  { %5042 = vst [vmem:[#allocation1] ss:$2 sm:$0xff] %v5994_v33 }
 0x986   :  { %v5332_v5 = vadd.f32 %v5877_v15, %v5324_v47  ;;  %v5352_v33 = vpop.permute.xlu0 %5351 }
 0x987   :  { %v5353_v16 = vrot.slane %v5352_v33, 4 }
 0x988   :  { %v5344_v18 = vadd.f32 %v5342_v3, %v5332_v5 }
 0x989   :  { %v5354_v11 = vsel %vm303_vm12, %v5353_v16, %v5352_v33  ;;  %v5433_v33 = vld [vmem:[#allocation23] sm:$0xff]  ;;  %vm5443_vm12 = vcmask 646144  }
 0x98a   :  { %v5998_v35 = vpop.eup %5997  ;;  %v5356_v46 = vadd.f32 %v5354_v11, %v5344_v18 }
 0x98b   :  { %v5256_v26 = vmul.f32 %v5998_v35, %v5998_v35 }
 0x98c   :  { %v5044_v19 = vld.sshfl [vmem:[#allocation1 + $0x8] sm:$0xff pattern:$0x75316420]  ;;  %v5043_v41 = vld.sshfl [vmem:[#allocation1] sm:$0xff pattern:$0x75316420]  ;;  %v5359_v14 = vadd.f32 %v5358_v7, %v5356_v46 }
 0x98d   :  { %5047 = vrot.lane.b32.xlu2 %v5044_v19, %s6326_s22  ;;  %5045 = vrot.lane.b32.xlu1 %v5043_v41, %s6326_s22  ;;  %5112 = vst [vmem:[#allocation1] ss:$2 sm:$0xff] %v5996_v27  ;;  %v5442_v41 = vld [vmem:[#allocation23 + $0x48] sm:$0x7f] }
 0x98e   :  { %5999 = vtanh.f32 %v5359_v14  ;;  %5883 = vmatpush.msk.msrb.mxu3 %vm5447_vm11, %v5442_v41 }
 0x990   :  { %5458 = vmatpush.msrb.mxu3 %v5441_v1 }
 0x992   :  { %5459 = vmatpush.msrb.mxu3 %v5440_v57 }
 0x994   :  { %v5113_v20 = vld.sshfl [vmem:[#allocation1] sm:$0xff pattern:$0x75316420]  ;;  %v5114_v63 = vld.sshfl [vmem:[#allocation1 + $0x8] sm:$0xff pattern:$0x75316420]  ;;  %v6000_v52 = vpop.eup %5999  ;;  %5460 = vmatpush.msrb.mxu3 %v5439_v34 }
 0x995   :  { %5133 = vst [vmem:[#allocation1] ss:$2 sm:$0xff] %v5131_v42  ;;  %v5381_v32 = vmul.f32 %v6000_v52, %v6000_v52 }
 0x996   :  { %5461 = vmatpush.msrb.mxu3 %v5438_v29  ;;  %v5494_v29 = vld [vmem:[#allocation24 + $0x48] sm:$0xff] }
 0x997   :  { %5509 = vmatpush.msrb.mxu2 %v5494_v29 }
 0x99c   :  { %v8521_v40 = vld.sshfl [vmem:[#allocation1] sm:$0xff pattern:$0x75316420]  ;;  %v5135_v31 = vld.sshfl [vmem:[#allocation1 + $0x8] sm:$0xff pattern:$0x75316420] }
 0x99d   :  { %5167 = vst [vmem:[#allocation1] ss:$2 sm:$0xff] %v5996_v27 }
 0x9a4   :  { %v5169_v55 = vld.sshfl [vmem:[#allocation1 + $0x8] sm:$0xff pattern:$0x75316420]  ;;  %v5168_v23 = vld.sshfl [vmem:[#allocation1] sm:$0xff pattern:$0x75316420] }
 0x9a5   :  { %5172 = vrot.lane.b32.xlu1 %v5169_v55, %s6326_s22  ;;  %5170 = vrot.lane.b32.xlu0 %v5168_v23, %s6326_s22  ;;  %5237 = vst [vmem:[#allocation1] ss:$2 sm:$0xff] %v5998_v35 }
 0x9ac   :  { %v5238_v49 = vld.sshfl [vmem:[#allocation1] sm:$0xff pattern:$0x75316420]  ;;  %v5239_v48 = vld.sshfl [vmem:[#allocation1 + $0x8] sm:$0xff pattern:$0x75316420] }
 0x9ad   :  { %5258 = vst [vmem:[#allocation1] ss:$2 sm:$0xff] %v5256_v26 }
 0x9b4   :  { %v8527_v4 = vld.sshfl [vmem:[#allocation1] sm:$0xff pattern:$0x75316420]  ;;  %v5260_v8 = vld.sshfl [vmem:[#allocation1 + $0x8] sm:$0xff pattern:$0x75316420] }
 0x9b5   :  { %5292 = vst [vmem:[#allocation1] ss:$2 sm:$0xff] %v5998_v35 }
 0x9bc   :  { %v5294_v38 = vld.sshfl [vmem:[#allocation1 + $0x8] sm:$0xff pattern:$0x75316420]  ;;  %v5293_v17 = vld.sshfl [vmem:[#allocation1] sm:$0xff pattern:$0x75316420] }
 0x9bd   :  { %5297 = vrot.lane.b32.xlu0 %v5294_v38, %s6326_s22  ;;  %5295 = vrot.lane.b32.xlu2 %v5293_v17, %s6326_s22  ;;  %5362 = vst [vmem:[#allocation1] ss:$2 sm:$0xff] %v6000_v52 }
 0x9c4   :  { %v8531_v50 = vld.sshfl [vmem:[#allocation1] sm:$0xff pattern:$0x75316420]  ;;  %v5364_v43 = vld.sshfl [vmem:[#allocation1 + $0x8] sm:$0xff pattern:$0x75316420] }
 0x9c5   :  { %5383 = vst [vmem:[#allocation1] ss:$2 sm:$0xff] %v5381_v32 }
 0x9cc   :  { %v5384_v25 = vld.sshfl [vmem:[#allocation1] sm:$0xff pattern:$0x75316420]  ;;  %v8533_v39 = vld.sshfl [vmem:[#allocation1 + $0x8] sm:$0xff pattern:$0x75316420] }
 0x9cd   :  { %5417 = vst [vmem:[#allocation1] ss:$2 sm:$0xff] %v6000_v52 }
 0x9d4   :  { %v5419_v22 = vld.sshfl [vmem:[#allocation1 + $0x8] sm:$0xff pattern:$0x75316420]  ;;  %v5418_v12 = vld.sshfl [vmem:[#allocation1] sm:$0xff pattern:$0x75316420] }
 0x9d5   :  { %5422 = vrot.lane.b32.xlu2 %v5419_v22, %s6326_s22  ;;  %5420 = vrot.lane.b32.xlu1 %v5418_v12, %s6326_s22  ;;  %v8590_v12 = vld [vmem:[%s8752_s12] sm:$0xff] }
 0x9dd   :  { %5117 = vrot.lane.b32.xlu2 %v5114_v63, %s6326_s22  ;;  %5115 = vrot.lane.b32.xlu1 %v5113_v20, %s6326_s22  ;;  %v5437_v63 = vld [vmem:[#allocation23 + $0x20] sm:$0xff] }
 0x9de   :  { %5462 = vmatpush.msrb.mxu3 %v5437_v63 }
 0x9e0   :  { %5463 = vmatpush.msrb.mxu3 %v5436_v9 }
 0x9e2   :  { %5464 = vmatpush.msrb.mxu3 %v5435_v45  ;;  %v5493_v45 = vld [vmem:[#allocation24 + $0x40] sm:$0xff] }
 0x9e3   :  { %5510 = vmatpush.msrb.mxu2 %v5493_v45 }
 0x9e5   :  { %4982 = vrot.lane.b32.xlu2 %v8496_v37, %s6326_s22  ;;  %5138 = vrot.lane.b32.xlu1 %v5135_v31, %s6326_s22 }
 0x9e7   :  { %v5048_v56 = vpop.permute.xlu2 %5047 }
 0x9ed   :  { %5006 = vrot.lane.b32.xlu2 %v8509_v10, %s6326_s22  ;;  %5004 = vrot.lane.b32.xlu1 %v8507_v21, %s6326_s22 }
 0x9f5   :  { %5386 = vrot.lane.b32.xlu2 %v5384_v25, %s6326_s22  ;;  %5367 = vrot.lane.b32.xlu1 %v5364_v43, %s6326_s22 }
 0x9fd   :  { %5242 = vrot.lane.b32.xlu2 %v5239_v48, %s6326_s22  ;;  %5240 = vrot.lane.b32.xlu1 %v5238_v49, %s6326_s22 }
 0x9ff   :  { %v5046_v53 = vpop.permute.xlu1 %5045 }
 0xa00   :  { %v5049_v37 = vsel %vm4986_vm1, %v5046_v53, %v5048_v56  ;;  %v8595_v56 = vld [vmem:[%s8752_s12 + $0x8] sm:$0xff] }
 0xa01   :  { %5051 = vst.msk [vmem:[#allocation7] sm:$0x3] %vm537_vm8, %v5049_v37  ;;  %v5921_v37 = vpack.i.bf16 %v8595_v56, %v8590_v12 }
 0xa05   :  { %5263 = vrot.lane.b32.xlu1 %v5260_v8, %s6326_s22 }
 0xa17   :  { %v5173_v60 = vpop.permute.xlu1 %5172  ;;  %v5171_v15 = vpop.permute.xlu0 %5170 }
 0xa18   :  { %v5174_v36 = vsel %vm4986_vm1, %v5171_v15, %v5173_v60  ;;  %v5296_v47 = vpop.permute.xlu2 %5295 }
 0xa19   :  { %5176 = vst.msk [vmem:[#allocation7 + $0x2] sm:$0x3] %vm537_vm8, %v5174_v36 }
 0xa2f   :  { %v5298_v21 = vpop.permute.xlu0 %5297  ;;  %v5423_v13 = vpop.permute.xlu2 %5422 }
 0xa30   :  { %v5299_v10 = vsel %vm4986_vm1, %v5296_v47, %v5298_v21 }
 0xa31   :  { %5301 = vst.msk [vmem:[#allocation7 + $0x4] sm:$0x3] %vm537_vm8, %v5299_v10  ;;  %v8604_v10 = vld [vmem:[%s8752_s12 + $0x30] sm:$0xff] }
 0xa37   :  { %v5118_v6 = vpop.permute.xlu2 %5117 }
 0xa3f   :  { %v4983_v30 = vpop.permute.xlu2 %4982 }
 0xa47   :  { %v5421_v5 = vpop.permute.xlu1 %5420  ;;  %v5007_v0 = vpop.permute.xlu2 %5006 }
 0xa48   :  { %v5424_v44 = vsel %vm4986_vm1, %v5421_v5, %v5423_v13  ;;  %v8609_v13 = vld [vmem:[%s8752_s12 + $0x38] sm:$0xff] }
 0xa49   :  { %5426 = vst.msk [vmem:[#allocation7 + $0x6] sm:$0x3] %vm537_vm8, %v5424_v44  ;;  %v5936_v44 = vpack.i.bf16 %v8609_v13, %v8604_v10 }
 0xa4f   :  { %v5116_v2 = vpop.permute.xlu1 %5115  ;;  %v5387_v61 = vpop.permute.xlu2 %5386 }
 0xa50   :  { %v5119_v62 = vsel %vm4986_vm1, %v5116_v2, %v5118_v6  ;;  %v5427_v24 = vld [vmem:[#allocation7] sm:$0xff] }
 0xa51   :  { %5429 = vrot.lane.b32.xlu0 %v5427_v24, %s6320_s0  ;;  %v5121_v27 = vsel %vm537_vm8, %v5119_v62, 0.0  ;;  %v8616_v62 = vld [vmem:[%s8752_s12 + $0x20] sm:$0xff] }
 0xa52   :  { %5122 = vadd.xlane.f32.xlu2 %v5121_v27 }
 0xa57   :  { %v5139_v19 = vpop.permute.xlu1 %5138  ;;  %v5243_v31 = vpop.permute.xlu2 %5242 }
 0xa59   :  { %5136 = vrot.lane.b32.xlu0 %v8521_v40, %s6326_s22  ;;  %v5434_v40 = vld [vmem:[#allocation23 + $0x8] sm:$0xff] }
 0xa5a   :  { %5465 = vmatpush.msrb.mxu3 %v5434_v40  ;;  %v8636_v40 = vld [vmem:[%s8752_s12 + $0x40] sm:$0xff] }
 0xa5c   :  { %5466 = vmatpush.msrb.mxu3 %v5433_v33 }
 0xa5f   :  { %v5005_v51 = vpop.permute.xlu1 %5004 }
 0xa60   :  { %v5008_v42 = vsel %vm4986_vm1, %v5005_v51, %v5007_v0 }
 0xa61   :  { %4984 = vrot.lane.b32.xlu0 %v8498_v28, %s6326_s22  ;;  %v5010_v20 = vsel %vm537_vm8, %v5008_v42, 0.0 }
 0xa62   :  { %5011 = vadd.xlane.f32.xlu2 %v5010_v20 }
 0xa67   :  { %v5368_v58 = vpop.permute.xlu1 %5367 }
 0xa69   :  { %5365 = vrot.lane.b32.xlu0 %v8531_v50, %s6326_s22  ;;  %v6327_v50 = vmov 160.0  }
 0xa6a   :  { %6001 = vrcp.f32 %v6327_v50 }
 0xa6f   :  { %v5241_v54 = vpop.permute.xlu1 %5240 }
 0xa70   :  { %v5244_v28 = vsel %vm4986_vm1, %v5241_v54, %v5243_v31  ;;  %v8643_v54 = vld [vmem:[%s8752_s12 + $0x48] sm:$0xff] }
 0xa71   :  { %5388 = vrot.lane.b32.xlu0 %v8533_v39, %s6326_s22  ;;  %v5246_v35 = vsel %vm537_vm8, %v5244_v28, 0.0  ;;  %v6002_v39 = vpop.eup %6001 }
 0xa72   :  { %5247 = vadd.xlane.f32.xlu2 %v5246_v35  ;;  %v5021_v53 = vmul.f32 160.0, %v6002_v39 }
 0xa74   :  { %v5022_v36 = vsub.f32 1.0, %v5021_v53 }
 0xa76   :  { %v5023_v6 = vmul.f32 %v6002_v39, %v5022_v36 }
 0xa77   :  { %v5264_v8 = vpop.permute.xlu1 %5263 }
 0xa78   :  { %v5024_v1 = vadd.f32 %v6002_v39, %v5023_v6 }
 0xa79   :  { %5261 = vrot.lane.b32.xlu0 %v8527_v4, %s6326_s22 }
 0xac3   :  { %v5430_v55 = vpop.permute.xlu0 %5429 }
 0xac4   :  { %v5432_v23 = vmax.f32 %v5427_v24, %v5430_v55  ;;  %v8621_v24 = vld [vmem:[%s8752_s12 + $0x28] sm:$0xff] }
 0xac5   :  { %v5123_v32 = vpop.xlane.xlu2 %5122  ;;  %v5931_v27 = vpack.i.bf16 %v8621_v24, %v8616_v62 }
 0xac6   :  { %5884 = vmatmul.msk.f32.vlgmr.msrb.gmra.mxu3 %vm5443_vm12, %v5432_v23  ;;  %v5124_v43 = vsel %vm210_vm3, %v5123_v32, 0.0  ;;  %v5492_v23 = vld [vmem:[#allocation24 + $0x38] sm:$0xff]  ;;  %vm5623_vm12 = vcmask 736256  }
 0xac7   :  { %v5125_v25 = vrot.slane %v5124_v43, 4  ;;  %5511 = vmatpush.msrb.mxu2 %v5492_v23 }
 0xac9   :  { %v5126_v22 = vadd.f32 %v5125_v25, %v5124_v43 }
 0xacb   :  { %v5137_v59 = vpop.permute.xlu0 %5136  ;;  %v5127_v15 = vrot.slane %v5126_v22, 2 }
 0xacc   :  { %v5140_v16 = vsel %vm4986_vm1, %v5137_v59, %v5139_v19  ;;  %v5941_v59 = vpack.i.bf16 %v8643_v54, %v8636_v40 }
 0xacd   :  { %v5142_v3 = vsel %vm537_vm8, %v5140_v16, 0.0  ;;  %v5128_v21 = vadd.f32 %v5127_v15, %v5126_v22  ;;  %v5487_v15 = vld [vmem:[#allocation24 + $0x10] sm:$0xff] }
 0xace   :  { %5143 = vadd.xlane.f32.xlu0 %v5142_v3 }
 0xacf   :  { %v5129_v19 = vrot.slane %v5128_v21, 1 }
 0xad1   :  { %v5130_v34 = vadd.f32 %v5129_v19, %v5128_v21  ;;  %v5486_v21 = vld [vmem:[#allocation24 + $0x8] sm:$0xff] }
 0xad2   :  { %v8669_v19 = vld [vmem:[%s8752_s12 + $0x10] sm:$0xff] }
 0xad3   :  { %v4985_v18 = vpop.permute.xlu0 %4984 }
 0xad4   :  { %v4987_v26 = vsel %vm4986_vm1, %v4983_v30, %v4985_v18 }
 0xad5   :  { %v4989_v11 = vsel %vm537_vm8, %v4987_v26, 0.0  ;;  %v5012_v60 = vpop.xlane.xlu2 %5011  ;;  %v5491_v26 = vld [vmem:[#allocation24 + $0x30] sm:$0xff] }
 0xad6   :  { %4990 = vadd.xlane.f32.xlu1 %v4989_v11  ;;  %v5013_v47 = vsel %vm210_vm3, %v5012_v60, 0.0  ;;  %5512 = vmatpush.msrb.mxu2 %v5491_v26 }
 0xad7   :  { %v5014_v5 = vrot.slane %v5013_v47, 4 }
 0xad9   :  { %v5015_v0 = vadd.f32 %v5014_v5, %v5013_v47 }
 0xadb   :  { %v5366_v49 = vpop.permute.xlu0 %5365  ;;  %v5016_v20 = vrot.slane %v5015_v0, 2 }
 0xadc   :  { %v5369_v48 = vsel %vm4986_vm1, %v5366_v49, %v5368_v58  ;;  %v5663_v58 = vld [vmem:[%s8752_s12 + $0x58] sm:$0x3] }
 0xadd   :  { %v5371_v46 = vsel %vm537_vm8, %v5369_v48, 0.0  ;;  %v5017_v16 = vadd.f32 %v5016_v20, %v5015_v0 }
 0xade   :  { %5372 = vadd.xlane.f32.xlu0 %v5371_v46 }
 0xae3   :  { %v5389_v7 = vpop.permute.xlu0 %5388 }
 0xae4   :  { %v5390_v14 = vsel %vm4986_vm1, %v5387_v61, %v5389_v7  ;;  %v5490_v7 = vld [vmem:[#allocation24 + $0x28] sm:$0xff] }
 0xae5   :  { %v5392_v4 = vsel %vm537_vm8, %v5390_v14, 0.0  ;;  %v5248_v35 = vpop.xlane.xlu2 %5247  ;;  %v5018_v14 = vrot.slane %v5017_v16, 1  ;;  %5513 = vmatpush.msrb.mxu2 %v5490_v7 }
 0xae6   :  { %5393 = vadd.xlane.f32.xlu1 %v5392_v4  ;;  %v5249_v11 = vsel %vm210_vm3, %v5248_v35, 0.0  ;;  %v5574_v35 = vld [vmem:[#allocation24 + $0x98] sm:$0xff] }
 0xae7   :  { %v5250_v4 = vrot.slane %v5249_v11, 4  ;;  %v5019_v22 = vadd.f32 %v5018_v14, %v5017_v16  ;;  %5589 = vmatpush.msra.mxu2 %v5574_v35  ;;  %v5573_v16 = vld [vmem:[#allocation24 + $0x90] sm:$0xff]  ;;  %v5571_v14 = vld [vmem:[#allocation24 + $0x80] sm:$0xff] }
 0xae9   :  { %v5251_v53 = vadd.f32 %v5250_v4, %v5249_v11  ;;  %5590 = vmatpush.msra.mxu2 %v5573_v16  ;;  %v5572_v11 = vld [vmem:[#allocation24 + $0x88] sm:$0xff]  ;;  %v5545_v4 = vld [vmem:[#allocation24 + $0x70] sm:$0xff] }
 0xaeb   :  { %v5262_v52 = vpop.permute.xlu0 %5261  ;;  %v5252_v5 = vrot.slane %v5251_v53, 2  ;;  %5591 = vmatpush.msra.mxu2 %v5572_v11 }
 0xaec   :  { %v5265_v38 = vsel %vm4986_vm1, %v5262_v52, %v5264_v8 }
 0xaed   :  { %v5267_v17 = vsel %vm537_vm8, %v5265_v38, 0.0  ;;  %vm5025_vm8 = vweird.f32 %v6002_v39  ;;  %5592 = vmatpush.msra.mxu2 %v5571_v14 }
 0xaee   :  { %5268 = vadd.xlane.f32.xlu0 %v5267_v17  ;;  %v8628_v42 = vsel %vm5025_vm8, %v6002_v39, %v5024_v1  ;;  %v5489_v17 = vld [vmem:[#allocation24 + $0x20] sm:$0xff]  ;;  %v5488_v39 = vld [vmem:[#allocation24 + $0x18] sm:$0xff]  ;;  %vm5650_vm8 = vcmask 58368  }
 0xaef   :  { %v8647_v28 = vmul.f32 %v5130_v34, %v8628_v42  ;;  %5532 = vmatpush.msrb.mxu1 %v5489_v17  ;;  %v5028_v6 = vmul.f32 %v8628_v42, %v5019_v22 }
 0xaf1   :  { %v5154_v49 = vmul.f32 %v8647_v28, %v8647_v28  ;;  %5533 = vmatpush.msrb.mxu1 %v5488_v39 }
 0xaf3   :  { %5534 = vmatpush.msrb.mxu1 %v5487_v15 }
 0xaf5   :  { %5535 = vmatpush.msrb.mxu1 %v5486_v21 }
 0xaff   :  { %5922 = vrot.lane.b32.xlu1 %v5921_v37, %s6328_s11 }
 0xb02   :  { %5932 = vrot.lane.b32.xlu0 %v5931_v27, %s6328_s11  ;;  %v5485_v27 = vld [vmem:[#allocation24] sm:$0xff] }
 0xb03   :  { %5536 = vmatpush.msrb.mxu1 %v5485_v27 }
 0xb05   :  { %5560 = vmatpush.msra.mxu1 %v5545_v4 }
 0xb07   :  { %5937 = vrot.lane.b32.xlu1 %v5936_v44, %s6328_s11 }
 0xb0a   :  { %5942 = vrot.lane.b32.xlu0 %v5941_v59, %s6328_s11 }
 0xb0f   :  { %5701 = vrot.lane.b32.xlu1 %v5663_v58, %s6328_s11 }
 0xb41   :  { %v5144_v2 = vpop.xlane.xlu0 %5143 }
 0xb42   :  { %v5145_v30 = vsel %vm210_vm3, %v5144_v2, 0.0 }
 0xb43   :  { %v5146_v41 = vrot.slane %v5145_v30, 4 }
 0xb45   :  { %v5147_v57 = vadd.f32 %v5146_v41, %v5145_v30  ;;  %v8674_v41 = vld [vmem:[%s8752_s12 + $0x18] sm:$0xff] }
 0xb46   :  { %v5926_v0 = vpack.i.bf16 %v8674_v41, %v8669_v19 }
 0xb47   :  { %v5148_v51 = vrot.slane %v5147_v57, 2 }
 0xb48   :  { %5927 = vrot.lane.b32.xlu2 %v5926_v0, %s6328_s11 }
 0xb49   :  { %v5149_v63 = vadd.f32 %v5148_v51, %v5147_v57  ;;  %v5468_v9 = vpop.f32.mrf.mxu3  ;;  %v4991_v61 = vpop.xlane.xlu1 %4990 }
 0xb4a   :  { %v4992_v31 = vsel %vm210_vm3, %v4991_v61, 0.0  ;;  %5472 = vst.msk [vmem:[#allocation7] sm:$0xff] %vm5471_vm14, %v5468_v9 }
 0xb4b   :  { %v5150_v33 = vrot.slane %v5149_v63, 1  ;;  %v4993_v55 = vrot.slane %v4992_v31, 4 }
 0xb4d   :  { %v5151_v3 = vadd.f32 %v5150_v33, %v5149_v63  ;;  %v4994_v18 = vadd.f32 %v4993_v55, %v4992_v31  ;;  %v5253_v63 = vadd.f32 %v5252_v5, %v5251_v53 }
 0xb4f   :  { %v5153_v48 = vmul.f32 %v5151_v3, %v8628_v42  ;;  %v4995_v46 = vrot.slane %v4994_v18, 2  ;;  %v5254_v55 = vrot.slane %v5253_v63, 1 }
 0xb51   :  { %v5155_v8 = vsub.f32 %v5153_v48, %v5154_v49  ;;  %v4996_v52 = vadd.f32 %v4995_v46, %v4994_v18  ;;  %v5373_v38 = vpop.xlane.xlu0 %5372  ;;  %v5476_v26 = vld [vmem:[#allocation7 + $0x2] sm:$0x3]  ;;  %v8688_v49 = vld [vmem:[%s8752_s12 + $0x50] sm:$0xff]  ;;  %v5255_v39 = vadd.f32 %v5254_v55, %v5253_v63  ;;  %v5479_v14 = vld [vmem:[#allocation7 + $0x4] sm:$0x3] }
 0xb52   :  { %v5374_v32 = vsel %vm210_vm3, %v5373_v38, 0.0  ;;  %5699 = vrot.lane.b32.xlu2 %v8688_v49, %s6328_s11 }
 0xb53   :  { %v8657_v50 = vadd.f32 1e-05, %v5155_v8  ;;  %v4997_v43 = vrot.slane %v4996_v52, 1  ;;  %v5375_v25 = vrot.slane %v5374_v32, 4 }
 0xb55   :  { %6003 = vrsqrt.f32 %v8657_v50  ;;  %v4998_v37 = vadd.f32 %v4997_v43, %v4996_v52  ;;  %v5376_v60 = vadd.f32 %v5375_v25, %v5374_v32  ;;  %vm5163_vm5 = vweird.f32 %v8657_v50  ;;  %v5544_v52 = vld [vmem:[#allocation24 + $0x68] sm:$0xff]  ;;  %v5570_v25 = vld [vmem:[#allocation24 + $0x78] sm:$0xff] }
 0xb56   :  { %v5477_v43 = vsub.f32 %v5476_v26, %v8647_v28  ;;  %5561 = vmatpush.msra.mxu1 %v5544_v52  ;;  %5593 = vmatpush.msra.mxu2 %v5570_v25 }
 0xb57   :  { %v8661_v36 = vmul.f32 %v8628_v42, %v4998_v37  ;;  %v5377_v47 = vrot.slane %v5376_v60, 2 }
 0xb59   :  { %v5029_v44 = vmul.f32 %v8661_v36, %v8661_v36  ;;  %v5378_v2 = vadd.f32 %v5377_v47, %v5376_v60  ;;  %v5394_v30 = vpop.xlane.xlu1 %5393 }
 0xb5a   :  { %v5395_v1 = vsel %vm210_vm3, %v5394_v30, 0.0  ;;  %v5277_v30 = vmul.f32 %v5255_v39, %v8628_v42 }
 0xb5b   :  { %v6004_v57 = vpop.eup %6003  ;;  %v5030_v34 = vsub.f32 %v5028_v6, %v5029_v44  ;;  %v5379_v51 = vrot.slane %v5378_v2, 1  ;;  %v5396_v29 = vrot.slane %v5395_v1, 4  ;;  %v5542_v6 = vld [vmem:[#allocation24 + $0x58] sm:$0xff] }
 0xb5c   :  { %v5158_v20 = vmul.f32 %v6004_v57, %v8657_v50  ;;  %vm5164_vm15 = vweird.f32 %v6004_v57  ;;  %v5543_v50 = vld [vmem:[#allocation24 + $0x60] sm:$0xff] }
 0xb5d   :  { %v8681_v9 = vadd.f32 1e-05, %v5030_v34  ;;  %v5397_v61 = vadd.f32 %v5396_v29, %v5395_v1  ;;  %v5380_v58 = vadd.f32 %v5379_v51, %v5378_v2  ;;  %vm5165_vm0 = vmor %vm5163_vm5, %vm5164_vm15  ;;  %5562 = vmatpush.msra.mxu1 %v5543_v50  ;;  %v5541_v2 = vld [vmem:[#allocation24 + $0x50] sm:$0xff]  ;;  %v5473_v51 = vld [vmem:[#allocation7] sm:$0x3]  ;;  %v5279_v29 = vmul.f32 %v5277_v30, %v5277_v30 }
 0xb5e   :  { %v5159_v45 = vmul.f32 %v6004_v57, %v5158_v20  ;;  %v5474_v63 = vsub.f32 %v5473_v51, %v8661_v36 }
 0xb5f   :  { %6005 = vrsqrt.f32 %v8681_v9  ;;  %v5398_v31 = vrot.slane %v5397_v61, 2  ;;  %v8691_v48 = vmul.f32 %v5380_v58, %v8628_v42  ;;  %5563 = vmatpush.msra.mxu1 %v5542_v6  ;;  %vm5038_vm9 = vweird.f32 %v8681_v9 }
 0xb60   :  { %v5160_v33 = vmul.f32 0.5, %v5159_v45 }
 0xb61   :  { %v5399_v23 = vadd.f32 %v5398_v31, %v5397_v61  ;;  %v5269_v59 = vpop.xlane.xlu0 %5268  ;;  %v5404_v37 = vmul.f32 %v8691_v48, %v8691_v48  ;;  %5564 = vmatpush.msra.mxu1 %v5541_v2 }
 0xb62   :  { %v5161_v3 = vsub.f32 1.5, %v5160_v33  ;;  %v5270_v18 = vsel %vm210_vm3, %v5269_v59, 0.0 }
 0xb63   :  { %v5400_v46 = vrot.slane %v5399_v23, 1  ;;  %v5271_v7 = vrot.slane %v5270_v18, 4 }
 0xb64   :  { %v5162_v8 = vmul.f32 %v6004_v57, %v5161_v3  ;;  %v5482_v3 = vld [vmem:[#allocation7 + $0x6] sm:$0x3] }
 0xb65   :  { %v6006_v38 = vpop.eup %6005  ;;  %v5401_v17 = vadd.f32 %v5400_v46, %v5399_v23  ;;  %v5272_v32 = vadd.f32 %v5271_v7, %v5270_v18  ;;  %v5483_v36 = vsub.f32 %v5482_v3, %v8691_v48 }
 0xb66   :  { %v5033_v22 = vmul.f32 %v6006_v38, %v8681_v9  ;;  %v5166_v53 = vsel %vm5165_vm0, %v6004_v57, %v5162_v8  ;;  %vm5039_vm6 = vweird.f32 %v6006_v38  ;;  %v5480_v8 = vsub.f32 %v5479_v14, %v5277_v30 }
 0xb67   :  { %v5403_v60 = vmul.f32 %v5401_v17, %v8628_v42  ;;  %v5273_v15 = vrot.slane %v5272_v32, 2  ;;  %v5478_v47 = vmul.f32 %v5477_v43, %v5166_v53  ;;  %vm5040_vm10 = vmor %vm5038_vm9, %vm5039_vm6 }
 0xb68   :  { %v5034_v21 = vmul.f32 %v6006_v38, %v5033_v22 }
 0xb69   :  { %v5405_v28 = vsub.f32 %v5403_v60, %v5404_v37  ;;  %v5274_v5 = vadd.f32 %v5273_v15, %v5272_v32  ;;  %5885 = vmatmul.msk.f32.vlgmr.msrb.gmra.mxu2 %vm5471_vm14, %v5478_v47 }
 0xb6a   :  { %v5035_v44 = vmul.f32 0.5, %v5034_v21 }
 0xb6b   :  { %v5406_v27 = vadd.f32 1e-05, %v5405_v28  ;;  %v5275_v1 = vrot.slane %v5274_v5, 1 }
 0xb6c   :  { %v5036_v0 = vsub.f32 1.5, %v5035_v44  ;;  %v5618_v44 = vld [vmem:[%s8752_s12 + $0x58] sm:$0x3] }
 0xb6d   :  { %6007 = vrsqrt.f32 %v5406_v27  ;;  %v5276_v57 = vadd.f32 %v5275_v1, %v5274_v5  ;;  %vm5413_vm7 = vweird.f32 %v5406_v27  ;;  %5889 = vmatpush.msk.msra.mxu3 %vm210_vm3, %v5618_v44 }
 0xb6e   :  { %v5037_v34 = vmul.f32 %v6006_v38, %v5036_v0 }
 0xb6f   :  { %v5278_v20 = vmul.f32 %v5276_v57, %v8628_v42  ;;  %5635 = vmatpush.msra.mxu3 %v8688_v49  ;;  %v5948_v57 = vld [vmem:[%s8753_s13] ss:$0 sm:$0xff] }
 0xb70   :  { %v5041_v61 = vsel %vm5040_vm10, %v6006_v38, %v5037_v34 }
 0xb71   :  { %v5280_v45 = vsub.f32 %v5278_v20, %v5279_v29  ;;  %v5475_v58 = vmul.f32 %v5474_v63, %v5041_v61  ;;  %v5923_v17 = vpop.permute.xlu1 %5922  ;;  %5636 = vmatpush.msra.mxu3 %v8643_v54 }
 0xb72   :  { %v5925_v28 = vunpack.i.h.bf16 %v5923_v17  ;;  %v5924_v5 = vunpack.i.l.bf16 %v5923_v17 }
 0xb73   :  { %v6008_v31 = vpop.eup %6007  ;;  %v5281_v35 = vadd.f32 1e-05, %v5280_v45  ;;  %5886 = vmatmul.msk.f32.vlgmr.msrb.gmra.mxu1 %vm5471_vm14, %v5475_v58  ;;  %5637 = vmatpush.msra.mxu3 %v8636_v40  ;;  %v5947_v40 = vld [vmem:[%s8753_s13] ss:$0 sm:$0xff] }
 0xb74   :  { %v5408_v33 = vmul.f32 %v6008_v31, %v5406_v27  ;;  %vm5414_vm2 = vweird.f32 %v6008_v31  ;;  %v5933_v43 = vpop.permute.xlu0 %5932  ;;  %5714 = vrot.lane.b32.xlu0 %v5947_v40, %s6328_s11  ;;  %s5747_s11 = sshll.u32 %s6329_s9, 4  ;;  %s5748_s11 = int_to_ptr.vmem [resolvable:$true] %s5747_s11 }
 0xb75   :  { %6009 = vrsqrt.f32 %v5281_v35  ;;  %vm5415_vm4 = vmor %vm5413_vm7, %vm5414_vm2  ;;  %vm5288_vm1 = vweird.f32 %v5281_v35  ;;  %v5935_v15 = vunpack.i.h.bf16 %v5933_v43  ;;  %v5934_v47 = vunpack.i.l.bf16 %v5933_v43  ;;  %5638 = vmatpush.msra.mxu3 %v8609_v13 }
 0xb76   :  { %v5409_v55 = vmul.f32 %v6008_v31, %v5408_v33 }
 0xb77   :  { %5639 = vmatpush.msra.mxu3 %v8604_v10 }
 0xb78   :  { %v5410_v23 = vmul.f32 0.5, %v5409_v55 }
 0xb79   :  { %v5938_v32 = vpop.permute.xlu1 %5937  ;;  %5640 = vmatpush.msra.mxu3 %v8621_v24 }
 0xb7a   :  { %v5411_v59 = vsub.f32 1.5, %v5410_v23  ;;  %v5940_v37 = vunpack.i.h.bf16 %v5938_v32  ;;  %v5939_v60 = vunpack.i.l.bf16 %v5938_v32 }
 0xb7b   :  { %v6010_v9 = vpop.eup %6009  ;;  %5641 = vmatpush.msra.mxu3 %v8616_v62  ;;  %v5946_v62 = vld [vmem:[#allocation26] ss:$0 sm:$0xff] }
 0xb7c   :  { %v5283_v16 = vmul.f32 %v6010_v9, %v5281_v35  ;;  %v5412_v42 = vmul.f32 %v6008_v31, %v5411_v59  ;;  %vm5289_vm13 = vweird.f32 %v6010_v9  ;;  %v5943_v22 = vpop.permute.xlu0 %5942 }
 0xb7d   :  { %vm5290_vm11 = vmor %vm5288_vm1, %vm5289_vm13  ;;  %v5945_v53 = vunpack.i.h.bf16 %v5943_v22  ;;  %v5944_v50 = vunpack.i.l.bf16 %v5943_v22  ;;  %5642 = vmatpush.msra.mxu3 %v8674_v41 }
 0xb7e   :  { %v5284_v18 = vmul.f32 %v6010_v9, %v5283_v16  ;;  %v5416_v26 = vsel %vm5415_vm4, %v6008_v31, %v5412_v42 }
 0xb7f   :  { %v5484_v11 = vmul.f32 %v5483_v36, %v5416_v26  ;;  %5643 = vmatpush.msra.mxu3 %v8669_v19 }
 0xb80   :  { %v5285_v46 = vmul.f32 0.5, %v5284_v18 }
 0xb81   :  { %5888 = vmatmul.msk.f32.vlgmr.msra.gmra.mxu2 %vm5471_vm14, %v5484_v11  ;;  %v5702_v25 = vpop.permute.xlu1 %5701  ;;  %5644 = vmatpush.msra.mxu3 %v8595_v56 }
 0xb82   :  { %v5286_v7 = vsub.f32 1.5, %v5285_v46  ;;  %5891 = vmatpush.msk.msrb.mxu0 %vm210_vm3, %v5702_v25 }
 0xb83   :  { %5645 = vmatpush.msra.mxu3 %v8590_v12 }
 0xb84   :  { %v5287_v4 = vmul.f32 %v6010_v9, %v5286_v7 }
 0xb86   :  { %v5291_v52 = vsel %vm5290_vm11, %v6010_v9, %v5287_v4 }
 0xb87   :  { %v5481_v38 = vmul.f32 %v5480_v8, %v5291_v52 }
 0xb89   :  { %5887 = vmatmul.msk.f32.vlgmr.msra.gmra.mxu1 %vm5471_vm14, %v5481_v38 }
 0xba2   :  { %v5928_v48 = vpop.permute.xlu2 %5927 }
 0xba3   :  { %v5930_v21 = vunpack.i.h.bf16 %v5928_v48  ;;  %v5929_v6 = vunpack.i.l.bf16 %v5928_v48 }
 0xbac   :  { %v5700_v39 = vpop.permute.xlu2 %5699 }
 0xbad   :  { %5724 = vmatpush.msrb.mxu0 %v5700_v39 }
 0xbaf   :  { %5725 = vmatpush.msrb.mxu0 %v5945_v53 }
 0xbb1   :  { %5726 = vmatpush.msrb.mxu0 %v5944_v50 }
 0xbb3   :  { %5727 = vmatpush.msrb.mxu0 %v5940_v37 }
 0xbb5   :  { %5728 = vmatpush.msrb.mxu0 %v5939_v60 }
 0xbb7   :  { %5729 = vmatpush.msrb.mxu0 %v5935_v15 }
 0xbb9   :  { %5730 = vmatpush.msrb.mxu0 %v5934_v47 }
 0xbbb   :  { %5731 = vmatpush.msrb.mxu0 %v5930_v21 }
 0xbbd   :  { %5732 = vmatpush.msrb.mxu0 %v5929_v6 }
 0xbbf   :  { %5733 = vmatpush.msrb.mxu0 %v5925_v28 }
 0xbc1   :  { %5734 = vmatpush.msrb.mxu0 %v5924_v5 }
 0xbe6   :  { %v5715_v12 = vpop.permute.xlu0 %5714 }
 0xbec   :  { %v5515_v10 = vpop.f32.mrf.mxu2 }
 0xbf0   :  { %v5538_v13 = vpop.f32.mrf.mxu1 }
 0xbf1   :  { %v5539_v54 = vadd.f32 %v5538_v13, %v5515_v10 }
 0xc04   :  { %v5595_v2 = vpop.f32.mrf.mxu2 }
 0xc06   :  { %v5566_v24 = vpop.f32.mrf.mxu1 }
 0xc07   :  { %v5569_v49 = vadd.f32 %v5566_v24, %v5539_v54 }
 0xc09   :  { %v5598_v41 = vadd.f32 %v5595_v2, %v5569_v49 }
 0xc0b   :  { %v5603_v30 = vadd.f32 %v5946_v62, %v5598_v41 }
 0xc0d   :  { %v5605_v19 = vmul.f32 0.1, %v5603_v30  ;;  %vm5604_vm3 = vcmp.ge.f32.partialorder %v5603_v30, 0.0 }
 0xc0f   :  { %v5606_v56 = vsel %vm5604_vm3, %v5603_v30, %v5605_v19 }
 0xc10   :  { %5890 = vmatmul.msk.f32.vlgmr.msra.gmra.mxu3 %vm5623_vm12, %v5606_v56  ;;  %5892 = vmatmul.msk.f32.vlgmr.msrb.gmra.mxu0 %vm5623_vm12, %v5606_v56 }
 0xc8d   :  { %v5736_v27 = vpop.f32.mrf.mxu0 }
 0xc8e   :  { %v5737_v1 = vadd.f32 %v5736_v27, %v5715_v12 }
 0xc90   :  { %v5739_v0 = vmul.f32 1.442695, %v5737_v1 }
 0xc92   :  { %6011 = vpow2.f32 %v5739_v0 }
 0xc93   :  { %v5647_v34 = vpop.f32.mrf.mxu3 }
 0xc94   :  { %v5648_v51 = vadd.f32 %v5948_v57, %v5647_v34 }
 0xc96   :  { %5651 = vst.msk [vmem:[#allocation27] sm:$0x3] %vm5650_vm8, %v5648_v51 }
 0xc97   :  { %5752 = dma.vmem_to_hbm [thread:$0]  %s5748_s11, 32, %s5750_s1, [#allocation10]  }
 0xc98   :  { %v6012_v29 = vpop.eup %6011 }
 0xc99   :  { %5741 = vst.msk [vmem:[#allocation28] sm:$0x3] %vm5650_vm8, %v6012_v29 }
 0xc9a   :  { %5763 = dma.vmem_to_hbm [thread:$0]  %s5759_s3, 32, %s5761_s2, [#allocation29]  }
 0xc9b   :  { %6299 = dma.done.wait [#allocation10], 32  }
 0xc9c   :  { %6300 = vsyncadd [#allocation10], 4294967264 }
 0xc9d   :  { %6301 = dma.done.wait [#allocation29], 32  }
 0xc9e   :  { %6302 = vsyncadd [#allocation29], 4294967264 }
 0xc9f   :  { %5772 = vsyncpa [#allocation9], 1 }
 0xca0   :  { %5773 = vsyncpa [#allocation22], 1 }
 0xca1   :  { %5774 = vsyncpa [#allocation25], 1 }
 0xca2   :  { %5775 = vsyncpa [#allocation10], 1 }
 0xca3   :  { %5776 = vsyncpa [#allocation29], 1 }
 0xca4   :  { %5777 = vsyncpa [#allocation11], 1 }
 0xca5   :  { %5778 = vsyncpa [#allocation17], 1 }
 0xca6   :  { %5779 = vsyncpa [#allocation12], 1 }
 0xca7   :  { %5780 = vsyncpa [#allocation15], 1 }

</bundles_post_ra>
